<compile_context>
chip_gen: v7x
topology: tpu7x:2x2x1
jax: 0.10.0
libtpu: 0.0.40
codegen_flags: <defaults>
</compile_context>

<pallas_src>
import functools

import jax
import jax.numpy as jnp
from jax.experimental import pallas as pl
from jax.experimental.pallas import tpu as pltpu

C_PAD = 128                         # lane-dense channel padding
BN_EPS = 1e-5
_STEP_VMEM_BUDGET = 8 * 1024 * 1024    # per-grid-step working-set cap (bytes)
_CACHE_VMEM_BUDGET = 16 * 1024 * 1024  # pass-0 conv-output cache cap (bytes)
_VMEM_LIMIT = 48 * 1024 * 1024         # safe on v7x (64 MiB) as well as v5e/v6e


# ----------------------------- Pallas kernel ------------------------------- #

def _conv3x3_acc(x_ref, xpad_ref, w_ref, *, B, H, W):
    """3x3 same-conv of the current tile: 9 shifted MXU matmuls, f32 accumulation.

    The halo border of xpad_ref was zeroed once at grid start and is never
    written again; only the interior is refreshed from x_ref here.
    """
    cin = w_ref.shape[1]
    cout = w_ref.shape[2]
    xpad_ref[:, 1:H + 1, 1:W + 1, :] = x_ref[...]
    m = B * H * W
    acc = jnp.zeros((m, cout), jnp.float32)
    for dx in range(3):
        # Hoist the expensive sublane (W) shift: one dx-slab reused by 3 dy taps.
        slab = xpad_ref[:, :, dx:dx + W, :]                    # (B, H+2, W, C)
        for dy in range(3):
            win = slab[:, dy:dy + H, :, :].reshape(m, cin)     # cheap outer-dim slice
            acc = acc + jnp.dot(win, w_ref[dy * 3 + dx],
                                preferred_element_type=jnp.float32)
    # NOTE: conv bias intentionally omitted — exactly cancelled by the BN mean.
    return acc


def _conv_bn_relu_pool_kernel(x_ref, w_ref, g_ref, b_ref, o_ref,
                              xpad_ref, sum_ref, sumsq_ref, cache_ref=None,
                              *, B, H, W, count):
    """Fused Conv3x3(pad=1) + training-mode BatchNorm + ReLU + MaxPool2x2.

    x_ref:     (B, H, W, C_PAD)        bf16 unpadded NHWC batch tile
    w_ref:     (9, C_PAD, C_PAD)       bf16 conv taps, k = dy*3 + dx (resident)
    g_ref:     (1, C_PAD)              f32 BN gamma (resident)
    b_ref:     (1, C_PAD)              f32 BN beta  (resident)
    o_ref:     (B, H//2, W//2, C_PAD)  bf16 pooled output tile
    xpad_ref:  (B, H+2, W+2, C_PAD)    bf16 halo scratch (border stays zero)
    sum_ref / sumsq_ref: (1, C_PAD)    f32 streamed BN statistics
    cache_ref: (n_tiles, B*H*W, C_PAD) bf16 pass-0 conv cache (None => recompute)
    """
    p = pl.program_id(0)   # 0 = stats pass, 1 = normalize + pool pass
    i = pl.program_id(1)   # batch-tile index
    cout = w_ref.shape[2]
    ho, wo = H // 2, W // 2

    @pl.when(jnp.logical_and(p == 0, i == 0))
    def _init():
        sum_ref[...] = jnp.zeros_like(sum_ref)
        sumsq_ref[...] = jnp.zeros_like(sumsq_ref)
        xpad_ref[...] = jnp.zeros_like(xpad_ref)   # halo border zeroed once

    @pl.when(p == 0)
    def _stats_pass():
        acc = _conv3x3_acc(x_ref, xpad_ref, w_ref, B=B, H=H, W=W)
        sum_ref[...] += jnp.sum(acc, axis=0, keepdims=True)
        sumsq_ref[...] += jnp.sum(acc * acc, axis=0, keepdims=True)
        if cache_ref is not None:
            cache_ref[i] = acc.astype(jnp.bfloat16)
        # Deterministic pass-0 output contents: the p*i output index_map no longer
        # depends on Pallas never flushing the pass-0 buffer (it is overwritten by
        # the valid pass-1 write before/after any possible writeback).
        o_ref[...] = jnp.zeros_like(o_ref)

    @pl.when(p == 1)
    def _normalize_relu_pool():
        if cache_ref is not None:
            acc = cache_ref[i].astype(jnp.float32)
        else:
            acc = _conv3x3_acc(x_ref, xpad_ref, w_ref, B=B, H=H, W=W)

        inv_count = jnp.float32(1.0 / count)
        mean = sum_ref[...] * inv_count                                  # (1, C)
        # One-pass variance (E[z^2] - mean^2) in f32, clamped at 0; matches
        # PyTorch's biased training-mode normalization.
        # TODO(synk): switch to Welford if cancellation matters at large batch.
        var = jnp.maximum(sumsq_ref[...] * inv_count - mean * mean, 0.0)
        inv_std = jax.lax.rsqrt(var + BN_EPS)
        scale = g_ref[...] * inv_std
        shift = b_ref[...] - mean * scale
        y = jnp.maximum(acc * scale + shift, 0.0)                        # (B*H*W, C)

        # Fused 2x2/stride-2 max-pool via reshapes + reduces (H, W always even here).
        y = y.reshape(B * ho, 2, W, cout)
        y = jnp.max(y, axis=1)                         # pool row pairs
        y = y.reshape(B * ho, wo, 2, cout)
        y = jnp.max(y, axis=2)                         # pool col (sublane) pairs
        o_ref[...] = y.reshape(B, ho, wo, cout).astype(o_ref.dtype)


# ------------------------------ Pallas wrapper ------------------------------ #

def _choose_batch_tile(n, h, w):
    """Largest divisor of n whose per-step working set fits the VMEM budget."""
    def step_bytes(b):
        m = b * h * w
        return (2 * m * C_PAD * 2                       # double-buffered input tile
                + 2 * (m // 4) * C_PAD * 2              # double-buffered output tile
                + b * (h + 2) * (w + 2) * C_PAD * 2     # halo scratch
                + m * C_PAD * 4                         # f32 conv accumulator
                + 3 * b * (h + 2) * w * C_PAD * 2)      # dx-shifted slabs
    for b in range(n, 0, -1):
        if n % b == 0 and step_bytes(b) <= _STEP_VMEM_BUDGET:
            return b
    return 1


def conv_block(x, w9, gamma, beta):
    """One CNN4 block.  x: (N, H, W, C_PAD) bf16 -> (N, H//2, W//2, C_PAD) bf16."""
    n, h, w, cp = x.shape
    assert cp == C_PAD and h % 2 == 0 and w % 2 == 0
    ho, wo = h // 2, w // 2

    b_tile = _choose_batch_tile(n, h, w)
    n_tiles = n // b_tile
    m = b_tile * h * w

    # Gate the pass-0 activation cache on VMEM fit; otherwise recompute in pass 1.
    cache_acc = (n * h * w * C_PAD * 2) <= _CACHE_VMEM_BUDGET

    kernel = functools.partial(_conv_bn_relu_pool_kernel,
                               B=b_tile, H=h, W=w, count=n * h * w)

    scratch = [pltpu.VMEM((b_tile, h + 2, w + 2, C_PAD), jnp.bfloat16),   # halo pad
               pltpu.VMEM((1, C_PAD), jnp.float32),                       # sum(z)
               pltpu.VMEM((1, C_PAD), jnp.float32)]                       # sum(z*z)
    if cache_acc:
        scratch.append(pltpu.VMEM((n_tiles, m, C_PAD), jnp.bfloat16))     # conv cache
        # Pass 1 reads the cache, not x: pin x to block 0 so it is not re-DMA'd.
        x_map = lambda p, i: ((1 - p) * i, 0, 0, 0)
    else:
        x_map = lambda p, i: (i, 0, 0, 0)

    return pl.pallas_call(
        kernel,
        out_shape=jax.ShapeDtypeStruct((n, ho, wo, C_PAD), jnp.bfloat16),
        grid_spec=pltpu.PrefetchScalarGridSpec(
            num_scalar_prefetch=0,
            grid=(2, n_tiles),                              # (pass, batch-tile)
            in_specs=[
                pl.BlockSpec((b_tile, h, w, C_PAD), x_map),
                pl.BlockSpec((9, C_PAD, C_PAD), lambda p, i: (0, 0, 0)),   # resident
                pl.BlockSpec((1, C_PAD), lambda p, i: (0, 0)),             # resident
                pl.BlockSpec((1, C_PAD), lambda p, i: (0, 0)),             # resident
            ],
            # Pass 0 maps every step to output block 0 (now written deterministically);
            # pass 1 writes the real blocks, which are flushed on index change / end.
            out_specs=pl.BlockSpec((b_tile, ho, wo, C_PAD),
                                   lambda p, i: (p * i, 0, 0, 0)),
            scratch_shapes=scratch,
        ),
        compiler_params=pltpu.CompilerParams(
            # Batch-statistic BN couples all tiles -> sequential two-pass grid.
            dimension_semantics=("arbitrary", "arbitrary"),
            vmem_limit_bytes=_VMEM_LIMIT,
        ),
    )(x, w9, gamma, beta)


# ------------------------------- Model glue -------------------------------- #

def init_params(key, x_dim=3, hid_dim=64, num_blocks=4):
    """Deterministic synthetic parameters, packed/padded for the kernel."""
    params = []
    cin = x_dim
    for _ in range(num_blocks):
        key, k1, k2, k3 = jax.random.split(key, 4)
        wconv = 0.1 * jax.random.normal(k1, (3, 3, cin, hid_dim), jnp.float32)
        bias = 0.01 * jax.random.normal(k2, (hid_dim,), jnp.float32)  # cancelled by BN mean
        gamma = jax.random.uniform(k3, (hid_dim,), jnp.float32)       # l2l BN weight ~ U(0,1)
        beta = jnp.zeros((hid_dim,), jnp.float32)

        w9 = jnp.zeros((9, C_PAD, C_PAD), jnp.float32)
        w9 = w9.at[:, :cin, :hid_dim].set(wconv.reshape(9, cin, hid_dim))
        g = jnp.zeros((1, C_PAD), jnp.float32).at[0, :hid_dim].set(gamma)
        bt = jnp.zeros((1, C_PAD), jnp.float32).at[0, :hid_dim].set(beta)

        params.append({"w9": w9.astype(jnp.bfloat16), "gamma": g, "beta": bt,
                       "bias": bias, "cout": hid_dim})
        cin = hid_dim
    return params


def convnet_forward(x_nchw, params):
    """Equivalent of Convnet.forward: encoder(x) then flatten per-sample."""
    n, c, h, w = x_nchw.shape
    x = jnp.transpose(x_nchw, (0, 2, 3, 1)).astype(jnp.float32)        # NCHW -> NHWC
    x = jnp.pad(x, ((0, 0), (0, 0), (0, 0), (0, C_PAD - c)))           # lane-dense channels
    x = x.astype(jnp.bfloat16)

    for p in params:
        # p["bias"] is mathematically a no-op under training-mode BN -> not applied.
        x = conv_block(x, p["w9"], p["gamma"], p["beta"])

    cout = params[-1]["cout"]
    x = x[..., :cout].astype(jnp.float32)            # drop channel padding
    x = jnp.transpose(x, (0, 3, 1, 2))               # NHWC -> NCHW
    return x.reshape(x.shape[0], -1)                 # torch x.view(x.size(0), -1)


# ---------------------------------- main ------------------------------------ #

if __name__ == "__main__":
    key = jax.random.PRNGKey(0)
    k_x, k_p = jax.random.split(key)

    # small, module-consistent shapes: batch=2, channels=x_dim=3, spatial=16x16
    x = jax.random.normal(k_x, (2, 3, 16, 16), jnp.float32)   # NCHW, like PyTorch
    params = init_params(k_p, x_dim=3, hid_dim=64, num_blocks=4)

    out = convnet_forward(x, params)
    out = jax.block_until_ready(out)

    # 16 -> 8 -> 4 -> 2 -> 1 spatial; flattened features = 64 * 1 * 1
    assert out.shape == (2, 64), out.shape
    assert jnp.isfinite(out).all()
    print("KERNEL_OK")
</pallas_src>

<mosaic_0001>
module attributes {stable_mosaic.version = 11 : i64} {
  func.func @_conv_bn_relu_pool_kernel(%arg0: i32, %arg1: i32, %arg2: memref<2x16x16x128xbf16, #tpu.memory_space<vmem>>, %arg3: memref<9x128x128xbf16, #tpu.memory_space<vmem>>, %arg4: memref<1x128xf32, #tpu.memory_space<vmem>>, %arg5: memref<1x128xf32, #tpu.memory_space<vmem>>, %arg6: memref<2x8x8x128xbf16, #tpu.memory_space<vmem>>, %arg7: memref<2x18x18x128xbf16, #tpu.memory_space<vmem>>, %arg8: memref<1x128xf32, #tpu.memory_space<vmem>>, %arg9: memref<1x128xf32, #tpu.memory_space<vmem>>, %arg10: memref<1x512x128xbf16, #tpu.memory_space<vmem>>) attributes {dimension_semantics = [#tpu.dimension_semantics<arbitrary>, #tpu.dimension_semantics<arbitrary>], iteration_bounds = array<i64: 2, 1>, scalar_prefetch = 0 : i64, scratch_operands = 4 : i64, tpu.core_type = #tpu.core_type<tc>, window_params = [{transform_indices = @transform_0, window_bounds = array<i64: 2, 16, 16, 128>}, {pipeline_mode = #tpu.pipeline_mode<synchronous>, transform_indices = @transform_1, window_bounds = array<i64: 9, 128, 128>}, {pipeline_mode = #tpu.pipeline_mode<synchronous>, transform_indices = @transform_2, window_bounds = array<i64: 1, 128>}, {pipeline_mode = #tpu.pipeline_mode<synchronous>, transform_indices = @transform_3, window_bounds = array<i64: 1, 128>}, {transform_indices = @transform_4, window_bounds = array<i64: 2, 8, 8, 128>}]} {
    %c0_i32 = arith.constant 0 : i32
    %0 = arith.cmpi eq, %arg0, %c0_i32 : i32
    %c0_i32_0 = arith.constant 0 : i32
    %1 = arith.cmpi eq, %arg1, %c0_i32_0 : i32
    %2 = arith.andi %0, %1 : i1
    %3 = arith.extui %2 : i1 to i32
    %c0_i32_1 = arith.constant 0 : i32
    %4 = arith.cmpi ne, %3, %c0_i32_1 : i32
    scf.if %4 {
      %cst = arith.constant 0.000000e+00 : f32
      %11 = vector.broadcast %cst : f32 to vector<1x128xf32>
      %c0 = arith.constant 0 : index
      %c0_5 = arith.constant 0 : index
      %12 = vector.load %arg8[%c0, %c0_5] : memref<1x128xf32, #tpu.memory_space<vmem>>, vector<1x128xf32>
      tpu.vector_store %arg8[%c0, %c0_5], %11 {strides = array<i32>} : memref<1x128xf32, #tpu.memory_space<vmem>>, vector<1x128xf32>,
      %cst_6 = arith.constant 0.000000e+00 : f32
      %13 = vector.broadcast %cst_6 : f32 to vector<1x128xf32>
      %c0_7 = arith.constant 0 : index
      %c0_8 = arith.constant 0 : index
      %14 = vector.load %arg9[%c0_7, %c0_8] : memref<1x128xf32, #tpu.memory_space<vmem>>, vector<1x128xf32>
      tpu.vector_store %arg9[%c0_7, %c0_8], %13 {strides = array<i32>} : memref<1x128xf32, #tpu.memory_space<vmem>>, vector<1x128xf32>,
      %cst_9 = arith.constant 0.000000e+00 : bf16
      %15 = vector.broadcast %cst_9 : bf16 to vector<2x18x18x128xbf16>
      %c0_10 = arith.constant 0 : index
      %c0_11 = arith.constant 0 : index
      %c0_12 = arith.constant 0 : index
      %c0_13 = arith.constant 0 : index
      %16 = vector.load %arg7[%c0_10, %c0_11, %c0_12, %c0_13] : memref<2x18x18x128xbf16, #tpu.memory_space<vmem>>, vector<2x18x18x128xbf16>
      tpu.vector_store %arg7[%c0_10, %c0_11, %c0_12, %c0_13], %15 {strides = array<i32>} : memref<2x18x18x128xbf16, #tpu.memory_space<vmem>>, vector<2x18x18x128xbf16>,
    } else {
    }
    %c0_i32_2 = arith.constant 0 : i32
    %5 = arith.cmpi eq, %arg0, %c0_i32_2 : i32
    %6 = arith.extui %5 : i1 to i32
    %c0_i32_3 = arith.constant 0 : i32
    %7 = arith.cmpi ne, %6, %c0_i32_3 : i32
    scf.if %7 {
      %c0 = arith.constant 0 : index
      %c0_5 = arith.constant 0 : index
      %c0_6 = arith.constant 0 : index
      %c0_7 = arith.constant 0 : index
      %11 = vector.load %arg2[%c0, %c0_5, %c0_6, %c0_7] : memref<2x16x16x128xbf16, #tpu.memory_space<vmem>>, vector<2x16x16x128xbf16>
      %c0_8 = arith.constant 0 : index
      %c1 = arith.constant 1 : index
      %c1_9 = arith.constant 1 : index
      %c0_10 = arith.constant 0 : index
      %12 = vector.load %arg7[%c0_8, %c1, %c1_9, %c0_10] : memref<2x18x18x128xbf16, #tpu.memory_space<vmem>>, vector<2x16x16x128xbf16>
      tpu.vector_store %arg7[%c0_8, %c1, %c1_9, %c0_10], %11 {strides = array<i32>} : memref<2x18x18x128xbf16, #tpu.memory_space<vmem>>, vector<2x16x16x128xbf16>,
      %cst = arith.constant 0.000000e+00 : f32
      %13 = vector.broadcast %cst : f32 to vector<512x128xf32>
      %c0_11 = arith.constant 0 : index
      %c0_12 = arith.constant 0 : index
      %c0_13 = arith.constant 0 : index
      %c0_14 = arith.constant 0 : index
      %14 = vector.load %arg7[%c0_11, %c0_12, %c0_13, %c0_14] : memref<2x18x18x128xbf16, #tpu.memory_space<vmem>>, vector<2x18x16x128xbf16>
      %15 = vector.extract_strided_slice %14 {offsets = [0, 0, 0, 0], sizes = [2, 16, 16, 128], strides = [1, 1, 1, 1]} : vector<2x18x16x128xbf16> to vector<2x16x16x128xbf16>
      %16 = vector.shape_cast %15 : vector<2x16x16x128xbf16> to vector<512x128xbf16>
      %c0_15 = arith.constant 0 : index
      %c0_16 = arith.constant 0 : index
      %c0_17 = arith.constant 0 : index
      %17 = vector.load %arg3[%c0_15, %c0_16, %c0_17] : memref<9x128x128xbf16, #tpu.memory_space<vmem>>, vector<1x128x128xbf16>
      %18 = vector.shape_cast %17 : vector<1x128x128xbf16> to vector<128x128xbf16>
      %cst_18 = arith.constant dense<0.000000e+00> : vector<512x128xf32>
      %19 = tpu.matmul %16, %18, %cst_18 {dimension_numbers = #tpu.dot_dimension_numbers<[1], [0], [0], [1], [0, 0, 1, 1], [], []>} : vector<512x128xbf16>, vector<128x128xbf16>, vector<512x128xf32> -> vector<512x128xf32>
      %20 = arith.addf %13, %19 : vector<512x128xf32>
      %21 = vector.extract_strided_slice %14 {offsets = [0, 1, 0, 0], sizes = [2, 16, 16, 128], strides = [1, 1, 1, 1]} : vector<2x18x16x128xbf16> to vector<2x16x16x128xbf16>
      %22 = vector.shape_cast %21 : vector<2x16x16x128xbf16> to vector<512x128xbf16>
      %c3 = arith.constant 3 : index
      %c0_19 = arith.constant 0 : index
      %c0_20 = arith.constant 0 : index
      %23 = vector.load %arg3[%c3, %c0_19, %c0_20] : memref<9x128x128xbf16, #tpu.memory_space<vmem>>, vector<1x128x128xbf16>
      %24 = vector.shape_cast %23 : vector<1x128x128xbf16> to vector<128x128xbf16>
      %cst_21 = arith.constant dense<0.000000e+00> : vector<512x128xf32>
      %25 = tpu.matmul %22, %24, %cst_21 {dimension_numbers = #tpu.dot_dimension_numbers<[1], [0], [0], [1], [0, 0, 1, 1], [], []>} : vector<512x128xbf16>, vector<128x128xbf16>, vector<512x128xf32> -> vector<512x128xf32>
      %26 = arith.addf %20, %25 : vector<512x128xf32>
      %27 = vector.extract_strided_slice %14 {offsets = [0, 2, 0, 0], sizes = [2, 16, 16, 128], strides = [1, 1, 1, 1]} : vector<2x18x16x128xbf16> to vector<2x16x16x128xbf16>
      %28 = vector.shape_cast %27 : vector<2x16x16x128xbf16> to vector<512x128xbf16>
      %c6 = arith.constant 6 : index
      %c0_22 = arith.constant 0 : index
      %c0_23 = arith.constant 0 : index
      %29 = vector.load %arg3[%c6, %c0_22, %c0_23] : memref<9x128x128xbf16, #tpu.memory_space<vmem>>, vector<1x128x128xbf16>
      %30 = vector.shape_cast %29 : vector<1x128x128xbf16> to vector<128x128xbf16>
      %cst_24 = arith.constant dense<0.000000e+00> : vector<512x128xf32>
      %31 = tpu.matmul %28, %30, %cst_24 {dimension_numbers = #tpu.dot_dimension_numbers<[1], [0], [0], [1], [0, 0, 1, 1], [], []>} : vector<512x128xbf16>, vector<128x128xbf16>, vector<512x128xf32> -> vector<512x128xf32>
      %32 = arith.addf %26, %31 : vector<512x128xf32>
      %c0_25 = arith.constant 0 : index
      %c0_26 = arith.constant 0 : index
      %c1_27 = arith.constant 1 : index
      %c0_28 = arith.constant 0 : index
      %33 = vector.load %arg7[%c0_25, %c0_26, %c1_27, %c0_28] : memref<2x18x18x128xbf16, #tpu.memory_space<vmem>>, vector<2x18x16x128xbf16>
      %34 = vector.extract_strided_slice %33 {offsets = [0, 0, 0, 0], sizes = [2, 16, 16, 128], strides = [1, 1, 1, 1]} : vector<2x18x16x128xbf16> to vector<2x16x16x128xbf16>
      %35 = vector.shape_cast %34 : vector<2x16x16x128xbf16> to vector<512x128xbf16>
      %c1_29 = arith.constant 1 : index
      %c0_30 = arith.constant 0 : index
      %c0_31 = arith.constant 0 : index
      %36 = vector.load %arg3[%c1_29, %c0_30, %c0_31] : memref<9x128x128xbf16, #tpu.memory_space<vmem>>, vector<1x128x128xbf16>
      %37 = vector.shape_cast %36 : vector<1x128x128xbf16> to vector<128x128xbf16>
      %cst_32 = arith.constant dense<0.000000e+00> : vector<512x128xf32>
      %38 = tpu.matmul %35, %37, %cst_32 {dimension_numbers = #tpu.dot_dimension_numbers<[1], [0], [0], [1], [0, 0, 1, 1], [], []>} : vector<512x128xbf16>, vector<128x128xbf16>, vector<512x128xf32> -> vector<512x128xf32>
      %39 = arith.addf %32, %38 : vector<512x128xf32>
      %40 = vector.extract_strided_slice %33 {offsets = [0, 1, 0, 0], sizes = [2, 16, 16, 128], strides = [1, 1, 1, 1]} : vector<2x18x16x128xbf16> to vector<2x16x16x128xbf16>
      %41 = vector.shape_cast %40 : vector<2x16x16x128xbf16> to vector<512x128xbf16>
      %c4 = arith.constant 4 : index
      %c0_33 = arith.constant 0 : index
      %c0_34 = arith.constant 0 : index
      %42 = vector.load %arg3[%c4, %c0_33, %c0_34] : memref<9x128x128xbf16, #tpu.memory_space<vmem>>, vector<1x128x128xbf16>
      %43 = vector.shape_cast %42 : vector<1x128x128xbf16> to vector<128x128xbf16>
      %cst_35 = arith.constant dense<0.000000e+00> : vector<512x128xf32>
      %44 = tpu.matmul %41, %43, %cst_35 {dimension_numbers = #tpu.dot_dimension_numbers<[1], [0], [0], [1], [0, 0, 1, 1], [], []>} : vector<512x128xbf16>, vector<128x128xbf16>, vector<512x128xf32> -> vector<512x128xf32>
      %45 = arith.addf %39, %44 : vector<512x128xf32>
      %46 = vector.extract_strided_slice %33 {offsets = [0, 2, 0, 0], sizes = [2, 16, 16, 128], strides = [1, 1, 1, 1]} : vector<2x18x16x128xbf16> to vector<2x16x16x128xbf16>
      %47 = vector.shape_cast %46 : vector<2x16x16x128xbf16> to vector<512x128xbf16>
      %c7 = arith.constant 7 : index
      %c0_36 = arith.constant 0 : index
      %c0_37 = arith.constant 0 : index
      %48 = vector.load %arg3[%c7, %c0_36, %c0_37] : memref<9x128x128xbf16, #tpu.memory_space<vmem>>, vector<1x128x128xbf16>
      %49 = vector.shape_cast %48 : vector<1x128x128xbf16> to vector<128x128xbf16>
      %cst_38 = arith.constant dense<0.000000e+00> : vector<512x128xf32>
      %50 = tpu.matmul %47, %49, %cst_38 {dimension_numbers = #tpu.dot_dimension_numbers<[1], [0], [0], [1], [0, 0, 1, 1], [], []>} : vector<512x128xbf16>, vector<128x128xbf16>, vector<512x128xf32> -> vector<512x128xf32>
      %51 = arith.addf %45, %50 : vector<512x128xf32>
      %c0_39 = arith.constant 0 : index
      %c0_40 = arith.constant 0 : index
      %c2 = arith.constant 2 : index
      %c0_41 = arith.constant 0 : index
      %52 = vector.load %arg7[%c0_39, %c0_40, %c2, %c0_41] : memref<2x18x18x128xbf16, #tpu.memory_space<vmem>>, vector<2x18x16x128xbf16>
      %53 = vector.extract_strided_slice %52 {offsets = [0, 0, 0, 0], sizes = [2, 16, 16, 128], strides = [1, 1, 1, 1]} : vector<2x18x16x128xbf16> to vector<2x16x16x128xbf16>
      %54 = vector.shape_cast %53 : vector<2x16x16x128xbf16> to vector<512x128xbf16>
      %c2_42 = arith.constant 2 : index
      %c0_43 = arith.constant 0 : index
      %c0_44 = arith.constant 0 : index
      %55 = vector.load %arg3[%c2_42, %c0_43, %c0_44] : memref<9x128x128xbf16, #tpu.memory_space<vmem>>, vector<1x128x128xbf16>
      %56 = vector.shape_cast %55 : vector<1x128x128xbf16> to vector<128x128xbf16>
      %cst_45 = arith.constant dense<0.000000e+00> : vector<512x128xf32>
      %57 = tpu.matmul %54, %56, %cst_45 {dimension_numbers = #tpu.dot_dimension_numbers<[1], [0], [0], [1], [0, 0, 1, 1], [], []>} : vector<512x128xbf16>, vector<128x128xbf16>, vector<512x128xf32> -> vector<512x128xf32>
      %58 = arith.addf %51, %57 : vector<512x128xf32>
      %59 = vector.extract_strided_slice %52 {offsets = [0, 1, 0, 0], sizes = [2, 16, 16, 128], strides = [1, 1, 1, 1]} : vector<2x18x16x128xbf16> to vector<2x16x16x128xbf16>
      %60 = vector.shape_cast %59 : vector<2x16x16x128xbf16> to vector<512x128xbf16>
      %c5 = arith.constant 5 : index
      %c0_46 = arith.constant 0 : index
      %c0_47 = arith.constant 0 : index
      %61 = vector.load %arg3[%c5, %c0_46, %c0_47] : memref<9x128x128xbf16, #tpu.memory_space<vmem>>, vector<1x128x128xbf16>
      %62 = vector.shape_cast %61 : vector<1x128x128xbf16> to vector<128x128xbf16>
      %cst_48 = arith.constant dense<0.000000e+00> : vector<512x128xf32>
      %63 = tpu.matmul %60, %62, %cst_48 {dimension_numbers = #tpu.dot_dimension_numbers<[1], [0], [0], [1], [0, 0, 1, 1], [], []>} : vector<512x128xbf16>, vector<128x128xbf16>, vector<512x128xf32> -> vector<512x128xf32>
      %64 = arith.addf %58, %63 : vector<512x128xf32>
      %65 = vector.extract_strided_slice %52 {offsets = [0, 2, 0, 0], sizes = [2, 16, 16, 128], strides = [1, 1, 1, 1]} : vector<2x18x16x128xbf16> to vector<2x16x16x128xbf16>
      %66 = vector.shape_cast %65 : vector<2x16x16x128xbf16> to vector<512x128xbf16>
      %c8 = arith.constant 8 : index
      %c0_49 = arith.constant 0 : index
      %c0_50 = arith.constant 0 : index
      %67 = vector.load %arg3[%c8, %c0_49, %c0_50] : memref<9x128x128xbf16, #tpu.memory_space<vmem>>, vector<1x128x128xbf16>
      %68 = vector.shape_cast %67 : vector<1x128x128xbf16> to vector<128x128xbf16>
      %cst_51 = arith.constant dense<0.000000e+00> : vector<512x128xf32>
      %69 = tpu.matmul %66, %68, %cst_51 {dimension_numbers = #tpu.dot_dimension_numbers<[1], [0], [0], [1], [0, 0, 1, 1], [], []>} : vector<512x128xbf16>, vector<128x128xbf16>, vector<512x128xf32> -> vector<512x128xf32>
      %70 = arith.addf %64, %69 : vector<512x128xf32>
      %c0_52 = arith.constant 0 : index
      %c0_53 = arith.constant 0 : index
      %71 = vector.load %arg8[%c0_52, %c0_53] : memref<1x128xf32, #tpu.memory_space<vmem>>, vector<1x128xf32>
      %cst_54 = arith.constant dense<0.000000e+00> : vector<128xf32>
      %72 = vector.multi_reduction <add>, %70, %cst_54 [0] : vector<512x128xf32> to vector<128xf32>
      %73 = vector.shape_cast %72 : vector<128xf32> to vector<1x128xf32>
      %74 = arith.addf %71, %73 : vector<1x128xf32>
      %c0_55 = arith.constant 0 : index
      %c0_56 = arith.constant 0 : index
      %75 = vector.load %arg8[%c0_55, %c0_56] : memref<1x128xf32, #tpu.memory_space<vmem>>, vector<1x128xf32>
      tpu.vector_store %arg8[%c0_55, %c0_56], %74 {strides = array<i32>} : memref<1x128xf32, #tpu.memory_space<vmem>>, vector<1x128xf32>,
      %c0_57 = arith.constant 0 : index
      %c0_58 = arith.constant 0 : index
      %76 = vector.load %arg9[%c0_57, %c0_58] : memref<1x128xf32, #tpu.memory_space<vmem>>, vector<1x128xf32>
      %77 = arith.mulf %70, %70 : vector<512x128xf32>
      %cst_59 = arith.constant dense<0.000000e+00> : vector<128xf32>
      %78 = vector.multi_reduction <add>, %77, %cst_59 [0] : vector<512x128xf32> to vector<128xf32>
      %79 = vector.shape_cast %78 : vector<128xf32> to vector<1x128xf32>
      %80 = arith.addf %76, %79 : vector<1x128xf32>
      %c0_60 = arith.constant 0 : index
      %c0_61 = arith.constant 0 : index
      %81 = vector.load %arg9[%c0_60, %c0_61] : memref<1x128xf32, #tpu.memory_space<vmem>>, vector<1x128xf32>
      tpu.vector_store %arg9[%c0_60, %c0_61], %80 {strides = array<i32>} : memref<1x128xf32, #tpu.memory_space<vmem>>, vector<1x128xf32>,
      %82 = arith.truncf %70 : vector<512x128xf32> to vector<512x128xbf16>
      %83 = arith.index_cast %arg1 : i32 to index
      %c0_62 = arith.constant 0 : index
      %c0_63 = arith.constant 0 : index
      %84 = vector.load %arg10[%83, %c0_62, %c0_63] : memref<1x512x128xbf16, #tpu.memory_space<vmem>>, vector<1x512x128xbf16>
      %85 = vector.shape_cast %84 : vector<1x512x128xbf16> to vector<512x128xbf16>
      %86 = vector.shape_cast %82 : vector<512x128xbf16> to vector<1x512x128xbf16>
      tpu.vector_store %arg10[%83, %c0_62, %c0_63], %86 {strides = array<i32>} : memref<1x512x128xbf16, #tpu.memory_space<vmem>>, vector<1x512x128xbf16>,
      %cst_64 = arith.constant 0.000000e+00 : bf16
      %87 = vector.broadcast %cst_64 : bf16 to vector<2x8x8x128xbf16>
      %c0_65 = arith.constant 0 : index
      %c0_66 = arith.constant 0 : index
      %c0_67 = arith.constant 0 : index
      %c0_68 = arith.constant 0 : index
      %88 = vector.load %arg6[%c0_65, %c0_66, %c0_67, %c0_68] : memref<2x8x8x128xbf16, #tpu.memory_space<vmem>>, vector<2x8x8x128xbf16>
      tpu.vector_store %arg6[%c0_65, %c0_66, %c0_67, %c0_68], %87 {strides = array<i32>} : memref<2x8x8x128xbf16, #tpu.memory_space<vmem>>, vector<2x8x8x128xbf16>,
    } else {
    }
    %c1_i32 = arith.constant 1 : i32
    %8 = arith.cmpi eq, %arg0, %c1_i32 : i32
    %9 = arith.extui %8 : i1 to i32
    %c0_i32_4 = arith.constant 0 : i32
    %10 = arith.cmpi ne, %9, %c0_i32_4 : i32
    scf.if %10 {
      %11 = arith.index_cast %arg1 : i32 to index
      %c0 = arith.constant 0 : index
      %c0_5 = arith.constant 0 : index
      %12 = vector.load %arg10[%11, %c0, %c0_5] : memref<1x512x128xbf16, #tpu.memory_space<vmem>>, vector<1x512x128xbf16>
      %13 = vector.shape_cast %12 : vector<1x512x128xbf16> to vector<512x128xbf16>
      %14 = arith.extf %13 : vector<512x128xbf16> to vector<512x128xf32>
      %c0_6 = arith.constant 0 : index
      %c0_7 = arith.constant 0 : index
      %15 = vector.load %arg8[%c0_6, %c0_7] : memref<1x128xf32, #tpu.memory_space<vmem>>, vector<1x128xf32>
      %cst = arith.constant 0.001953125 : f32
      %16 = vector.broadcast %cst : f32 to vector<1x128xf32>
      %17 = arith.mulf %15, %16 : vector<1x128xf32>
      %c0_8 = arith.constant 0 : index
      %c0_9 = arith.constant 0 : index
      %18 = vector.load %arg9[%c0_8, %c0_9] : memref<1x128xf32, #tpu.memory_space<vmem>>, vector<1x128xf32>
      %cst_10 = arith.constant 0.001953125 : f32
      %19 = vector.broadcast %cst_10 : f32 to vector<1x128xf32>
      %20 = arith.mulf %18, %19 : vector<1x128xf32>
      %21 = arith.mulf %17, %17 : vector<1x128xf32>
      %22 = arith.subf %20, %21 : vector<1x128xf32>
      %cst_11 = arith.constant 0.000000e+00 : f32
      %23 = vector.broadcast %cst_11 : f32 to vector<1x128xf32>
      %24 = arith.maximumf %22, %23 : vector<1x128xf32>
      %cst_12 = arith.constant 9.99999974E-6 : f32
      %25 = vector.broadcast %cst_12 : f32 to vector<1x128xf32>
      %26 = arith.addf %24, %25 : vector<1x128xf32>
      %27 = math.rsqrt %26 : vector<1x128xf32>
      %c0_13 = arith.constant 0 : index
      %c0_14 = arith.constant 0 : index
      %28 = vector.load %arg4[%c0_13, %c0_14] : memref<1x128xf32, #tpu.memory_space<vmem>>, vector<1x128xf32>
      %29 = arith.mulf %28, %27 : vector<1x128xf32>
      %c0_15 = arith.constant 0 : index
      %c0_16 = arith.constant 0 : index
      %30 = vector.load %arg5[%c0_15, %c0_16] : memref<1x128xf32, #tpu.memory_space<vmem>>, vector<1x128xf32>
      %31 = arith.mulf %17, %29 : vector<1x128xf32>
      %32 = arith.subf %30, %31 : vector<1x128xf32>
      %33 = vector.broadcast %29 : vector<1x128xf32> to vector<512x128xf32>
      %34 = arith.mulf %14, %33 : vector<512x128xf32>
      %35 = vector.broadcast %32 : vector<1x128xf32> to vector<512x128xf32>
      %36 = arith.addf %34, %35 : vector<512x128xf32>
      %cst_17 = arith.constant 0.000000e+00 : f32
      %37 = vector.broadcast %cst_17 : f32 to vector<512x128xf32>
      %38 = arith.maximumf %36, %37 : vector<512x128xf32>
      %39 = vector.shape_cast %38 : vector<512x128xf32> to vector<16x2x16x128xf32>
      %cst_18 = arith.constant dense<0xFF800000> : vector<16x16x128xf32>
      %40 = vector.multi_reduction <maximumf>, %39, %cst_18 [1] : vector<16x2x16x128xf32> to vector<16x16x128xf32>
      %41 = vector.shape_cast %40 : vector<16x16x128xf32> to vector<16x8x2x128xf32>
      %cst_19 = arith.constant dense<0xFF800000> : vector<16x8x128xf32>
      %42 = vector.multi_reduction <maximumf>, %41, %cst_19 [2] : vector<16x8x2x128xf32> to vector<16x8x128xf32>
      %43 = vector.shape_cast %42 : vector<16x8x128xf32> to vector<2x8x8x128xf32>
      %44 = arith.truncf %43 : vector<2x8x8x128xf32> to vector<2x8x8x128xbf16>
      %c0_20 = arith.constant 0 : index
      %c0_21 = arith.constant 0 : index
      %c0_22 = arith.constant 0 : index
      %c0_23 = arith.constant 0 : index
      %45 = vector.load %arg6[%c0_20, %c0_21, %c0_22, %c0_23] : memref<2x8x8x128xbf16, #tpu.memory_space<vmem>>, vector<2x8x8x128xbf16>
      tpu.vector_store %arg6[%c0_20, %c0_21, %c0_22, %c0_23], %44 {strides = array<i32>} : memref<2x8x8x128xbf16, #tpu.memory_space<vmem>>, vector<2x8x8x128xbf16>,
    } else {
    }
    return
  }
  func.func @transform_0(%arg0: i32, %arg1: i32) -> (i32, i32, i32, i32) {
    %c1_i32 = arith.constant 1 : i32
    %0 = arith.subi %c1_i32, %arg0 : i32
    %1 = arith.muli %0, %arg1 : i32
    %c0_i32 = arith.constant 0 : i32
    %c0_i32_0 = arith.constant 0 : i32
    %c0_i32_1 = arith.constant 0 : i32
    %c0_i32_2 = arith.constant 0 : i32
    return %1, %c0_i32, %c0_i32_0, %c0_i32_1 : i32, i32, i32, i32
  }
  func.func @transform_1(%arg0: i32, %arg1: i32) -> (i32, i32, i32) {
    %c0_i32 = arith.constant 0 : i32
    %c0_i32_0 = arith.constant 0 : i32
    %c0_i32_1 = arith.constant 0 : i32
    %c0_i32_2 = arith.constant 0 : i32
    return %c0_i32, %c0_i32_0, %c0_i32_1 : i32, i32, i32
  }
  func.func @transform_2(%arg0: i32, %arg1: i32) -> (i32, i32) {
    %c0_i32 = arith.constant 0 : i32
    %c0_i32_0 = arith.constant 0 : i32
    %c0_i32_1 = arith.constant 0 : i32
    return %c0_i32, %c0_i32_0 : i32, i32
  }
  func.func @transform_3(%arg0: i32, %arg1: i32) -> (i32, i32) {
    %c0_i32 = arith.constant 0 : i32
    %c0_i32_0 = arith.constant 0 : i32
    %c0_i32_1 = arith.constant 0 : i32
    return %c0_i32, %c0_i32_0 : i32, i32
  }
  func.func @transform_4(%arg0: i32, %arg1: i32) -> (i32, i32, i32, i32) {
    %0 = arith.muli %arg0, %arg1 : i32
    %c0_i32 = arith.constant 0 : i32
    %c0_i32_0 = arith.constant 0 : i32
    %c0_i32_1 = arith.constant 0 : i32
    %c0_i32_2 = arith.constant 0 : i32
    return %0, %c0_i32, %c0_i32_0, %c0_i32_1 : i32, i32, i32, i32
  }
}

</mosaic_0001>

<bundles_post_ra>
// kernel: tpu_custom_call.1
= control target key start
LH: loop header
LB: loop body
LE: loop exit
PB: predicated region body
PF: predicated region fallthrough
CT: control target
= control target key end

     0   :  { %9 = vsyncpa [#allocation7], 0  ;;  %s17148_s0 = inlined_call_operand.hbm [shape: bf16[2,16,16,128], index: 0, kind: input, shape index: {}]   ;;  %s17149_s1 = inlined_call_operand.hbm [shape: bf16[9,128,128], index: 1, kind: input, shape index: {}]   ;;  %s17150_s2 = inlined_call_operand.vmem [shape: f32[1,128], index: 2, kind: input, shape index: {}]   ;;  %s17151_s3 = inlined_call_operand.vmem [shape: f32[1,128], index: 3, kind: input, shape index: {}]   ;;  %s17152_s4 = inlined_call_operand.hbm [shape: bf16[2,8,8,128], index: 4, kind: output, shape index: {}]  }
   0x1   :  { %11 = vsyncpa [#allocation7 + $0x1], 0 }
   0x2   :  { %12 = vsyncpa [#allocation10], 0 }
   0x3   :  { %13 = vsyncpa [#allocation8], 0 }
   0x4   :  { %15 = vsyncpa [#allocation8 + $0x1], 0  ;;  %s12595_s15 = smov 0   ;;  %s12597_s16 = smov 0  }
   0x5   :  { %s12599_s17 = smov 0  }
   0x6 LB: > { %s10060_s18 = sadd.s32 4294967295, %s12557_s17   ;;  %s10061_s19 = sadd.s32 4294967294, %s12557_s17   ;;  %s12557_s17 = sphi %s12599_s17, %s21_s17   ;;  %s12553_s16 = sphi %s12597_s16, %s18248_s16   ;;  %s12549_s15 = sphi %s12595_s15, %s18247_s15  }
   0x7   : > { %s33_s20 = sadd.s32 1, %s12553_s16  ;;  %p10062_p0 = scmp.ge.s32.totalorder %s12557_s17, 1 }
   0x8   : > { %p35_p1 = scmp.ge.s32.totalorder %s33_s20, 2  ;;  %p159_p2 = scmp.lt.s32.totalorder %s12557_s17, 3 }
   0x9   : > { %p12617_p3 = scmp.eq.s32.totalorder %s10060_s18, 0  ;;  %s12559_s23 = smov [#allocation9]  }
   0xa   : > { %s18250_s20 = smov (%p35_p1, %s33_s20), 0  ;;  %p12623_p4 = pnand %p10062_p0, %p159_p2 }
   0xb   : > { %s17379_s21 = scalar_select %p12617_p3, 1, 0 }
   0xc   : > { %s17380_s22 = scalar_select %p12623_p4, 1, 0 }
   0xd   : > { %s171_s24 = sshll.u32 %s12559_s23, 4  ;;  %p12169_p5 = pneg %p12623_p4  ;;  %s172_s24 = int_to_ptr.vmem [resolvable:$true] %s171_s24 }
   0xe   : > { %s12441_s28 = scalar_lea.hbm %s17149_s1, 9216 }
   0xf   : > { %p12632_p7 = pnand %p12617_p3, %p12169_p5  ;;  %p12442_p10 = scmp.ne.s32.totalorder %s17149_s1, %s12441_s28 }
  0x10   : > { %p12448_p0 = scmp.lt.u32.totalorder %s12441_s28, %s17149_s1 }
  0x11   : > { %p12443_p11 = pneg %p12632_p7 }
  0x13   : > { %p12444_p12 = pnand %p12443_p11, %p12442_p10 }
  0x15   : > { %p12445_p13 = pneg %p12444_p12 }
  0x17   : > { %p12450_p1 = pnand %p12448_p0, %p12445_p13 }
  0x19   : > { %12453 = shalt.err (!%p12450_p1)
}
  0x1a   : > { %s12454_s7 = scalar_lea.vmem %s172_s24, 9216  ;;  %p12462_p9 = scmp.lt.s32.totalorder %s172_s24, %s172_s24 }
  0x1b   : > { %p12455_p2 = scmp.ne.s32.totalorder %s172_s24, %s12454_s7  ;;  %p12463_p8 = scmp.lt.s32.totalorder %s12454_s7, %s12454_s7 }
  0x1d   : > { %p12457_p5 = pnand %p12455_p2, %p12443_p11  ;;  %p12464_p3 = por %p12463_p8, %p12462_p9 }
  0x1f   : > { %p12458_p6 = pneg %p12457_p5 }
  0x21   : > { %p12465_p4 = pnand %p12464_p3, %p12458_p6 }
  0x23   : > { %12468 = shalt.err (!%p12465_p4)
}
  0x24   : > { %s12560_s8 = smov 64   ;;  %s12561_s9 = smov 4  }
  0x25   : > { %12172 = dma.hbm_to_vmem [thread:$0]  (!%p12632_p7), %s17149_s1, 9216, %s172_s24, [#allocation10], %s12560_s8, %s12560_s8, %s12561_s9  }
  0x26   : > { %s12562_s12 = smov [#allocation6]   ;;  %p17382_p10 = scmp.lt.s32.totalorder %s12557_s17, 2 }
  0x27   : > { %s205_s13 = sshll.u32 %s12562_s12, 4  ;;  %p17383_p11 = scmp.eq.s32.totalorder %s12557_s17, 0  ;;  %s206_s13 = int_to_ptr.vmem [resolvable:$true] %s205_s13 }
  0x28   : > { %s12469_s27 = scalar_lea.hbm %s17148_s0, 4096 }
  0x29   : > { %p12658_p12 = pnand %p17383_p11, %p17382_p10  ;;  %p12470_p3 = scmp.ne.s32.totalorder %s17148_s0, %s12469_s27 }
  0x2a   : > { %p12476_p8 = scmp.lt.u32.totalorder %s12469_s27, %s17148_s0 }
  0x2b   : > { %p12471_p4 = pneg %p12658_p12 }
  0x2d   : > { %p12472_p6 = pnand %p12471_p4, %p12470_p3 }
  0x2f   : > { %p12473_p7 = pneg %p12472_p6 }
  0x31   : > { %p12478_p9 = pnand %p12476_p8, %p12473_p7 }
  0x33   : > { %12481 = shalt.err (!%p12478_p9)
}
  0x34   : > { %s12482_s30 = scalar_lea.vmem %s206_s13, 4096  ;;  %s12489_s5 = scalar_lea.vmem %s206_s13, 8192 }
  0x35   : > { %p12483_p13 = scmp.ne.s32.totalorder %s206_s13, %s12482_s30  ;;  %p12490_p2 = scmp.lt.s32.totalorder %s206_s13, %s206_s13 }
  0x36   : > { %p12491_p5 = scmp.lt.s32.totalorder %s12489_s5, %s12482_s30 }
  0x37   : > { %p12485_p0 = pnand %p12483_p13, %p12471_p4 }
  0x38   : > { %p12492_p10 = por %p12491_p5, %p12490_p2 }
  0x39   : > { %p12486_p1 = pneg %p12485_p0 }
  0x3b   : > { %p12493_p11 = pnand %p12492_p10, %p12486_p1 }
  0x3d   : > { %12496 = shalt.err (!%p12493_p11)
}
  0x3e   : > { %12176 = dma.hbm_to_vmem [thread:$0]  (!%p12658_p12), %s17148_s0, 4096, %s206_s13, [#allocation7], %s12560_s8, %s12560_s8, %s12561_s9  }
  0x3f   : > { %p17385_p3 = scmp.ne.s32.totalorder %s17380_s22, 0 }
  0x40   : > { %p17386_p6 = scmp.ne.s32.totalorder (!%p17385_p3), %s17379_s21, 0 }
  0x41   : > { %217 = sbr.rel (%p17385_p3) target bundleno = 1571 (0x623), region = 36 }
  0x48   : > { %12536 = dma.done.wait (%p17386_p6), [#allocation7], 4096  }
  0x49   : > { %12538 = vsyncadd (%p17386_p6), [#allocation7], 4294963200 }
  0x4a   : > { %12540 = dma.done.wait (%p17386_p6), [#allocation10], 9216  }
  0x4b   : > { %12542 = vsyncadd (%p17386_p6), [#allocation10], 4294958080  ;;  %p258_p4 = scmp.eq.s32.totalorder %s12549_s15, 0 }
  0x4c   : > { %v12563_v0 = vmov (%p258_p4), 0.0   ;;  %v12564_v1 = vmov (%p258_p4), 0  }
  0x4d   : > { %263 = sbr.rel (!%p258_p4) target bundleno = 132 (0x84), region = 48  ;;  %264 = vst [vmem:[#allocation3] sm:$0x1] (%p258_p4), %v12563_v0  ;;  %265 = vst [vmem:[#allocation4] sm:$0x1] (%p258_p4), %v12563_v0 }
  0x4e   : > { %266 = vst [vmem:[#allocation2] sm:$0xf] (%p258_p4), %v12564_v1  ;;  %267 = vst [vmem:[#allocation2 + $0x4] sm:$0xf] (%p258_p4), %v12564_v1 }
  0x4f   : > { %268 = vst [vmem:[#allocation2 + $0x8] sm:$0x1] (%p258_p4), %v12564_v1  ;;  %269 = vst [vmem:[#allocation2 + $0xc] sm:$0xf] (%p258_p4), %v12564_v1 }
  0x50   : > { %270 = vst [vmem:[#allocation2 + $0x10] sm:$0xf] (%p258_p4), %v12564_v1  ;;  %271 = vst [vmem:[#allocation2 + $0x14] sm:$0x1] (%p258_p4), %v12564_v1 }
  0x51   : > { %272 = vst [vmem:[#allocation2 + $0x18] sm:$0xf] (%p258_p4), %v12564_v1  ;;  %273 = vst [vmem:[#allocation2 + $0x1c] sm:$0xf] (%p258_p4), %v12564_v1 }
  0x52   : > { %274 = vst [vmem:[#allocation2 + $0x20] sm:$0x1] (%p258_p4), %v12564_v1  ;;  %275 = vst [vmem:[#allocation2 + $0x24] sm:$0xf] (%p258_p4), %v12564_v1 }
  0x53   : > { %276 = vst [vmem:[#allocation2 + $0x28] sm:$0xf] (%p258_p4), %v12564_v1  ;;  %277 = vst [vmem:[#allocation2 + $0x2c] sm:$0x1] (%p258_p4), %v12564_v1 }
  0x54   : > { %278 = vst [vmem:[#allocation2 + $0x30] sm:$0xf] %v12564_v1  ;;  %279 = vst [vmem:[#allocation2 + $0x34] sm:$0xf] %v12564_v1 }
  0x55   : > { %280 = vst [vmem:[#allocation2 + $0x38] sm:$0x1] %v12564_v1  ;;  %281 = vst [vmem:[#allocation2 + $0x3c] sm:$0xf] %v12564_v1 }
  0x56   : > { %282 = vst [vmem:[#allocation2 + $0x40] sm:$0xf] %v12564_v1  ;;  %283 = vst [vmem:[#allocation2 + $0x44] sm:$0x1] %v12564_v1 }
  0x57   : > { %284 = vst [vmem:[#allocation2 + $0x48] sm:$0xf] %v12564_v1  ;;  %285 = vst [vmem:[#allocation2 + $0x4c] sm:$0xf] %v12564_v1 }
  0x58   : > { %286 = vst [vmem:[#allocation2 + $0x50] sm:$0x1] %v12564_v1  ;;  %287 = vst [vmem:[#allocation2 + $0x54] sm:$0xf] %v12564_v1 }
  0x59   : > { %288 = vst [vmem:[#allocation2 + $0x58] sm:$0xf] %v12564_v1  ;;  %289 = vst [vmem:[#allocation2 + $0x5c] sm:$0x1] %v12564_v1 }
  0x5a   : > { %290 = vst [vmem:[#allocation2 + $0x60] sm:$0xf] %v12564_v1  ;;  %291 = vst [vmem:[#allocation2 + $0x64] sm:$0xf] %v12564_v1 }
  0x5b   : > { %292 = vst [vmem:[#allocation2 + $0x68] sm:$0x1] %v12564_v1  ;;  %293 = vst [vmem:[#allocation2 + $0x6c] sm:$0xf] %v12564_v1 }
  0x5c   : > { %294 = vst [vmem:[#allocation2 + $0x70] sm:$0xf] %v12564_v1  ;;  %295 = vst [vmem:[#allocation2 + $0x74] sm:$0x1] %v12564_v1 }
  0x5d   : > { %296 = vst [vmem:[#allocation2 + $0x78] sm:$0xf] %v12564_v1  ;;  %297 = vst [vmem:[#allocation2 + $0x7c] sm:$0xf] %v12564_v1 }
  0x5e   : > { %298 = vst [vmem:[#allocation2 + $0x80] sm:$0x1] %v12564_v1  ;;  %299 = vst [vmem:[#allocation2 + $0x84] sm:$0xf] %v12564_v1 }
  0x5f   : > { %300 = vst [vmem:[#allocation2 + $0x88] sm:$0xf] %v12564_v1  ;;  %301 = vst [vmem:[#allocation2 + $0x8c] sm:$0x1] %v12564_v1 }
  0x60   : > { %302 = vst [vmem:[#allocation2 + $0x90] sm:$0xf] %v12564_v1  ;;  %303 = vst [vmem:[#allocation2 + $0x94] sm:$0xf] %v12564_v1 }
  0x61   : > { %304 = vst [vmem:[#allocation2 + $0x98] sm:$0x1] %v12564_v1  ;;  %305 = vst [vmem:[#allocation2 + $0x9c] sm:$0xf] %v12564_v1 }
  0x62   : > { %306 = vst [vmem:[#allocation2 + $0xa0] sm:$0xf] %v12564_v1  ;;  %307 = vst [vmem:[#allocation2 + $0xa4] sm:$0x1] %v12564_v1 }
  0x63   : > { %308 = vst [vmem:[#allocation2 + $0xa8] sm:$0xf] %v12564_v1  ;;  %309 = vst [vmem:[#allocation2 + $0xac] sm:$0xf] %v12564_v1 }
  0x64   : > { %310 = vst [vmem:[#allocation2 + $0xb0] sm:$0x1] %v12564_v1  ;;  %311 = vst [vmem:[#allocation2 + $0xb4] sm:$0xf] %v12564_v1 }
  0x65   : > { %312 = vst [vmem:[#allocation2 + $0xb8] sm:$0xf] %v12564_v1  ;;  %313 = vst [vmem:[#allocation2 + $0xbc] sm:$0x1] %v12564_v1 }
  0x66   : > { %314 = vst [vmem:[#allocation2 + $0xc0] sm:$0xf] %v12564_v1  ;;  %315 = vst [vmem:[#allocation2 + $0xc4] sm:$0xf] %v12564_v1 }
  0x67   : > { %316 = vst [vmem:[#allocation2 + $0xc8] sm:$0x1] %v12564_v1  ;;  %317 = vst [vmem:[#allocation2 + $0xcc] sm:$0xf] %v12564_v1 }
  0x68   : > { %318 = vst [vmem:[#allocation2 + $0xd0] sm:$0xf] %v12564_v1  ;;  %319 = vst [vmem:[#allocation2 + $0xd4] sm:$0x1] %v12564_v1 }
  0x69   : > { %320 = vst [vmem:[#allocation2 + $0xd8] sm:$0xf] %v12564_v1  ;;  %321 = vst [vmem:[#allocation2 + $0xdc] sm:$0xf] %v12564_v1 }
  0x6a   : > { %322 = vst [vmem:[#allocation2 + $0xe0] sm:$0x1] %v12564_v1  ;;  %323 = vst [vmem:[#allocation2 + $0xe4] sm:$0xf] %v12564_v1 }
  0x6b   : > { %324 = vst [vmem:[#allocation2 + $0xe8] sm:$0xf] %v12564_v1  ;;  %325 = vst [vmem:[#allocation2 + $0xec] sm:$0x1] %v12564_v1 }
  0x6c   : > { %326 = vst [vmem:[#allocation2 + $0xf0] sm:$0xf] %v12564_v1  ;;  %327 = vst [vmem:[#allocation2 + $0xf4] sm:$0xf] %v12564_v1 }
  0x6d   : > { %328 = vst [vmem:[#allocation2 + $0xf8] sm:$0x1] %v12564_v1  ;;  %329 = vst [vmem:[#allocation2 + $0xfc] sm:$0xf] %v12564_v1 }
  0x6e   : > { %330 = vst [vmem:[#allocation2 + $0x100] sm:$0xf] %v12564_v1  ;;  %331 = vst [vmem:[#allocation2 + $0x104] sm:$0x1] %v12564_v1 }
  0x6f   : > { %332 = vst [vmem:[#allocation2 + $0x108] sm:$0xf] %v12564_v1  ;;  %333 = vst [vmem:[#allocation2 + $0x10c] sm:$0xf] %v12564_v1 }
  0x70   : > { %334 = vst [vmem:[#allocation2 + $0x110] sm:$0x1] %v12564_v1  ;;  %335 = vst [vmem:[#allocation2 + $0x114] sm:$0xf] %v12564_v1 }
  0x71   : > { %336 = vst [vmem:[#allocation2 + $0x118] sm:$0xf] %v12564_v1  ;;  %337 = vst [vmem:[#allocation2 + $0x11c] sm:$0x1] %v12564_v1 }
  0x72   : > { %338 = vst [vmem:[#allocation2 + $0x120] sm:$0xf] %v12564_v1  ;;  %339 = vst [vmem:[#allocation2 + $0x124] sm:$0xf] %v12564_v1 }
  0x73   : > { %340 = vst [vmem:[#allocation2 + $0x128] sm:$0x1] %v12564_v1  ;;  %341 = vst [vmem:[#allocation2 + $0x12c] sm:$0xf] %v12564_v1 }
  0x74   : > { %342 = vst [vmem:[#allocation2 + $0x130] sm:$0xf] %v12564_v1  ;;  %343 = vst [vmem:[#allocation2 + $0x134] sm:$0x1] %v12564_v1 }
  0x75   : > { %344 = vst [vmem:[#allocation2 + $0x138] sm:$0xf] %v12564_v1  ;;  %345 = vst [vmem:[#allocation2 + $0x13c] sm:$0xf] %v12564_v1 }
  0x76   : > { %346 = vst [vmem:[#allocation2 + $0x140] sm:$0x1] %v12564_v1  ;;  %347 = vst [vmem:[#allocation2 + $0x144] sm:$0xf] %v12564_v1 }
  0x77   : > { %348 = vst [vmem:[#allocation2 + $0x148] sm:$0xf] %v12564_v1  ;;  %349 = vst [vmem:[#allocation2 + $0x14c] sm:$0x1] %v12564_v1 }
  0x78   : > { %350 = vst [vmem:[#allocation2 + $0x150] sm:$0xf] %v12564_v1  ;;  %351 = vst [vmem:[#allocation2 + $0x154] sm:$0xf] %v12564_v1 }
  0x79   : > { %352 = vst [vmem:[#allocation2 + $0x158] sm:$0x1] %v12564_v1  ;;  %353 = vst [vmem:[#allocation2 + $0x15c] sm:$0xf] %v12564_v1 }
  0x7a   : > { %354 = vst [vmem:[#allocation2 + $0x160] sm:$0xf] %v12564_v1  ;;  %355 = vst [vmem:[#allocation2 + $0x164] sm:$0x1] %v12564_v1 }
  0x7b   : > { %356 = vst [vmem:[#allocation2 + $0x168] sm:$0xf] %v12564_v1  ;;  %357 = vst [vmem:[#allocation2 + $0x16c] sm:$0xf] %v12564_v1 }
  0x7c   : > { %358 = vst [vmem:[#allocation2 + $0x170] sm:$0x1] %v12564_v1  ;;  %359 = vst [vmem:[#allocation2 + $0x174] sm:$0xf] %v12564_v1 }
  0x7d   : > { %360 = vst [vmem:[#allocation2 + $0x178] sm:$0xf] %v12564_v1  ;;  %361 = vst [vmem:[#allocation2 + $0x17c] sm:$0x1] %v12564_v1 }
  0x7e   : > { %362 = vst [vmem:[#allocation2 + $0x180] sm:$0xf] %v12564_v1  ;;  %363 = vst [vmem:[#allocation2 + $0x184] sm:$0xf] %v12564_v1 }
  0x7f   : > { %364 = vst [vmem:[#allocation2 + $0x188] sm:$0x1] %v12564_v1  ;;  %365 = vst [vmem:[#allocation2 + $0x18c] sm:$0xf] %v12564_v1 }
  0x80   : > { %366 = vst [vmem:[#allocation2 + $0x190] sm:$0xf] %v12564_v1  ;;  %367 = vst [vmem:[#allocation2 + $0x194] sm:$0x1] %v12564_v1 }
  0x81   : > { %368 = vst [vmem:[#allocation2 + $0x198] sm:$0xf] %v12564_v1  ;;  %369 = vst [vmem:[#allocation2 + $0x19c] sm:$0xf] %v12564_v1 }
  0x82   : > { %370 = vst [vmem:[#allocation2 + $0x1a0] sm:$0x1] %v12564_v1  ;;  %371 = vst [vmem:[#allocation2 + $0x1a4] sm:$0xf] %v12564_v1 }
  0x83   : > { %372 = vst [vmem:[#allocation2 + $0x1a8] sm:$0xf] %v12564_v1  ;;  %373 = vst [vmem:[#allocation2 + $0x1ac] sm:$0x1] %v12564_v1 }
  0x84 PF: > { %p10070_p12 = scmp.ne.s32.totalorder %s12549_s15, 0 }
  0x86   : > { %376 = sbr.rel (%p10070_p12) target bundleno = 1041 (0x411), region = 52 }
  0x8d   : > { %v12224_v2 = vld [vmem:[#allocation9 + $0xc0] sm:$0xff]   ;;  %v12226_v4 = vld [vmem:[#allocation9 + $0xc8] sm:$0xff]   ;;  %v12228_v6 = vld [vmem:[#allocation9 + $0xd0] sm:$0xff]   ;;  %vm1092_vm0 = vcmask 1040384   ;;  %vm1085_vm1 = vcmask 1043456   ;;  %vm5232_vm11 = vcmask 1042432  }
  0x8e   : > { %v12225_v3 = vld [vmem:[#allocation9 + $0x100] sm:$0xff]   ;;  %10909 = vmatprep.subr.bf16.mxu1 %v12224_v2  ;;  %v12227_v5 = vld [vmem:[#allocation9 + $0x108] sm:$0xff]   ;;  %v12229_v7 = vld [vmem:[#allocation9 + $0x110] sm:$0xff]   ;;  %vm441_vm2 = vsmask.f32 256  ;;  %vm5233_vm12 = vcmask 1046532  }
  0x8f   : > { %11229 = vmatprep.subr.bf16.mxu0 %v12225_v3  ;;  %10910 = vmatpush3.bf16.msra.mxu1 %v12224_v2  ;;  %v12230_v8 = vld [vmem:[#allocation9 + $0xd8] sm:$0xff]   ;;  %v12232_v10 = vld [vmem:[#allocation9 + $0xe0] sm:$0xff]   ;;  %v12234_v12 = vld [vmem:[#allocation9 + $0xe8] sm:$0xff]   ;;  %vm442_vm3 = vsmask.f32 4368 }
  0x90   : > { %11230 = vmatpush3.bf16.msra.mxu0 %v12225_v3  ;;  %10911 = vmatprep.subr.bf16.mxu1 %v12226_v4  ;;  %v12231_v9 = vld [vmem:[#allocation9 + $0x118] sm:$0xff]   ;;  %v12233_v11 = vld [vmem:[#allocation9 + $0x120] sm:$0xff]   ;;  %v12235_v15 = vld [vmem:[#allocation9 + $0x128] sm:$0xff]   ;;  %vm1086_vm6 = vsmask.f32 7938 }
  0x91   : > { %11231 = vmatprep.subr.bf16.mxu0 %v12227_v5  ;;  %v377_v13 = vld [vmem:[#allocation6] sm:$0xf]  ;;  %v378_v14 = vld [vmem:[#allocation6 + $0x4] sm:$0xf]  ;;  %vm12799_vm4 = vmand %vm1092_vm0, %vm441_vm2  ;;  %vm2835_vm8 = vsmask.f32 3328 }
  0x92   : > { %v445_v16 = vshrl.u32 %v377_v13, 16  ;;  %v448_v17 = vshll.u32 %v377_v13, 16  ;;  %v453_v18 = vshrl.u32 %v378_v14, 16  ;;  %vm12803_vm5 = vmor %vm441_vm2, %vm442_vm3  ;;  %v456_v21 = vshll.u32 %v378_v14, 16  ;;  %v12236_v22 = vld [vmem:[#allocation9 + $0xf0] sm:$0xff]   ;;  %v12238_v35 = vld [vmem:[#allocation9 + $0xf8] sm:$0xff]  }
  0x93   : > { %10912 = vmatpush3.bf16.msra.mxu1 %v12226_v4  ;;  %vm12808_vm7 = vmand %vm1085_vm1, %vm1086_vm6  ;;  %v1088_v26 = vld [vmem:[#allocation2 + $0xc] sm:$0xf]  ;;  %v1094_v27 = vld [vmem:[#allocation2 + $0x14] sm:$0x1]  ;;  %vm2836_vm9 = vsmask.f32 7440 }
  0x94   : > { %11232 = vmatpush3.bf16.msra.mxu0 %v12227_v5  ;;  %10913 = vmatprep.subr.bf16.mxu1 %v12228_v6  ;;  %v447_v23 = vrot.slane %v445_v16, 7  ;;  %v455_v24 = vrot.slane %v453_v18, 7  ;;  %v379_v28 = vld [vmem:[#allocation6 + $0x8] sm:$0xf]  ;;  %v380_v29 = vld [vmem:[#allocation6 + $0xc] sm:$0xf]  ;;  %vm12853_vm10 = vmor %vm2835_vm8, %vm2836_vm9 }
  0x95   : > { %11233 = vmatprep.subr.bf16.mxu0 %v12229_v7  ;;  %v12237_v30 = vld [vmem:[#allocation9 + $0x130] sm:$0xff]   ;;  %v462_v36 = vshrl.u32 %v379_v28, 16  ;;  %v465_v37 = vshll.u32 %v379_v28, 16  ;;  %v470_v38 = vshrl.u32 %v380_v29, 16  ;;  %v473_v39 = vshll.u32 %v380_v29, 16  ;;  %v12239_v40 = vld [vmem:[#allocation9 + $0x138] sm:$0xff]   ;;  %vm13276_vm13 = vmor %vm5232_vm11, %vm5233_vm12 }
  0x96   : > { %v450_v31 = vor.u32 %v448_v17, %v447_v23  ;;  %v451_v32 = vrot.slane %v447_v23, 4  ;;  %v458_v33 = vor.u32 %v456_v21, %v455_v24  ;;  %v460_v34 = vrot.slane %v455_v24, 4  ;;  %v1097_v44 = vld [vmem:[#allocation2 + $0x18] sm:$0xf]  ;;  %v381_v47 = vld [vmem:[#allocation6 + $0x10] sm:$0xf] }
  0x97   : > { %10914 = vmatpush3.bf16.msra.mxu1 %v12228_v6  ;;  %v464_v45 = vrot.slane %v462_v36, 7  ;;  %v472_v46 = vrot.slane %v470_v38, 7  ;;  %v382_v48 = vld [vmem:[#allocation6 + $0x14] sm:$0xf]  ;;  %v1101_v49 = vld [vmem:[#allocation2 + $0x20] sm:$0x1] }
  0x98   : > { %11234 = vmatpush3.bf16.msra.mxu0 %v12229_v7  ;;  %10915 = vmatprep.subr.bf16.mxu1 %v12230_v8  ;;  %v459_v41 = vsel %vm12803_vm5, %v451_v32, %v458_v33  ;;  %v1089_v42 = vsel %vm12808_vm7, %v450_v31, %v1088_v26  ;;  %v1095_v43 = vsel %vm12799_vm4, %v460_v34, %v1094_v27  ;;  %v479_v50 = vshrl.u32 %v381_v47, 16  ;;  %v12818_v58 = vld [vmem:[#allocation9] sm:$0xff]   ;;  %v383_v59 = vld [vmem:[#allocation6 + $0x18] sm:$0xf]  ;;  %v384_v62 = vld [vmem:[#allocation6 + $0x1c] sm:$0xf] }
  0x99   : > { %11235 = vmatprep.subr.bf16.mxu0 %v12231_v9  ;;  %1090 = vst [vmem:[#allocation2 + $0xc] sm:$0xf] %v1089_v42  ;;  %1091 = vst [vmem:[#allocation2 + $0x10] sm:$0xf] %v459_v41  ;;  %v482_v51 = vshll.u32 %v381_v47, 16  ;;  %v487_v52 = vshrl.u32 %v382_v48, 16  ;;  %v467_v54 = vor.u32 %v465_v37, %v464_v45  ;;  %v475_v56 = vor.u32 %v473_v39, %v472_v46 }
  0x9a   : > { %1096 = vst [vmem:[#allocation2 + $0x14] sm:$0x1] %v1095_v43  ;;  %v490_v53 = vshll.u32 %v382_v48, 16  ;;  %v468_v55 = vrot.slane %v464_v45, 4  ;;  %v477_v57 = vrot.slane %v472_v46, 4  ;;  %v481_v60 = vrot.slane %v479_v50, 7 }
  0x9b   : > { %10916 = vmatpush3.bf16.msra.mxu1 %v12230_v8  ;;  %v489_v61 = vrot.slane %v487_v52, 7  ;;  %v496_v63 = vshrl.u32 %v383_v59, 16  ;;  %v499_v0 = vshll.u32 %v383_v59, 16  ;;  %v1098_v2 = vsel %vm12808_vm7, %v467_v54, %v1097_v44  ;;  %v12826_v4 = vld [vmem:[#allocation9 + $0x1c0] sm:$0xff]   ;;  %v1104_v5 = vld [vmem:[#allocation2 + $0x24] sm:$0xf] }
  0x9c   : > { %11236 = vmatpush3.bf16.msra.mxu0 %v12231_v9  ;;  %10917 = vmatprep.subr.bf16.mxu1 %v12232_v10  ;;  %v476_v1 = vsel %vm12803_vm5, %v468_v55, %v475_v56  ;;  %v1102_v3 = vsel %vm12799_vm4, %v477_v57, %v1101_v49  ;;  %v1108_v6 = vld [vmem:[#allocation2 + $0x2c] sm:$0x1]  ;;  %v504_v7 = vshrl.u32 %v384_v62, 16  ;;  %1099 = vst [vmem:[#allocation2 + $0x18] sm:$0xf] %v1098_v2  ;;  %v485_v9 = vrot.slane %v481_v60, 4 }
  0x9d   : > { %11237 = vmatprep.subr.bf16.mxu0 %v12233_v11  ;;  %1100 = vst [vmem:[#allocation2 + $0x1c] sm:$0xf] %v476_v1  ;;  %1103 = vst [vmem:[#allocation2 + $0x20] sm:$0x1] %v1102_v3  ;;  %v484_v8 = vor.u32 %v482_v51, %v481_v60  ;;  %v507_v14 = vshll.u32 %v384_v62, 16  ;;  %v12249_v41 = vld [vmem:[#allocation9 + $0x8] sm:$0xff]  }
  0x9e   : > { %v506_v13 = vrot.slane %v504_v7, 7  ;;  %v1111_v32 = vld [vmem:[#allocation2 + $0x30] sm:$0xf]  ;;  %v17393_v52 = vmov 0 }
  0x9f   : > { %10918 = vmatpush3.bf16.msra.mxu1 %v12232_v10  ;;  %v492_v10 = vor.u32 %v490_v53, %v489_v61  ;;  %v1105_v18 = vsel %vm12808_vm7, %v484_v8, %v1104_v5  ;;  %v17394_v52 = vsel %vm12853_vm10, 4294967295, %v17393_v52 }
  0xa0   : > { %11238 = vmatpush3.bf16.msra.mxu0 %v12233_v11  ;;  %10919 = vmatprep.subr.bf16.mxu1 %v12234_v12  ;;  %v494_v11 = vrot.slane %v489_v61, 4  ;;  %v12240_v16 = vld [vmem:[#allocation2 + $0xc] sm:$0xff]   ;;  %1106 = vst [vmem:[#allocation2 + $0x24] sm:$0xf] %v1105_v18  ;;  %v509_v27 = vor.u32 %v507_v14, %v506_v13  ;;  %v511_v51 = vrot.slane %v506_v13, 4  ;;  %17395 = vst [vmem:[#allocation15_spill] sm:$0xff] %v17394_v52 }
  0xa1   : > { %11239 = vmatprep.subr.bf16.mxu0 %v12235_v15  ;;  %v493_v17 = vsel %vm12803_vm5, %v485_v9, %v492_v10  ;;  %v12836_v23 = vld [vmem:[#allocation2 + $0x10] sm:$0xf]  ;;  %v12838_v24 = vld [vmem:[#allocation2 + $0x14] sm:$0x1]  ;;  %10925 = vmatprep.mubr.bf16.mxu1 %v12240_v16 }
  0xa2   : > { %v1109_v21 = vsel %vm12799_vm4, %v494_v11, %v1108_v6  ;;  %1107 = vst [vmem:[#allocation2 + $0x28] sm:$0xf] %v493_v17  ;;  %v2876_v31 = vshrl.u32 %v12836_v23, 16  ;;  %v2882_v33 = vshll.u32 %v12838_v24, 16  ;;  %v17156_v43 = vrot.slane %v12836_v23, 5 }
  0xa3   : > { %10920 = vmatpush3.bf16.msra.mxu1 %v12234_v12  ;;  %v498_v12 = vrot.slane %v496_v63, 7  ;;  %1110 = vst [vmem:[#allocation2 + $0x2c] sm:$0x1] %v1109_v21  ;;  %v2733_v49 = vld [vmem:[#allocation2 + $0x18] sm:$0xf] }
  0xa4   : > { %11240 = vmatpush3.bf16.msra.mxu0 %v12235_v15  ;;  %10921 = vmatprep.subr.bf16.mxu1 %v12236_v22  ;;  %v12828_v15 = vld [vmem:[#allocation6 + $0x20] sm:$0xf]  ;;  %v2884_v42 = vrot.slane %v2882_v33, 5  ;;  %v12241_v48 = vld [vmem:[#allocation2 + $0x18] sm:$0xff]   ;;  %v2735_v53 = vld [vmem:[#allocation2 + $0x20] sm:$0x1] }
  0xa5   : > { %11241 = vmatprep.subr.bf16.mxu0 %v12237_v30  ;;  %v501_v26 = vor.u32 %v499_v0, %v498_v12  ;;  %v502_v34 = vrot.slane %v498_v12, 4  ;;  %v513_v36 = vshrl.u32 %v12828_v15, 16  ;;  %v2734_v50 = vld [vmem:[#allocation2 + $0x1c] sm:$0xf]  ;;  %v2887_v54 = vshrl.u32 %v2733_v49, 16 }
  0xa6   : > { %v2890_v55 = vshll.u32 %v2733_v49, 16  ;;  %v2896_v56 = vshll.u32 %v2734_v50, 16  ;;  %v2900_v57 = vshrl.u32 %v2734_v50, 16  ;;  %v2906_v61 = vshll.u32 %v2735_v53, 16  ;;  %v387_v53 = vld [vmem:[#allocation6 + $0x28] sm:$0xf] }
  0xa7   : > { %10922 = vmatpush3.bf16.msra.mxu1 %v12236_v22  ;;  %v2730_v22 = vld [vmem:[#allocation2 + $0xc] sm:$0xf]  ;;  %v510_v44 = vsel %vm12803_vm5, %v502_v34, %v509_v27  ;;  %v1112_v45 = vsel %vm12808_vm7, %v501_v26, %v1111_v32  ;;  %v2889_v0 = vrot.slane %v2887_v54, 4  ;;  %v2736_v8 = vld [vmem:[#allocation2 + $0x24] sm:$0xf]  ;;  %v12864_v10 = vrot.slane %v513_v36, 7 }
  0xa8   : > { %11242 = vmatpush3.bf16.msra.mxu0 %v12237_v30  ;;  %10923 = vmatprep.subr.bf16.mxu1 %v12238_v35  ;;  %v2863_v28 = vshrl.u32 %v2730_v22, 16  ;;  %v2866_v29 = vshll.u32 %v2730_v22, 16  ;;  %v2872_v30 = vshll.u32 %v12836_v23, 16  ;;  %1113 = vst [vmem:[#allocation2 + $0x30] sm:$0xf] %v1112_v45  ;;  %v2892_v1 = vrot.slane %v2890_v55, 5 }
  0xa9   : > { %11243 = vmatprep.subr.bf16.mxu0 %v12239_v40  ;;  %1114 = vst [vmem:[#allocation2 + $0x34] sm:$0xf] %v510_v44  ;;  %v12244_v62 = vld [vmem:[#allocation2 + $0x24] sm:$0xff]   ;;  %v2898_v2 = vrot.slane %v2896_v56, 5  ;;  %v2902_v3 = vrot.slane %v2900_v57, 4  ;;  %v2908_v7 = vrot.slane %v2906_v61, 5 }
  0xaa   : > { %v2865_v37 = vrot.slane %v2863_v28, 4  ;;  %v2868_v38 = vrot.slane %v2866_v29, 5  ;;  %v2874_v39 = vrot.slane %v2872_v30, 5  ;;  %v2737_v9 = vld [vmem:[#allocation2 + $0x28] sm:$0xf]  ;;  %v2893_v12 = vor.u32 %v2892_v1, %v2889_v0 }
  0xab   : > { %10924 = vmatpush3.bf16.msra.mxu1 %v12238_v35  ;;  %v1115_v35 = vld [vmem:[#allocation2 + $0x38] sm:$0x1]  ;;  %v2903_v13 = vor.u32 %v2902_v3, %v2898_v2  ;;  %v2738_v14 = vld [vmem:[#allocation2 + $0x2c] sm:$0x1]  ;;  %v2914_v16 = vshll.u32 %v2736_v8, 16  ;;  %v2920_v17 = vshll.u32 %v2737_v9, 16 }
  0xac   : > { %11244 = vmatpush3.bf16.msra.mxu0 %v12239_v40  ;;  %10989 = vmatprep.subr.bf16.mxu1 %v12818_v58  ;;  %v2878_v40 = vrot.slane %v2876_v31, 4  ;;  %v2869_v46 = vor.u32 %v2868_v38, %v2865_v37  ;;  %v1116_v63 = vsel %vm12799_vm4, %v511_v51, %v1115_v35  ;;  %v2924_v18 = vshrl.u32 %v2737_v9, 16  ;;  %v386_v37 = vld [vmem:[#allocation6 + $0x24] sm:$0xf]  ;;  %v12250_v57 = vld [vmem:[#allocation9 + $0x1d0] sm:$0xff]  }
  0xad   : > { %11309 = vmatprep.subr.bf16.mxu0 %v12826_v4  ;;  %1117 = vst [vmem:[#allocation2 + $0x38] sm:$0x1] %v1116_v63  ;;  %v2930_v21 = vshll.u32 %v2738_v14, 16  ;;  %v2894_v22 = vrot.slane %v2893_v12, 4  ;;  %v2904_v26 = vrot.slane %v2903_v13, 4  ;;  %v2916_v29 = vrot.slane %v2914_v16, 5 }
  0xae   : > { %v2879_v47 = vor.u32 %v2878_v40, %v2874_v39  ;;  %v2870_v59 = vrot.slane %v2869_v46, 4  ;;  %10926 = vmatmul.mubr.bf16.vlgmr.msra.gmra.mrb[0].mxu1 %v12241_v48  ;;  %v2922_v30 = vrot.slane %v2920_v17, 5  ;;  %v2926_v31 = vrot.slane %v2924_v18, 4  ;;  %v12246_v46 = vld [vmem:[#allocation9 + $0x1c8] sm:$0xff]   ;;  %v389_v9 = vld [vmem:[#allocation6 + $0x30] sm:$0xf] }
  0xaf   : > { %10990 = vmatpush3.bf16.msra.mxu1 %v12818_v58  ;;  %10929 = vmatprep.mubr.bf16.mxu1 %v12244_v62  ;;  %v2911_v58 = vshrl.u32 %v2736_v8, 16  ;;  %v2932_v32 = vrot.slane %v2930_v21, 5  ;;  %v2899_v33 = vsel %vm12853_vm10, %v2894_v22, %v2898_v2  ;;  %v2909_v34 = vsel %vm12853_vm10, %v2904_v26, %v2908_v7  ;;  %v2739_v35 = vld [vmem:[#allocation2 + $0x30] sm:$0xf]  ;;  %v388_v0 = vld [vmem:[#allocation6 + $0x2c] sm:$0xf] }
  0xb0   : > { %v2880_v60 = vrot.slane %v2879_v47, 4  ;;  %v2875_v5 = vsel %vm12853_vm10, %v2870_v59, %v2874_v39  ;;  %10991 = vmatprep.subr.bf16.mxu1 %v12249_v41  ;;  %v12245_v28 = vld [vmem:[#allocation2 + $0x30] sm:$0xff]   ;;  %v516_v38 = vshll.u32 %v12828_v15, 16  ;;  %v519_v39 = vrot.slane %v12864_v10, 4  ;;  %v1118_v47 = vld [vmem:[#allocation2 + $0x3c] sm:$0xf] }
  0xb1   : > { %v2913_v27 = vrot.slane %v2911_v58, 4  ;;  %v2740_v36 = vld [vmem:[#allocation2 + $0x34] sm:$0xf]  ;;  %v12875_v40 = vcombine.low %v2899_v33, %v2909_v34  ;;  %v2935_v45 = vshrl.u32 %v2739_v35, 16  ;;  %v2938_v48 = vshll.u32 %v2739_v35, 16  ;;  %v12256_v59 = vld [vmem:[#allocation9 + $0x10] sm:$0xff]  }
  0xb2   : > { %v2885_v6 = vsel %vm12853_vm10, %v2880_v60, %v2884_v42  ;;  %v2927_v42 = vor.u32 %v2926_v31, %v2922_v30  ;;  %v2944_v49 = vshll.u32 %v2740_v36, 16  ;;  %v2948_v50 = vshrl.u32 %v2740_v36, 16  ;;  %v1122_v13 = vld [vmem:[#allocation2 + $0x44] sm:$0x1]  ;;  %v1125_v22 = vld [vmem:[#allocation2 + $0x48] sm:$0xf] }
  0xb3   : > { %v12866_v11 = vcombine.low %v2875_v5, %v2885_v6  ;;  %10992 = vmatpush3.bf16.msra.mxu1 %v12249_v41  ;;  %17397 = vst [vmem:[#allocation17_spill] sm:$0xff] %v12875_v40  ;;  %v2917_v41 = vor.u32 %v2916_v29, %v2913_v27  ;;  %v2937_v55 = vrot.slane %v2935_v45, 4  ;;  %v518_v56 = vor.u32 %v516_v38, %v12864_v10  ;;  %v1129_v31 = vld [vmem:[#allocation2 + $0x50] sm:$0x1]  ;;  %v390_v35 = vld [vmem:[#allocation6 + $0x34] sm:$0xf] }
  0xb4   : > { %v2741_v44 = vld [vmem:[#allocation2 + $0x38] sm:$0x1]  ;;  %v2928_v15 = vrot.slane %v2927_v42, 4  ;;  %v2940_v60 = vrot.slane %v2938_v48, 5  ;;  %v2946_v61 = vrot.slane %v2944_v49, 5  ;;  %v2950_v62 = vrot.slane %v2948_v50, 4  ;;  %10993 = vmatprep.subr.bf16.mxu1 %v12256_v59 }
  0xb5   : > { %17396 = vst [vmem:[#allocation16_spill] sm:$0xff] %v12866_v11  ;;  %11245 = vmatprep.mubr.bf16.mxu0 %v12866_v11  ;;  %v2954_v51 = vshll.u32 %v2741_v44, 16  ;;  %v2918_v54 = vrot.slane %v2917_v41, 4  ;;  %v521_v3 = vshrl.u32 %v386_v37, 16  ;;  %v524_v5 = vshll.u32 %v386_v37, 16 }
  0xb6   : > { %10930 = vmatmul.mubr.bf16.gmra.mrb[4].mxu1 %v12245_v28  ;;  %11246 = vmatmul.mubr.bf16.vlgmr.msra.gmra.mrb[0].mxu0 %v12875_v40  ;;  %v2933_v2 = vsel %vm12853_vm10, %v2928_v15, %v2932_v32  ;;  %v2941_v7 = vor.u32 %v2940_v60, %v2937_v55  ;;  %v2951_v8 = vor.u32 %v2950_v62, %v2946_v61  ;;  %v530_v14 = vshrl.u32 %v387_v53, 16  ;;  %v12253_v32 = vld [vmem:[#allocation9 + $0x1d8] sm:$0xff]   ;;  %v1132_v38 = vld [vmem:[#allocation2 + $0x54] sm:$0xf] }
  0xb7   : > { %11310 = vmatpush3.bf16.msra.mxu0 %v12826_v4  ;;  %v2956_v63 = vrot.slane %v2954_v51, 5  ;;  %v2923_v1 = vsel %vm12853_vm10, %v2918_v54, %v2922_v30  ;;  %v1119_v4 = vsel %vm12808_vm7, %v518_v56, %v1118_v47  ;;  %10994 = vmatpush3.bf16.msra.mxu1 %v12256_v59  ;;  %v523_v12 = vrot.slane %v521_v3, 7  ;;  %v392_v51 = vld [vmem:[#allocation6 + $0x3c] sm:$0xf]  ;;  %v393_v15 = vld [vmem:[#allocation6 + $0x40] sm:$0xf] }
  0xb8   : > { %11311 = vmatprep.subr.bf16.mxu0 %v12246_v46  ;;  %v12884_v6 = vcombine.low %v2923_v1, %v2933_v2  ;;  %1120 = vst [vmem:[#allocation2 + $0x3c] sm:$0xf] %v1119_v4  ;;  %v533_v58 = vshll.u32 %v387_v53, 16  ;;  %v538_v16 = vshrl.u32 %v388_v0, 16  ;;  %v2942_v17 = vrot.slane %v2941_v7, 4  ;;  %v12257_v55 = vld [vmem:[#allocation9 + $0x1e0] sm:$0xff]  }
  0xb9   : > { %v2952_v18 = vrot.slane %v2951_v8, 4  ;;  %v541_v21 = vshll.u32 %v388_v0, 16  ;;  %v547_v26 = vshrl.u32 %v389_v9, 16  ;;  %v526_v27 = vor.u32 %v524_v5, %v523_v12  ;;  %v12263_v62 = vld [vmem:[#allocation9 + $0x18] sm:$0xff]   ;;  %v1136_v3 = vld [vmem:[#allocation2 + $0x5c] sm:$0x1] }
  0xba   : > { %17398 = vst [vmem:[#allocation18_spill] sm:$0xff] %v12884_v6  ;;  %11249 = vmatprep.mubr.bf16.mxu0 %v12884_v6  ;;  %v528_v28 = vrot.slane %v523_v12, 4  ;;  %v532_v29 = vrot.slane %v530_v14, 7  ;;  %v540_v30 = vrot.slane %v538_v16, 7  ;;  %v2947_v33 = vsel %vm12853_vm10, %v2942_v17, %v2946_v61  ;;  %10995 = vmatprep.subr.bf16.mxu1 %v12263_v62  ;;  %v12260_v16 = vld [vmem:[#allocation9 + $0x1e8] sm:$0xff]  }
  0xbb   : > { %11312 = vmatpush3.bf16.msra.mxu0 %v12246_v46  ;;  %v2957_v34 = vsel %vm12853_vm10, %v2952_v18, %v2956_v63  ;;  %v12893_v36 = vrot.slane %v547_v26, 7  ;;  %v550_v37 = vshll.u32 %v389_v9, 16  ;;  %v527_v42 = vsel %vm12803_vm5, %v519_v39, %v526_v27  ;;  %v391_v46 = vld [vmem:[#allocation6 + $0x38] sm:$0xf]  ;;  %10996 = vmatpush3.bf16.msra.mxu1 %v12263_v62 }
  0xbc   : > { %11313 = vmatprep.subr.bf16.mxu0 %v12250_v57  ;;  %v12895_v41 = vcombine.low %v2947_v33, %v2957_v34  ;;  %v1123_v44 = vsel %vm12799_vm4, %v528_v28, %v1122_v13  ;;  %v535_v45 = vor.u32 %v533_v58, %v532_v29  ;;  %1121 = vst [vmem:[#allocation2 + $0x40] sm:$0xf] %v527_v42  ;;  %v536_v47 = vrot.slane %v532_v29, 4  ;;  %v1139_v58 = vld [vmem:[#allocation2 + $0x60] sm:$0xf] }
  0xbd   : > { %1124 = vst [vmem:[#allocation2 + $0x44] sm:$0x1] %v1123_v44  ;;  %v543_v48 = vor.u32 %v541_v21, %v540_v30  ;;  %v545_v49 = vrot.slane %v540_v30, 4  ;;  %v552_v50 = vor.u32 %v550_v37, %v12893_v36  ;;  %v553_v39 = vrot.slane %v12893_v36, 4  ;;  %v1146_v27 = vld [vmem:[#allocation2 + $0x6c] sm:$0xf] }
  0xbe   : > { %17399 = vst [vmem:[#allocation19_spill] sm:$0xff] %v12895_v41  ;;  %11250 = vmatmul.mubr.bf16.gmra.mrb[4].mxu0 %v12895_v41  ;;  %v1126_v10 = vsel %vm12808_vm7, %v535_v45, %v1125_v22  ;;  %v555_v53 = vshrl.u32 %v390_v35, 16  ;;  %v558_v54 = vshll.u32 %v390_v35, 16  ;;  %v564_v61 = vshrl.u32 %v391_v46, 16  ;;  %v1143_v22 = vld [vmem:[#allocation2 + $0x68] sm:$0x1] }
  0xbf   : > { %11314 = vmatpush3.bf16.msra.mxu0 %v12250_v57  ;;  %v2742_v56 = vld [vmem:[#allocation2 + $0x3c] sm:$0xf]  ;;  %v544_v59 = vsel %vm12803_vm5, %v536_v47, %v543_v48  ;;  %1127 = vst [vmem:[#allocation2 + $0x48] sm:$0xf] %v1126_v10  ;;  %v1130_v57 = vsel %vm12799_vm4, %v545_v49, %v1129_v31  ;;  %v1133_v60 = vsel %vm12808_vm7, %v552_v50, %v1132_v38  ;;  %v567_v2 = vshll.u32 %v391_v46, 16  ;;  %v12264_v34 = vld [vmem:[#allocation9 + $0x1f0] sm:$0xff]  }
  0xc0   : > { %11315 = vmatprep.subr.bf16.mxu0 %v12253_v32  ;;  %v2959_v63 = vshrl.u32 %v2742_v56, 16  ;;  %v2962_v0 = vshll.u32 %v2742_v56, 16  ;;  %1128 = vst [vmem:[#allocation2 + $0x4c] sm:$0xf] %v544_v59  ;;  %1131 = vst [vmem:[#allocation2 + $0x50] sm:$0x1] %v1130_v57 }
  0xc1   : > { %v557_v1 = vrot.slane %v555_v53, 7  ;;  %1134 = vst [vmem:[#allocation2 + $0x54] sm:$0xf] %v1133_v60  ;;  %v566_v5 = vrot.slane %v564_v61, 7  ;;  %v572_v7 = vshrl.u32 %v392_v51, 16  ;;  %v575_v8 = vshll.u32 %v392_v51, 16 }
  0xc2   : > { %v581_v4 = vshrl.u32 %v393_v15, 16  ;;  %v2961_v9 = vrot.slane %v2959_v63, 4  ;;  %v2964_v12 = vrot.slane %v2962_v0, 5  ;;  %v584_v33 = vshll.u32 %v393_v15, 16  ;;  %v12270_v44 = vld [vmem:[#allocation9 + $0x20] sm:$0xff]   ;;  %v12267_v61 = vld [vmem:[#allocation9 + $0x1f8] sm:$0xff]  }
  0xc3   : > { %11316 = vmatpush3.bf16.msra.mxu0 %v12253_v32  ;;  %v560_v13 = vor.u32 %v558_v54, %v557_v1  ;;  %v562_v14 = vrot.slane %v557_v1, 4  ;;  %v569_v17 = vor.u32 %v567_v2, %v566_v5  ;;  %v570_v18 = vrot.slane %v566_v5, 4  ;;  %v12247_v28 = vld [vmem:[#allocation2 + $0x3c] sm:$0xff]   ;;  %10997 = vmatprep.subr.bf16.mxu1 %v12270_v44  ;;  %v12927_v57 = vld [vmem:[#allocation6 + $0x44] sm:$0xf] }
  0xc4   : > { %11317 = vmatprep.subr.bf16.mxu0 %v12257_v55  ;;  %v574_v21 = vrot.slane %v572_v7, 7  ;;  %v12914_v26 = vrot.slane %v581_v4, 7  ;;  %v2743_v29 = vld [vmem:[#allocation2 + $0x40] sm:$0xf]  ;;  %v2965_v30 = vor.u32 %v2964_v12, %v2961_v9  ;;  %v2744_v35 = vld [vmem:[#allocation2 + $0x44] sm:$0x1]  ;;  %10933 = vmatprep.mubr.bf16.mxu1 %v12247_v28 }
  0xc5   : > { %v561_v31 = vsel %vm12803_vm5, %v553_v39, %v560_v13  ;;  %v1137_v32 = vsel %vm12799_vm4, %v562_v14, %v1136_v3  ;;  %v2968_v36 = vshll.u32 %v2743_v29, 16  ;;  %v2972_v37 = vshrl.u32 %v2743_v29, 16  ;;  %10998 = vmatpush3.bf16.msra.mxu1 %v12270_v44 }
  0xc6   : > { %1135 = vst [vmem:[#allocation2 + $0x58] sm:$0xf] %v561_v31  ;;  %1138 = vst [vmem:[#allocation2 + $0x5c] sm:$0x1] %v1137_v32  ;;  %v577_v38 = vor.u32 %v575_v8, %v574_v21  ;;  %v579_v42 = vrot.slane %v574_v21, 4  ;;  %v2966_v45 = vrot.slane %v2965_v30, 4  ;;  %v1140_v48 = vsel %vm12808_vm7, %v569_v17, %v1139_v58 }
  0xc7   : > { %11318 = vmatpush3.bf16.msra.mxu0 %v12257_v55  ;;  %v2978_v46 = vshll.u32 %v2744_v35, 16  ;;  %v2745_v47 = vld [vmem:[#allocation2 + $0x48] sm:$0xf]  ;;  %v586_v49 = vor.u32 %v584_v33, %v12914_v26  ;;  %v2970_v50 = vrot.slane %v2968_v36, 5  ;;  %v2974_v51 = vrot.slane %v2972_v37, 4 }
  0xc8   : > { %11319 = vmatprep.subr.bf16.mxu0 %v12260_v16  ;;  %v12248_v10 = vld [vmem:[#allocation2 + $0x48] sm:$0xff]   ;;  %v2983_v39 = vshrl.u32 %v2745_v47, 16  ;;  %v578_v53 = vsel %vm12803_vm5, %v570_v18, %v577_v38  ;;  %1141 = vst [vmem:[#allocation2 + $0x60] sm:$0xf] %v1140_v48  ;;  %v2747_v55 = vld [vmem:[#allocation2 + $0x50] sm:$0x1]  ;;  %v1144_v59 = vsel %vm12799_vm4, %v579_v42, %v1143_v22 }
  0xc9   : > { %v2980_v54 = vrot.slane %v2978_v46, 5  ;;  %v2746_v15 = vld [vmem:[#allocation2 + $0x4c] sm:$0xf]  ;;  %v2986_v56 = vshll.u32 %v2745_v47, 16  ;;  %1142 = vst [vmem:[#allocation2 + $0x64] sm:$0xf] %v578_v53  ;;  %v1147_v60 = vsel %vm12808_vm7, %v586_v49, %v1146_v27  ;;  %v2971_v62 = vsel %vm12853_vm10, %v2966_v45, %v2970_v50  ;;  %10934 = vmatmul.mubr.bf16.gmra.mrb[8].mxu1 %v12248_v10 }
  0xca   : > { %v2975_v63 = vor.u32 %v2974_v51, %v2970_v50  ;;  %v2985_v0 = vrot.slane %v2983_v39, 4  ;;  %v2992_v1 = vshll.u32 %v2746_v15, 16  ;;  %v2748_v2 = vld [vmem:[#allocation2 + $0x54] sm:$0xf]  ;;  %1145 = vst [vmem:[#allocation2 + $0x68] sm:$0x1] %v1144_v59 }
  0xcb   : > { %1148 = vst [vmem:[#allocation2 + $0x6c] sm:$0xf] %v1147_v60  ;;  %11320 = vmatpush3.bf16.msra.mxu0 %v12260_v16  ;;  %v2988_v3 = vrot.slane %v2986_v56, 5  ;;  %v2996_v5 = vshrl.u32 %v2746_v15, 16  ;;  %v3002_v7 = vshll.u32 %v2747_v55, 16  ;;  %v3007_v8 = vshrl.u32 %v2748_v2, 16 }
  0xcc   : > { %11321 = vmatprep.subr.bf16.mxu0 %v12264_v34  ;;  %v2976_v4 = vrot.slane %v2975_v63, 4  ;;  %v2994_v9 = vrot.slane %v2992_v1, 5  ;;  %v3010_v12 = vshll.u32 %v2748_v2, 16  ;;  %v587_v13 = vrot.slane %v12914_v26, 4  ;;  %v12271_v56 = vld [vmem:[#allocation9 + $0x80] sm:$0xff]  }
  0xcd   : > { %v2989_v14 = vor.u32 %v2988_v3, %v2985_v0  ;;  %v2998_v58 = vrot.slane %v2996_v5, 4  ;;  %v3004_v17 = vrot.slane %v3002_v7, 5  ;;  %v12251_v18 = vld [vmem:[#allocation2 + $0x54] sm:$0xff]   ;;  %v3009_v21 = vrot.slane %v3007_v8, 4  ;;  %v2750_v16 = vld [vmem:[#allocation2 + $0x5c] sm:$0x1] }
  0xce   : > { %v2981_v22 = vsel %vm12853_vm10, %v2976_v4, %v2980_v54  ;;  %v2749_v27 = vld [vmem:[#allocation2 + $0x58] sm:$0xf]  ;;  %v3012_v28 = vrot.slane %v3010_v12, 5  ;;  %v589_v29 = vshrl.u32 %v12927_v57, 16  ;;  %10937 = vmatprep.mubr.bf16.mxu1 %v12251_v18  ;;  %v3026_v38 = vshll.u32 %v2750_v16, 16 }
  0xcf   : > { %11322 = vmatpush3.bf16.msra.mxu0 %v12264_v34  ;;  %v12937_v30 = vcombine.low %v2971_v62, %v2981_v22  ;;  %v2990_v31 = vrot.slane %v2989_v14, 4  ;;  %v2999_v32 = vor.u32 %v2998_v58, %v2994_v9  ;;  %v3016_v33 = vshll.u32 %v2749_v27, 16  ;;  %v2751_v35 = vld [vmem:[#allocation2 + $0x60] sm:$0xf]  ;;  %v395_v5 = vld [vmem:[#allocation6 + $0x48] sm:$0xf] }
  0xd0   : > { %11323 = vmatprep.subr.bf16.mxu0 %v12267_v61  ;;  %v3013_v36 = vor.u32 %v3012_v28, %v3009_v21  ;;  %v3020_v37 = vshrl.u32 %v2749_v27, 16  ;;  %v12252_v42 = vld [vmem:[#allocation2 + $0x60] sm:$0xff]   ;;  %v3031_v44 = vshrl.u32 %v2751_v35, 16  ;;  %v3028_v51 = vrot.slane %v3026_v38, 5  ;;  %v434_v26 = vld [vmem:[#allocation6 + $0xe4] sm:$0xf] }
  0xd1   : > { %17400 = vst [vmem:[#allocation20_spill] sm:$0xff] %v12937_v30  ;;  %11253 = vmatprep.mubr.bf16.mxu0 %v12937_v30  ;;  %v2995_v45 = vsel %vm12853_vm10, %v2990_v31, %v2994_v9  ;;  %v3000_v46 = vrot.slane %v2999_v32, 4  ;;  %v3018_v34 = vrot.slane %v3016_v33, 5  ;;  %v2752_v47 = vld [vmem:[#allocation2 + $0x64] sm:$0xf]  ;;  %10938 = vmatmul.mubr.bf16.gmra.mrb[12].mxu1 %v12252_v42  ;;  %v3034_v53 = vshll.u32 %v2751_v35, 16 }
  0xd2   : > { %v2753_v48 = vld [vmem:[#allocation2 + $0x68] sm:$0x1]  ;;  %v3014_v49 = vrot.slane %v3013_v36, 4  ;;  %v3022_v50 = vrot.slane %v3020_v37, 4  ;;  %v3033_v10 = vrot.slane %v3031_v44, 4  ;;  %v3040_v54 = vshll.u32 %v2752_v47, 16 }
  0xd3   : > { %11324 = vmatpush3.bf16.msra.mxu0 %v12267_v61  ;;  %v3005_v39 = vsel %vm12853_vm10, %v3000_v46, %v3004_v17  ;;  %v3044_v15 = vshrl.u32 %v2752_v47, 16  ;;  %v2754_v55 = vld [vmem:[#allocation2 + $0x6c] sm:$0xf]  ;;  %v3050_v63 = vshll.u32 %v2753_v48, 16  ;;  %v12276_v0 = vld [vmem:[#allocation9 + $0x28] sm:$0xff]   ;;  %v3036_v1 = vrot.slane %v3034_v53, 5 }
  0xd4   : > { %v12944_v59 = vcombine.low %v2995_v45, %v3005_v39  ;;  %v3019_v60 = vsel %vm12853_vm10, %v3014_v49, %v3018_v34  ;;  %v3023_v62 = vor.u32 %v3022_v50, %v3018_v34  ;;  %v3042_v2 = vrot.slane %v3040_v54, 5  ;;  %11389 = vmatprep.subr.bf16.mxu0 %v12271_v56  ;;  %v1150_v9 = vld [vmem:[#allocation2 + $0x74] sm:$0x1]  ;;  %10999 = vmatprep.subr.bf16.mxu1 %v12276_v0  ;;  %v396_v16 = vld [vmem:[#allocation6 + $0x4c] sm:$0xf] }
  0xd5   : > { %v3046_v3 = vrot.slane %v3044_v15, 4  ;;  %v591_v61 = vrot.slane %v589_v29, 7  ;;  %v3052_v8 = vrot.slane %v3050_v63, 5  ;;  %v592_v4 = vshll.u32 %v12927_v57, 16  ;;  %11000 = vmatpush3.bf16.msra.mxu1 %v12276_v0  ;;  %v1153_v33 = vld [vmem:[#allocation2 + $0x78] sm:$0xf] }
  0xd6   : > { %17401 = vst [vmem:[#allocation21_spill] sm:$0xff] %v12944_v59  ;;  %11254 = vmatmul.mubr.bf16.gmra.mrb[8].mxu0 %v12944_v59  ;;  %v3024_v7 = vrot.slane %v3023_v62, 4  ;;  %v3055_v12 = vshrl.u32 %v2754_v55, 16  ;;  %v3037_v14 = vor.u32 %v3036_v1, %v3033_v10  ;;  %v3058_v18 = vshll.u32 %v2754_v55, 16  ;;  %v397_v35 = vld [vmem:[#allocation6 + $0x50] sm:$0xf] }
  0xd7   : > { %v3047_v58 = vor.u32 %v3046_v3, %v3042_v2  ;;  %v596_v17 = vrot.slane %v591_v61, 4  ;;  %v594_v22 = vor.u32 %v592_v4, %v591_v61  ;;  %v598_v28 = vshrl.u32 %v395_v5, 16  ;;  %v398_v36 = vld [vmem:[#allocation6 + $0x54] sm:$0xf]  ;;  %v399_v48 = vld [vmem:[#allocation6 + $0x58] sm:$0xf] }
  0xd8   : > { %v3029_v21 = vsel %vm12853_vm10, %v3024_v7, %v3028_v51  ;;  %v12952_v27 = vrot.slane %v3055_v12, 4  ;;  %v3038_v31 = vrot.slane %v3037_v14, 4  ;;  %v3060_v38 = vrot.slane %v3058_v18, 5  ;;  %v12282_v51 = vld [vmem:[#allocation9 + $0x30] sm:$0xff]   ;;  %v400_v15 = vld [vmem:[#allocation6 + $0x5c] sm:$0xf] }
  0xd9   : > { %v12954_v29 = vcombine.low %v3019_v60, %v3029_v21  ;;  %v3048_v57 = vrot.slane %v3047_v58, 4  ;;  %v1151_v32 = vsel %vm12799_vm4, %v596_v17, %v1150_v9  ;;  %v595_v37 = vsel %vm12803_vm5, %v587_v13, %v594_v22  ;;  %v1157_v60 = vld [vmem:[#allocation2 + $0x80] sm:$0x1]  ;;  %11001 = vmatprep.subr.bf16.mxu1 %v12282_v51  ;;  %v1160_v61 = vld [vmem:[#allocation2 + $0x84] sm:$0xf] }
  0xda   : > { %1152 = vst [vmem:[#allocation2 + $0x74] sm:$0x1] %v1151_v32  ;;  %v600_v42 = vrot.slane %v598_v28, 7  ;;  %v601_v44 = vshll.u32 %v395_v5, 16  ;;  %v3043_v45 = vsel %vm12853_vm10, %v3038_v31, %v3042_v2  ;;  %1149 = vst [vmem:[#allocation2 + $0x70] sm:$0xf] %v595_v37  ;;  %v3061_v55 = vor.u32 %v3060_v38, %v12952_v27  ;;  %11002 = vmatpush3.bf16.msra.mxu1 %v12282_v51 }
  0xdb   : > { %17402 = vst [vmem:[#allocation22_spill] sm:$0xff] %v12954_v29  ;;  %11257 = vmatprep.mubr.bf16.mxu0 %v12954_v29  ;;  %v3053_v46 = vsel %vm12853_vm10, %v3048_v57, %v3052_v8  ;;  %v606_v34 = vshrl.u32 %v396_v16, 16  ;;  %v609_v47 = vshll.u32 %v396_v16, 16  ;;  %v615_v39 = vshrl.u32 %v397_v35, 16  ;;  %v12288_v5 = vld [vmem:[#allocation9 + $0x38] sm:$0xff]  }
  0xdc   : > { %v12968_v49 = vcombine.low %v3043_v45, %v3053_v46  ;;  %v603_v13 = vor.u32 %v601_v44, %v600_v42  ;;  %v604_v50 = vrot.slane %v600_v42, 4  ;;  %v618_v53 = vshll.u32 %v397_v35, 16  ;;  %v1164_v7 = vld [vmem:[#allocation2 + $0x8c] sm:$0x1]  ;;  %v1167_v14 = vld [vmem:[#allocation2 + $0x90] sm:$0xf]  ;;  %11003 = vmatprep.subr.bf16.mxu1 %v12288_v5 }
  0xdd   : > { %v608_v10 = vrot.slane %v606_v34, 7  ;;  %v623_v54 = vshrl.u32 %v398_v36, 16  ;;  %v626_v62 = vshll.u32 %v398_v36, 16  ;;  %v632_v63 = vshrl.u32 %v399_v48, 16  ;;  %v401_v27 = vld [vmem:[#allocation6 + $0x60] sm:$0xf] }
  0xde   : > { %17403 = vst [vmem:[#allocation23_spill] sm:$0xff] %v12968_v49  ;;  %11258 = vmatmul.mubr.bf16.gmra.mrb[12].mxu0 %v12968_v49  ;;  %v1154_v56 = vsel %vm12808_vm7, %v603_v13, %v1153_v33  ;;  %v617_v2 = vrot.slane %v615_v39, 7  ;;  %v635_v4 = vshll.u32 %v399_v48, 16  ;;  %v640_v9 = vshrl.u32 %v400_v15, 16  ;;  %11004 = vmatpush3.bf16.msra.mxu1 %v12288_v5  ;;  %v1171_v46 = vld [vmem:[#allocation2 + $0x98] sm:$0x1] }
  0xdf   : > { %v611_v0 = vor.u32 %v609_v47, %v608_v10  ;;  %v613_v1 = vrot.slane %v608_v10, 4  ;;  %1155 = vst [vmem:[#allocation2 + $0x78] sm:$0xf] %v1154_v56  ;;  %v625_v3 = vrot.slane %v623_v54, 7  ;;  %v634_v8 = vrot.slane %v632_v63, 7 }
  0xe0   : > { %v643_v12 = vshll.u32 %v400_v15, 16  ;;  %v620_v21 = vor.u32 %v618_v53, %v617_v2  ;;  %v621_v22 = vrot.slane %v617_v2, 4  ;;  %v3062_v38 = vrot.slane %v3061_v55, 4 }
  0xe1   : > { %v2756_v58 = vld [vmem:[#allocation2 + $0x74] sm:$0x1]  ;;  %v612_v17 = vsel %vm12803_vm5, %v604_v50, %v611_v0  ;;  %v1158_v18 = vsel %vm12799_vm4, %v613_v1, %v1157_v60  ;;  %v12254_v16 = vld [vmem:[#allocation2 + $0x6c] sm:$0xff]   ;;  %v628_v57 = vor.u32 %v626_v62, %v625_v3  ;;  %v637_v32 = vor.u32 %v635_v4, %v634_v8  ;;  %v1174_v0 = vld [vmem:[#allocation2 + $0x9c] sm:$0xf] }
  0xe2   : > { %v2755_v28 = vld [vmem:[#allocation2 + $0x70] sm:$0xf]  ;;  %v3074_v31 = vshll.u32 %v2756_v58, 16  ;;  %1156 = vst [vmem:[#allocation2 + $0x7c] sm:$0xf] %v612_v17  ;;  %v630_v36 = vrot.slane %v625_v3, 4  ;;  %v1161_v37 = vsel %vm12808_vm7, %v620_v21, %v1160_v61  ;;  %10941 = vmatprep.mubr.bf16.mxu1 %v12254_v16 }
  0xe3   : > { %1159 = vst [vmem:[#allocation2 + $0x80] sm:$0x1] %v1158_v18  ;;  %v3064_v33 = vshll.u32 %v2755_v28, 16  ;;  %v3068_v35 = vshrl.u32 %v2755_v28, 16  ;;  %v629_v42 = vsel %vm12803_vm5, %v621_v22, %v628_v57  ;;  %1162 = vst [vmem:[#allocation2 + $0x84] sm:$0xf] %v1161_v37  ;;  %v1168_v13 = vsel %vm12808_vm7, %v637_v32, %v1167_v14 }
  0xe4   : > { %v638_v44 = vrot.slane %v634_v8, 4  ;;  %v642_v45 = vrot.slane %v640_v9, 7  ;;  %1163 = vst [vmem:[#allocation2 + $0x88] sm:$0xf] %v629_v42  ;;  %v1165_v48 = vsel %vm12799_vm4, %v630_v36, %v1164_v7  ;;  %1169 = vst [vmem:[#allocation2 + $0x90] sm:$0xf] %v1168_v13 }
  0xe5   : > { %v3066_v34 = vrot.slane %v3064_v33, 5  ;;  %v3070_v47 = vrot.slane %v3068_v35, 4  ;;  %1166 = vst [vmem:[#allocation2 + $0x8c] sm:$0x1] %v1165_v48  ;;  %v649_v39 = vshrl.u32 %v401_v27, 16  ;;  %v3076_v54 = vrot.slane %v3074_v31, 5 }
  0xe6   : > { %v2757_v50 = vld [vmem:[#allocation2 + $0x78] sm:$0xf]  ;;  %v645_v51 = vor.u32 %v643_v12, %v642_v45  ;;  %v647_v10 = vrot.slane %v642_v45, 4  ;;  %v652_v63 = vshll.u32 %v401_v27, 16 }
  0xe7   : > { %v3071_v53 = vor.u32 %v3070_v47, %v3066_v34  ;;  %v3079_v15 = vshrl.u32 %v2757_v50, 16  ;;  %v3082_v55 = vshll.u32 %v2757_v50, 16  ;;  %v12990_v62 = vrot.slane %v649_v39, 7  ;;  %v12994_v12 = vld [vmem:[#allocation6 + $0x64] sm:$0xf] }
  0xe8   : > { %v646_v56 = vsel %vm12803_vm5, %v638_v44, %v645_v51  ;;  %v1172_v60 = vsel %vm12799_vm4, %v647_v10, %v1171_v46  ;;  %v3067_v1 = vsel %vm12853_vm10, %v3062_v38, %v3066_v34  ;;  %v12293_v57 = vld [vmem:[#allocation9 + $0x180] sm:$0xff]   ;;  %v657_v13 = vshrl.u32 %v12994_v12, 16 }
  0xe9   : > { %v3072_v2 = vrot.slane %v3071_v53, 4  ;;  %v12255_v3 = vld [vmem:[#allocation2 + $0x78] sm:$0xff]   ;;  %1170 = vst [vmem:[#allocation2 + $0x94] sm:$0xf] %v646_v56  ;;  %1173 = vst [vmem:[#allocation2 + $0x98] sm:$0x1] %v1172_v60  ;;  %v654_v18 = vor.u32 %v652_v63, %v12990_v62  ;;  %11069 = vmatprep.subr.bf16.mxu1 %v12293_v57 }
  0xea   : > { %v2758_v61 = vld [vmem:[#allocation2 + $0x7c] sm:$0xf]  ;;  %v2759_v5 = vld [vmem:[#allocation2 + $0x80] sm:$0x1]  ;;  %v3081_v7 = vrot.slane %v3079_v15, 4  ;;  %v3084_v8 = vrot.slane %v3082_v55, 5  ;;  %10942 = vmatmul.mubr.bf16.gmra.mrb[16].mxu1 %v12255_v3 }
  0xeb   : > { %v3088_v4 = vshll.u32 %v2758_v61, 16  ;;  %v3092_v9 = vshrl.u32 %v2758_v61, 16  ;;  %v3077_v14 = vsel %vm12853_vm10, %v3072_v2, %v3076_v54  ;;  %v3098_v58 = vshll.u32 %v2759_v5, 16  ;;  %v2760_v17 = vld [vmem:[#allocation2 + $0x84] sm:$0xf] }
  0xec   : > { %v655_v21 = vrot.slane %v12990_v62, 4  ;;  %v13000_v22 = vcombine.low %v3067_v1, %v3077_v14  ;;  %v3085_v27 = vor.u32 %v3084_v8, %v3081_v7  ;;  %v12258_v31 = vld [vmem:[#allocation2 + $0x84] sm:$0xff]   ;;  %v2762_v35 = vld [vmem:[#allocation2 + $0x8c] sm:$0x1]  ;;  %v3103_v36 = vshrl.u32 %v2760_v17, 16 }
  0xed   : > { %v3090_v16 = vrot.slane %v3088_v4, 5  ;;  %v3094_v28 = vrot.slane %v3092_v9, 4  ;;  %v3100_v32 = vrot.slane %v3098_v58, 5  ;;  %v2761_v33 = vld [vmem:[#allocation2 + $0x88] sm:$0xf]  ;;  %v1175_v37 = vsel %vm12808_vm7, %v654_v18, %v1174_v0  ;;  %10945 = vmatprep.mubr.bf16.mxu1 %v12258_v31 }
  0xee   : > { %17404 = vst [vmem:[#allocation24_spill] sm:$0xff] %v13000_v22  ;;  %11261 = vmatprep.mubr.bf16.mxu0 %v13000_v22  ;;  %v3086_v38 = vrot.slane %v3085_v27, 4  ;;  %v3106_v44 = vshll.u32 %v2760_v17, 16  ;;  %v3112_v45 = vshll.u32 %v2761_v33, 16  ;;  %1176 = vst [vmem:[#allocation2 + $0x9c] sm:$0xf] %v1175_v37 }
  0xef   : > { %v3095_v42 = vor.u32 %v3094_v28, %v3090_v16  ;;  %v3105_v46 = vrot.slane %v3103_v36, 4  ;;  %v3116_v34 = vshrl.u32 %v2761_v33, 16  ;;  %v3122_v47 = vshll.u32 %v2762_v35, 16  ;;  %v2763_v48 = vld [vmem:[#allocation2 + $0x90] sm:$0xf] }
  0xf0   : > { %v3091_v50 = vsel %vm12853_vm10, %v3086_v38, %v3090_v16  ;;  %v3108_v10 = vrot.slane %v3106_v44, 5  ;;  %v3114_v39 = vrot.slane %v3112_v45, 5  ;;  %v12259_v53 = vld [vmem:[#allocation2 + $0x90] sm:$0xff]   ;;  %v2765_v56 = vld [vmem:[#allocation2 + $0x98] sm:$0x1]  ;;  %v3127_v0 = vshrl.u32 %v2763_v48, 16 }
  0xf1   : > { %v3096_v51 = vrot.slane %v3095_v42, 4  ;;  %v3118_v54 = vrot.slane %v3116_v34, 4  ;;  %v3124_v15 = vrot.slane %v3122_v47, 5  ;;  %v2764_v55 = vld [vmem:[#allocation2 + $0x94] sm:$0xf]  ;;  %v3130_v1 = vshll.u32 %v2763_v48, 16 }
  0xf2   : > { %v3109_v63 = vor.u32 %v3108_v10, %v3105_v46  ;;  %10946 = vmatmul.mubr.bf16.gmra.mrb[20].mxu1 %v12259_v53  ;;  %v3136_v61 = vshll.u32 %v2764_v55, 16  ;;  %v3140_v5 = vshrl.u32 %v2764_v55, 16  ;;  %v3129_v8 = vrot.slane %v3127_v0, 4  ;;  %v1178_v14 = vld [vmem:[#allocation2 + $0xa4] sm:$0x1] }
  0xf3   : > { %v3101_v60 = vsel %vm12853_vm10, %v3096_v51, %v3100_v32  ;;  %v3119_v3 = vor.u32 %v3118_v54, %v3114_v39  ;;  %v3132_v4 = vrot.slane %v3130_v1, 5  ;;  %v3146_v9 = vshll.u32 %v2765_v56, 16  ;;  %v403_v58 = vld [vmem:[#allocation6 + $0x68] sm:$0xf]  ;;  %v404_v34 = vld [vmem:[#allocation6 + $0x6c] sm:$0xf] }
  0xf4   : > { %v13010_v2 = vcombine.low %v3091_v50, %v3101_v60  ;;  %v3110_v7 = vrot.slane %v3109_v63, 4  ;;  %v3138_v18 = vrot.slane %v3136_v61, 5  ;;  %v3142_v27 = vrot.slane %v3140_v5, 4  ;;  %v405_v47 = vld [vmem:[#allocation6 + $0x70] sm:$0xf] }
  0xf5   : > { %v3120_v17 = vrot.slane %v3119_v3, 4  ;;  %v659_v16 = vrot.slane %v657_v13, 7  ;;  %v3133_v31 = vor.u32 %v3132_v4, %v3129_v8  ;;  %v3148_v57 = vrot.slane %v3146_v9, 5  ;;  %v2766_v33 = vld [vmem:[#allocation2 + $0x9c] sm:$0xf] }
  0xf6   : > { %17405 = vst [vmem:[#allocation25_spill] sm:$0xff] %v13010_v2  ;;  %11262 = vmatmul.mubr.bf16.gmra.mrb[16].mxu0 %v13010_v2  ;;  %v3115_v28 = vsel %vm12853_vm10, %v3110_v7, %v3114_v39  ;;  %v660_v32 = vshll.u32 %v12994_v12, 16  ;;  %v3143_v36 = vor.u32 %v3142_v27, %v3138_v18  ;;  %v3151_v38 = vshrl.u32 %v2766_v33, 16  ;;  %v406_v51 = vld [vmem:[#allocation6 + $0x74] sm:$0xf] }
  0xf7   : > { %v3125_v35 = vsel %vm12853_vm10, %v3120_v17, %v3124_v15  ;;  %v664_v37 = vrot.slane %v659_v16, 4  ;;  %v3134_v44 = vrot.slane %v3133_v31, 4  ;;  %v3154_v46 = vshll.u32 %v2766_v33, 16  ;;  %v1181_v15 = vld [vmem:[#allocation2 + $0xa8] sm:$0xf] }
  0xf8   : > { %v13018_v42 = vcombine.low %v3115_v28, %v3125_v35  ;;  %v662_v45 = vor.u32 %v660_v32, %v659_v16  ;;  %v3144_v48 = vrot.slane %v3143_v36, 4  ;;  %v3153_v50 = vrot.slane %v3151_v38, 4  ;;  %v407_v55 = vld [vmem:[#allocation6 + $0x78] sm:$0xf]  ;;  %v1185_v8 = vld [vmem:[#allocation2 + $0xb0] sm:$0x1] }
  0xf9   : > { %v1179_v13 = vsel %vm12799_vm4, %v664_v37, %v1178_v14  ;;  %v666_v12 = vshrl.u32 %v403_v58, 16  ;;  %v3139_v10 = vsel %vm12853_vm10, %v3134_v44, %v3138_v18  ;;  %v3156_v53 = vrot.slane %v3154_v46, 5  ;;  %v1188_v17 = vld [vmem:[#allocation2 + $0xb4] sm:$0xf]  ;;  %v408_v32 = vld [vmem:[#allocation6 + $0x7c] sm:$0xf] }
  0xfa   : > { %17406 = vst [vmem:[#allocation26_spill] sm:$0xff] %v13018_v42  ;;  %11265 = vmatprep.mubr.bf16.mxu0 %v13018_v42  ;;  %v663_v39 = vsel %vm12803_vm5, %v655_v21, %v662_v45  ;;  %1180 = vst [vmem:[#allocation2 + $0xa4] sm:$0x1] %v1179_v13  ;;  %v669_v54 = vshll.u32 %v403_v58, 16  ;;  %v3149_v56 = vsel %vm12853_vm10, %v3144_v48, %v3148_v57  ;;  %v674_v63 = vshrl.u32 %v404_v34, 16 }
  0xfb   : > { %1177 = vst [vmem:[#allocation2 + $0xa0] sm:$0xf] %v663_v39  ;;  %v668_v60 = vrot.slane %v666_v12, 7  ;;  %v677_v0 = vshll.u32 %v404_v34, 16  ;;  %v13031_v1 = vcombine.low %v3139_v10, %v3149_v56  ;;  %v3157_v3 = vor.u32 %v3156_v53, %v3153_v50  ;;  %v1192_v57 = vld [vmem:[#allocation2 + $0xbc] sm:$0x1] }
  0xfc   : > { %v683_v61 = vshrl.u32 %v405_v47, 16  ;;  %v686_v62 = vshll.u32 %v405_v47, 16  ;;  %v676_v21 = vrot.slane %v674_v63, 7  ;;  %v691_v4 = vshrl.u32 %v406_v51, 16  ;;  %v1195_v38 = vld [vmem:[#allocation2 + $0xc0] sm:$0xf] }
  0xfd   : > { %17407 = vst [vmem:[#allocation27_spill] sm:$0xff] %v13031_v1  ;;  %v671_v5 = vor.u32 %v669_v54, %v668_v60  ;;  %v672_v7 = vrot.slane %v668_v60, 4  ;;  %v13034_v9 = vrot.slane %v3157_v3, 4  ;;  %v694_v58 = vshll.u32 %v406_v51, 16  ;;  %v409_v48 = vld [vmem:[#allocation6 + $0x80] sm:$0xf] }
  0xfe   : > { %11266 = vmatmul.mubr.bf16.gmra.mrb[20].mxu0 %v13031_v1  ;;  %v685_v14 = vrot.slane %v683_v61, 7  ;;  %v700_v18 = vshrl.u32 %v407_v55, 16  ;;  %v679_v27 = vor.u32 %v677_v0, %v676_v21  ;;  %v681_v16 = vrot.slane %v676_v21, 4  ;;  %v13054_v3 = vld [vmem:[#allocation6 + $0x88] sm:$0xf] }
  0xff   : > { %v1182_v28 = vsel %vm12808_vm7, %v671_v5, %v1181_v15  ;;  %v693_v31 = vrot.slane %v691_v4, 7  ;;  %v703_v37 = vshll.u32 %v407_v55, 16  ;;  %v13051_v55 = vld [vmem:[#allocation6 + $0x84] sm:$0xf]  ;;  %v708_v63 = vshrl.u32 %v408_v32, 16 }
 0x100   : > { %1183 = vst [vmem:[#allocation2 + $0xa8] sm:$0xf] %v1182_v28  ;;  %v688_v33 = vor.u32 %v686_v62, %v685_v14  ;;  %v689_v35 = vrot.slane %v685_v14, 4  ;;  %v13038_v36 = vrot.slane %v700_v18, 7  ;;  %v680_v45 = vsel %vm12803_vm5, %v672_v7, %v679_v27 }
 0x101   : > { %v2768_v44 = vld [vmem:[#allocation2 + $0xa4] sm:$0x1]  ;;  %v1186_v46 = vsel %vm12799_vm4, %v681_v16, %v1185_v8  ;;  %v696_v34 = vor.u32 %v694_v58, %v693_v31  ;;  %v698_v47 = vrot.slane %v693_v31, 4  ;;  %1184 = vst [vmem:[#allocation2 + $0xac] sm:$0xf] %v680_v45  ;;  %v711_v0 = vshll.u32 %v408_v32, 16 }
 0x102   : > { %v12261_v13 = vld [vmem:[#allocation2 + $0x9c] sm:$0xff]   ;;  %v3170_v12 = vshll.u32 %v2768_v44, 16  ;;  %1187 = vst [vmem:[#allocation2 + $0xb0] sm:$0x1] %v1186_v46  ;;  %v1189_v51 = vsel %vm12808_vm7, %v688_v33, %v1188_v17  ;;  %v705_v10 = vor.u32 %v703_v37, %v13038_v36  ;;  %v706_v60 = vrot.slane %v13038_v36, 4 }
 0x103   : > { %v2767_v50 = vld [vmem:[#allocation2 + $0xa0] sm:$0xf]  ;;  %v697_v54 = vsel %vm12803_vm5, %v689_v35, %v696_v34  ;;  %1190 = vst [vmem:[#allocation2 + $0xb4] sm:$0xf] %v1189_v51  ;;  %v1193_v15 = vsel %vm12799_vm4, %v698_v47, %v1192_v57  ;;  %10949 = vmatprep.mubr.bf16.mxu1 %v12261_v13  ;;  %v717_v7 = vshrl.u32 %v409_v48, 16  ;;  %v710_v21 = vrot.slane %v708_v63, 7 }
 0x104   : > { %v3160_v39 = vshll.u32 %v2767_v50, 16  ;;  %v3164_v53 = vshrl.u32 %v2767_v50, 16  ;;  %v3172_v56 = vrot.slane %v3170_v12, 5  ;;  %1191 = vst [vmem:[#allocation2 + $0xb8] sm:$0xf] %v697_v54  ;;  %v1196_v5 = vsel %vm12808_vm7, %v705_v10, %v1195_v38 }
 0x105   : > { %1194 = vst [vmem:[#allocation2 + $0xbc] sm:$0x1] %v1193_v15  ;;  %1197 = vst [vmem:[#allocation2 + $0xc0] sm:$0xf] %v1196_v5  ;;  %v720_v8 = vshll.u32 %v409_v48, 16  ;;  %v725_v4 = vshrl.u32 %v13051_v55, 16  ;;  %v713_v31 = vor.u32 %v711_v0, %v710_v21 }
 0x106   : > { %v3162_v61 = vrot.slane %v3160_v39, 5  ;;  %v3166_v62 = vrot.slane %v3164_v53, 4  ;;  %v728_v14 = vshll.u32 %v13051_v55, 16  ;;  %v13060_v18 = vrot.slane %v717_v7, 7  ;;  %v1199_v32 = vld [vmem:[#allocation2 + $0xc8] sm:$0x1] }
 0x107   : > { %v2769_v17 = vld [vmem:[#allocation2 + $0xa8] sm:$0xf]  ;;  %v734_v27 = vshrl.u32 %v13054_v3, 16  ;;  %v715_v57 = vrot.slane %v710_v21, 4  ;;  %v714_v12 = vsel %vm12803_vm5, %v706_v60, %v713_v31  ;;  %v1202_v5 = vld [vmem:[#allocation2 + $0xe4] sm:$0xf] }
 0x108   : > { %v3167_v58 = vor.u32 %v3166_v62, %v3162_v61  ;;  %v3175_v16 = vshrl.u32 %v2769_v17, 16  ;;  %v3178_v28 = vshll.u32 %v2769_v17, 16  ;;  %v3163_v33 = vsel %vm12853_vm10, %v13034_v9, %v3162_v61  ;;  %v12262_v36 = vld [vmem:[#allocation2 + $0xa8] sm:$0xff]   ;;  %1198 = vst [vmem:[#allocation2 + $0xc4] sm:$0xf] %v714_v12 }
 0x109   : > { %v2770_v37 = vld [vmem:[#allocation2 + $0xac] sm:$0xf]  ;;  %v722_v38 = vor.u32 %v720_v8, %v13060_v18  ;;  %v2771_v44 = vld [vmem:[#allocation2 + $0xb0] sm:$0x1]  ;;  %10950 = vmatmul.mubr.bf16.gmra.mrb[24].mxu1 %v12262_v36  ;;  %v1200_v9 = vsel %vm12799_vm4, %v715_v57, %v1199_v32  ;;  %v723_v31 = vrot.slane %v13060_v18, 4  ;;  %v13099_v55 = vrot.slane %v17156_v43, 4 }
 0x10a   : > { %v3168_v35 = vrot.slane %v3167_v58, 4  ;;  %v3177_v45 = vrot.slane %v3175_v16, 4  ;;  %v3180_v46 = vrot.slane %v3178_v28, 5  ;;  %v3184_v34 = vshll.u32 %v2770_v37, 16  ;;  %v2772_v54 = vld [vmem:[#allocation2 + $0xb4] sm:$0xf] }
 0x10b   : > { %v3188_v47 = vshrl.u32 %v2770_v37, 16  ;;  %v3194_v13 = vshll.u32 %v2771_v44, 16  ;;  %v12265_v50 = vld [vmem:[#allocation2 + $0xb4] sm:$0xff]   ;;  %1201 = vst [vmem:[#allocation2 + $0xc8] sm:$0x1] %v1200_v9  ;;  %v3199_v0 = vshrl.u32 %v2772_v54, 16 }
 0x10c   : > { %v3173_v48 = vsel %vm12853_vm10, %v3168_v35, %v3172_v56  ;;  %v3181_v10 = vor.u32 %v3180_v46, %v3177_v45  ;;  %v3186_v39 = vrot.slane %v3184_v34, 5  ;;  %v2773_v15 = vld [vmem:[#allocation2 + $0xb8] sm:$0xf]  ;;  %10953 = vmatprep.mubr.bf16.mxu1 %v12265_v50  ;;  %v2774_v56 = vld [vmem:[#allocation2 + $0xbc] sm:$0x1]  ;;  %v3202_v61 = vshll.u32 %v2772_v54, 16 }
 0x10d   : > { %v13073_v51 = vcombine.low %v3163_v33, %v3173_v48  ;;  %v3190_v53 = vrot.slane %v3188_v47, 4  ;;  %v3196_v63 = vrot.slane %v3194_v13, 5  ;;  %v3208_v62 = vshll.u32 %v2773_v15, 16  ;;  %v2775_v28 = vld [vmem:[#allocation2 + $0xc0] sm:$0xf] }
 0x10e   : > { %v3182_v60 = vrot.slane %v3181_v10, 4  ;;  %v3212_v21 = vshrl.u32 %v2773_v15, 16  ;;  %v3218_v8 = vshll.u32 %v2774_v56, 16  ;;  %v3201_v58 = vrot.slane %v3199_v0, 4  ;;  %v412_v56 = vld [vmem:[#allocation6 + $0x8c] sm:$0xf] }
 0x10f   : > { %17408 = vst [vmem:[#allocation28_spill] sm:$0xff] %v13073_v51  ;;  %11269 = vmatprep.mubr.bf16.mxu0 %v13073_v51  ;;  %v3191_v7 = vor.u32 %v3190_v53, %v3186_v39  ;;  %v3204_v17 = vrot.slane %v3202_v61, 5  ;;  %v3210_v16 = vrot.slane %v3208_v62, 5  ;;  %v4153_v37 = vshrl.u32 %v2775_v28, 16  ;;  %v12266_v50 = vld [vmem:[#allocation2 + $0xc0] sm:$0xff]  }
 0x110   : > { %v3187_v57 = vsel %vm12853_vm10, %v3182_v60, %v3186_v39  ;;  %v3214_v33 = vrot.slane %v3212_v21, 4  ;;  %v3220_v35 = vrot.slane %v3218_v8, 5  ;;  %v4156_v44 = vshll.u32 %v2775_v28, 16  ;;  %v2776_v12 = vld [vmem:[#allocation2 + $0xc4] sm:$0xf] }
 0x111   : > { %v3192_v32 = vrot.slane %v3191_v7, 4  ;;  %v3205_v36 = vor.u32 %v3204_v17, %v3201_v58  ;;  %v13079_v45 = vrot.slane %v725_v4, 7  ;;  %v1203_v47 = vsel %vm12808_vm7, %v722_v38, %v1202_v5  ;;  %10954 = vmatmul.mubr.bf16.gmra.mrb[28].mxu1 %v12266_v50  ;;  %v1209_v62 = vld [vmem:[#allocation2 + $0xf0] sm:$0xf]  ;;  %v413_v5 = vld [vmem:[#allocation6 + $0x90] sm:$0xf] }
 0x112   : > { %v3215_v34 = vor.u32 %v3214_v33, %v3210_v16  ;;  %v13085_v48 = vrot.slane %v734_v27, 7  ;;  %1204 = vst [vmem:[#allocation2 + $0xe4] sm:$0xf] %v1203_v47  ;;  %v2777_v10 = vld [vmem:[#allocation2 + $0xc8] sm:$0x1]  ;;  %v4155_v39 = vrot.slane %v4153_v37, 4 }
 0x113   : > { %v3197_v46 = vsel %vm12853_vm10, %v3192_v32, %v3196_v63  ;;  %v3206_v13 = vrot.slane %v3205_v36, 4  ;;  %v730_v9 = vor.u32 %v728_v14, %v13079_v45  ;;  %v4158_v53 = vrot.slane %v4156_v44, 5  ;;  %v414_v58 = vld [vmem:[#allocation6 + $0x94] sm:$0xf] }
 0x114   : > { %v13087_v18 = vcombine.low %v3187_v57, %v3197_v46  ;;  %v3216_v4 = vrot.slane %v3215_v34, 4  ;;  %v4162_v54 = vshll.u32 %v2776_v12, 16  ;;  %v4166_v38 = vshrl.u32 %v2776_v12, 16  ;;  %v415_v57 = vld [vmem:[#allocation6 + $0x98] sm:$0xf] }
 0x115   : > { %v3211_v27 = vsel %vm12853_vm10, %v3206_v13, %v3210_v16  ;;  %v4172_v15 = vshll.u32 %v2777_v10, 16  ;;  %v731_v63 = vsel %vm12803_vm5, %v723_v31, %v730_v9  ;;  %v4159_v0 = vor.u32 %v4158_v53, %v4155_v39  ;;  %v1216_v34 = vld [vmem:[#allocation2 + $0xfc] sm:$0xf]  ;;  %v416_v12 = vld [vmem:[#allocation6 + $0x9c] sm:$0xf] }
 0x116   : > { %17409 = vst [vmem:[#allocation29_spill] sm:$0xff] %v13087_v18  ;;  %11270 = vmatmul.mubr.bf16.gmra.mrb[24].mxu0 %v13087_v18  ;;  %v3221_v14 = vsel %vm12853_vm10, %v3216_v4, %v3220_v35  ;;  %v4164_v61 = vrot.slane %v4162_v54, 5  ;;  %1205 = vst [vmem:[#allocation2 + $0xe8] sm:$0xf] %v731_v63  ;;  %v4168_v7 = vrot.slane %v4166_v38, 4  ;;  %v737_v8 = vshll.u32 %v13054_v3, 16 }
 0x117   : > { %v13103_v60 = vcombine.low %v3211_v27, %v3221_v14  ;;  %v4174_v21 = vrot.slane %v4172_v15, 5  ;;  %v4160_v17 = vrot.slane %v4159_v0, 4  ;;  %v740_v16 = vrot.slane %v13085_v48, 4  ;;  %v1223_v39 = vld [vmem:[#allocation2 + $0x108] sm:$0xf] }
 0x118   : > { %v742_v28 = vshrl.u32 %v412_v56, 16  ;;  %v745_v31 = vshll.u32 %v412_v56, 16  ;;  %v4169_v32 = vor.u32 %v4168_v7, %v4164_v61  ;;  %v739_v33 = vor.u32 %v737_v8, %v13085_v48  ;;  %v417_v53 = vld [vmem:[#allocation6 + $0xa0] sm:$0xf] }
 0x119   : > { %17410 = vst [vmem:[#allocation30_spill] sm:$0xff] %v13103_v60  ;;  %11273 = vmatprep.mubr.bf16.mxu0 %v13103_v60  ;;  %v751_v35 = vshrl.u32 %v413_v5, 16  ;;  %v754_v36 = vshll.u32 %v413_v5, 16  ;;  %v4165_v37 = vsel %vm12853_vm10, %v4160_v17, %v4164_v61  ;;  %v759_v3 = vshrl.u32 %v414_v58, 16  ;;  %v418_v61 = vld [vmem:[#allocation6 + $0xa4] sm:$0xf] }
 0x11a   : > { %v13111_v44 = vrot.slane %v742_v28, 7  ;;  %v762_v46 = vshll.u32 %v414_v58, 16  ;;  %v4170_v47 = vrot.slane %v4169_v32, 4  ;;  %v1210_v13 = vsel %vm12808_vm7, %v739_v33, %v1209_v62  ;;  %v419_v62 = vld [vmem:[#allocation6 + $0xa8] sm:$0xf] }
 0x11b   : > { %v753_v50 = vrot.slane %v751_v35, 7  ;;  %v768_v9 = vshrl.u32 %v415_v57, 16  ;;  %1211 = vst [vmem:[#allocation2 + $0xf0] sm:$0xf] %v1210_v13  ;;  %v13116_v48 = vrot.slane %v759_v3, 7  ;;  %v771_v10 = vshll.u32 %v415_v57, 16 }
 0x11c   : > { %v747_v4 = vor.u32 %v745_v31, %v13111_v44  ;;  %v4175_v54 = vsel %vm12853_vm10, %v4170_v47, %v4174_v21  ;;  %v420_v5 = vld [vmem:[#allocation6 + $0xac] sm:$0xf]  ;;  %v776_v58 = vshrl.u32 %v416_v12, 16  ;;  %v785_v28 = vshrl.u32 %v417_v53, 16  ;;  %v421_v47 = vld [vmem:[#allocation6 + $0xb0] sm:$0xf] }
 0x11d   : > { %v12268_v27 = vld [vmem:[#allocation2 + $0xe4] sm:$0xff]   ;;  %v756_v38 = vor.u32 %v754_v36, %v753_v50  ;;  %v757_v15 = vrot.slane %v753_v50, 4  ;;  %v770_v63 = vrot.slane %v768_v9, 7  ;;  %v13120_v56 = vcombine.low %v4165_v37, %v4175_v54  ;;  %v1230_v36 = vld [vmem:[#allocation2 + $0x114] sm:$0xf] }
 0x11e   : > { %v748_v14 = vsel %vm12803_vm5, %v740_v16, %v747_v4  ;;  %v764_v0 = vor.u32 %v762_v46, %v13116_v48  ;;  %10957 = vmatprep.mubr.bf16.mxu1 %v12268_v27  ;;  %v779_v16 = vshll.u32 %v416_v12, 16  ;;  %v788_v31 = vshll.u32 %v417_v53, 16  ;;  %v1237_v4 = vld [vmem:[#allocation2 + $0x120] sm:$0xf] }
 0x11f   : > { %1212 = vst [vmem:[#allocation2 + $0xf4] sm:$0xf] %v748_v14  ;;  %v1217_v7 = vsel %vm12808_vm7, %v756_v38, %v1216_v34  ;;  %v773_v21 = vor.u32 %v771_v10, %v770_v63  ;;  %v774_v8 = vrot.slane %v770_v63, 4  ;;  %11274 = vmatmul.mubr.bf16.gmra.mrb[28].mxu0 %v13120_v56  ;;  %v13131_v57 = vrot.slane %v776_v58, 7  ;;  %v422_v10 = vld [vmem:[#allocation6 + $0xb4] sm:$0xf] }
 0x120   : > { %v765_v17 = vsel %vm12803_vm5, %v757_v15, %v764_v0  ;;  %1218 = vst [vmem:[#allocation2 + $0xfc] sm:$0xf] %v1217_v7  ;;  %11325 = vmatprep.mubr.bf16.mxu0 %v12875_v40  ;;  %v793_v33 = vshrl.u32 %v418_v61, 16  ;;  %v796_v35 = vshll.u32 %v418_v61, 16  ;;  %v787_v37 = vrot.slane %v785_v28, 7  ;;  %v12277_v38 = vld [vmem:[#allocation9 + $0x88] sm:$0xff]  }
 0x121   : > { %1219 = vst [vmem:[#allocation2 + $0x100] sm:$0xf] %v765_v17  ;;  %v1224_v32 = vsel %vm12808_vm7, %v773_v21, %v1223_v39  ;;  %v802_v3 = vshrl.u32 %v419_v62, 16  ;;  %v805_v46 = vshll.u32 %v419_v62, 16  ;;  %v810_v34 = vshrl.u32 %v420_v5, 16 }
 0x122   : > { %1225 = vst [vmem:[#allocation2 + $0x108] sm:$0xf] %v1224_v32  ;;  %v781_v50 = vor.u32 %v779_v16, %v13131_v57  ;;  %v13137_v12 = vrot.slane %v793_v33, 7  ;;  %v813_v9 = vshll.u32 %v420_v5, 16  ;;  %v790_v53 = vor.u32 %v788_v31, %v787_v37  ;;  %v423_v15 = vld [vmem:[#allocation6 + $0xb8] sm:$0xf] }
 0x123   : > { %v791_v39 = vrot.slane %v787_v37, 4  ;;  %v804_v54 = vrot.slane %v802_v3, 7  ;;  %v13139_v27 = vrot.slane %v810_v34, 7  ;;  %v819_v61 = vshrl.u32 %v421_v47, 16  ;;  %v13145_v62 = vld [vmem:[#allocation6 + $0xbc] sm:$0xf] }
 0x124   : > { %v782_v14 = vsel %vm12803_vm5, %v774_v8, %v781_v50  ;;  %v798_v0 = vor.u32 %v796_v35, %v13137_v12  ;;  %v13147_v5 = vld [vmem:[#allocation6 + $0xc0] sm:$0xf]  ;;  %v1231_v21 = vsel %vm12808_vm7, %v790_v53, %v1230_v36  ;;  %v1244_v28 = vld [vmem:[#allocation2 + $0x12c] sm:$0xf]  ;;  %v13152_v31 = vld [vmem:[#allocation6 + $0xc4] sm:$0xf] }
 0x125   : > { %1226 = vst [vmem:[#allocation2 + $0x10c] sm:$0xf] %v782_v14  ;;  %v807_v58 = vor.u32 %v805_v46, %v804_v54  ;;  %v808_v17 = vrot.slane %v804_v54, 4  ;;  %v815_v16 = vor.u32 %v813_v9, %v13139_v27  ;;  %1232 = vst [vmem:[#allocation2 + $0x114] sm:$0xf] %v1231_v21  ;;  %v821_v33 = vrot.slane %v819_v61, 7 }
 0x126   : > { %v12269_v7 = vld [vmem:[#allocation2 + $0xf0] sm:$0xff]   ;;  %v799_v32 = vsel %vm12803_vm5, %v791_v39, %v798_v0  ;;  %v822_v35 = vshll.u32 %v421_v47, 16  ;;  %v827_v46 = vshrl.u32 %v422_v10, 16  ;;  %v830_v34 = vshll.u32 %v422_v10, 16  ;;  %v12283_v54 = vld [vmem:[#allocation9 + $0x90] sm:$0xff]   ;;  %v12296_v8 = vld [vmem:[#allocation9 + $0xa8] sm:$0xff]  }
 0x127   : > { %10958 = vmatmul.mubr.bf16.gmra.mrb[32].mxu1 %v12269_v7  ;;  %11326 = vmatmul.mubr.bf16.vlgmr.msra.gmra.mrb[0].mxu0 %v12884_v6  ;;  %1233 = vst [vmem:[#allocation2 + $0x118] sm:$0xf] %v799_v32  ;;  %v816_v36 = vsel %vm12803_vm5, %v808_v17, %v815_v16  ;;  %v1238_v3 = vsel %vm12808_vm7, %v807_v58, %v1237_v4  ;;  %v12332_v50 = vld [vmem:[#allocation9 + $0x80] sm:$0xff]   ;;  %v825_v9 = vrot.slane %v821_v33, 4  ;;  %v836_v53 = vshrl.u32 %v423_v15, 16 }
 0x128   : > { %v12272_v37 = vld [vmem:[#allocation2 + $0xfc] sm:$0xff]   ;;  %11390 = vmatpush3.bf16.msra.mxu0 %v12332_v50  ;;  %11329 = vmatprep.mubr.bf16.mxu0 %v12895_v41  ;;  %1239 = vst [vmem:[#allocation2 + $0x120] sm:$0xf] %v1238_v3  ;;  %1240 = vst [vmem:[#allocation2 + $0x124] sm:$0xf] %v816_v36  ;;  %v824_v47 = vor.u32 %v822_v35, %v821_v33  ;;  %v839_v39 = vshll.u32 %v423_v15, 16 }
 0x129   : > { %10961 = vmatprep.mubr.bf16.mxu1 %v12272_v37  ;;  %11391 = vmatprep.subr.bf16.mxu0 %v12277_v38  ;;  %v13163_v14 = vrot.slane %v827_v46, 7  ;;  %v844_v0 = vshrl.u32 %v13145_v62, 16  ;;  %v847_v4 = vshll.u32 %v13145_v62, 16  ;;  %v1251_v10 = vld [vmem:[#allocation2 + $0x138] sm:$0xf]  ;;  %v853_v61 = vshrl.u32 %v13147_v5, 16 }
 0x12a   : > { %v1245_v7 = vsel %vm12808_vm7, %v824_v47, %v1244_v28  ;;  %v838_v21 = vrot.slane %v836_v53, 7  ;;  %v856_v58 = vshll.u32 %v13147_v5, 16  ;;  %v861_v15 = vshrl.u32 %v13152_v31, 16  ;;  %v1258_v17 = vld [vmem:[#allocation2 + $0x144] sm:$0xf] }
 0x12b   : > { %v427_v16 = vld [vmem:[#allocation6 + $0xc8] sm:$0xf]  ;;  %v832_v33 = vor.u32 %v830_v34, %v13163_v14  ;;  %1246 = vst [vmem:[#allocation2 + $0x12c] sm:$0xf] %v1245_v7  ;;  %v13174_v35 = vrot.slane %v844_v0, 7  ;;  %v855_v62 = vrot.slane %v853_v61, 7 }
 0x12c   : > { %v428_v37 = vld [vmem:[#allocation6 + $0xcc] sm:$0xf]  ;;  %v12273_v36 = vld [vmem:[#allocation2 + $0x108] sm:$0xff]   ;;  %11392 = vmatpush3.bf16.msra.mxu0 %v12277_v38  ;;  %v841_v3 = vor.u32 %v839_v39, %v838_v21  ;;  %v842_v28 = vrot.slane %v838_v21, 4  ;;  %v13176_v46 = vrot.slane %v861_v15, 7  ;;  %v864_v5 = vshll.u32 %v13152_v31, 16 }
 0x12d   : > { %v429_v50 = vld [vmem:[#allocation6 + $0xd0] sm:$0xf]  ;;  %v430_v47 = vld [vmem:[#allocation6 + $0xd4] sm:$0xf]  ;;  %v833_v34 = vsel %vm12803_vm5, %v825_v9, %v832_v33  ;;  %v849_v0 = vor.u32 %v847_v4, %v13174_v35  ;;  %v858_v7 = vor.u32 %v856_v58, %v855_v62  ;;  %11393 = vmatprep.subr.bf16.mxu0 %v12283_v54  ;;  %v431_v61 = vld [vmem:[#allocation6 + $0xd8] sm:$0xf] }
 0x12e   : > { %v12274_v43 = vld [vmem:[#allocation2 + $0x114] sm:$0xff]   ;;  %1247 = vst [vmem:[#allocation2 + $0x130] sm:$0xf] %v833_v34  ;;  %v1252_v39 = vsel %vm12808_vm7, %v841_v3, %v1251_v10  ;;  %v859_v31 = vrot.slane %v855_v62, 4  ;;  %v866_v21 = vor.u32 %v864_v5, %v13176_v46  ;;  %v12289_v15 = vld [vmem:[#allocation9 + $0x98] sm:$0xff]   ;;  %v870_v33 = vshrl.u32 %v427_v16, 16 }
 0x12f   : > { %10962 = vmatmul.mubr.bf16.gmra.mrb[36].mxu1 %v12273_v36  ;;  %11330 = vmatmul.mubr.bf16.gmra.mrb[4].mxu0 %v12937_v30  ;;  %v850_v9 = vsel %vm12803_vm5, %v842_v28, %v849_v0  ;;  %1253 = vst [vmem:[#allocation2 + $0x138] sm:$0xf] %v1252_v39  ;;  %v1259_v58 = vsel %vm12808_vm7, %v858_v7, %v1258_v17  ;;  %v873_v62 = vshll.u32 %v427_v16, 16  ;;  %v878_v36 = vshrl.u32 %v428_v37, 16  ;;  %v1265_v5 = vld [vmem:[#allocation2 + $0x150] sm:$0xf] }
 0x130   : > { %10965 = vmatprep.mubr.bf16.mxu1 %v12274_v43  ;;  %11333 = vmatprep.mubr.bf16.mxu0 %v12944_v59  ;;  %1254 = vst [vmem:[#allocation2 + $0x13c] sm:$0xf] %v850_v9  ;;  %v867_v10 = vsel %vm12803_vm5, %v859_v31, %v866_v21  ;;  %1260 = vst [vmem:[#allocation2 + $0x144] sm:$0xf] %v1259_v58  ;;  %v881_v3 = vshll.u32 %v428_v37, 16  ;;  %v12294_v28 = vld [vmem:[#allocation9 + $0xa0] sm:$0xff]  }
 0x131   : > { %1261 = vst [vmem:[#allocation2 + $0x148] sm:$0xf] %v867_v10  ;;  %v872_v34 = vrot.slane %v870_v33, 7  ;;  %11394 = vmatpush3.bf16.msra.mxu0 %v12283_v54  ;;  %v887_v0 = vshrl.u32 %v429_v50, 16  ;;  %v890_v39 = vshll.u32 %v429_v50, 16  ;;  %v895_v17 = vshrl.u32 %v430_v47, 16 }
 0x132   : > { %v432_v7 = vld [vmem:[#allocation6 + $0xdc] sm:$0xf]  ;;  %v13196_v43 = vrot.slane %v878_v36, 7  ;;  %v898_v4 = vshll.u32 %v430_v47, 16  ;;  %v1272_v9 = vld [vmem:[#allocation2 + $0x15c] sm:$0xf]  ;;  %11395 = vmatprep.subr.bf16.mxu0 %v12289_v15 }
 0x133   : > { %v904_v38 = vshrl.u32 %v431_v61, 16  ;;  %v907_v53 = vshll.u32 %v431_v61, 16  ;;  %v12275_v31 = vld [vmem:[#allocation2 + $0x120] sm:$0xff]   ;;  %v875_v16 = vor.u32 %v873_v62, %v872_v34  ;;  %v876_v21 = vrot.slane %v872_v34, 4  ;;  %v1279_v10 = vld [vmem:[#allocation2 + $0x168] sm:$0xf] }
 0x134   : > { %v889_v37 = vrot.slane %v887_v0, 7  ;;  %v13198_v58 = vrot.slane %v895_v17, 7  ;;  %v433_v33 = vld [vmem:[#allocation6 + $0xe0] sm:$0xf]  ;;  %v883_v54 = vor.u32 %v881_v3, %v13196_v43  ;;  %v912_v32 = vshrl.u32 %v432_v7, 16 }
 0x135   : > { %v906_v50 = vrot.slane %v904_v38, 7  ;;  %v435_v36 = vld [vmem:[#allocation6 + $0xe8] sm:$0xf]  ;;  %v12278_v47 = vld [vmem:[#allocation2 + $0x12c] sm:$0xff]   ;;  %v1266_v61 = vsel %vm12808_vm7, %v875_v16, %v1265_v5  ;;  %11396 = vmatpush3.bf16.msra.mxu0 %v12289_v15  ;;  %v436_v3 = vld [vmem:[#allocation6 + $0xec] sm:$0xf] }
 0x136   : > { %v892_v63 = vor.u32 %v890_v39, %v889_v37  ;;  %v893_v13 = vrot.slane %v889_v37, 4  ;;  %v900_v62 = vor.u32 %v898_v4, %v13198_v58  ;;  %v884_v34 = vsel %vm12803_vm5, %v876_v21, %v883_v54  ;;  %1267 = vst [vmem:[#allocation2 + $0x150] sm:$0xf] %v1266_v61  ;;  %11397 = vmatprep.subr.bf16.mxu0 %v12294_v28  ;;  %v12298_v61 = vld [vmem:[#allocation9 + $0xb0] sm:$0xff]   ;;  %v12385_v41 = vld [vmem:[#allocation2 + $0xb0] sm:$0x1] }
 0x137   : > { %v909_v0 = vor.u32 %v907_v53, %v906_v50  ;;  %10966 = vmatmul.mubr.bf16.gmra.mrb[40].mxu1 %v12275_v31  ;;  %11334 = vmatmul.mubr.bf16.gmra.mrb[8].mxu0 %v12954_v29  ;;  %1268 = vst [vmem:[#allocation2 + $0x154] sm:$0xf] %v884_v34  ;;  %v910_v39 = vrot.slane %v906_v50, 4  ;;  %v13211_v4 = vrot.slane %v912_v32, 7  ;;  %v915_v53 = vshll.u32 %v432_v7, 16 }
 0x138   : > { %v901_v38 = vsel %vm12803_vm5, %v893_v13, %v900_v62  ;;  %v1273_v5 = vsel %vm12808_vm7, %v892_v63, %v1272_v9  ;;  %10969 = vmatprep.mubr.bf16.mxu1 %v12278_v47  ;;  %11337 = vmatprep.mubr.bf16.mxu0 %v12968_v49  ;;  %v921_v17 = vshrl.u32 %v433_v33, 16  ;;  %v924_v31 = vshll.u32 %v433_v33, 16  ;;  %v1286_v63 = vld [vmem:[#allocation2 + $0x174] sm:$0xf]  ;;  %v1293_v47 = vld [vmem:[#allocation2 + $0x180] sm:$0xf] }
 0x139   : > { %1274 = vst [vmem:[#allocation2 + $0x15c] sm:$0xf] %v1273_v5  ;;  %1275 = vst [vmem:[#allocation2 + $0x160] sm:$0xf] %v901_v38  ;;  %v1280_v15 = vsel %vm12808_vm7, %v909_v0, %v1279_v10  ;;  %v929_v13 = vshrl.u32 %v434_v26, 16  ;;  %v932_v21 = vshll.u32 %v434_v26, 16  ;;  %11398 = vmatpush3.bf16.msra.mxu0 %v12294_v28  ;;  %v917_v32 = vor.u32 %v915_v53, %v13211_v4 }
 0x13a   : > { %1281 = vst [vmem:[#allocation2 + $0x168] sm:$0xf] %v1280_v15  ;;  %v938_v9 = vshrl.u32 %v435_v36, 16  ;;  %v923_v37 = vrot.slane %v921_v17, 7  ;;  %v941_v54 = vshll.u32 %v435_v36, 16  ;;  %v946_v50 = vshrl.u32 %v436_v3, 16  ;;  %11399 = vmatprep.subr.bf16.mxu0 %v12296_v8 }
 0x13b   : > { %v437_v7 = vld [vmem:[#allocation6 + $0xf0] sm:$0xf]  ;;  %v12279_v10 = vld [vmem:[#allocation2 + $0x138] sm:$0xff]   ;;  %v13218_v62 = vrot.slane %v929_v13, 7  ;;  %v949_v34 = vshll.u32 %v436_v3, 16  ;;  %v918_v26 = vsel %vm12803_vm5, %v910_v39, %v917_v32  ;;  %v12300_v15 = vld [vmem:[#allocation9 + $0xb8] sm:$0xff]  }
 0x13c   : > { %v940_v33 = vrot.slane %v938_v9, 7  ;;  %v955_v0 = vshrl.u32 %v437_v7, 16  ;;  %v12280_v38 = vld [vmem:[#allocation2 + $0x144] sm:$0xff]   ;;  %v926_v28 = vor.u32 %v924_v31, %v923_v37  ;;  %v927_v5 = vrot.slane %v923_v37, 4  ;;  %1282 = vst [vmem:[#allocation2 + $0x16c] sm:$0xf] %v918_v26 }
 0x13d   : > { %v13222_v53 = vrot.slane %v946_v50, 7  ;;  %v438_v36 = vld [vmem:[#allocation6 + $0xf4] sm:$0xf]  ;;  %v934_v16 = vor.u32 %v932_v21, %v13218_v62  ;;  %v439_v9 = vld [vmem:[#allocation6 + $0xf8] sm:$0xf]  ;;  %11400 = vmatpush3.bf16.msra.mxu0 %v12296_v8  ;;  %v17411_v20 = vrot.slane %v13111_v44, 4 }
 0x13e   : > { %v943_v13 = vor.u32 %v941_v54, %v940_v33  ;;  %v944_v49 = vrot.slane %v940_v33, 4  ;;  %v1287_v39 = vsel %vm12808_vm7, %v926_v28, %v1286_v63  ;;  %v957_v32 = vrot.slane %v955_v0, 7  ;;  %v1300_v37 = vld [vmem:[#allocation2 + $0x18c] sm:$0xf]  ;;  %11401 = vmatprep.subr.bf16.mxu0 %v12298_v61  ;;  %v12281_v26 = vld [vmem:[#allocation2 + $0x150] sm:$0xff]  }
 0x13f   : > { %v951_v31 = vor.u32 %v949_v34, %v13222_v53  ;;  %v440_v50 = vld [vmem:[#allocation6 + $0xfc] sm:$0xf]  ;;  %10970 = vmatmul.mubr.bf16.gmra.mrb[44].mxu1 %v12279_v10  ;;  %11338 = vmatmul.mubr.bf16.gmra.mrb[12].mxu0 %v13000_v22  ;;  %v935_v54 = vsel %vm12803_vm5, %v927_v5, %v934_v16  ;;  %1288 = vst [vmem:[#allocation2 + $0x174] sm:$0xf] %v1287_v39  ;;  %v958_v33 = vshll.u32 %v437_v7, 16  ;;  %v963_v34 = vshrl.u32 %v438_v36, 16 }
 0x140   : > { %v1294_v8 = vsel %vm12808_vm7, %v943_v13, %v1293_v47  ;;  %10973 = vmatprep.mubr.bf16.mxu1 %v12280_v38  ;;  %11341 = vmatprep.mubr.bf16.mxu0 %v13010_v2  ;;  %1289 = vst [vmem:[#allocation2 + $0x178] sm:$0xf] %v935_v54  ;;  %v961_v10 = vrot.slane %v957_v32, 4  ;;  %v966_v0 = vshll.u32 %v438_v36, 16  ;;  %v972_v16 = vshrl.u32 %v439_v9, 16  ;;  %v12303_v47 = vld [vmem:[#allocation9 + $0x140] sm:$0xff]  }
 0x141   : > { %v952_v63 = vsel %vm12803_vm5, %v944_v49, %v951_v31  ;;  %1295 = vst [vmem:[#allocation2 + $0x180] sm:$0xf] %v1294_v8  ;;  %v960_v28 = vor.u32 %v958_v33, %v957_v32  ;;  %v975_v5 = vshll.u32 %v439_v9, 16  ;;  %v980_v39 = vshrl.u32 %v440_v50, 16  ;;  %11402 = vmatpush3.bf16.msra.mxu0 %v12298_v61  ;;  %v2778_v13 = vld [vmem:[#allocation2 + $0xcc] sm:$0xf] }
 0x142   : > { %1296 = vst [vmem:[#allocation2 + $0x184] sm:$0xf] %v952_v63  ;;  %v13239_v7 = vrot.slane %v963_v34, 7  ;;  %v983_v38 = vshll.u32 %v440_v50, 16  ;;  %v2779_v54 = vld [vmem:[#allocation2 + $0xd0] sm:$0xf]  ;;  %11403 = vmatprep.subr.bf16.mxu0 %v12300_v15 }
 0x143   : > { %v12284_v21 = vld [vmem:[#allocation2 + $0x15c] sm:$0xff]   ;;  %v1301_v49 = vsel %vm12808_vm7, %v960_v28, %v1300_v37  ;;  %v974_v31 = vrot.slane %v972_v16, 7  ;;  %v13243_v36 = vrot.slane %v980_v39, 7  ;;  %v1307_v8 = vld [vmem:[#allocation2 + $0x198] sm:$0xf]  ;;  %v4627_v32 = vshrl.u32 %v2778_v13, 16 }
 0x144   : > { %v968_v9 = vor.u32 %v966_v0, %v13239_v7  ;;  %1302 = vst [vmem:[#allocation2 + $0x18c] sm:$0xf] %v1301_v49  ;;  %v2780_v61 = vld [vmem:[#allocation2 + $0xd4] sm:$0x1]  ;;  %v4630_v33 = vshll.u32 %v2778_v13, 16  ;;  %v4636_v63 = vshll.u32 %v2779_v54, 16 }
 0x145   : > { %v977_v34 = vor.u32 %v975_v5, %v974_v31  ;;  %v978_v3 = vrot.slane %v974_v31, 4  ;;  %v985_v17 = vor.u32 %v983_v38, %v13243_v36  ;;  %11404 = vmatpush3.bf16.msra.mxu0 %v12300_v15  ;;  %v4629_v16 = vrot.slane %v4627_v32, 4  ;;  %v1213_v13 = vld [vmem:[#allocation2 + $0xf8] sm:$0x1]  ;;  %v12285_v49 = vld [vmem:[#allocation2 + $0x168] sm:$0xff]  }
 0x146   : > { %v969_v28 = vsel %vm12803_vm5, %v961_v10, %v968_v9  ;;  %v4632_v39 = vrot.slane %v4630_v33, 5  ;;  %11469 = vmatprep.subr.bf16.mxu0 %v12303_v47  ;;  %v4638_v38 = vrot.slane %v4636_v63, 5  ;;  %v4640_v15 = vshrl.u32 %v2779_v54, 16  ;;  %v2802_v10 = vld [vmem:[#allocation2 + $0x12c] sm:$0xf]  ;;  %v12306_v50 = vld [vmem:[#allocation9 + $0x1b0] sm:$0xff]  }
 0x147   : > { %10974 = vmatmul.mubr.bf16.gmra.mrb[48].mxu1 %v12281_v26  ;;  %11342 = vmatmul.mubr.bf16.gmra.mrb[16].mxu0 %v13018_v42  ;;  %1303 = vst [vmem:[#allocation2 + $0x190] sm:$0xf] %v969_v28  ;;  %v986_v0 = vsel %vm12803_vm5, %v978_v3, %v985_v17  ;;  %v1308_v5 = vsel %vm12808_vm7, %v977_v34, %v1307_v8  ;;  %v4646_v26 = vshll.u32 %v2780_v61, 16  ;;  %v2787_v17 = vld [vmem:[#allocation2 + $0xf0] sm:$0xf]  ;;  %v5338_v6 = vrot.slane %v12385_v41, 5 }
 0x148   : > { %10977 = vmatprep.mubr.bf16.mxu1 %v12284_v21  ;;  %11345 = vmatprep.mubr.bf16.mxu0 %v13031_v1  ;;  %1309 = vst [vmem:[#allocation2 + $0x198] sm:$0xf] %v1308_v5  ;;  %1310 = vst [vmem:[#allocation2 + $0x19c] sm:$0xf] %v986_v0  ;;  %v4633_v47 = vor.u32 %v4632_v39, %v4629_v16  ;;  %v4642_v31 = vrot.slane %v4640_v15, 4  ;;  %v1214_v25 = vsel %vm12799_vm4, %v17411_v20, %v1213_v13  ;;  %v12286_v21 = vld [vmem:[#allocation2 + $0x174] sm:$0xff]  }
 0x149   : > { %v2788_v3 = vld [vmem:[#allocation2 + $0xf4] sm:$0xf]  ;;  %v4648_v8 = vrot.slane %v4646_v26, 5  ;;  %1215 = vst [vmem:[#allocation2 + $0xf8] sm:$0x1] %v1214_v25  ;;  %v3271_v32 = vshrl.u32 %v2787_v17, 16 }
 0x14a   : > { %v4634_v54 = vrot.slane %v4633_v47, 4  ;;  %v3274_v9 = vshll.u32 %v2787_v17, 16  ;;  %v4643_v33 = vor.u32 %v4642_v31, %v4638_v38  ;;  %v3280_v63 = vshll.u32 %v2788_v3, 16  ;;  %v1220_v16 = vld [vmem:[#allocation2 + $0x104] sm:$0x1] }
 0x14b   : > { %v3284_v61 = vshrl.u32 %v2788_v3, 16  ;;  %v3273_v34 = vrot.slane %v3271_v32, 4  ;;  %v2790_v39 = vld [vmem:[#allocation2 + $0xfc] sm:$0xf]  ;;  %v17412_v15 = vrot.slane %v13116_v48, 4 }
 0x14c   : > { %v3276_v28 = vrot.slane %v3274_v9, 5  ;;  %v4644_v44 = vrot.slane %v4643_v33, 4  ;;  %v3282_v0 = vrot.slane %v3280_v63, 5  ;;  %v2791_v47 = vld [vmem:[#allocation2 + $0x100] sm:$0xf]  ;;  %v3295_v20 = vshrl.u32 %v2790_v39, 16 }
 0x14d   : > { %v3286_v5 = vrot.slane %v3284_v61, 4  ;;  %v1221_v13 = vsel %vm12799_vm4, %v17412_v15, %v1220_v16  ;;  %v3298_v25 = vshll.u32 %v2790_v39, 16  ;;  %v3304_v31 = vshll.u32 %v2791_v47, 16  ;;  %v2821_v37 = vld [vmem:[#allocation2 + $0x178] sm:$0xf] }
 0x14e   : > { %v3277_v26 = vor.u32 %v3276_v28, %v3273_v34  ;;  %1222 = vst [vmem:[#allocation2 + $0x104] sm:$0x1] %v1221_v13  ;;  %v4639_v17 = vsel %vm12853_vm10, %v4634_v54, %v4638_v38  ;;  %v4649_v3 = vsel %vm12853_vm10, %v4644_v44, %v4648_v8  ;;  %v3308_v48 = vshrl.u32 %v2791_v47, 16  ;;  %v12287_v34 = vld [vmem:[#allocation2 + $0x180] sm:$0xff]   ;;  %v12290_v39 = vld [vmem:[#allocation2 + $0x18c] sm:$0xff]  }
 0x14f   : > { %10978 = vmatmul.mubr.bf16.gmra.mrb[52].mxu1 %v12285_v49  ;;  %11346 = vmatmul.mubr.bf16.gmra.mrb[20].mxu0 %v13073_v51  ;;  %v3287_v32 = vor.u32 %v3286_v5, %v3282_v0  ;;  %v3297_v63 = vrot.slane %v3295_v20, 4  ;;  %v3300_v61 = vrot.slane %v3298_v25, 5  ;;  %v3306_v28 = vrot.slane %v3304_v31, 5  ;;  %v1227_v5 = vld [vmem:[#allocation2 + $0x110] sm:$0x1] }
 0x150   : > { %10981 = vmatprep.mubr.bf16.mxu1 %v12286_v21  ;;  %11349 = vmatprep.mubr.bf16.mxu0 %v13087_v18  ;;  %v3278_v33 = vrot.slane %v3277_v26, 4  ;;  %v2789_v49 = vld [vmem:[#allocation2 + $0xf8] sm:$0x1]  ;;  %v3310_v16 = vrot.slane %v3308_v48, 4  ;;  %v13273_v38 = vcombine.low %v4639_v17, %v4649_v3  ;;  %v17415_v47 = vrot.slane %v13131_v57, 4 }
 0x151   : > { %v3288_v54 = vrot.slane %v3287_v32, 4  ;;  %v3290_v8 = vshll.u32 %v2789_v49, 16  ;;  %v3301_v44 = vor.u32 %v3300_v61, %v3297_v63  ;;  %v2793_v20 = vld [vmem:[#allocation2 + $0x108] sm:$0xf]  ;;  %v2794_v25 = vld [vmem:[#allocation2 + $0x10c] sm:$0xf] }
 0x152   : > { %v3283_v15 = vsel %vm12853_vm10, %v3278_v33, %v3282_v0  ;;  %v3311_v13 = vor.u32 %v3310_v16, %v3306_v28  ;;  %v1228_v26 = vsel %vm12799_vm4, %v17415_v47, %v1227_v5  ;;  %v1234_v31 = vld [vmem:[#allocation2 + $0x11c] sm:$0x1]  ;;  %v17416_v17 = vrot.slane %v12838_v24, 5  ;;  %v2796_v63 = vld [vmem:[#allocation2 + $0x114] sm:$0xf] }
 0x153   : > { %v3292_v32 = vrot.slane %v3290_v8, 5  ;;  %v3302_v48 = vrot.slane %v3301_v44, 4  ;;  %1229 = vst [vmem:[#allocation2 + $0x110] sm:$0x1] %v1228_v26  ;;  %v3319_v0 = vshrl.u32 %v2793_v20, 16  ;;  %v3322_v33 = vshll.u32 %v2793_v20, 16 }
 0x154   : > { %v13291_v3 = vsel %vm13276_vm13, %v13099_v55, %v17416_v17  ;;  %v3312_v61 = vrot.slane %v3311_v13, 4  ;;  %v3328_v49 = vshll.u32 %v2794_v25, 16  ;;  %v3332_v16 = vshrl.u32 %v2794_v25, 16  ;;  %v2797_v26 = vld [vmem:[#allocation2 + $0x118] sm:$0xf] }
 0x155   : > { %v2792_v57 = vld [vmem:[#allocation2 + $0x104] sm:$0x1]  ;;  %v17417_v5 = vrot.slane %v13137_v12, 4  ;;  %v3293_v47 = vsel %vm12853_vm10, %v3288_v54, %v3292_v32  ;;  %v3307_v55 = vsel %vm12853_vm10, %v3302_v48, %v3306_v28  ;;  %v3321_v44 = vrot.slane %v3319_v0, 4  ;;  %v1241_v20 = vld [vmem:[#allocation2 + $0x128] sm:$0x1] }
 0x156   : > { %v3314_v8 = vshll.u32 %v2792_v57, 16  ;;  %v13302_v13 = vcombine.low %v3283_v15, %v3293_v47  ;;  %v3324_v12 = vrot.slane %v3322_v33, 5  ;;  %v3330_v25 = vrot.slane %v3328_v49, 5  ;;  %v2799_v48 = vld [vmem:[#allocation2 + $0x120] sm:$0xf] }
 0x157   : > { %v1235_v24 = vsel %vm12799_vm4, %v17417_v5, %v1234_v31  ;;  %10982 = vmatmul.mubr.bf16.gmra.mrb[56].mxu1 %v12287_v34  ;;  %11350 = vmatmul.mubr.bf16.gmra.mrb[24].mxu0 %v13103_v60  ;;  %v3334_v17 = vrot.slane %v3332_v16, 4  ;;  %v3343_v31 = vshrl.u32 %v2796_v63, 16  ;;  %v3346_v32 = vshll.u32 %v2796_v63, 16  ;;  %v12315_v60 = vld [vmem:[#allocation9 + $0x170] sm:$0xff]   ;;  %v12373_v42 = vld [vmem:[#allocation2 + $0x80] sm:$0x1] }
 0x158   : > { %1236 = vst [vmem:[#allocation2 + $0x11c] sm:$0x1] %v1235_v24  ;;  %17418 = vst [vmem:[#allocation31_spill] sm:$0xff] %v13302_v13  ;;  %10985 = vmatprep.mubr.bf16.mxu1 %v12290_v39  ;;  %11353 = vmatprep.mubr.bf16.mxu0 %v13120_v56  ;;  %v3316_v54 = vrot.slane %v3314_v8, 5  ;;  %v3352_v28 = vshll.u32 %v2797_v26, 16  ;;  %v3325_v0 = vor.u32 %v3324_v12, %v3321_v44  ;;  %v3356_v5 = vshrl.u32 %v2797_v26, 16 }
 0x159   : > { %v3335_v57 = vor.u32 %v3334_v17, %v3330_v25  ;;  %v17419_v34 = vrot.slane %v13139_v27, 4  ;;  %v3345_v49 = vrot.slane %v3343_v31, 4  ;;  %v3348_v39 = vrot.slane %v3346_v32, 5  ;;  %v2800_v56 = vld [vmem:[#allocation2 + $0x124] sm:$0xf]  ;;  %v12291_v24 = vld [vmem:[#allocation2 + $0x198] sm:$0xff]  }
 0x15a   : > { %v3317_v33 = vsel %vm12853_vm10, %v3312_v61, %v3316_v54  ;;  %v3354_v16 = vrot.slane %v3352_v28, 5  ;;  %v2795_v47 = vld [vmem:[#allocation2 + $0x110] sm:$0x1]  ;;  %v3326_v8 = vrot.slane %v3325_v0, 4  ;;  %v3358_v26 = vrot.slane %v3356_v5, 4  ;;  %v12292_v27 = vld [vmem:[#allocation2] sm:$0xff]  }
 0x15b   : > { %v1242_v15 = vsel %vm12799_vm4, %v17419_v34, %v1241_v20  ;;  %v13311_v63 = vcombine.low %v3307_v55, %v3317_v33  ;;  %v3336_v44 = vrot.slane %v3335_v57, 4  ;;  %v1248_v12 = vld [vmem:[#allocation2 + $0x134] sm:$0x1]  ;;  %v3338_v17 = vshll.u32 %v2795_v47, 16  ;;  %v2803_v55 = vld [vmem:[#allocation2 + $0x130] sm:$0xf] }
 0x15c   : > { %1243 = vst [vmem:[#allocation2 + $0x128] sm:$0x1] %v1242_v15  ;;  %v3349_v9 = vor.u32 %v3348_v39, %v3345_v49  ;;  %v3367_v20 = vshrl.u32 %v2799_v48, 16  ;;  %v3370_v34 = vshll.u32 %v2799_v48, 16  ;;  %v3331_v61 = vsel %vm12853_vm10, %v3326_v8, %v3330_v25  ;;  %v12379_v22 = vld [vmem:[#allocation2 + $0x98] sm:$0x1] }
 0x15d   : > { %17420 = vst [vmem:[#allocation32_spill] sm:$0xff] %v13311_v63  ;;  %v3359_v31 = vor.u32 %v3358_v26, %v3354_v16  ;;  %v3376_v32 = vshll.u32 %v2800_v56, 16  ;;  %v3380_v28 = vshrl.u32 %v2800_v56, 16  ;;  %v3340_v15 = vrot.slane %v3338_v17, 5  ;;  %v12384_v30 = vld [vmem:[#allocation2 + $0xa4] sm:$0x1] }
 0x15e   : > { %v3350_v33 = vrot.slane %v3349_v9, 4  ;;  %v3369_v57 = vrot.slane %v3367_v20, 4  ;;  %v3372_v49 = vrot.slane %v3370_v34, 5  ;;  %v17421_v9 = vrot.slane %v13163_v14, 4  ;;  %v1255_v20 = vld [vmem:[#allocation2 + $0x140] sm:$0x1] }
 0x15f   : > { %v2798_v54 = vld [vmem:[#allocation2 + $0x11c] sm:$0x1]  ;;  %10986 = vmatmul.mubr.bf16.gmra.mrb[60].mxu1 %v12291_v24  ;;  %11354 = vmatmul.mubr.bf16.gmra.mrb[28].mxu0 %v13273_v38  ;;  %v3360_v5 = vrot.slane %v3359_v31, 4  ;;  %v3378_v39 = vrot.slane %v3376_v32, 5  ;;  %v3382_v48 = vrot.slane %v3380_v28, 4  ;;  %v3341_v25 = vsel %vm12853_vm10, %v3336_v44, %v3340_v15 }
 0x160   : > { %v3362_v0 = vshll.u32 %v2798_v54, 16  ;;  %11005 = vmatprep.mubr.bf16.mxu1 %v12292_v27  ;;  %11357 = vmatprep.mubr.bf16.mxu0 %v13302_v13  ;;  %v3355_v56 = vsel %vm12853_vm10, %v3350_v33, %v3354_v16  ;;  %v1249_v24 = vsel %vm12799_vm4, %v17421_v9, %v1248_v12  ;;  %v13325_v38 = vcombine.low %v3331_v61, %v3341_v25  ;;  %v2805_v31 = vld [vmem:[#allocation2 + $0x138] sm:$0xf]  ;;  %v2806_v61 = vld [vmem:[#allocation2 + $0x13c] sm:$0xf] }
 0x161   : > { %v3373_v26 = vor.u32 %v3372_v49, %v3369_v57  ;;  %v3383_v17 = vor.u32 %v3382_v48, %v3378_v39  ;;  %1250 = vst [vmem:[#allocation2 + $0x134] sm:$0x1] %v1249_v24  ;;  %v3391_v27 = vshrl.u32 %v2802_v10, 16  ;;  %v3394_v54 = vshll.u32 %v2802_v10, 16  ;;  %v12295_v33 = vld [vmem:[#allocation9 + $0x188] sm:$0xff]  }
 0x162   : > { %v3364_v47 = vrot.slane %v3362_v0, 5  ;;  %17422 = vst [vmem:[#allocation33_spill] sm:$0xff] %v13325_v38  ;;  %v3400_v16 = vshll.u32 %v2803_v55, 16  ;;  %v3404_v49 = vshrl.u32 %v2803_v55, 16  ;;  %v3415_v25 = vshrl.u32 %v2805_v31, 16 }
 0x163   : > { %v2801_v8 = vld [vmem:[#allocation2 + $0x128] sm:$0x1]  ;;  %v3374_v14 = vrot.slane %v3373_v26, 4  ;;  %v3384_v28 = vrot.slane %v3383_v17, 4  ;;  %v3393_v12 = vrot.slane %v3391_v27, 4  ;;  %v3396_v0 = vrot.slane %v3394_v54, 5 }
 0x164   : > { %v3365_v44 = vsel %vm12853_vm10, %v3360_v5, %v3364_v47  ;;  %v3386_v34 = vshll.u32 %v2801_v8, 16  ;;  %v13331_v57 = vrot.slane %v3400_v16, 5  ;;  %v17424_v5 = vrot.slane %v13174_v35, 4  ;;  %v1262_v47 = vld [vmem:[#allocation2 + $0x14c] sm:$0x1]  ;;  %v12335_v54 = vld [vmem:[#allocation2 + $0x18] sm:$0xff]  }
 0x165   : > { %v13329_v32 = vcombine.low %v3355_v56, %v3365_v44  ;;  %v3379_v48 = vsel %vm12853_vm10, %v3374_v14, %v3378_v39  ;;  %v3418_v56 = vshll.u32 %v2805_v31, 16  ;;  %v2808_v9 = vld [vmem:[#allocation2 + $0x144] sm:$0xf]  ;;  %v3397_v8 = vor.u32 %v3396_v0, %v3393_v12  ;;  %v2809_v55 = vld [vmem:[#allocation2 + $0x148] sm:$0xf]  ;;  %v12333_v27 = vld [vmem:[#allocation2 + $0xc] sm:$0xff]  }
 0x166   : > { %v3388_v15 = vrot.slane %v3386_v34, 5  ;;  %v1256_v10 = vsel %vm12799_vm4, %v17424_v5, %v1255_v20  ;;  %v3406_v26 = vrot.slane %v3404_v49, 4  ;;  %v3424_v17 = vshll.u32 %v2806_v61, 16  ;;  %v12334_v34 = vld [vmem:[#allocation9 + $0x180] sm:$0xff]   ;;  %v12367_v13 = vld [vmem:[#allocation2 + $0x68] sm:$0x1] }
 0x167   : > { %17423 = vst [vmem:[#allocation34_spill] sm:$0xff] %v13329_v32  ;;  %1257 = vst [vmem:[#allocation2 + $0x140] sm:$0x1] %v1256_v10  ;;  %11006 = vmatmul.mubr.bf16.vlgmr.msra.gmra.mrb[0].mxu1 %v12333_v27  ;;  %11358 = vmatmul.mubr.bf16.gmra.mrb[32].mxu0 %v13311_v63  ;;  %v3417_v39 = vrot.slane %v3415_v25, 4  ;;  %v3420_v20 = vrot.slane %v3418_v56, 5  ;;  %v3428_v44 = vshrl.u32 %v2806_v61, 16 }
 0x168   : > { %v3389_v24 = vsel %vm12853_vm10, %v3384_v28, %v3388_v15  ;;  %11070 = vmatpush3.bf16.msra.mxu1 %v12334_v34  ;;  %11009 = vmatprep.mubr.bf16.mxu1 %v12335_v54  ;;  %v2804_v16 = vld [vmem:[#allocation2 + $0x134] sm:$0x1]  ;;  %v3398_v31 = vrot.slane %v3397_v8, 4  ;;  %v3407_v14 = vor.u32 %v3406_v26, %v13331_v57  ;;  %v13345_v28 = vrot.slane %v3424_v17, 5  ;;  %v1269_v0 = vld [vmem:[#allocation2 + $0x158] sm:$0x1] }
 0x169   : > { %v13342_v35 = vcombine.low %v3379_v48, %v3389_v24  ;;  %v17426_v12 = vrot.slane %v13176_v46, 4  ;;  %11361 = vmatprep.mubr.bf16.mxu0 %v13325_v38  ;;  %11071 = vmatprep.subr.bf16.mxu1 %v12295_v33  ;;  %v3410_v61 = vshll.u32 %v2804_v16, 16  ;;  %v3421_v49 = vor.u32 %v3420_v20, %v3417_v39  ;;  %v2811_v10 = vld [vmem:[#allocation2 + $0x150] sm:$0xf]  ;;  %v12297_v25 = vld [vmem:[#allocation9 + $0x190] sm:$0xff]  }
 0x16a   : > { %v3430_v48 = vrot.slane %v3428_v44, 4  ;;  %v3439_v5 = vshrl.u32 %v2808_v9, 16  ;;  %v3403_v56 = vsel %vm12853_vm10, %v3398_v31, %v13331_v57  ;;  %v3408_v24 = vrot.slane %v3407_v14, 4  ;;  %v2812_v26 = vld [vmem:[#allocation2 + $0x154] sm:$0xf]  ;;  %v12309_v38 = vld [vmem:[#allocation9 + $0x158] sm:$0xff]  }
 0x16b   : > { %17425 = vst [vmem:[#allocation35_spill] sm:$0xff] %v13342_v35  ;;  %v1263_v15 = vsel %vm12799_vm4, %v17426_v12, %v1262_v47  ;;  %v3442_v46 = vshll.u32 %v2808_v9, 16  ;;  %v3448_v8 = vshll.u32 %v2809_v55, 16  ;;  %v3412_v47 = vrot.slane %v3410_v61, 5  ;;  %v1276_v12 = vld [vmem:[#allocation2 + $0x164] sm:$0x1] }
 0x16c   : > { %1264 = vst [vmem:[#allocation2 + $0x14c] sm:$0x1] %v1263_v15  ;;  %v3422_v17 = vrot.slane %v3421_v49, 4  ;;  %v3431_v27 = vor.u32 %v3430_v48, %v13345_v28  ;;  %v3441_v34 = vrot.slane %v3439_v5, 4  ;;  %11072 = vmatpush3.bf16.msra.mxu1 %v12295_v33  ;;  %v3452_v44 = vshrl.u32 %v2809_v55, 16  ;;  %v12299_v49 = vld [vmem:[#allocation9 + $0x198] sm:$0xff]  }
 0x16d   : > { %v3444_v39 = vrot.slane %v3442_v46, 5  ;;  %v13356_v20 = vrot.slane %v3448_v8, 5  ;;  %v17427_v54 = vrot.slane %v13196_v43, 4  ;;  %v3413_v57 = vsel %vm12853_vm10, %v3408_v24, %v3412_v47  ;;  %11073 = vmatprep.subr.bf16.mxu1 %v12297_v25  ;;  %v12337_v8 = vld [vmem:[#allocation2 + $0x30] sm:$0xff]  }
 0x16e   : > { %v2807_v9 = vld [vmem:[#allocation2 + $0x140] sm:$0x1]  ;;  %v3427_v31 = vsel %vm12853_vm10, %v3422_v17, %v13345_v28  ;;  %v3432_v14 = vrot.slane %v3431_v27, 4  ;;  %v3463_v33 = vshrl.u32 %v2811_v10, 16  ;;  %v13367_v15 = vcombine.low %v3403_v56, %v3413_v57  ;;  %v2814_v28 = vld [vmem:[#allocation2 + $0x15c] sm:$0xf] }
 0x16f   : > { %v1270_v16 = vsel %vm12799_vm4, %v17427_v54, %v1269_v0  ;;  %v3434_v55 = vshll.u32 %v2807_v9, 16  ;;  %v3445_v43 = vor.u32 %v3444_v39, %v3441_v34  ;;  %v3454_v61 = vrot.slane %v3452_v44, 4  ;;  %v12336_v0 = vld [vmem:[#allocation2 + $0x24] sm:$0xff]   ;;  %11362 = vmatmul.mubr.bf16.gmra.mrb[36].mxu0 %v13329_v32  ;;  %v12302_v44 = vld [vmem:[#allocation9 + $0x1a0] sm:$0xff]   ;;  %v2815_v57 = vld [vmem:[#allocation2 + $0x160] sm:$0xf] }
 0x170   : > { %1271 = vst [vmem:[#allocation2 + $0x158] sm:$0x1] %v1270_v16  ;;  %17428 = vst [vmem:[#allocation36_spill] sm:$0xff] %v13367_v15  ;;  %11010 = vmatmul.mubr.bf16.gmra.mrb[4].mxu1 %v12336_v0  ;;  %v3465_v48 = vrot.slane %v3463_v33, 4  ;;  %v3466_v5 = vshll.u32 %v2811_v10, 16  ;;  %v3472_v24 = vshll.u32 %v2812_v26, 16  ;;  %11365 = vmatprep.mubr.bf16.mxu0 %v13342_v35 }
 0x171   : > { %v3476_v46 = vshrl.u32 %v2812_v26, 16  ;;  %11013 = vmatprep.mubr.bf16.mxu1 %v12337_v8  ;;  %v3436_v47 = vrot.slane %v3434_v55, 5  ;;  %v3446_v17 = vrot.slane %v3445_v43, 4  ;;  %v3455_v27 = vor.u32 %v3454_v61, %v13356_v20  ;;  %11074 = vmatpush3.bf16.msra.mxu1 %v12297_v25  ;;  %v1283_v43 = vld [vmem:[#allocation2 + $0x170] sm:$0x1] }
 0x172   : > { %v17429_v34 = vrot.slane %v13198_v58, 4  ;;  %v3468_v10 = vrot.slane %v3466_v5, 5  ;;  %v3474_v16 = vrot.slane %v3472_v24, 5  ;;  %v3487_v58 = vshrl.u32 %v2814_v28, 16  ;;  %v2817_v61 = vld [vmem:[#allocation2 + $0x168] sm:$0xf]  ;;  %11075 = vmatprep.subr.bf16.mxu1 %v12299_v49 }
 0x173   : > { %v2810_v56 = vld [vmem:[#allocation2 + $0x14c] sm:$0x1]  ;;  %v3478_v26 = vrot.slane %v3476_v46, 4  ;;  %v3437_v9 = vsel %vm12853_vm10, %v3432_v14, %v3436_v47  ;;  %v3451_v33 = vsel %vm12853_vm10, %v3446_v17, %v13356_v20  ;;  %v3456_v55 = vrot.slane %v3455_v27, 4  ;;  %v12361_v32 = vld [vmem:[#allocation2 + $0x50] sm:$0x1] }
 0x174   : > { %v1277_v39 = vsel %vm12799_vm4, %v17429_v34, %v1276_v12  ;;  %v3458_v54 = vshll.u32 %v2810_v56, 16  ;;  %v13381_v12 = vcombine.low %v3427_v31, %v3437_v9  ;;  %v3469_v5 = vor.u32 %v3468_v10, %v3465_v48  ;;  %v2818_v46 = vld [vmem:[#allocation2 + $0x16c] sm:$0xf]  ;;  %v12304_v48 = vld [vmem:[#allocation9 + $0x1a8] sm:$0xff]  }
 0x175   : > { %1278 = vst [vmem:[#allocation2 + $0x164] sm:$0x1] %v1277_v39  ;;  %v3479_v24 = vor.u32 %v3478_v26, %v3474_v16  ;;  %v3489_v25 = vrot.slane %v3487_v58, 4  ;;  %v3490_v56 = vshll.u32 %v2814_v28, 16  ;;  %v3496_v34 = vshll.u32 %v2815_v57, 16  ;;  %11076 = vmatpush3.bf16.msra.mxu1 %v12299_v49  ;;  %v13387_v10 = vld [vmem:[#allocation2 + $0x3c] sm:$0xff]  }
 0x176   : > { %17430 = vst [vmem:[#allocation37_spill] sm:$0xff] %v13381_v12  ;;  %v3460_v0 = vrot.slane %v3458_v54, 5  ;;  %v3500_v14 = vshrl.u32 %v2815_v57, 16  ;;  %v3470_v20 = vrot.slane %v3469_v5, 4  ;;  %11077 = vmatprep.subr.bf16.mxu1 %v12302_v44  ;;  %v17432_v57 = vrot.slane %v13211_v4, 4 }
 0x177   : > { %v2813_v8 = vld [vmem:[#allocation2 + $0x158] sm:$0x1]  ;;  %v3480_v17 = vrot.slane %v3479_v24, 4  ;;  %v3492_v31 = vrot.slane %v3490_v56, 5  ;;  %v3498_v9 = vrot.slane %v3496_v34, 5  ;;  %11366 = vmatmul.mubr.bf16.gmra.mrb[40].mxu0 %v13367_v15  ;;  %v3520_v56 = vshll.u32 %v2818_v46, 16 }
 0x178   : > { %v3461_v47 = vsel %vm12853_vm10, %v3456_v55, %v3460_v0  ;;  %v3482_v27 = vshll.u32 %v2813_v8, 16  ;;  %v3502_v54 = vrot.slane %v3500_v14, 4  ;;  %11014 = vmatmul.mubr.bf16.gmra.mrb[8].mxu1 %v13387_v10  ;;  %v3475_v28 = vsel %vm12853_vm10, %v3470_v20, %v3474_v16  ;;  %v1290_v55 = vld [vmem:[#allocation2 + $0x17c] sm:$0x1]  ;;  %v2820_v58 = vld [vmem:[#allocation2 + $0x174] sm:$0xf]  ;;  %11369 = vmatprep.mubr.bf16.mxu0 %v13381_v12 }
 0x179   : > { %v13385_v39 = vcombine.low %v3451_v33, %v3461_v47  ;;  %v1284_v49 = vsel %vm12799_vm4, %v17432_v57, %v1283_v43  ;;  %v3511_v33 = vshrl.u32 %v2817_v61, 16  ;;  %v13397_v0 = vld [vmem:[#allocation2 + $0x48] sm:$0xff]   ;;  %v3493_v24 = vor.u32 %v3492_v31, %v3489_v25  ;;  %11078 = vmatpush3.bf16.msra.mxu1 %v12302_v44 }
 0x17a   : > { %v3484_v26 = vrot.slane %v3482_v27, 5  ;;  %11017 = vmatprep.mubr.bf16.mxu1 %v13397_v0  ;;  %v3503_v8 = vor.u32 %v3502_v54, %v3498_v9  ;;  %1285 = vst [vmem:[#allocation2 + $0x170] sm:$0x1] %v1284_v49  ;;  %v3514_v16 = vshll.u32 %v2817_v61, 16  ;;  %v3524_v14 = vshrl.u32 %v2818_v46, 16  ;;  %11079 = vmatprep.subr.bf16.mxu1 %v12304_v48 }
 0x17b   : > { %17431 = vst [vmem:[#allocation38_spill] sm:$0xff] %v13385_v39  ;;  %v3513_v43 = vrot.slane %v3511_v33, 4  ;;  %v3494_v20 = vrot.slane %v3493_v24, 4  ;;  %v13405_v31 = vrot.slane %v3520_v56, 5  ;;  %v17434_v54 = vrot.slane %v13218_v62, 4 }
 0x17c   : > { %v2816_v5 = vld [vmem:[#allocation2 + $0x164] sm:$0x1]  ;;  %v3485_v4 = vsel %vm12853_vm10, %v3480_v17, %v3484_v26  ;;  %v3504_v27 = vrot.slane %v3503_v8, 4  ;;  %v3516_v57 = vrot.slane %v3514_v16, 5  ;;  %v3526_v61 = vrot.slane %v3524_v14, 4 }
 0x17d   : > { %v3506_v34 = vshll.u32 %v2816_v5, 16  ;;  %v13403_v47 = vcombine.low %v3475_v28, %v3485_v4  ;;  %v1291_v17 = vsel %vm12799_vm4, %v17434_v54, %v1290_v55  ;;  %v3499_v44 = vsel %vm12853_vm10, %v3494_v20, %v3498_v9  ;;  %v1297_v49 = vld [vmem:[#allocation2 + $0x188] sm:$0x1]  ;;  %v2823_v33 = vld [vmem:[#allocation2 + $0x180] sm:$0xf]  ;;  %11080 = vmatpush3.bf16.msra.mxu1 %v12304_v48 }
 0x17e   : > { %v3517_v46 = vor.u32 %v3516_v57, %v3513_v43  ;;  %1292 = vst [vmem:[#allocation2 + $0x17c] sm:$0x1] %v1291_v17  ;;  %v3535_v28 = vshrl.u32 %v2820_v58, 16  ;;  %v3538_v26 = vshll.u32 %v2820_v58, 16  ;;  %v3527_v24 = vor.u32 %v3526_v61, %v13405_v31  ;;  %v2824_v62 = vld [vmem:[#allocation2 + $0x184] sm:$0xf]  ;;  %11081 = vmatprep.subr.bf16.mxu1 %v12306_v50 }
 0x17f   : > { %17433 = vst [vmem:[#allocation39_spill] sm:$0xff] %v13403_v47  ;;  %v3508_v25 = vrot.slane %v3506_v34, 5  ;;  %v3544_v8 = vshll.u32 %v2821_v37, 16  ;;  %v3548_v16 = vshrl.u32 %v2821_v37, 16  ;;  %v1304_v56 = vld [vmem:[#allocation2 + $0x194] sm:$0x1]  ;;  %11370 = vmatmul.mubr.bf16.gmra.mrb[44].mxu0 %v13385_v39 }
 0x180   : > { %v3518_v4 = vrot.slane %v3517_v46, 4  ;;  %v3537_v9 = vrot.slane %v3535_v28, 4  ;;  %v3540_v34 = vrot.slane %v3538_v26, 5  ;;  %v12308_v43 = vld [vmem:[#allocation9 + $0x1b8] sm:$0xff]   ;;  %v13418_v58 = vld [vmem:[#allocation2 + $0x54] sm:$0xff]   ;;  %v3528_v20 = vrot.slane %v3527_v24, 4  ;;  %11373 = vmatprep.mubr.bf16.mxu0 %v13403_v47 }
 0x181   : > { %v3509_v5 = vsel %vm12853_vm10, %v3504_v27, %v3508_v25  ;;  %11018 = vmatmul.mubr.bf16.gmra.mrb[12].mxu1 %v13418_v58  ;;  %v2819_v14 = vld [vmem:[#allocation2 + $0x170] sm:$0x1]  ;;  %v13422_v27 = vrot.slane %v3544_v8, 5  ;;  %v3550_v37 = vrot.slane %v3548_v16, 4  ;;  %v17436_v48 = vrot.slane %v13222_v53, 4  ;;  %v13428_v25 = vld [vmem:[#allocation2 + $0x60] sm:$0xff]  }
 0x182   : > { %v13416_v55 = vcombine.low %v3499_v44, %v3509_v5  ;;  %11021 = vmatprep.mubr.bf16.mxu1 %v13428_v25  ;;  %v3523_v61 = vsel %vm12853_vm10, %v3518_v4, %v13405_v31  ;;  %v3530_v54 = vshll.u32 %v2819_v14, 16  ;;  %v3541_v17 = vor.u32 %v3540_v34, %v3537_v9  ;;  %v2826_v46 = vld [vmem:[#allocation2 + $0x18c] sm:$0xf]  ;;  %v2827_v5 = vld [vmem:[#allocation2 + $0x190] sm:$0xf]  ;;  %11082 = vmatpush3.bf16.msra.mxu1 %v12306_v50 }
 0x183   : > { %v1298_v57 = vsel %vm12799_vm4, %v17436_v48, %v1297_v49  ;;  %v3559_v44 = vshrl.u32 %v2823_v33, 16  ;;  %v3551_v53 = vor.u32 %v3550_v37, %v13422_v27  ;;  %v3562_v28 = vshll.u32 %v2823_v33, 16  ;;  %v1311_v4 = vld [vmem:[#allocation2 + $0x1a0] sm:$0x1]  ;;  %11083 = vmatprep.subr.bf16.mxu1 %v12308_v43  ;;  %v13440_v9 = vld [vmem:[#allocation9 + $0x40] sm:$0xff]  }
 0x184   : > { %17435 = vst [vmem:[#allocation40_spill] sm:$0xff] %v13416_v55  ;;  %1299 = vst [vmem:[#allocation2 + $0x188] sm:$0x1] %v1298_v57  ;;  %v3568_v26 = vshll.u32 %v2824_v62, 16  ;;  %v3572_v49 = vshrl.u32 %v2824_v62, 16  ;;  %v3532_v24 = vrot.slane %v3530_v54, 5 }
 0x185   : > { %v3542_v8 = vrot.slane %v3541_v17, 4  ;;  %v3561_v16 = vrot.slane %v3559_v44, 4  ;;  %v17437_v48 = vrot.slane %v13239_v7, 4  ;;  %v13442_v34 = vld [vmem:[#allocation2 + $0x17c] sm:$0x1]  ;;  %v3552_v14 = vrot.slane %v3551_v53, 4 }
 0x186   : > { %v3564_v33 = vrot.slane %v3562_v28, 5  ;;  %v3570_v37 = vrot.slane %v3568_v26, 5  ;;  %v3574_v62 = vrot.slane %v3572_v49, 4  ;;  %v3533_v50 = vsel %vm12853_vm10, %v3528_v20, %v3532_v24  ;;  %v2829_v54 = vld [vmem:[#allocation2 + $0x198] sm:$0xf]  ;;  %11084 = vmatpush3.bf16.msra.mxu1 %v12308_v43  ;;  %v13453_v20 = vld [vmem:[#allocation2 + $0x6c] sm:$0xff]  }
 0x187   : > { %v1305_v31 = vsel %vm12799_vm4, %v17437_v48, %v1304_v56  ;;  %v3547_v7 = vsel %vm12853_vm10, %v3542_v8, %v13422_v27  ;;  %v3554_v56 = vshll.u32 %v13442_v34, 16  ;;  %v3583_v57 = vshrl.u32 %v2826_v46, 16  ;;  %v2830_v28 = vld [vmem:[#allocation2 + $0x19c] sm:$0xf]  ;;  %11149 = vmatprep.subr.bf16.mxu1 %v13440_v9  ;;  %11374 = vmatmul.mubr.bf16.gmra.mrb[48].mxu0 %v13416_v55  ;;  %v2834_v39 = vld [vmem:[#allocation2 + $0x1ac] sm:$0x1] }
 0x188   : > { %1306 = vst [vmem:[#allocation2 + $0x194] sm:$0x1] %v1305_v31  ;;  %v13450_v17 = vcombine.low %v3523_v61, %v3533_v50  ;;  %v3565_v44 = vor.u32 %v3564_v33, %v3561_v16  ;;  %v3575_v48 = vor.u32 %v3574_v62, %v3570_v37  ;;  %v3586_v53 = vshll.u32 %v2826_v46, 16  ;;  %v13463_v16 = vld [vmem:[#allocation2 + $0x78] sm:$0xff]  }
 0x189   : > { %v3556_v26 = vrot.slane %v3554_v56, 5  ;;  %v3585_v49 = vrot.slane %v3583_v57, 4  ;;  %v3592_v31 = vshll.u32 %v2827_v5, 16  ;;  %v3596_v47 = vshrl.u32 %v2827_v5, 16  ;;  %11022 = vmatmul.mubr.bf16.gmra.mrb[16].mxu1 %v13453_v20 }
 0x18a   : > { %17438 = vst [vmem:[#allocation41_spill] sm:$0xff] %v13450_v17  ;;  %v3566_v61 = vrot.slane %v3565_v44, 4  ;;  %v3576_v24 = vrot.slane %v3575_v48, 4  ;;  %v3588_v8 = vrot.slane %v3586_v53, 5  ;;  %v17439_v46 = vrot.slane %v13243_v36, 4  ;;  %11025 = vmatprep.mubr.bf16.mxu1 %v13463_v16  ;;  %11377 = vmatprep.mubr.bf16.mxu0 %v13450_v17 }
 0x18b   : > { %v13457_v27 = vld [vmem:[#allocation2 + $0x188] sm:$0x1]  ;;  %v3557_v5 = vsel %vm12853_vm10, %v3552_v14, %v3556_v26  ;;  %v3594_v62 = vrot.slane %v3592_v31, 5  ;;  %v3598_v50 = vrot.slane %v3596_v47, 4  ;;  %v4177_v57 = vshrl.u32 %v2829_v54, 16 }
 0x18c   : > { %v1312_v43 = vsel %vm12799_vm4, %v17439_v46, %v1311_v4  ;;  %v3578_v33 = vshll.u32 %v13457_v27, 16  ;;  %v13470_v56 = vcombine.low %v3547_v7, %v3557_v5  ;;  %v3571_v36 = vsel %vm12853_vm10, %v3566_v61, %v3570_v37  ;;  %v2832_v44 = vld [vmem:[#allocation2 + $0x1a4] sm:$0xf]  ;;  %v2833_v48 = vld [vmem:[#allocation2 + $0x1a8] sm:$0xf] }
 0x18d   : > { %1313 = vst [vmem:[#allocation2 + $0x1a0] sm:$0x1] %v1312_v43  ;;  %v3589_v4 = vor.u32 %v3588_v8, %v3585_v49  ;;  %v3599_v17 = vor.u32 %v3598_v50, %v3594_v62  ;;  %v4180_v55 = vshll.u32 %v2829_v54, 16  ;;  %v4186_v14 = vshll.u32 %v2830_v28, 16 }
 0x18e   : > { %17440 = vst [vmem:[#allocation42_spill] sm:$0xff] %v13470_v56  ;;  %v3580_v53 = vrot.slane %v3578_v33, 5  ;;  %v4179_v47 = vrot.slane %v4177_v57, 4  ;;  %v4190_v43 = vshrl.u32 %v2830_v28, 16  ;;  %v4651_v50 = vshrl.u32 %v2832_v44, 16 }
 0x18f   : > { %v13474_v46 = vld [vmem:[#allocation2 + $0x194] sm:$0x1]  ;;  %v3590_v26 = vrot.slane %v3589_v4, 4  ;;  %v3600_v5 = vrot.slane %v3599_v17, 4  ;;  %v4182_v37 = vrot.slane %v4180_v55, 5  ;;  %v4188_v49 = vrot.slane %v4186_v14, 5  ;;  %11378 = vmatmul.mubr.bf16.gmra.mrb[52].mxu0 %v13470_v56 }
 0x190   : > { %v3602_v31 = vshll.u32 %v13474_v46, 16  ;;  %v3581_v7 = vsel %vm12853_vm10, %v3576_v24, %v3580_v53  ;;  %v4192_v33 = vrot.slane %v4190_v43, 4  ;;  %v4654_v54 = vshll.u32 %v2832_v44, 16  ;;  %v13481_v4 = vld [vmem:[#allocation2 + $0x84] sm:$0xff]   ;;  %v13491_v53 = vld [vmem:[#allocation2 + $0x90] sm:$0xff]  }
 0x191   : > { %v13479_v61 = vcombine.low %v3571_v36, %v3581_v7  ;;  %v4183_v12 = vor.u32 %v4182_v37, %v4179_v47  ;;  %v4660_v15 = vshll.u32 %v2833_v48, 16  ;;  %11026 = vmatmul.mubr.bf16.gmra.mrb[20].mxu1 %v13481_v4  ;;  %v3595_v17 = vsel %vm12853_vm10, %v3590_v26, %v3594_v62  ;;  %v13489_v57 = vld [vmem:[#allocation2 + $0x4] sm:$0xf]  ;;  %v5100_v43 = vld [vmem:[#allocation2] sm:$0xe] }
 0x192   : > { %v3604_v8 = vrot.slane %v3602_v31, 5  ;;  %v4193_v24 = vor.u32 %v4192_v33, %v4188_v49  ;;  %v4664_v36 = vshrl.u32 %v2833_v48, 16  ;;  %11029 = vmatprep.mubr.bf16.mxu1 %v13491_v53  ;;  %v4653_v31 = vrot.slane %v4651_v50, 4  ;;  %v5101_v37 = vld [vmem:[#allocation2 + $0xc] sm:$0xe] }
 0x193   : > { %17441 = vst [vmem:[#allocation43_spill] sm:$0xff] %v13479_v61  ;;  %11381 = vmatprep.mubr.bf16.mxu0 %v13479_v61  ;;  %v4184_v44 = vrot.slane %v4183_v12, 4  ;;  %v4670_v47 = vshll.u32 %v2834_v39, 16  ;;  %v4656_v26 = vrot.slane %v4654_v54, 5  ;;  %v4662_v7 = vrot.slane %v4660_v15, 5 }
 0x194   : > { %v3605_v55 = vsel %vm12853_vm10, %v3600_v5, %v3604_v8  ;;  %v2831_v28 = vld [vmem:[#allocation2 + $0x1a0] sm:$0x1]  ;;  %v4194_v62 = vrot.slane %v4193_v24, 4  ;;  %v4666_v5 = vrot.slane %v4664_v36, 4  ;;  %v13497_v33 = vld [vmem:[#allocation2 + $0x8] sm:$0x1] }
 0x195   : > { %v4196_v14 = vshll.u32 %v2831_v28, 16  ;;  %v4189_v48 = vsel %vm12853_vm10, %v4184_v44, %v4188_v49  ;;  %17442 = vst [vmem:[#allocation44_spill] sm:$0xff] %v13497_v33  ;;  %v13499_v56 = vcombine.low %v3595_v17, %v3605_v55  ;;  %v4657_v35 = vor.u32 %v4656_v26, %v4653_v31 }
 0x196   : > { %v4667_v61 = vor.u32 %v4666_v5, %v4662_v7  ;;  %v5237_v12 = vrot.slane %v13489_v57, 5  ;;  %v4672_v50 = vrot.slane %v4670_v47, 5  ;;  %v10191_v54 = vrot.slane %v5100_v43, 9  ;;  %v13518_v47 = vld [vmem:[#allocation2 + $0xa8] sm:$0xff]   ;;  %v5102_v5 = vld [vmem:[#allocation2 + $0x18] sm:$0xe] }
 0x197   : > { %v4198_v8 = vrot.slane %v4196_v14, 5  ;;  %17443 = vst [vmem:[#allocation45_spill] sm:$0xff] %v13499_v56  ;;  %v10192_v15 = vrot.slane %v5101_v37, 9  ;;  %v4658_v24 = vrot.slane %v4657_v35, 4  ;;  %v5240_v49 = vrot.slane %v13497_v33, 5  ;;  %v13511_v14 = vld [vmem:[#allocation2 + $0x9c] sm:$0xff]   ;;  %11382 = vmatmul.mubr.bf16.gmra.mrb[56].mxu0 %v13499_v56 }
 0x198   : > { %v4668_v36 = vrot.slane %v4667_v61, 4  ;;  %v5239_v44 = vrot.slane %v5237_v12, 4  ;;  %v17445_v17 = vrot.slane %v12836_v23, 5  ;;  %v5238_v61 = vsel %vm13276_vm13, %v10191_v54, %v5237_v12  ;;  %v12301_v37 = vld [vmem:[#allocation2 + $0xd8] sm:$0xff]   ;;  %v12351_v12 = vld [vmem:[#allocation2 + $0x28] sm:$0xf] }
 0x199   : > { %v4199_v39 = vsel %vm12853_vm10, %v4194_v62, %v4198_v8  ;;  %11030 = vmatmul.mubr.bf16.gmra.mrb[24].mxu1 %v13511_v14  ;;  %v4663_v23 = vsel %vm12853_vm10, %v4658_v24, %v4662_v7  ;;  %v10193_v8 = vrot.slane %v5102_v5, 9  ;;  %v13530_v7 = vld [vmem:[#allocation2 + $0xb4] sm:$0xff]   ;;  %v5103_v54 = vld [vmem:[#allocation2 + $0x24] sm:$0xe]  ;;  %v5120_v33 = vld [vmem:[#allocation2 + $0xf0] sm:$0xe] }
 0x19a   : > { %v13504_v28 = vcombine.low %v4189_v48, %v4199_v39  ;;  %v5245_v55 = vsel %vm13276_vm13, %v10192_v15, %v17445_v17  ;;  %11033 = vmatprep.mubr.bf16.mxu1 %v13518_v47  ;;  %v4673_v35 = vsel %vm12853_vm10, %v4668_v36, %v4672_v50  ;;  %v5241_v43 = vsel %vm13276_vm13, %v5239_v44, %v5240_v49  ;;  %v12349_v15 = vld [vmem:[#allocation2 + $0x20] sm:$0x1]  ;;  %v12352_v24 = vld [vmem:[#allocation2 + $0x34] sm:$0xf] }
 0x19b   : > { %v13516_v31 = vcombine.low %v5245_v55, %v13291_v3  ;;  %v12348_v3 = vld [vmem:[#allocation2 + $0x1c] sm:$0xf]  ;;  %v10182_v26 = vcombine.low %v4663_v23, %v4673_v35  ;;  %v10223_v48 = vcombine.low %v5238_v61, %v5241_v43  ;;  %v5254_v17 = vrot.slane %v12349_v15, 5  ;;  %v5104_v55 = vld [vmem:[#allocation2 + $0x30] sm:$0xe] }
 0x19c   : > { %17444 = vst [vmem:[#allocation46_spill] sm:$0xff] %v13504_v28  ;;  %11385 = vmatprep.mubr.bf16.mxu0 %v13504_v28  ;;  %v5251_v62 = vrot.slane %v12348_v3, 5  ;;  %v5258_v50 = vrot.slane %v12351_v12, 5  ;;  %v5265_v36 = vrot.slane %v12352_v24, 5  ;;  %v10194_v23 = vrot.slane %v5103_v54, 9  ;;  %v12305_v15 = vld [vmem:[#allocation9 + $0x148] sm:$0xff]  }
 0x19d   : > { %v12353_v61 = vld [vmem:[#allocation2 + $0x2c] sm:$0x1]  ;;  %v12355_v12 = vld [vmem:[#allocation2 + $0xe4] sm:$0xff]   ;;  %v5105_v54 = vld [vmem:[#allocation2 + $0x3c] sm:$0xe] }
 0x19e   : > { %v5253_v39 = vrot.slane %v5251_v62, 4  ;;  %v5252_v49 = vsel %vm13276_vm13, %v10193_v8, %v5251_v62  ;;  %v5260_v35 = vrot.slane %v5258_v50, 4  ;;  %v5261_v43 = vrot.slane %v12353_v61, 5  ;;  %v12356_v62 = vld [vmem:[#allocation9 + $0x140] sm:$0xff]   ;;  %v12358_v24 = vld [vmem:[#allocation2 + $0x40] sm:$0xf] }
 0x19f   : > { %11386 = vmatmul.mubr.bf16.gmra.mrb[60].mxu0 %v10182_v26  ;;  %v10195_v26 = vrot.slane %v5104_v55, 9  ;;  %v5267_v5 = vrot.slane %v5265_v36, 4  ;;  %v13540_v8 = vld [vmem:[#allocation2 + $0xf0] sm:$0xff]   ;;  %v5106_v61 = vld [vmem:[#allocation2 + $0x48] sm:$0xe] }
 0x1a0   : > { %11405 = vmatprep.mubr.bf16.mxu0 %v10223_v48  ;;  %v5255_v44 = vsel %vm13276_vm13, %v5253_v39, %v5254_v17  ;;  %v5259_v39 = vsel %vm13276_vm13, %v10194_v23, %v5258_v50  ;;  %v5262_v17 = vsel %vm13276_vm13, %v5260_v35, %v5261_v43  ;;  %v732_v50 = vrot.slane %v13079_v45, 4  ;;  %v12360_v28 = vld [vmem:[#allocation2 + $0x44] sm:$0x1]  ;;  %v13561_v45 = vld [vmem:[#allocation2 + $0x108] sm:$0xff]  }
 0x1a1   : > { %11034 = vmatmul.mubr.bf16.gmra.mrb[28].mxu1 %v13530_v7  ;;  %v13537_v3 = vcombine.low %v5252_v49, %v5255_v44  ;;  %v5272_v49 = vrot.slane %v12358_v24, 5  ;;  %v5266_v44 = vsel %vm13276_vm13, %v10195_v26, %v5265_v36  ;;  %v13553_v23 = vcombine.low %v5259_v39, %v5262_v17 }
 0x1a2   : > { %11037 = vmatprep.mubr.bf16.mxu1 %v12301_v37  ;;  %v12354_v37 = vld [vmem:[#allocation2 + $0x38] sm:$0x1]  ;;  %v10196_v35 = vrot.slane %v5105_v54, 9  ;;  %v5275_v56 = vrot.slane %v12360_v28, 5  ;;  %v10197_v36 = vrot.slane %v5106_v61, 9 }
 0x1a3   : > { %v5268_v48 = vrot.slane %v12354_v37, 5  ;;  %v12359_v37 = vld [vmem:[#allocation2 + $0x4c] sm:$0xf]  ;;  %v5274_v24 = vrot.slane %v5272_v49, 4  ;;  %v12365_v61 = vld [vmem:[#allocation2 + $0x64] sm:$0xf] }
 0x1a4   : > { %v5273_v28 = vsel %vm13276_vm13, %v10196_v35, %v5272_v49  ;;  %v5293_v63 = vrot.slane %v12365_v61, 5  ;;  %v12311_v49 = vld [vmem:[#allocation9 + $0x160] sm:$0xff]   ;;  %v5108_v35 = vld [vmem:[#allocation2 + $0x60] sm:$0xe] }
 0x1a5   : > { %v5269_v55 = vsel %vm13276_vm13, %v5267_v5, %v5268_v48  ;;  %v5282_v5 = vrot.slane %v12361_v32, 5  ;;  %v1206_v48 = vld [vmem:[#allocation2 + $0xec] sm:$0x1]  ;;  %v5276_v32 = vsel %vm13276_vm13, %v5274_v24, %v5275_v56 }
 0x1a6   : > { %v13555_v43 = vcombine.low %v5266_v44, %v5269_v55  ;;  %v1207_v17 = vsel %vm12799_vm4, %v732_v50, %v1206_v48  ;;  %v5107_v55 = vld [vmem:[#allocation2 + $0x54] sm:$0xe]  ;;  %v13575_v56 = vcombine.low %v5273_v28, %v5276_v32  ;;  %v12366_v48 = vld [vmem:[#allocation2 + $0x5c] sm:$0x1]  ;;  %v13583_v28 = vld [vmem:[#allocation2 + $0x120] sm:$0xff]  }
 0x1a7   : > { %11406 = vmatmul.mubr.bf16.vlgmr.msra.gmra.mrb[0].mxu0 %v13516_v31  ;;  %1208 = vst [vmem:[#allocation2 + $0xec] sm:$0x1] %v1207_v17  ;;  %v10198_v19 = vrot.slane %v5107_v55, 9  ;;  %v12370_v17 = vld [vmem:[#allocation2 + $0x70] sm:$0xf] }
 0x1a8   : > { %11470 = vmatpush3.bf16.msra.mxu0 %v12356_v62  ;;  %11409 = vmatprep.mubr.bf16.mxu0 %v13537_v3  ;;  %v12307_v62 = vld [vmem:[#allocation9 + $0x150] sm:$0xff]  }
 0x1a9   : > { %11038 = vmatmul.mubr.bf16.gmra.mrb[32].mxu1 %v12355_v12  ;;  %11471 = vmatprep.subr.bf16.mxu0 %v12305_v15  ;;  %v5279_v12 = vrot.slane %v12359_v37, 5  ;;  %v13557_v37 = vld [vmem:[#allocation2 + $0xfc] sm:$0xff]  }
 0x1aa   : > { %11041 = vmatprep.mubr.bf16.mxu1 %v13540_v8 }
 0x1ab   : > { %v5281_v26 = vrot.slane %v5279_v12, 4  ;;  %v5280_v54 = vsel %vm13276_vm13, %v10197_v36, %v5279_v12  ;;  %v10199_v12 = vrot.slane %v5108_v35, 9  ;;  %v5295_v36 = vrot.slane %v5293_v63, 4  ;;  %v12371_v35 = vld [vmem:[#allocation2 + $0x7c] sm:$0xf] }
 0x1ac   : > { %11472 = vmatpush3.bf16.msra.mxu0 %v12305_v15  ;;  %v12364_v15 = vld [vmem:[#allocation2 + $0x58] sm:$0xf] }
 0x1ad   : > { %11473 = vmatprep.subr.bf16.mxu0 %v12307_v62  ;;  %v5286_v39 = vrot.slane %v12364_v15, 5  ;;  %v5283_v44 = vsel %vm13276_vm13, %v5281_v26, %v5282_v5  ;;  %v5289_v15 = vrot.slane %v12366_v48, 5  ;;  %v5296_v26 = vrot.slane %v12367_v13, 5  ;;  %v12313_v5 = vld [vmem:[#allocation9 + $0x168] sm:$0xff]  }
 0x1ae   : > { %v13577_v24 = vcombine.low %v5280_v54, %v5283_v44  ;;  %v5300_v54 = vrot.slane %v12370_v17, 5  ;;  %v5110_v44 = vld [vmem:[#allocation2 + $0x78] sm:$0xe]  ;;  %v5294_v55 = vsel %vm13276_vm13, %v10199_v12, %v5293_v63  ;;  %v5307_v48 = vrot.slane %v12371_v35, 5  ;;  %v12317_v12 = vld [vmem:[#allocation9 + $0x178] sm:$0xff]  }
 0x1af   : > { %11410 = vmatmul.mubr.bf16.gmra.mrb[4].mxu0 %v13553_v23  ;;  %v5288_v50 = vrot.slane %v5286_v39, 4  ;;  %v5287_v32 = vsel %vm13276_vm13, %v10198_v19, %v5286_v39  ;;  %v5297_v61 = vsel %vm13276_vm13, %v5295_v36, %v5296_v26  ;;  %v12372_v19 = vld [vmem:[#allocation2 + $0x74] sm:$0x1]  ;;  %v10201_v51 = vrot.slane %v5110_v44, 9  ;;  %v13599_v36 = vld [vmem:[#allocation2 + $0x12c] sm:$0xff]  }
 0x1b0   : > { %11413 = vmatprep.mubr.bf16.mxu0 %v13555_v43  ;;  %11474 = vmatpush3.bf16.msra.mxu0 %v12307_v62  ;;  %v13579_v62 = vld [vmem:[#allocation2 + $0x114] sm:$0xff]   ;;  %v5302_v17 = vrot.slane %v5300_v54, 4  ;;  %v5309_v1 = vrot.slane %v5307_v48, 4  ;;  %v5310_v63 = vrot.slane %v12373_v42, 5  ;;  %v5111_v44 = vld [vmem:[#allocation2 + $0x84] sm:$0xe] }
 0x1b1   : > { %11042 = vmatmul.mubr.bf16.gmra.mrb[36].mxu1 %v13557_v37  ;;  %11475 = vmatprep.subr.bf16.mxu0 %v12309_v38  ;;  %v5290_v13 = vsel %vm13276_vm13, %v5288_v50, %v5289_v15  ;;  %v5303_v50 = vrot.slane %v12372_v19, 5  ;;  %v13597_v15 = vcombine.low %v5294_v55, %v5297_v61  ;;  %v12377_v55 = vld [vmem:[#allocation2 + $0x94] sm:$0xf]  ;;  %v5112_v35 = vld [vmem:[#allocation2 + $0x90] sm:$0xe] }
 0x1b2   : > { %11045 = vmatprep.mubr.bf16.mxu1 %v13561_v45  ;;  %v13595_v18 = vcombine.low %v5287_v32, %v5290_v13  ;;  %v5308_v13 = vsel %vm13276_vm13, %v10201_v51, %v5307_v48  ;;  %v5321_v61 = vrot.slane %v12377_v55, 5  ;;  %v13615_v19 = vld [vmem:[#allocation9 + $0x200] sm:$0xff]   ;;  %v10203_v51 = vrot.slane %v5112_v35, 9  ;;  %v12383_v55 = vld [vmem:[#allocation2 + $0xac] sm:$0xf] }
 0x1b3   : > { %v5304_v42 = vsel %vm13276_vm13, %v5302_v17, %v5303_v50  ;;  %v10202_v50 = vrot.slane %v5111_v44, 9  ;;  %v5113_v44 = vld [vmem:[#allocation2 + $0x9c] sm:$0xe]  ;;  %v5335_v35 = vrot.slane %v12383_v55, 5  ;;  %v13661_v55 = vld [vmem:[#allocation2 + $0xe0] sm:$0x1] }
 0x1b4   : > { %11476 = vmatpush3.bf16.msra.mxu0 %v12309_v38  ;;  %v5109_v38 = vld [vmem:[#allocation2 + $0x6c] sm:$0xe]  ;;  %v5323_v48 = vrot.slane %v5321_v61, 4  ;;  %17448 = vst [vmem:[#allocation49_spill] sm:$0xff] %v13661_v55 }
 0x1b5   : > { %11477 = vmatprep.subr.bf16.mxu0 %v12311_v49  ;;  %v10200_v39 = vrot.slane %v5109_v38, 9  ;;  %v5311_v38 = vsel %vm13276_vm13, %v5309_v1, %v5310_v63  ;;  %v5324_v1 = vrot.slane %v12379_v22, 5  ;;  %v13626_v63 = vld [vmem:[#allocation2 + $0x150] sm:$0xff]  }
 0x1b7   : > { %11414 = vmatmul.mubr.bf16.gmra.mrb[8].mxu0 %v13575_v56  ;;  %v5301_v26 = vsel %vm13276_vm13, %v10200_v39, %v5300_v54  ;;  %v13619_v39 = vcombine.low %v5308_v13, %v5311_v38  ;;  %v5322_v13 = vsel %vm13276_vm13, %v10203_v51, %v5321_v61  ;;  %v5325_v38 = vsel %vm13276_vm13, %v5323_v48, %v5324_v1  ;;  %v13642_v61 = vld [vmem:[#allocation2 + $0xdc] sm:$0xf]  ;;  %v13648_v48 = vld [vmem:[#allocation2 + $0x168] sm:$0xff]   ;;  %v12388_v1 = vld [vmem:[#allocation2 + $0xb8] sm:$0xf] }
 0x1b8   : > { %11417 = vmatprep.mubr.bf16.mxu0 %v13577_v24  ;;  %11478 = vmatpush3.bf16.msra.mxu0 %v12311_v49  ;;  %v13603_v49 = vld [vmem:[#allocation2 + $0x138] sm:$0xff]   ;;  %v13617_v54 = vcombine.low %v5301_v26, %v5304_v42  ;;  %v13640_v59 = vcombine.low %v5322_v13, %v5325_v38  ;;  %17447 = vst [vmem:[#allocation48_spill] sm:$0xff] %v13642_v61  ;;  %v5115_v38 = vld [vmem:[#allocation2 + $0xb4] sm:$0xe] }
 0x1b9   : > { %11046 = vmatmul.mubr.bf16.gmra.mrb[40].mxu1 %v13579_v62  ;;  %11479 = vmatprep.subr.bf16.mxu0 %v12313_v5  ;;  %v13644_v51 = vld [vmem:[#allocation2 + $0x15c] sm:$0xff]  }
 0x1ba   : > { %11049 = vmatprep.mubr.bf16.mxu1 %v13583_v28  ;;  %17446 = vst [vmem:[#allocation47_spill] sm:$0xff] %v13640_v59 }
 0x1bc   : > { %11480 = vmatpush3.bf16.msra.mxu0 %v12313_v5  ;;  %v12376_v5 = vld [vmem:[#allocation2 + $0x88] sm:$0xf] }
 0x1bd   : > { %11481 = vmatprep.subr.bf16.mxu0 %v12315_v60  ;;  %v5314_v32 = vrot.slane %v12376_v5, 5  ;;  %v12378_v5 = vld [vmem:[#allocation2 + $0x8c] sm:$0x1] }
 0x1be   : > { %v5317_v2 = vrot.slane %v12378_v5, 5  ;;  %v5114_v5 = vld [vmem:[#allocation2 + $0xa8] sm:$0xe] }
 0x1bf   : > { %11418 = vmatmul.mubr.bf16.gmra.mrb[12].mxu0 %v13595_v18  ;;  %v5316_v17 = vrot.slane %v5314_v32, 4  ;;  %v5315_v26 = vsel %vm13276_vm13, %v10202_v50, %v5314_v32  ;;  %v10204_v32 = vrot.slane %v5113_v44, 9  ;;  %v5349_v44 = vrot.slane %v13642_v61, 5 }
 0x1c0   : > { %11421 = vmatprep.mubr.bf16.mxu0 %v13597_v15  ;;  %11482 = vmatpush3.bf16.msra.mxu0 %v12315_v60  ;;  %v13622_v60 = vld [vmem:[#allocation2 + $0x144] sm:$0xff]  }
 0x1c1   : > { %11050 = vmatmul.mubr.bf16.gmra.mrb[44].mxu1 %v13599_v36  ;;  %11483 = vmatprep.subr.bf16.mxu0 %v12317_v12  ;;  %v5318_v22 = vsel %vm13276_vm13, %v5316_v17, %v5317_v2  ;;  %v5331_v2 = vrot.slane %v12384_v30, 5  ;;  %v10205_v17 = vrot.slane %v5114_v5, 9  ;;  %v5118_v5 = vld [vmem:[#allocation2 + $0xd8] sm:$0xe]  ;;  %v5351_v52 = vrot.slane %v5349_v44, 4 }
 0x1c2   : > { %11053 = vmatprep.mubr.bf16.mxu1 %v13603_v49  ;;  %v13638_v29 = vcombine.low %v5315_v26, %v5318_v22  ;;  %v5342_v26 = vrot.slane %v12388_v1, 5  ;;  %v10207_v11 = vrot.slane %v5118_v5, 9  ;;  %v13687_v5 = vld [vmem:[#allocation2 + $0xec] sm:$0x1] }
 0x1c3   : > { %v5336_v22 = vsel %vm13276_vm13, %v10205_v17, %v5335_v35  ;;  %v13668_v17 = vld [vmem:[#allocation2 + $0xe8] sm:$0xf]  ;;  %17454 = vst [vmem:[#allocation55_spill] sm:$0xff] %v13687_v5 }
 0x1c4   : > { %11484 = vmatpush3.bf16.msra.mxu0 %v12317_v12  ;;  %v12382_v12 = vld [vmem:[#allocation2 + $0xa0] sm:$0xf]  ;;  %17451 = vst [vmem:[#allocation52_spill] sm:$0xff] %v13668_v17 }
 0x1c5   : > { %11549 = vmatprep.subr.bf16.mxu0 %v13615_v19  ;;  %v5328_v42 = vrot.slane %v12382_v12, 5  ;;  %v5337_v12 = vrot.slane %v5335_v35, 4  ;;  %v5352_v35 = vrot.slane %v13661_v55, 5  ;;  %v12392_v55 = vld [vmem:[#allocation2 + $0xf4] sm:$0xf] }
 0x1c6   : > { %v5363_v61 = vrot.slane %v12392_v55, 5 }
 0x1c7   : > { %11422 = vmatmul.mubr.bf16.gmra.mrb[16].mxu0 %v13617_v54  ;;  %v5330_v50 = vrot.slane %v5328_v42, 4  ;;  %v5329_v30 = vsel %vm13276_vm13, %v10204_v32, %v5328_v42  ;;  %v5339_v13 = vsel %vm13276_vm13, %v5337_v12, %v5338_v6  ;;  %v10206_v32 = vrot.slane %v5115_v38, 9  ;;  %v13670_v6 = vld [vmem:[#allocation2 + $0x174] sm:$0xff]   ;;  %v13674_v12 = vld [vmem:[#allocation2 + $0x180] sm:$0xff]  }
 0x1c8   : > { %11425 = vmatprep.mubr.bf16.mxu0 %v13619_v39  ;;  %v13665_v42 = vcombine.low %v5336_v22, %v5339_v13  ;;  %17452 = vst [vmem:[#allocation53_spill] sm:$0xff] %v13670_v6  ;;  %17453 = vst [vmem:[#allocation54_spill] sm:$0xff] %v13674_v12  ;;  %v5356_v22 = vrot.slane %v13668_v17, 5  ;;  %v5350_v13 = vsel %vm13276_vm13, %v10207_v11, %v5349_v44  ;;  %v5365_v17 = vrot.slane %v5363_v61, 4  ;;  %v13692_v44 = vld [vmem:[#allocation2 + $0x18c] sm:$0xff]  }
 0x1c9   : > { %11054 = vmatmul.mubr.bf16.gmra.mrb[48].mxu1 %v13622_v60  ;;  %v5332_v41 = vsel %vm13276_vm13, %v5330_v50, %v5331_v2  ;;  %v5344_v50 = vrot.slane %v5342_v26, 4  ;;  %v12389_v2 = vld [vmem:[#allocation2 + $0xbc] sm:$0x1]  ;;  %v5353_v38 = vsel %vm13276_vm13, %v5351_v52, %v5352_v35  ;;  %17456 = vst [vmem:[#allocation57_spill] sm:$0xff] %v13692_v44 }
 0x1ca   : > { %11057 = vmatprep.mubr.bf16.mxu1 %v13626_v63  ;;  %v13663_v40 = vcombine.low %v5329_v30, %v5332_v41  ;;  %17450 = vst [vmem:[#allocation51_spill] sm:$0xff] %v13665_v42  ;;  %v5345_v1 = vrot.slane %v12389_v2, 5  ;;  %v5343_v30 = vsel %vm13276_vm13, %v10206_v32, %v5342_v26  ;;  %v5119_v2 = vld [vmem:[#allocation2 + $0xe4] sm:$0xe]  ;;  %v10239_v26 = vcombine.low %v5350_v13, %v5353_v38  ;;  %v12395_v52 = vld [vmem:[#allocation2 + $0x18] sm:$0xff]  }
 0x1cb   : > { %v10208_v32 = vrot.slane %v5119_v2, 9  ;;  %v12397_v13 = vld [vmem:[#allocation2 + $0x10c] sm:$0xf] }
 0x1cc   : > { %17449 = vst [vmem:[#allocation50_spill] sm:$0xff] %v13663_v40  ;;  %v5346_v41 = vsel %vm13276_vm13, %v5344_v50, %v5345_v1  ;;  %v5359_v50 = vrot.slane %v13687_v5, 5  ;;  %v10209_v1 = vrot.slane %v5120_v33, 9  ;;  %v5122_v5 = vld [vmem:[#allocation2 + $0x108] sm:$0xe] }
 0x1cd   : > { %v5357_v55 = vsel %vm13276_vm13, %v10208_v32, %v5356_v22 }
 0x1ce   : > { %v5364_v38 = vsel %vm13276_vm13, %v10209_v1, %v5363_v61  ;;  %v12401_v61 = vld [vmem:[#allocation2 + $0x30] sm:$0xff]  }
 0x1cf   : > { %11426 = vmatmul.mubr.bf16.gmra.mrb[20].mxu0 %v13638_v29 }
 0x1d0   : > { %11429 = vmatprep.mubr.bf16.mxu0 %v13640_v59 }
 0x1d1   : > { %11058 = vmatmul.mubr.bf16.gmra.mrb[52].mxu1 %v13644_v51 }
 0x1d2   : > { %11061 = vmatprep.mubr.bf16.mxu1 %v13648_v48 }
 0x1d7   : > { %11430 = vmatmul.mubr.bf16.gmra.mrb[24].mxu0 %v13663_v40  ;;  %v5358_v40 = vrot.slane %v5356_v22, 4  ;;  %v12398_v22 = vld [vmem:[#allocation2 + $0x104] sm:$0x1] }
 0x1d8   : > { %11433 = vmatprep.mubr.bf16.mxu0 %v13665_v42  ;;  %v13689_v42 = vcombine.low %v5343_v30, %v5346_v41  ;;  %v12396_v30 = vld [vmem:[#allocation2 + $0x100] sm:$0xf]  ;;  %v5121_v41 = vld [vmem:[#allocation2 + $0xfc] sm:$0xe]  ;;  %v5373_v32 = vrot.slane %v12398_v22, 5 }
 0x1d9   : > { %11062 = vmatmul.mubr.bf16.gmra.mrb[56].mxu1 %v13670_v6  ;;  %v5360_v35 = vsel %vm13276_vm13, %v5358_v40, %v5359_v50  ;;  %v5370_v33 = vrot.slane %v12396_v30, 5  ;;  %v10211_v40 = vrot.slane %v5122_v5, 9  ;;  %v12399_v30 = vld [vmem:[#allocation2 + $0x110] sm:$0x1]  ;;  %v12400_v6 = vld [vmem:[#allocation2 + $0x24] sm:$0xff]  }
 0x1da   : > { %11065 = vmatprep.mubr.bf16.mxu1 %v13674_v12  ;;  %17455 = vst [vmem:[#allocation56_spill] sm:$0xff] %v13689_v42  ;;  %v12393_v12 = vld [vmem:[#allocation2 + $0xf8] sm:$0x1]  ;;  %v5380_v59 = vrot.slane %v12399_v30, 5 }
 0x1db   : > { %v5366_v11 = vrot.slane %v12393_v12, 5  ;;  %v5377_v12 = vrot.slane %v12397_v13, 5  ;;  %v12312_v13 = vld [vmem:[#allocation9 + $0x48] sm:$0xff]  }
 0x1dd   : > { %v5367_v2 = vsel %vm13276_vm13, %v5365_v17, %v5366_v11  ;;  %v5379_v50 = vrot.slane %v5377_v12, 4  ;;  %v12402_v11 = vld [vmem:[#allocation2 + $0x118] sm:$0xf] }
 0x1de   : > { %v5384_v5 = vrot.slane %v12402_v11, 5 }
 0x1df   : > { %11434 = vmatmul.mubr.bf16.gmra.mrb[28].mxu0 %v13689_v42  ;;  %v5372_v42 = vrot.slane %v5370_v33, 4 }
 0x1e0   : > { %11437 = vmatprep.mubr.bf16.mxu0 %v10239_v26  ;;  %v10210_v26 = vrot.slane %v5121_v41, 9  ;;  %v5386_v22 = vrot.slane %v5384_v5, 4 }
 0x1e1   : > { %11066 = vmatmul.mubr.bf16.gmra.mrb[60].mxu1 %v13692_v44  ;;  %v13706_v44 = vcombine.low %v5364_v38, %v5367_v2  ;;  %v5374_v1 = vsel %vm13276_vm13, %v5372_v42, %v5373_v32  ;;  %v12314_v38 = vld [vmem:[#allocation9 + $0x50] sm:$0xff]   ;;  %v12404_v32 = vld [vmem:[#allocation2 + $0x11c] sm:$0x1] }
 0x1e2   : > { %11085 = vmatprep.mubr.bf16.mxu1 %v12395_v52  ;;  %v13704_v52 = vcombine.low %v5357_v55, %v5360_v35  ;;  %v5371_v17 = vsel %vm13276_vm13, %v10210_v26, %v5370_v33  ;;  %v5378_v55 = vsel %vm13276_vm13, %v10211_v40, %v5377_v12  ;;  %v12403_v35 = vld [vmem:[#allocation2 + $0x124] sm:$0xf]  ;;  %v5124_v2 = vld [vmem:[#allocation2 + $0x120] sm:$0xe]  ;;  %v5387_v30 = vrot.slane %v12404_v32, 5 }
 0x1e3   : > { %v5391_v41 = vrot.slane %v12403_v35, 5  ;;  %v13719_v33 = vcombine.low %v5371_v17, %v5374_v1  ;;  %v12405_v40 = vld [vmem:[#allocation2 + $0x128] sm:$0x1]  ;;  %v12406_v17 = vld [vmem:[#allocation2 + $0x130] sm:$0xf] }
 0x1e4   : > { %v5394_v11 = vrot.slane %v12405_v40, 5  ;;  %v5398_v1 = vrot.slane %v12406_v17, 5 }
 0x1e5   : > { %v5393_v12 = vrot.slane %v5391_v41, 4 }
 0x1e7   : > { %11438 = vmatmul.mubr.bf16.gmra.mrb[32].mxu0 %v13704_v52 }
 0x1e8   : > { %11441 = vmatprep.mubr.bf16.mxu0 %v13706_v44 }
 0x1e9   : > { %11086 = vmatmul.mubr.bf16.vlgmr.msra.gmra.mrb[0].mxu1 %v12400_v6  ;;  %v5381_v6 = vsel %vm13276_vm13, %v5379_v50, %v5380_v59  ;;  %v12316_v59 = vld [vmem:[#allocation9 + $0x58] sm:$0xff]  }
 0x1ea   : > { %11150 = vmatpush3.bf16.msra.mxu1 %v13440_v9  ;;  %11089 = vmatprep.mubr.bf16.mxu1 %v12401_v61  ;;  %v5123_v9 = vld [vmem:[#allocation2 + $0x114] sm:$0xe]  ;;  %v13721_v26 = vcombine.low %v5378_v55, %v5381_v6  ;;  %v10213_v61 = vrot.slane %v5124_v2, 9  ;;  %v5125_v6 = vld [vmem:[#allocation2 + $0x12c] sm:$0xe] }
 0x1eb   : > { %11151 = vmatprep.subr.bf16.mxu1 %v12312_v13  ;;  %v10212_v42 = vrot.slane %v5123_v9, 9  ;;  %v12407_v9 = vld [vmem:[#allocation2 + $0x13c] sm:$0xf]  ;;  %v12319_v2 = vld [vmem:[#allocation9 + $0x60] sm:$0xff]  }
 0x1ec   : > { %17457 = vst [vmem:[#allocation58_spill] sm:$0xff] %v13721_v26  ;;  %v5392_v55 = vsel %vm13276_vm13, %v10213_v61, %v5391_v41  ;;  %v5405_v35 = vrot.slane %v12407_v9, 5  ;;  %v12409_v61 = vld [vmem:[#allocation2 + $0x140] sm:$0x1]  ;;  %v12323_v9 = vld [vmem:[#allocation9 + $0x70] sm:$0xff]  }
 0x1ed   : > { %v5385_v50 = vsel %vm13276_vm13, %v10212_v42, %v5384_v5  ;;  %v10214_v42 = vrot.slane %v5125_v6, 9 }
 0x1ee   : > { %11152 = vmatpush3.bf16.msra.mxu1 %v12312_v13  ;;  %v5388_v13 = vsel %vm13276_vm13, %v5386_v22, %v5387_v30  ;;  %v5400_v22 = vrot.slane %v5398_v1, 4  ;;  %v12408_v30 = vld [vmem:[#allocation2 + $0x134] sm:$0x1]  ;;  %v5407_v41 = vrot.slane %v5405_v35, 4 }
 0x1ef   : > { %11153 = vmatprep.subr.bf16.mxu1 %v12314_v38  ;;  %11442 = vmatmul.mubr.bf16.gmra.mrb[36].mxu0 %v13719_v33  ;;  %v13735_v32 = vcombine.low %v5385_v50, %v5388_v13  ;;  %v5401_v40 = vrot.slane %v12408_v30, 5  ;;  %v12410_v50 = vld [vmem:[#allocation2 + $0x148] sm:$0xf]  ;;  %v12412_v30 = vld [vmem:[#allocation2 + $0x14c] sm:$0x1] }
 0x1f0   : > { %11445 = vmatprep.mubr.bf16.mxu0 %v13721_v26  ;;  %v5408_v26 = vrot.slane %v12409_v61, 5  ;;  %v5412_v13 = vrot.slane %v12410_v50, 5 }
 0x1f1   : > { %11090 = vmatmul.mubr.bf16.gmra.mrb[4].mxu1 %v13387_v10  ;;  %v5395_v10 = vsel %vm13276_vm13, %v5393_v12, %v5394_v11  ;;  %v12321_v12 = vld [vmem:[#allocation9 + $0x68] sm:$0xff]   ;;  %v5402_v11 = vsel %vm13276_vm13, %v5400_v22, %v5401_v40  ;;  %v5415_v40 = vrot.slane %v12412_v30, 5 }
 0x1f2   : > { %11093 = vmatprep.mubr.bf16.mxu1 %v13397_v0  ;;  %11154 = vmatpush3.bf16.msra.mxu1 %v12314_v38  ;;  %v5126_v0 = vld [vmem:[#allocation2 + $0x138] sm:$0xe]  ;;  %v13737_v5 = vcombine.low %v5392_v55, %v5395_v10  ;;  %v5399_v38 = vsel %vm13276_vm13, %v10214_v42, %v5398_v1  ;;  %v5127_v55 = vld [vmem:[#allocation2 + $0x144] sm:$0xe]  ;;  %v12411_v10 = vld [vmem:[#allocation2 + $0x154] sm:$0xf] }
 0x1f3   : > { %11155 = vmatprep.subr.bf16.mxu1 %v12316_v59  ;;  %v10215_v17 = vrot.slane %v5126_v0, 9  ;;  %v5419_v6 = vrot.slane %v12411_v10, 5  ;;  %v13751_v0 = vcombine.low %v5399_v38, %v5402_v11  ;;  %v10216_v42 = vrot.slane %v5127_v55, 9  ;;  %v12414_v38 = vld [vmem:[#allocation2 + $0x160] sm:$0xf] }
 0x1f4   : > { %v5414_v22 = vrot.slane %v5412_v13, 4  ;;  %v5426_v11 = vrot.slane %v12414_v38, 5  ;;  %v5131_v38 = vld [vmem:[#allocation2 + $0x174] sm:$0xe] }
 0x1f6   : > { %11156 = vmatpush3.bf16.msra.mxu1 %v12316_v59  ;;  %v5406_v59 = vsel %vm13276_vm13, %v10215_v17, %v5405_v35  ;;  %v5421_v35 = vrot.slane %v5419_v6, 4  ;;  %v12413_v17 = vld [vmem:[#allocation2 + $0x158] sm:$0x1] }
 0x1f7   : > { %11157 = vmatprep.subr.bf16.mxu1 %v12319_v2  ;;  %11446 = vmatmul.mubr.bf16.gmra.mrb[40].mxu0 %v13735_v32  ;;  %v5422_v50 = vrot.slane %v12413_v17, 5 }
 0x1f8   : > { %11449 = vmatprep.mubr.bf16.mxu0 %v13737_v5 }
 0x1f9   : > { %11094 = vmatmul.mubr.bf16.gmra.mrb[8].mxu1 %v13418_v58  ;;  %v5409_v58 = vsel %vm13276_vm13, %v5407_v41, %v5408_v26  ;;  %v12325_v26 = vld [vmem:[#allocation9 + $0x78] sm:$0xff]   ;;  %v5416_v41 = vsel %vm13276_vm13, %v5414_v22, %v5415_v40  ;;  %v12416_v22 = vld [vmem:[#allocation2 + $0x164] sm:$0x1] }
 0x1fa   : > { %11097 = vmatprep.mubr.bf16.mxu1 %v13428_v25  ;;  %11158 = vmatpush3.bf16.msra.mxu1 %v12319_v2  ;;  %v5128_v25 = vld [vmem:[#allocation2 + $0x150] sm:$0xe]  ;;  %v13753_v1 = vcombine.low %v5406_v59, %v5409_v58  ;;  %v5413_v2 = vsel %vm13276_vm13, %v10216_v42, %v5412_v13  ;;  %v5129_v59 = vld [vmem:[#allocation2 + $0x15c] sm:$0xe]  ;;  %v12415_v58 = vld [vmem:[#allocation2 + $0x16c] sm:$0xf] }
 0x1fb   : > { %11159 = vmatprep.subr.bf16.mxu1 %v12321_v12  ;;  %v10217_v61 = vrot.slane %v5128_v25, 9  ;;  %v5433_v55 = vrot.slane %v12415_v58, 5  ;;  %v13767_v10 = vcombine.low %v5413_v2, %v5416_v41  ;;  %v10218_v25 = vrot.slane %v5129_v59, 9  ;;  %v12419_v2 = vld [vmem:[#allocation2 + $0x178] sm:$0xf] }
 0x1fc   : > { %v5428_v42 = vrot.slane %v5426_v11, 4  ;;  %v5429_v30 = vrot.slane %v12416_v22, 5 }
 0x1fd   : > { %v5435_v17 = vrot.slane %v5433_v55, 4 }
 0x1fe   : > { %11160 = vmatpush3.bf16.msra.mxu1 %v12321_v12  ;;  %v5420_v12 = vsel %vm13276_vm13, %v10217_v61, %v5419_v6  ;;  %v12417_v6 = vld [vmem:[#allocation2 + $0x170] sm:$0x1] }
 0x1ff   : > { %11161 = vmatprep.subr.bf16.mxu1 %v12323_v9  ;;  %11450 = vmatmul.mubr.bf16.gmra.mrb[44].mxu0 %v13751_v0  ;;  %v5436_v61 = vrot.slane %v12417_v6, 5 }
 0x200   : > { %11453 = vmatprep.mubr.bf16.mxu0 %v13753_v1 }
 0x201   : > { %11098 = vmatmul.mubr.bf16.gmra.mrb[12].mxu1 %v13453_v20  ;;  %v5423_v20 = vsel %vm13276_vm13, %v5421_v35, %v5422_v50  ;;  %v13771_v35 = vld [vmem:[#allocation9 + $0x100] sm:$0xff]   ;;  %v5430_v50 = vsel %vm13276_vm13, %v5428_v42, %v5429_v30  ;;  %v5450_v30 = vrot.slane %v13457_v27, 5 }
 0x202   : > { %11101 = vmatprep.mubr.bf16.mxu1 %v13463_v16  ;;  %11162 = vmatpush3.bf16.msra.mxu1 %v12323_v9  ;;  %v5130_v16 = vld [vmem:[#allocation2 + $0x168] sm:$0xe]  ;;  %v13769_v13 = vcombine.low %v5420_v12, %v5423_v20  ;;  %v5427_v9 = vsel %vm13276_vm13, %v10218_v25, %v5426_v11  ;;  %v12420_v12 = vld [vmem:[#allocation2 + $0x184] sm:$0xf]  ;;  %v10220_v11 = vrot.slane %v5131_v38, 9  ;;  %v5443_v25 = vrot.slane %v13442_v34, 5 }
 0x203   : > { %11163 = vmatprep.subr.bf16.mxu1 %v12325_v26  ;;  %v10219_v40 = vrot.slane %v5130_v16, 9  ;;  %v5447_v20 = vrot.slane %v12420_v12, 5  ;;  %v13786_v59 = vcombine.low %v5427_v9, %v5430_v50  ;;  %v12318_v38 = vld [vmem:[#allocation2 + $0xcc] sm:$0xff]  }
 0x205   : > { %v5434_v41 = vsel %vm13276_vm13, %v10219_v40, %v5433_v55  ;;  %v5449_v22 = vrot.slane %v5447_v20, 4 }
 0x206   : > { %11164 = vmatpush3.bf16.msra.mxu1 %v12325_v26  ;;  %v5440_v26 = vrot.slane %v12419_v2, 5  ;;  %v5457_v2 = vrot.slane %v13474_v46, 5  ;;  %v12322_v46 = vld [vmem:[#allocation9 + $0x208] sm:$0xff]  }
 0x207   : > { %11629 = vmatprep.subr.bf16.mxu1 %v13771_v35  ;;  %11454 = vmatmul.mubr.bf16.gmra.mrb[48].mxu0 %v13767_v10  ;;  %v5451_v27 = vsel %vm13276_vm13, %v5449_v22, %v5450_v30  ;;  %v5116_v30 = vld [vmem:[#allocation2 + $0xc0] sm:$0xe] }
 0x208   : > { %11457 = vmatprep.mubr.bf16.mxu0 %v13769_v13  ;;  %v5442_v16 = vrot.slane %v5440_v26, 4  ;;  %v5441_v55 = vsel %vm13276_vm13, %v10220_v11, %v5440_v26  ;;  %v12422_v26 = vld [vmem:[#allocation2 + $0xc0] sm:$0xff]  }
 0x209   : > { %11102 = vmatmul.mubr.bf16.gmra.mrb[16].mxu1 %v13481_v4  ;;  %v5437_v4 = vsel %vm13276_vm13, %v5435_v17, %v5436_v61  ;;  %v12421_v17 = vld [vmem:[#allocation2 + $0x190] sm:$0xf] }
 0x20a   : > { %11105 = vmatprep.mubr.bf16.mxu1 %v13491_v53  ;;  %v5132_v53 = vld [vmem:[#allocation2 + $0x180] sm:$0xe]  ;;  %v13788_v58 = vcombine.low %v5434_v41, %v5437_v4  ;;  %v5444_v40 = vsel %vm13276_vm13, %v5442_v16, %v5443_v25  ;;  %v5454_v34 = vrot.slane %v12421_v17, 5  ;;  %v17459_v25 = vld [vmem:[#allocation47_spill] sm:$0xff] }
 0x20b   : > { %v10221_v42 = vrot.slane %v5132_v53, 9  ;;  %v13804_v61 = vcombine.low %v5441_v55, %v5444_v40  ;;  %v17458_v16 = vld [vmem:[#allocation53_spill] sm:$0xff]  ;;  %v17462_v17 = vld [vmem:[#allocation44_spill] sm:$0xff] }
 0x20c   : > { %v5456_v50 = vrot.slane %v5454_v34, 4 }
 0x20d   : > { %v5448_v6 = vsel %vm13276_vm13, %v10221_v42, %v5447_v20  ;;  %v12326_v20 = vld [vmem:[#allocation9 + $0x218] sm:$0xff]  }
 0x20e   : > { %v5458_v4 = vsel %vm13276_vm13, %v5456_v50, %v5457_v2  ;;  %v17461_v42 = vld [vmem:[#allocation50_spill] sm:$0xff] }
 0x20f   : > { %11458 = vmatmul.mubr.bf16.gmra.mrb[52].mxu0 %v13786_v59 }
 0x210   : > { %11461 = vmatprep.mubr.bf16.mxu0 %v13788_v58 }
 0x211   : > { %11106 = vmatmul.mubr.bf16.gmra.mrb[20].mxu1 %v13511_v14  ;;  %v5133_v14 = vld [vmem:[#allocation2 + $0x18c] sm:$0xe] }
 0x212   : > { %11109 = vmatprep.mubr.bf16.mxu1 %v13518_v47  ;;  %v13806_v47 = vcombine.low %v5448_v6, %v5451_v27  ;;  %v10222_v9 = vrot.slane %v5133_v14, 9  ;;  %v12424_v27 = vld [vmem:[#allocation2 + $0xc8] sm:$0x1] }
 0x213   : > { %v6016_v14 = vrot.slane %v12424_v27, 5  ;;  %v17478_v27 = vld [vmem:[#allocation48_spill] sm:$0xff] }
 0x214   : > { %v5455_v41 = vsel %vm13276_vm13, %v10222_v9, %v5454_v34  ;;  %v2858_v34 = vshll.u32 %v17462_v17, 16  ;;  %v17476_v17 = vld [vmem:[#allocation24_spill] sm:$0xff] }
 0x215   : > { %v13816_v12 = vcombine.low %v5455_v41, %v5458_v4  ;;  %v17464_v41 = vld [vmem:[#allocation51_spill] sm:$0xff] }
 0x216   : > { %v2860_v2 = vrot.slane %v2858_v34, 5  ;;  %v12425_v4 = vld [vmem:[#allocation2 + $0x198] sm:$0xff]   ;;  %v17477_v34 = vld [vmem:[#allocation25_spill] sm:$0xff] }
 0x217   : > { %11462 = vmatmul.mubr.bf16.gmra.mrb[56].mxu0 %v13804_v61 }
 0x218   : > { %11465 = vmatprep.mubr.bf16.mxu0 %v13806_v47 }
 0x219   : > { %11110 = vmatmul.mubr.bf16.gmra.mrb[24].mxu1 %v13530_v7  ;;  %v12324_v7 = vld [vmem:[#allocation9 + $0x210] sm:$0xff]  }
 0x21a   : > { %11113 = vmatprep.mubr.bf16.mxu1 %v12422_v26  ;;  %v17463_v26 = vld [vmem:[#allocation57_spill] sm:$0xff] }
 0x21f   : > { %11466 = vmatmul.mubr.bf16.gmra.mrb[60].mxu0 %v13816_v12 }
 0x220   : > { %11485 = vmatprep.mubr.bf16.mxu0 %v13516_v31  ;;  %v12328_v31 = vld [vmem:[#allocation9 + $0x220] sm:$0xff]  }
 0x221   : > { %11114 = vmatmul.mubr.bf16.gmra.mrb[28].mxu1 %v12318_v38  ;;  %v17465_v38 = vld [vmem:[#allocation56_spill] sm:$0xff] }
 0x222   : > { %11117 = vmatprep.mubr.bf16.mxu1 %v13540_v8  ;;  %v12329_v8 = vld [vmem:[#allocation9 + $0x228] sm:$0xff]  }
 0x227   : > { %11486 = vmatmul.mubr.bf16.vlgmr.msra.gmra.mrb[0].mxu0 %v13537_v3 }
 0x228   : > { %11550 = vmatpush3.bf16.msra.mxu0 %v13615_v19  ;;  %11489 = vmatprep.mubr.bf16.mxu0 %v13553_v23  ;;  %v2852_v19 = vshrl.u32 %v13489_v57, 16 }
 0x229   : > { %11118 = vmatmul.mubr.bf16.gmra.mrb[32].mxu1 %v13557_v37  ;;  %11551 = vmatprep.subr.bf16.mxu0 %v12322_v46  ;;  %v12330_v37 = vld [vmem:[#allocation9 + $0x230] sm:$0xff]  }
 0x22a   : > { %11121 = vmatprep.mubr.bf16.mxu1 %v13561_v45  ;;  %v12331_v45 = vld [vmem:[#allocation9 + $0x238] sm:$0xff]   ;;  %v2854_v11 = vrot.slane %v2852_v19, 4  ;;  %v12427_v19 = vld [vmem:[#allocation9 + $0x110] sm:$0xff]  }
 0x22c   : > { %11552 = vmatpush3.bf16.msra.mxu0 %v12322_v46 }
 0x22d   : > { %11553 = vmatprep.subr.bf16.mxu0 %v12324_v7 }
 0x22f   : > { %11490 = vmatmul.mubr.bf16.gmra.mrb[4].mxu0 %v13555_v43 }
 0x230   : > { %11493 = vmatprep.mubr.bf16.mxu0 %v13575_v56  ;;  %11554 = vmatpush3.bf16.msra.mxu0 %v12324_v7 }
 0x231   : > { %11122 = vmatmul.mubr.bf16.gmra.mrb[36].mxu1 %v13579_v62  ;;  %11555 = vmatprep.subr.bf16.mxu0 %v12326_v20  ;;  %v2727_v62 = vld [vmem:[#allocation2] sm:$0xf] }
 0x232   : > { %11125 = vmatprep.mubr.bf16.mxu1 %v13583_v28  ;;  %v2839_v28 = vshrl.u32 %v2727_v62, 16 }
 0x234   : > { %11556 = vmatpush3.bf16.msra.mxu0 %v12326_v20  ;;  %v17491_v20 = vld [vmem:[#allocation35_spill] sm:$0xff] }
 0x235   : > { %11557 = vmatprep.subr.bf16.mxu0 %v12328_v31 }
 0x237   : > { %11494 = vmatmul.mubr.bf16.gmra.mrb[8].mxu0 %v13577_v24 }
 0x238   : > { %11497 = vmatprep.mubr.bf16.mxu0 %v13595_v18  ;;  %11558 = vmatpush3.bf16.msra.mxu0 %v12328_v31 }
 0x239   : > { %11126 = vmatmul.mubr.bf16.gmra.mrb[40].mxu1 %v13599_v36  ;;  %11559 = vmatprep.subr.bf16.mxu0 %v12329_v8  ;;  %v2842_v36 = vshll.u32 %v2727_v62, 16 }
 0x23a   : > { %11129 = vmatprep.mubr.bf16.mxu1 %v13603_v49  ;;  %v2848_v49 = vshll.u32 %v13489_v57, 16  ;;  %v10263_v57 = vrot.slane %v5116_v30, 9  ;;  %v17475_v30 = vld [vmem:[#allocation23_spill] sm:$0xff] }
 0x23c   : > { %11560 = vmatpush3.bf16.msra.mxu0 %v12329_v8  ;;  %v2850_v53 = vrot.slane %v2848_v49, 5  ;;  %v12426_v49 = vld [vmem:[#allocation9 + $0x108] sm:$0xff]  }
 0x23d   : > { %11561 = vmatprep.subr.bf16.mxu0 %v12330_v37 }
 0x23e   : > { %v2855_v40 = vor.u32 %v2854_v11, %v2850_v53  ;;  %v17472_v11 = vld [vmem:[#allocation20_spill] sm:$0xff] }
 0x23f   : > { %11498 = vmatmul.mubr.bf16.gmra.mrb[12].mxu0 %v13597_v15 }
 0x240   : > { %11501 = vmatprep.mubr.bf16.mxu0 %v13617_v54  ;;  %11562 = vmatpush3.bf16.msra.mxu0 %v12330_v37  ;;  %v2856_v50 = vrot.slane %v2855_v40, 4  ;;  %v12327_v37 = vld [vmem:[#allocation2 + $0x1a4] sm:$0xff]   ;;  %v2781_v40 = vld [vmem:[#allocation2 + $0xd8] sm:$0xf] }
 0x241   : > { %11130 = vmatmul.mubr.bf16.gmra.mrb[44].mxu1 %v13622_v60  ;;  %11563 = vmatprep.subr.bf16.mxu0 %v12331_v45  ;;  %v2841_v60 = vrot.slane %v2839_v28, 4  ;;  %v17467_v28 = vld [vmem:[#allocation16_spill] sm:$0xff] }
 0x242   : > { %11133 = vmatprep.mubr.bf16.mxu1 %v13626_v63  ;;  %v2844_v63 = vrot.slane %v2842_v36, 5  ;;  %v2861_v8 = vsel %vm12853_vm10, %v2856_v50, %v2860_v2  ;;  %v17468_v36 = vld [vmem:[#allocation17_spill] sm:$0xff] }
 0x244   : > { %11564 = vmatpush3.bf16.msra.mxu0 %v12331_v45  ;;  %v2845_v55 = vor.u32 %v2844_v63, %v2841_v60  ;;  %v17469_v60 = vld [vmem:[#allocation18_spill] sm:$0xff] }
 0x245   : > { %v17470_v63 = vld [vmem:[#allocation58_spill] sm:$0xff] }
 0x246   : > { %v2846_v9 = vrot.slane %v2845_v55, 4  ;;  %v12432_v55 = vld [vmem:[#allocation9 + $0x138] sm:$0xff]  }
 0x247   : > { %11502 = vmatmul.mubr.bf16.gmra.mrb[16].mxu0 %v13619_v39 }
 0x248   : > { %11505 = vmatprep.mubr.bf16.mxu0 %v13638_v29  ;;  %v2851_v31 = vsel %vm12853_vm10, %v2846_v9, %v2850_v53  ;;  %v12428_v53 = vld [vmem:[#allocation9 + $0x118] sm:$0xff]   ;;  %v3236_v9 = vshrl.u32 %v17478_v27, 16 }
 0x249   : > { %11134 = vmatmul.mubr.bf16.gmra.mrb[48].mxu1 %v13644_v51  ;;  %v17460_v51 = vld [vmem:[#allocation54_spill] sm:$0xff]  ;;  %v10131_v62 = vcombine.low %v2851_v31, %v2861_v8  ;;  %v12433_v31 = vld [vmem:[#allocation2 + $0x19c] sm:$0xf] }
 0x24a   : > { %11137 = vmatprep.mubr.bf16.mxu1 %v13648_v48  ;;  %v12423_v48 = vld [vmem:[#allocation2 + $0xc4] sm:$0xf]  ;;  %v6020_v8 = vrot.slane %v12433_v31, 5 }
 0x24b   : > { %v6013_v22 = vrot.slane %v12423_v48, 5  ;;  %v12431_v48 = vld [vmem:[#allocation9 + $0x130] sm:$0xff]  }
 0x24d   : > { %v6015_v6 = vrot.slane %v6013_v22, 4  ;;  %v6014_v46 = vsel %vm13276_vm13, %v10263_v57, %v6013_v22  ;;  %v17474_v22 = vld [vmem:[#allocation22_spill] sm:$0xff]  ;;  %v3223_v57 = vshrl.u32 %v2781_v40, 16 }
 0x24f   : > { %11506 = vmatmul.mubr.bf16.gmra.mrb[20].mxu0 %v17459_v25  ;;  %v6017_v7 = vsel %vm13276_vm13, %v6015_v6, %v6016_v14  ;;  %v3226_v6 = vshll.u32 %v2781_v40, 16  ;;  %v3232_v14 = vshll.u32 %v17478_v27, 16  ;;  %v3225_v50 = vrot.slane %v3223_v57, 4  ;;  %v17483_v27 = vld [vmem:[#allocation28_spill] sm:$0xff] }
 0x250   : > { %11509 = vmatprep.mubr.bf16.mxu0 %v17461_v42  ;;  %v13860_v45 = vcombine.low %v6014_v46, %v6017_v7  ;;  %v2784_v46 = vld [vmem:[#allocation2 + $0xe4] sm:$0xf]  ;;  %v17479_v7 = vld [vmem:[#allocation26_spill] sm:$0xff] }
 0x251   : > { %11138 = vmatmul.mubr.bf16.gmra.mrb[52].mxu1 %v17458_v16  ;;  %v17473_v16 = vld [vmem:[#allocation21_spill] sm:$0xff]  ;;  %v3228_v2 = vrot.slane %v3226_v6, 5 }
 0x252   : > { %11141 = vmatprep.mubr.bf16.mxu1 %v17460_v51  ;;  %v12430_v51 = vld [vmem:[#allocation9 + $0x128] sm:$0xff]  }
 0x257   : > { %11510 = vmatmul.mubr.bf16.gmra.mrb[24].mxu0 %v17464_v41 }
 0x258   : > { %11513 = vmatprep.mubr.bf16.mxu0 %v17465_v38 }
 0x259   : > { %11142 = vmatmul.mubr.bf16.gmra.mrb[56].mxu1 %v17463_v26  ;;  %v3234_v26 = vrot.slane %v3232_v14, 5 }
 0x25a   : > { %11145 = vmatprep.mubr.bf16.mxu1 %v12425_v4  ;;  %v3238_v4 = vrot.slane %v3236_v9, 4  ;;  %v17484_v9 = vld [vmem:[#allocation29_spill] sm:$0xff] }
 0x25f   : > { %11514 = vmatmul.mubr.bf16.gmra.mrb[28].mxu0 %v13860_v45 }
 0x260   : > { %11517 = vmatprep.mubr.bf16.mxu0 %v13704_v52  ;;  %v17471_v52 = vld [vmem:[#allocation19_spill] sm:$0xff] }
 0x261   : > { %11146 = vmatmul.mubr.bf16.gmra.mrb[60].mxu1 %v12327_v37  ;;  %v17480_v37 = vld [vmem:[#allocation27_spill] sm:$0xff] }
 0x262   : > { %11165 = vmatprep.mubr.bf16.mxu1 %v10131_v62  ;;  %v5134_v62 = vld [vmem:[#allocation2 + $0x198] sm:$0xe] }
 0x267   : > { %11518 = vmatmul.mubr.bf16.gmra.mrb[32].mxu0 %v13706_v44 }
 0x268   : > { %11521 = vmatprep.mubr.bf16.mxu0 %v13719_v33 }
 0x269   : > { %11166 = vmatmul.mubr.bf16.vlgmr.msra.gmra.mrb[0].mxu1 %v17467_v28  ;;  %v3247_v28 = vshrl.u32 %v2784_v46, 16 }
 0x26a   : > { %11637 = vmatpush3.bf16.msra.mxu1 %v13771_v35  ;;  %11169 = vmatprep.mubr.bf16.mxu1 %v17468_v36  ;;  %v12429_v35 = vld [vmem:[#allocation9 + $0x120] sm:$0xff]   ;;  %v3250_v36 = vshll.u32 %v2784_v46, 16 }
 0x26b   : > { %11630 = vmatprep.subr.bf16.mxu1 %v12426_v49  ;;  %v17485_v46 = vld [vmem:[#allocation55_spill] sm:$0xff] }
 0x26e   : > { %11638 = vmatpush3.bf16.msra.mxu1 %v12426_v49  ;;  %v17481_v49 = vld [vmem:[#allocation52_spill] sm:$0xff] }
 0x26f   : > { %11631 = vmatprep.subr.bf16.mxu1 %v12427_v19  ;;  %11522 = vmatmul.mubr.bf16.gmra.mrb[36].mxu0 %v17470_v63 }
 0x270   : > { %11525 = vmatprep.mubr.bf16.mxu0 %v13735_v32 }
 0x271   : > { %11170 = vmatmul.mubr.bf16.gmra.mrb[4].mxu1 %v17469_v60  ;;  %v3260_v60 = vshrl.u32 %v17481_v49, 16 }
 0x272   : > { %11173 = vmatprep.mubr.bf16.mxu1 %v17471_v52  ;;  %11639 = vmatpush3.bf16.msra.mxu1 %v12427_v19  ;;  %v3256_v19 = vshll.u32 %v17481_v49, 16  ;;  %v3229_v52 = vor.u32 %v3228_v2, %v3225_v50 }
 0x273   : > { %11632 = vmatprep.subr.bf16.mxu1 %v12428_v53 }
 0x274   : > { %v3258_v40 = vrot.slane %v3256_v19, 5  ;;  %v17486_v19 = vld [vmem:[#allocation30_spill] sm:$0xff] }
 0x276   : > { %11640 = vmatpush3.bf16.msra.mxu1 %v12428_v53  ;;  %v3239_v53 = vor.u32 %v3238_v4, %v3234_v26 }
 0x277   : > { %11633 = vmatprep.subr.bf16.mxu1 %v12429_v35  ;;  %11526 = vmatmul.mubr.bf16.gmra.mrb[40].mxu0 %v13737_v5 }
 0x278   : > { %11529 = vmatprep.mubr.bf16.mxu0 %v13751_v0  ;;  %v3240_v57 = vrot.slane %v3239_v53, 4  ;;  %v17487_v53 = vld [vmem:[#allocation31_spill] sm:$0xff] }
 0x279   : > { %11174 = vmatmul.mubr.bf16.gmra.mrb[8].mxu1 %v17472_v11 }
 0x27a   : > { %11177 = vmatprep.mubr.bf16.mxu1 %v17473_v16  ;;  %11641 = vmatpush3.bf16.msra.mxu1 %v12429_v35  ;;  %v17482_v35 = vld [vmem:[#allocation49_spill] sm:$0xff]  ;;  %v10264_v16 = vrot.slane %v5134_v62, 9 }
 0x27b   : > { %11634 = vmatprep.subr.bf16.mxu1 %v12430_v51  ;;  %v3242_v11 = vshll.u32 %v17482_v35, 16  ;;  %v17488_v35 = vld [vmem:[#allocation32_spill] sm:$0xff] }
 0x27c   : > { %v6021_v14 = vsel %vm13276_vm13, %v10264_v16, %v6020_v8 }
 0x27d   : > { %v3244_v6 = vrot.slane %v3242_v11, 5  ;;  %v17489_v11 = vld [vmem:[#allocation33_spill] sm:$0xff] }
 0x27e   : > { %11642 = vmatpush3.bf16.msra.mxu1 %v12430_v51  ;;  %v6022_v51 = vrot.slane %v6020_v8, 4 }
 0x27f   : > { %11635 = vmatprep.subr.bf16.mxu1 %v12431_v48  ;;  %11530 = vmatmul.mubr.bf16.gmra.mrb[44].mxu0 %v13753_v1 }
 0x280   : > { %11533 = vmatprep.mubr.bf16.mxu0 %v13767_v10 }
 0x281   : > { %11178 = vmatmul.mubr.bf16.gmra.mrb[12].mxu1 %v17474_v22 }
 0x282   : > { %11181 = vmatprep.mubr.bf16.mxu1 %v17475_v30  ;;  %11643 = vmatpush3.bf16.msra.mxu1 %v12431_v48  ;;  %v12434_v48 = vld [vmem:[#allocation2 + $0x1a0] sm:$0x1]  ;;  %v3249_v30 = vrot.slane %v3247_v28, 4 }
 0x283   : > { %11636 = vmatprep.subr.bf16.mxu1 %v12432_v55  ;;  %v6023_v22 = vrot.slane %v12434_v48, 5 }
 0x285   : > { %v6024_v50 = vsel %vm13276_vm13, %v6022_v51, %v6023_v22  ;;  %v5117_v51 = vld [vmem:[#allocation2 + $0xcc] sm:$0xe]  ;;  %v12436_v22 = vld [vmem:[#allocation2 + $0xd4] sm:$0x1] }
 0x286   : > { %11644 = vmatpush3.bf16.msra.mxu1 %v12432_v55  ;;  %v3252_v55 = vrot.slane %v3250_v36, 5  ;;  %v13907_v62 = vcombine.low %v6021_v14, %v6024_v50 }
 0x287   : > { %11534 = vmatmul.mubr.bf16.gmra.mrb[48].mxu0 %v13769_v13 }
 0x288   : > { %11537 = vmatprep.mubr.bf16.mxu0 %v13786_v59  ;;  %v3253_v2 = vor.u32 %v3252_v55, %v3249_v30  ;;  %v6462_v30 = vrot.slane %v12436_v22, 5 }
 0x289   : > { %11182 = vmatmul.mubr.bf16.gmra.mrb[16].mxu1 %v17476_v17  ;;  %v3262_v17 = vrot.slane %v3260_v60, 4 }
 0x28a   : > { %11185 = vmatprep.mubr.bf16.mxu1 %v17477_v34  ;;  %v3230_v34 = vrot.slane %v3229_v52, 4  ;;  %v3254_v28 = vrot.slane %v3253_v2, 4 }
 0x28b   : > { %v3263_v4 = vor.u32 %v3262_v17, %v3258_v40 }
 0x28c   : > { %v3235_v31 = vsel %vm12853_vm10, %v3230_v34, %v3234_v26  ;;  %v3259_v60 = vsel %vm12853_vm10, %v3254_v28, %v3258_v40  ;;  %v17500_v40 = vld [vmem:[#allocation45_spill] sm:$0xff] }
 0x28d   : > { %v3264_v36 = vrot.slane %v3263_v4, 4 }
 0x28f   : > { %11538 = vmatmul.mubr.bf16.gmra.mrb[52].mxu0 %v13788_v58 }
 0x290   : > { %11541 = vmatprep.mubr.bf16.mxu0 %v13804_v61 }
 0x291   : > { %11186 = vmatmul.mubr.bf16.gmra.mrb[20].mxu1 %v17479_v7  ;;  %v3266_v7 = vshll.u32 %v17485_v46, 16 }
 0x292   : > { %11189 = vmatprep.mubr.bf16.mxu1 %v17480_v37  ;;  %v3245_v37 = vsel %vm12853_vm10, %v3240_v57, %v3244_v6 }
 0x293   : > { %v10147_v8 = vcombine.low %v3235_v31, %v3245_v37  ;;  %v3268_v49 = vrot.slane %v3266_v7, 5 }
 0x295   : > { %v3269_v26 = vsel %vm12853_vm10, %v3264_v36, %v3268_v49 }
 0x296   : > { %v10148_v52 = vcombine.low %v3259_v60, %v3269_v26 }
 0x297   : > { %11542 = vmatmul.mubr.bf16.gmra.mrb[56].mxu0 %v13806_v47 }
 0x298   : > { %11545 = vmatprep.mubr.bf16.mxu0 %v13816_v12 }
 0x299   : > { %11190 = vmatmul.mubr.bf16.gmra.mrb[24].mxu1 %v17483_v27 }
 0x29a   : > { %11193 = vmatprep.mubr.bf16.mxu1 %v17484_v9 }
 0x29f   : > { %11546 = vmatmul.mubr.bf16.gmra.mrb[60].mxu0 %v13907_v62 }
 0x2a0   : > { %11565 = vmatprep.mubr.bf16.mxu0 %v13537_v3  ;;  %v17490_v3 = vld [vmem:[#allocation34_spill] sm:$0xff] }
 0x2a1   : > { %11194 = vmatmul.mubr.bf16.gmra.mrb[28].mxu1 %v17486_v19 }
 0x2a2   : > { %11197 = vmatprep.mubr.bf16.mxu1 %v10147_v8 }
 0x2a7   : > { %11566 = vmatmul.mubr.bf16.vlgmr.msra.gmra.mrb[0].mxu0 %v13553_v23  ;;  %v17492_v23 = vld [vmem:[#allocation36_spill] sm:$0xff] }
 0x2a8   : > { %11569 = vmatprep.mubr.bf16.mxu0 %v13555_v43  ;;  %v17493_v43 = vld [vmem:[#allocation37_spill] sm:$0xff] }
 0x2a9   : > { %11198 = vmatmul.mubr.bf16.gmra.mrb[32].mxu1 %v10148_v52 }
 0x2aa   : > { %11201 = vmatprep.mubr.bf16.mxu1 %v17487_v53 }
 0x2af   : > { %11570 = vmatmul.mubr.bf16.gmra.mrb[4].mxu0 %v13575_v56  ;;  %v17494_v56 = vld [vmem:[#allocation38_spill] sm:$0xff] }
 0x2b0   : > { %11573 = vmatprep.mubr.bf16.mxu0 %v13577_v24  ;;  %v17495_v24 = vld [vmem:[#allocation39_spill] sm:$0xff] }
 0x2b1   : > { %11202 = vmatmul.mubr.bf16.gmra.mrb[36].mxu1 %v17488_v35 }
 0x2b2   : > { %11205 = vmatprep.mubr.bf16.mxu1 %v17489_v11 }
 0x2b7   : > { %11574 = vmatmul.mubr.bf16.gmra.mrb[8].mxu0 %v13595_v18  ;;  %v17496_v18 = vld [vmem:[#allocation40_spill] sm:$0xff] }
 0x2b8   : > { %11577 = vmatprep.mubr.bf16.mxu0 %v13597_v15  ;;  %v17497_v15 = vld [vmem:[#allocation41_spill] sm:$0xff] }
 0x2b9   : > { %11206 = vmatmul.mubr.bf16.gmra.mrb[40].mxu1 %v17490_v3 }
 0x2ba   : > { %11209 = vmatprep.mubr.bf16.mxu1 %v17491_v20 }
 0x2bf   : > { %11578 = vmatmul.mubr.bf16.gmra.mrb[12].mxu0 %v13617_v54  ;;  %v12435_v54 = vld [vmem:[#allocation2 + $0xd0] sm:$0xf] }
 0x2c0   : > { %11581 = vmatprep.mubr.bf16.mxu0 %v13619_v39  ;;  %v6459_v16 = vrot.slane %v12435_v54, 5  ;;  %v10275_v39 = vrot.slane %v5117_v51, 9 }
 0x2c1   : > { %11210 = vmatmul.mubr.bf16.gmra.mrb[44].mxu1 %v17492_v23 }
 0x2c2   : > { %11213 = vmatprep.mubr.bf16.mxu1 %v17493_v43  ;;  %v6461_v48 = vrot.slane %v6459_v16, 4 }
 0x2c7   : > { %11582 = vmatmul.mubr.bf16.gmra.mrb[16].mxu0 %v13638_v29  ;;  %v17498_v29 = vld [vmem:[#allocation42_spill] sm:$0xff] }
 0x2c8   : > { %11585 = vmatprep.mubr.bf16.mxu0 %v17459_v25  ;;  %v17499_v25 = vld [vmem:[#allocation43_spill] sm:$0xff] }
 0x2c9   : > { %11214 = vmatmul.mubr.bf16.gmra.mrb[48].mxu1 %v17494_v56 }
 0x2ca   : > { %11217 = vmatprep.mubr.bf16.mxu1 %v17495_v24 }
 0x2cf   : > { %11586 = vmatmul.mubr.bf16.gmra.mrb[20].mxu0 %v17461_v42  ;;  %v6460_v42 = vsel %vm13276_vm13, %v10275_v39, %v6459_v16 }
 0x2d0   : > { %11589 = vmatprep.mubr.bf16.mxu0 %v17464_v41  ;;  %v6463_v41 = vsel %vm13276_vm13, %v6461_v48, %v6462_v30 }
 0x2d1   : > { %11218 = vmatmul.mubr.bf16.gmra.mrb[52].mxu1 %v17496_v18  ;;  %v10277_v55 = vcombine.low %v6460_v42, %v6463_v41 }
 0x2d2   : > { %11221 = vmatprep.mubr.bf16.mxu1 %v17497_v15 }
 0x2d7   : > { %11590 = vmatmul.mubr.bf16.gmra.mrb[24].mxu0 %v17465_v38 }
 0x2d8   : > { %11593 = vmatprep.mubr.bf16.mxu0 %v13860_v45 }
 0x2d9   : > { %11222 = vmatmul.mubr.bf16.gmra.mrb[56].mxu1 %v17498_v29 }
 0x2da   : > { %11225 = vmatprep.mubr.bf16.mxu1 %v17499_v25 }
 0x2df   : > { %11594 = vmatmul.mubr.bf16.gmra.mrb[28].mxu0 %v10277_v55 }
 0x2e0   : > { %11597 = vmatprep.mubr.bf16.mxu0 %v13706_v44  ;;  %v12437_v44 = vld [vmem:[#allocation2 + $0x1a8] sm:$0xf] }
 0x2e1   : > { %11226 = vmatmul.mubr.bf16.gmra.mrb[60].mxu1 %v17500_v40 }
 0x2e2   : > { %11277 = vmatprep.mubr.bf16.mxu1 %v10148_v52 }
 0x2e7   : > { %11598 = vmatmul.mubr.bf16.gmra.mrb[32].mxu0 %v13719_v33  ;;  %v6466_v33 = vrot.slane %v12437_v44, 5 }
 0x2e8   : > { %11601 = vmatprep.mubr.bf16.mxu0 %v17470_v63 }
 0x2e9   : > { %11278 = vmatmul.mubr.bf16.vlgmr.msra.gmra.mrb[32].mxu1 %v17487_v53 }
 0x2ea   : > { %11281 = vmatprep.mubr.bf16.mxu1 %v17488_v35 }
 0x2ef   : > { %11602 = vmatmul.mubr.bf16.gmra.mrb[36].mxu0 %v13735_v32  ;;  %v5135_v32 = vld [vmem:[#allocation2 + $0x1a4] sm:$0xe] }
 0x2f0   : > { %11605 = vmatprep.mubr.bf16.mxu0 %v13737_v5  ;;  %v10276_v5 = vrot.slane %v5135_v32, 9 }
 0x2f1   : > { %11282 = vmatmul.mubr.bf16.gmra.mrb[36].mxu1 %v17489_v11 }
 0x2f2   : > { %11285 = vmatprep.mubr.bf16.mxu1 %v17490_v3 }
 0x2f7   : > { %11606 = vmatmul.mubr.bf16.gmra.mrb[40].mxu0 %v13751_v0  ;;  %v6468_v0 = vrot.slane %v6466_v33, 4 }
 0x2f8   : > { %11609 = vmatprep.mubr.bf16.mxu0 %v13753_v1  ;;  %v12438_v1 = vld [vmem:[#allocation2 + $0x1ac] sm:$0x1] }
 0x2f9   : > { %11286 = vmatmul.mubr.bf16.gmra.mrb[40].mxu1 %v17491_v20 }
 0x2fa   : > { %11289 = vmatprep.mubr.bf16.mxu1 %v17492_v23 }
 0x2ff   : > { %11610 = vmatmul.mubr.bf16.gmra.mrb[44].mxu0 %v13767_v10  ;;  %v6469_v10 = vrot.slane %v12438_v1, 5 }
 0x300   : > { %11613 = vmatprep.mubr.bf16.mxu0 %v13769_v13  ;;  %v6467_v13 = vsel %vm13276_vm13, %v10276_v5, %v6466_v33 }
 0x301   : > { %11290 = vmatmul.mubr.bf16.gmra.mrb[44].mxu1 %v17493_v43 }
 0x302   : > { %11293 = vmatprep.mubr.bf16.mxu1 %v17494_v56 }
 0x307   : > { %11614 = vmatmul.mubr.bf16.gmra.mrb[48].mxu0 %v13786_v59  ;;  %v6470_v59 = vsel %vm13276_vm13, %v6468_v0, %v6469_v10 }
 0x308   : > { %11617 = vmatprep.mubr.bf16.mxu0 %v13788_v58  ;;  %v10278_v58 = vcombine.low %v6467_v13, %v6470_v59 }
 0x309   : > { %11294 = vmatmul.mubr.bf16.gmra.mrb[48].mxu1 %v17495_v24 }
 0x30a   : > { %11297 = vmatprep.mubr.bf16.mxu1 %v17496_v18 }
 0x30f   : > { %11618 = vmatmul.mubr.bf16.gmra.mrb[52].mxu0 %v13804_v61  ;;  %v17501_v61 = vld [vmem:[#allocation46_spill] sm:$0xff] }
 0x310   : > { %11621 = vmatprep.mubr.bf16.mxu0 %v13806_v47 }
 0x311   : > { %11298 = vmatmul.mubr.bf16.gmra.mrb[52].mxu1 %v17497_v15 }
 0x312   : > { %11301 = vmatprep.mubr.bf16.mxu1 %v17498_v29 }
 0x317   : > { %11622 = vmatmul.mubr.bf16.gmra.mrb[56].mxu0 %v13816_v12 }
 0x318   : > { %11625 = vmatprep.mubr.bf16.mxu0 %v13907_v62 }
 0x319   : > { %11302 = vmatmul.mubr.bf16.gmra.mrb[56].mxu1 %v17499_v25 }
 0x31a   : > { %11305 = vmatprep.mubr.bf16.mxu1 %v17500_v40 }
 0x31f   : > { %11626 = vmatmul.mubr.bf16.gmra.mrb[60].mxu0 %v10278_v58 }
 0x321   : > { %11306 = vmatmul.mubr.bf16.gmra.mrb[60].mxu1 %v17501_v61 }
 0x33c   : > { %v11167_v47 = vpop.f32.mrb[0].mxu1 }
 0x33d   : > { %v3833_v38 = vpop.f32.mrb[1].mxu1 }
 0x33e   : > { %v11168_v45 = vpop.f32.mrb[2].mxu1 }
 0x33f   : > { %v3836_v63 = vpop.f32.mrb[3].mxu1 }
 0x344   : > { %v11171_v17 = vpop.f32.mrb[4].mxu1 }
 0x345   : > { %v3849_v12 = vpop.f32.mrb[5].mxu1 }
 0x346   : > { %v11172_v34 = vpop.f32.mrb[6].mxu1 }
 0x347   : > { %v3852_v57 = vpop.f32.mrb[7].mxu1 }
 0x34c   : > { %v13982_v6 = vpop.f32.mrb[8].mxu1 }
 0x34d   : > { %v13984_v27 = vpop.f32.mrb[9].mxu1 }
 0x34e   : > { %v13986_v14 = vpop.f32.mrb[10].mxu1 }
 0x34f   : > { %v13988_v21 = vpop.f32.mrb[11].mxu1 }
 0x354   : > { %v13990_v9 = vpop.f32.mrb[12].mxu1 }
 0x355   : > { %v13992_v50 = vpop.f32.mrb[13].mxu1 }
 0x356   : > { %v13994_v2 = vpop.f32.mrb[14].mxu1 }
 0x357   : > { %v13996_v4 = vpop.f32.mrb[15].mxu1 }
 0x35c   : > { %v13998_v46 = vpop.f32.mrb[16].mxu1 }
 0x35d   : > { %v14000_v7 = vpop.f32.mrb[17].mxu1 }
 0x35e   : > { %v14002_v31 = vpop.f32.mrb[18].mxu1 }
 0x35f   : > { %v14004_v37 = vpop.f32.mrb[19].mxu1 }
 0x364   : > { %v14006_v62 = vpop.f32.mrb[20].mxu1 }
 0x365   : > { %v14008_v8 = vpop.f32.mrb[21].mxu1 }
 0x366   : > { %v14010_v28 = vpop.f32.mrb[22].mxu1 }
 0x367   : > { %v14012_v36 = vpop.f32.mrb[23].mxu1 }
 0x36c   : > { %v14014_v49 = vpop.f32.mrb[24].mxu1 }
 0x36d   : > { %v14016_v19 = vpop.f32.mrb[25].mxu1 }
 0x36e   : > { %v14018_v60 = vpop.f32.mrb[26].mxu1 }
 0x36f   : > { %v14020_v26 = vpop.f32.mrb[27].mxu1 }
 0x374   : > { %v14022_v52 = vpop.f32.mrb[28].mxu1 }
 0x375   : > { %v14024_v53 = vpop.f32.mrb[29].mxu1 }
 0x376   : > { %v14026_v35 = vpop.f32.mrb[30].mxu1 }
 0x377   : > { %v14028_v11 = vpop.f32.mrb[31].mxu1 }
 0x37a   : > { %v11567_v3 = vpop.f32.mrb[0].mxu0 }
 0x37b   : > { %v11645_v20 = vadd.f32 %v11567_v3, %v11167_v47  ;;  %v6578_v23 = vpop.f32.mrb[1].mxu0 }
 0x37c   : > { %v11646_v43 = vadd.f32 %v6578_v23, %v3833_v38  ;;  %v11568_v56 = vpop.f32.mrb[2].mxu0 }
 0x37d   : > { %v11647_v24 = vadd.f32 %v11568_v56, %v11168_v45  ;;  %v6581_v18 = vpop.f32.mrb[3].mxu0  ;;  %v6972_v22 = vmul.f32 %v11645_v20, %v11645_v20 }
 0x37e   : > { %v11648_v15 = vadd.f32 %v6581_v18, %v3836_v63  ;;  %v6970_v16 = vmul.f32 %v11646_v43, %v11646_v43 }
 0x37f   : > { %v7106_v54 = vpack.c.bf16 %v11647_v24, %v11645_v20  ;;  %v6973_v55 = vmul.f32 %v11647_v24, %v11647_v24 }
 0x380   : > { %v6898_v51 = vadd.f32 %v11648_v15, %v11646_v43  ;;  %v6971_v39 = vmul.f32 %v11648_v15, %v11648_v15  ;;  %v7105_v48 = vpack.c.bf16 %v11648_v15, %v11646_v43 }
 0x381   : > { %7141 = vst [vmem:[#allocation5 + $0x8] sm:$0xff] %v7106_v54 }
 0x382   : > { %v6899_v30 = vadd.f32 %v11645_v20, %v6898_v51  ;;  %v7034_v29 = vadd.f32 %v6971_v39, %v6970_v16  ;;  %7140 = vst [vmem:[#allocation5] sm:$0xff] %v7105_v48  ;;  %v11571_v25 = vpop.f32.mrb[4].mxu0  ;;  %v12565_v48 = vmov 0  }
 0x383   : > { %v11649_v42 = vadd.f32 %v11571_v25, %v11171_v17  ;;  %v6594_v41 = vpop.f32.mrb[5].mxu0  ;;  %7172 = vst [vmem:[#allocation11] sm:$0xf] %v12565_v48  ;;  %7173 = vst [vmem:[#allocation11 + $0x4] sm:$0xf] %v12565_v48 }
 0x384   : > { %v7035_v40 = vadd.f32 %v7034_v29, %v6972_v22  ;;  %v11650_v44 = vadd.f32 %v6594_v41, %v3849_v12  ;;  %v6900_v33 = vadd.f32 %v11647_v24, %v6899_v30  ;;  %v11572_v32 = vpop.f32.mrb[6].mxu0  ;;  %7174 = vst [vmem:[#allocation11 + $0x8] sm:$0xf] %v12565_v48  ;;  %7175 = vst [vmem:[#allocation11 + $0xc] sm:$0xf] %v12565_v48 }
 0x385   : > { %v11651_v5 = vadd.f32 %v11572_v32, %v11172_v34  ;;  %v6597_v0 = vpop.f32.mrb[7].mxu0  ;;  %v6976_v63 = vmul.f32 %v11649_v42, %v11649_v42  ;;  %7176 = vst [vmem:[#allocation11 + $0x10] sm:$0xf] %v12565_v48  ;;  %7177 = vst [vmem:[#allocation11 + $0x14] sm:$0xf] %v12565_v48 }
 0x386   : > { %v6901_v1 = vadd.f32 %v11650_v44, %v6900_v33  ;;  %v6974_v10 = vmul.f32 %v11650_v44, %v11650_v44  ;;  %v7036_v13 = vadd.f32 %v7035_v40, %v6973_v55  ;;  %v11652_v59 = vadd.f32 %v6597_v0, %v3852_v57  ;;  %7178 = vst [vmem:[#allocation11 + $0x18] sm:$0xf] %v12565_v48 }
 0x387   : > { %v7108_v58 = vpack.c.bf16 %v11651_v5, %v11649_v42  ;;  %v6977_v34 = vmul.f32 %v11651_v5, %v11651_v5  ;;  %7179 = vst [vmem:[#allocation11 + $0x1c] sm:$0xf] %v12565_v48  ;;  %7180 = vst [vmem:[#allocation11 + $0x20] sm:$0xf] %v12565_v48 }
 0x388   : > { %v7037_v61 = vadd.f32 %v7036_v13, %v6974_v10  ;;  %v6902_v47 = vadd.f32 %v11652_v59, %v6901_v1  ;;  %v6975_v38 = vmul.f32 %v11652_v59, %v11652_v59  ;;  %v7107_v45 = vpack.c.bf16 %v11652_v59, %v11650_v44  ;;  %7181 = vst [vmem:[#allocation11 + $0x24] sm:$0xf] %v12565_v48 }
 0x389   : > { %7143 = vst [vmem:[#allocation5 + $0x18] sm:$0xff] %v7108_v58  ;;  %7182 = vst [vmem:[#allocation11 + $0x28] sm:$0xf] %v12565_v48 }
 0x38a   : > { %v6903_v17 = vadd.f32 %v11649_v42, %v6902_v47  ;;  %v7038_v3 = vadd.f32 %v7037_v61, %v6975_v38  ;;  %7142 = vst [vmem:[#allocation5 + $0x10] sm:$0xff] %v7107_v45  ;;  %v11575_v20 = vpop.f32.mrb[8].mxu0  ;;  %7183 = vst [vmem:[#allocation11 + $0x2c] sm:$0xf] %v12565_v48 }
 0x38b   : > { %v11653_v12 = vadd.f32 %v11575_v20, %v13982_v6  ;;  %v6610_v23 = vpop.f32.mrb[9].mxu0  ;;  %7184 = vst [vmem:[#allocation11 + $0x30] sm:$0xf] %v12565_v48  ;;  %7185 = vst [vmem:[#allocation11 + $0x34] sm:$0xf] %v12565_v48 }
 0x38c   : > { %v7039_v43 = vadd.f32 %v7038_v3, %v6976_v63  ;;  %v11654_v56 = vadd.f32 %v6610_v23, %v13984_v27  ;;  %v6904_v24 = vadd.f32 %v11651_v5, %v6903_v17  ;;  %v11576_v57 = vpop.f32.mrb[10].mxu0  ;;  %7186 = vst [vmem:[#allocation11 + $0x38] sm:$0xf] %v12565_v48  ;;  %7187 = vst [vmem:[#allocation11 + $0x3c] sm:$0xf] %v12565_v48 }
 0x38d   : > { %v11655_v18 = vadd.f32 %v11576_v57, %v13986_v14  ;;  %v6613_v15 = vpop.f32.mrb[11].mxu0  ;;  %v6980_v30 = vmul.f32 %v11653_v12, %v11653_v12 }
 0x38e   : > { %v6905_v54 = vadd.f32 %v11654_v56, %v6904_v24  ;;  %v6978_v16 = vmul.f32 %v11654_v56, %v11654_v56  ;;  %v7040_v51 = vadd.f32 %v7039_v43, %v6977_v34  ;;  %v11656_v39 = vadd.f32 %v6613_v15, %v13988_v21 }
 0x38f   : > { %v7110_v6 = vpack.c.bf16 %v11655_v18, %v11653_v12  ;;  %v6981_v40 = vmul.f32 %v11655_v18, %v11655_v18 }
 0x390   : > { %v7041_v27 = vadd.f32 %v7040_v51, %v6978_v16  ;;  %v6906_v14 = vadd.f32 %v11656_v39, %v6905_v54  ;;  %v6979_v21 = vmul.f32 %v11656_v39, %v11656_v39  ;;  %v7109_v22 = vpack.c.bf16 %v11656_v39, %v11654_v56 }
 0x391   : > { %7145 = vst [vmem:[#allocation5 + $0x28] sm:$0xff] %v7110_v6 }
 0x392   : > { %v6907_v29 = vadd.f32 %v11653_v12, %v6906_v14  ;;  %v7042_v25 = vadd.f32 %v7041_v27, %v6979_v21  ;;  %7144 = vst [vmem:[#allocation5 + $0x20] sm:$0xff] %v7109_v22  ;;  %v11579_v42 = vpop.f32.mrb[12].mxu0 }
 0x393   : > { %v11657_v41 = vadd.f32 %v11579_v42, %v13990_v9  ;;  %v6626_v55 = vpop.f32.mrb[13].mxu0 }
 0x394   : > { %v7043_v44 = vadd.f32 %v7042_v25, %v6980_v30  ;;  %v11658_v33 = vadd.f32 %v6626_v55, %v13992_v50  ;;  %v6908_v32 = vadd.f32 %v11655_v18, %v6907_v29  ;;  %v11580_v5 = vpop.f32.mrb[14].mxu0 }
 0x395   : > { %v11659_v0 = vadd.f32 %v11580_v5, %v13994_v2  ;;  %v6629_v1 = vpop.f32.mrb[15].mxu0  ;;  %v6984_v63 = vmul.f32 %v11657_v41, %v11657_v41 }
 0x396   : > { %v6909_v10 = vadd.f32 %v11658_v33, %v6908_v32  ;;  %v6982_v13 = vmul.f32 %v11658_v33, %v11658_v33  ;;  %v7044_v59 = vadd.f32 %v7043_v44, %v6981_v40  ;;  %v11660_v58 = vadd.f32 %v6629_v1, %v13996_v4 }
 0x397   : > { %v7112_v61 = vpack.c.bf16 %v11659_v0, %v11657_v41  ;;  %v6985_v12 = vmul.f32 %v11659_v0, %v11659_v0 }
 0x398   : > { %v7045_v47 = vadd.f32 %v7044_v59, %v6982_v13  ;;  %v6910_v38 = vadd.f32 %v11660_v58, %v6909_v10  ;;  %v6983_v45 = vmul.f32 %v11660_v58, %v11660_v58  ;;  %v7111_v9 = vpack.c.bf16 %v11660_v58, %v11658_v33 }
 0x399   : > { %7147 = vst [vmem:[#allocation5 + $0x38] sm:$0xff] %v7112_v61 }
 0x39a   : > { %v6911_v17 = vadd.f32 %v11657_v41, %v6910_v38  ;;  %v7046_v3 = vadd.f32 %v7045_v47, %v6983_v45  ;;  %7146 = vst [vmem:[#allocation5 + $0x30] sm:$0xff] %v7111_v9  ;;  %v11583_v50 = vpop.f32.mrb[16].mxu0 }
 0x39b   : > { %v11661_v20 = vadd.f32 %v11583_v50, %v13998_v46  ;;  %v6642_v2 = vpop.f32.mrb[17].mxu0 }
 0x39c   : > { %v7047_v23 = vadd.f32 %v7046_v3, %v6984_v63  ;;  %v11662_v34 = vadd.f32 %v6642_v2, %v14000_v7  ;;  %v6912_v43 = vadd.f32 %v11659_v0, %v6911_v17  ;;  %v11584_v4 = vpop.f32.mrb[18].mxu0 }
 0x39d   : > { %v11663_v56 = vadd.f32 %v11584_v4, %v14002_v31  ;;  %v6645_v24 = vpop.f32.mrb[19].mxu0  ;;  %v6988_v6 = vmul.f32 %v11661_v20, %v11661_v20 }
 0x39e   : > { %v6913_v57 = vadd.f32 %v11662_v34, %v6912_v43  ;;  %v6986_v18 = vmul.f32 %v11662_v34, %v11662_v34  ;;  %v7048_v15 = vadd.f32 %v7047_v23, %v6985_v12  ;;  %v11664_v54 = vadd.f32 %v6645_v24, %v14004_v37 }
 0x39f   : > { %v7114_v16 = vpack.c.bf16 %v11663_v56, %v11661_v20  ;;  %v6989_v22 = vmul.f32 %v11663_v56, %v11663_v56 }
 0x3a0   : > { %v7049_v51 = vadd.f32 %v7048_v15, %v6986_v18  ;;  %v6914_v39 = vadd.f32 %v11664_v54, %v6913_v57  ;;  %v6987_v48 = vmul.f32 %v11664_v54, %v11664_v54  ;;  %v7113_v46 = vpack.c.bf16 %v11664_v54, %v11662_v34 }
 0x3a1   : > { %7149 = vst [vmem:[#allocation5 + $0x48] sm:$0xff] %v7114_v16 }
 0x3a2   : > { %v6915_v27 = vadd.f32 %v11661_v20, %v6914_v39  ;;  %v7050_v14 = vadd.f32 %v7049_v51, %v6987_v48  ;;  %7148 = vst [vmem:[#allocation5 + $0x40] sm:$0xff] %v7113_v46  ;;  %v11587_v7 = vpop.f32.mrb[20].mxu0 }
 0x3a3   : > { %v11665_v21 = vadd.f32 %v11587_v7, %v14006_v62  ;;  %v6658_v31 = vpop.f32.mrb[21].mxu0 }
 0x3a4   : > { %v7051_v30 = vadd.f32 %v7050_v14, %v6988_v6  ;;  %v11666_v29 = vadd.f32 %v6658_v31, %v14008_v8  ;;  %v6916_v25 = vadd.f32 %v11663_v56, %v6915_v27  ;;  %v11588_v37 = vpop.f32.mrb[22].mxu0 }
 0x3a5   : > { %v11667_v42 = vadd.f32 %v11588_v37, %v14010_v28  ;;  %v6661_v41 = vpop.f32.mrb[23].mxu0  ;;  %v6992_v10 = vmul.f32 %v11665_v21, %v11665_v21 }
 0x3a6   : > { %v6917_v55 = vadd.f32 %v11666_v29, %v6916_v25  ;;  %v6990_v40 = vmul.f32 %v11666_v29, %v11666_v29  ;;  %v7052_v44 = vadd.f32 %v7051_v30, %v6989_v22  ;;  %v11668_v33 = vadd.f32 %v6661_v41, %v14012_v36 }
 0x3a7   : > { %v7116_v32 = vpack.c.bf16 %v11667_v42, %v11665_v21  ;;  %v6993_v61 = vmul.f32 %v11667_v42, %v11667_v42 }
 0x3a8   : > { %v7053_v5 = vadd.f32 %v7052_v44, %v6990_v40  ;;  %v6918_v0 = vadd.f32 %v11668_v33, %v6917_v55  ;;  %v6991_v1 = vmul.f32 %v11668_v33, %v11668_v33  ;;  %v7115_v62 = vpack.c.bf16 %v11668_v33, %v11666_v29 }
 0x3a9   : > { %7151 = vst [vmem:[#allocation5 + $0x58] sm:$0xff] %v7116_v32 }
 0x3aa   : > { %v6919_v13 = vadd.f32 %v11665_v21, %v6918_v0  ;;  %v7054_v59 = vadd.f32 %v7053_v5, %v6991_v1  ;;  %7150 = vst [vmem:[#allocation5 + $0x50] sm:$0xff] %v7115_v62  ;;  %v11591_v8 = vpop.f32.mrb[24].mxu0 }
 0x3ab   : > { %v11669_v58 = vadd.f32 %v11591_v8, %v14014_v49  ;;  %v6674_v28 = vpop.f32.mrb[25].mxu0 }
 0x3ac   : > { %v7055_v47 = vadd.f32 %v7054_v59, %v6992_v10  ;;  %v11670_v38 = vadd.f32 %v6674_v28, %v14016_v19  ;;  %v6920_v45 = vadd.f32 %v11667_v42, %v6919_v13  ;;  %v11592_v36 = vpop.f32.mrb[26].mxu0 }
 0x3ad   : > { %v11671_v9 = vadd.f32 %v11592_v36, %v14018_v60  ;;  %v6677_v63 = vpop.f32.mrb[27].mxu0  ;;  %v6996_v43 = vmul.f32 %v11669_v58, %v11669_v58 }
 0x3ae   : > { %v6921_v17 = vadd.f32 %v11670_v38, %v6920_v45  ;;  %v6994_v3 = vmul.f32 %v11670_v38, %v11670_v38  ;;  %v7056_v50 = vadd.f32 %v7055_v47, %v6993_v61  ;;  %v11672_v20 = vadd.f32 %v6677_v63, %v14020_v26 }
 0x3af   : > { %v7118_v2 = vpack.c.bf16 %v11671_v9, %v11669_v58  ;;  %v6997_v57 = vmul.f32 %v11671_v9, %v11671_v9 }
 0x3b0   : > { %v7057_v12 = vadd.f32 %v7056_v50, %v6994_v3  ;;  %v6922_v23 = vadd.f32 %v11672_v20, %v6921_v17  ;;  %v6995_v34 = vmul.f32 %v11672_v20, %v11672_v20  ;;  %v7117_v49 = vpack.c.bf16 %v11672_v20, %v11670_v38 }
 0x3b1   : > { %7153 = vst [vmem:[#allocation5 + $0x68] sm:$0xff] %v7118_v2 }
 0x3b2   : > { %v6923_v4 = vadd.f32 %v11669_v58, %v6922_v23  ;;  %v7058_v56 = vadd.f32 %v7057_v12, %v6995_v34  ;;  %7152 = vst [vmem:[#allocation5 + $0x60] sm:$0xff] %v7117_v49  ;;  %v11595_v19 = vpop.f32.mrb[28].mxu0 }
 0x3b3   : > { %v11673_v24 = vadd.f32 %v11595_v19, %v14022_v52  ;;  %v6690_v60 = vpop.f32.mrb[29].mxu0 }
 0x3b4   : > { %v7059_v18 = vadd.f32 %v7058_v56, %v6996_v43  ;;  %v11674_v15 = vadd.f32 %v6690_v60, %v14024_v53  ;;  %v6924_v54 = vadd.f32 %v11671_v9, %v6923_v4  ;;  %v11596_v26 = vpop.f32.mrb[30].mxu0 }
 0x3b5   : > { %v11675_v16 = vadd.f32 %v11596_v26, %v14026_v35  ;;  %v6693_v51 = vpop.f32.mrb[31].mxu0  ;;  %v7000_v31 = vmul.f32 %v11673_v24, %v11673_v24 }
 0x3b6   : > { %v6925_v39 = vadd.f32 %v11674_v15, %v6924_v54  ;;  %v6998_v48 = vmul.f32 %v11674_v15, %v11674_v15  ;;  %v7060_v46 = vadd.f32 %v7059_v18, %v6997_v57  ;;  %v11676_v6 = vadd.f32 %v6693_v51, %v14028_v11 }
 0x3b7   : > { %v7120_v27 = vpack.c.bf16 %v11675_v16, %v11673_v24  ;;  %v7001_v42 = vmul.f32 %v11675_v16, %v11675_v16 }
 0x3b8   : > { %v7061_v14 = vadd.f32 %v7060_v46, %v6998_v48  ;;  %v6926_v7 = vadd.f32 %v11676_v6, %v6925_v39  ;;  %v6999_v21 = vmul.f32 %v11676_v6, %v11676_v6  ;;  %v7119_v52 = vpack.c.bf16 %v11676_v6, %v11674_v15 }
 0x3b9   : > { %7155 = vst [vmem:[#allocation5 + $0x78] sm:$0xff] %v7120_v27 }
 0x3ba   : > { %v6927_v22 = vadd.f32 %v11673_v24, %v6926_v7  ;;  %v7062_v30 = vadd.f32 %v7061_v14, %v6999_v21  ;;  %7154 = vst [vmem:[#allocation5 + $0x70] sm:$0xff] %v7119_v52  ;;  %v11599_v29 = vpop.f32.mrb[32].mxu0 }
 0x3bb   : > { %v6706_v37 = vpop.f32.mrb[33].mxu0 }
 0x3bc   : > { %v11279_v53 = vpop.f32.mrb[32].mxu1  ;;  %v7063_v41 = vadd.f32 %v7062_v30, %v7000_v31  ;;  %v6928_v40 = vadd.f32 %v11675_v16, %v6927_v22  ;;  %v11600_v44 = vpop.f32.mrb[34].mxu0 }
 0x3bd   : > { %v11677_v25 = vadd.f32 %v11599_v29, %v11279_v53  ;;  %v4435_v35 = vpop.f32.mrb[33].mxu1  ;;  %v6709_v5 = vpop.f32.mrb[35].mxu0 }
 0x3be   : > { %v11678_v55 = vadd.f32 %v6706_v37, %v4435_v35  ;;  %v11280_v11 = vpop.f32.mrb[34].mxu1  ;;  %v7064_v62 = vadd.f32 %v7063_v41, %v7001_v42 }
 0x3bf   : > { %v11679_v33 = vadd.f32 %v11600_v44, %v11280_v11  ;;  %v4438_v32 = vpop.f32.mrb[35].mxu1  ;;  %v7004_v61 = vmul.f32 %v11677_v25, %v11677_v25 }
 0x3c0   : > { %v6929_v0 = vadd.f32 %v11678_v55, %v6928_v40  ;;  %v7002_v1 = vmul.f32 %v11678_v55, %v11678_v55  ;;  %v11680_v10 = vadd.f32 %v6709_v5, %v4438_v32 }
 0x3c1   : > { %v7122_v13 = vpack.c.bf16 %v11679_v33, %v11677_v25  ;;  %v7005_v3 = vmul.f32 %v11679_v33, %v11679_v33 }
 0x3c2   : > { %v7065_v59 = vadd.f32 %v7064_v62, %v7002_v1  ;;  %v6930_v8 = vadd.f32 %v11680_v10, %v6929_v0  ;;  %v7003_v58 = vmul.f32 %v11680_v10, %v11680_v10  ;;  %v7121_v28 = vpack.c.bf16 %v11680_v10, %v11678_v55  ;;  %v11603_v36 = vpop.f32.mrb[36].mxu0 }
 0x3c3   : > { %7157 = vst [vmem:[#allocation5 + $0x88] sm:$0xff] %v7122_v13  ;;  %v6722_v17 = vpop.f32.mrb[37].mxu0 }
 0x3c4   : > { %v6931_v47 = vadd.f32 %v11677_v25, %v6930_v8  ;;  %v7066_v38 = vadd.f32 %v7065_v59, %v7003_v58  ;;  %7156 = vst [vmem:[#allocation5 + $0x80] sm:$0xff] %v7121_v28  ;;  %v11283_v45 = vpop.f32.mrb[36].mxu1  ;;  %v11604_v23 = vpop.f32.mrb[38].mxu0 }
 0x3c5   : > { %v11681_v9 = vadd.f32 %v11603_v36, %v11283_v45  ;;  %v4451_v63 = vpop.f32.mrb[37].mxu1  ;;  %v6725_v43 = vpop.f32.mrb[39].mxu0 }
 0x3c6   : > { %v7067_v50 = vadd.f32 %v7066_v38, %v7004_v61  ;;  %v11682_v20 = vadd.f32 %v6722_v17, %v4451_v63  ;;  %v6932_v2 = vadd.f32 %v11679_v33, %v6931_v47  ;;  %v11284_v12 = vpop.f32.mrb[38].mxu1 }
 0x3c7   : > { %v11683_v34 = vadd.f32 %v11604_v23, %v11284_v12  ;;  %v4454_v49 = vpop.f32.mrb[39].mxu1  ;;  %v7008_v26 = vmul.f32 %v11681_v9, %v11681_v9 }
 0x3c8   : > { %v6933_v4 = vadd.f32 %v11682_v20, %v6932_v2  ;;  %v7006_v56 = vmul.f32 %v11682_v20, %v11682_v20  ;;  %v7068_v19 = vadd.f32 %v7067_v50, %v7005_v3  ;;  %v11684_v24 = vadd.f32 %v6725_v43, %v4454_v49 }
 0x3c9   : > { %v7124_v60 = vpack.c.bf16 %v11683_v34, %v11681_v9  ;;  %v7009_v14 = vmul.f32 %v11683_v34, %v11683_v34 }
 0x3ca   : > { %v7069_v57 = vadd.f32 %v7068_v19, %v7006_v56  ;;  %v6934_v18 = vadd.f32 %v11684_v24, %v6933_v4  ;;  %v7007_v15 = vmul.f32 %v11684_v24, %v11684_v24  ;;  %v7123_v54 = vpack.c.bf16 %v11684_v24, %v11682_v20  ;;  %v11607_v48 = vpop.f32.mrb[40].mxu0 }
 0x3cb   : > { %7159 = vst [vmem:[#allocation5 + $0x98] sm:$0xff] %v7124_v60  ;;  %v6738_v27 = vpop.f32.mrb[41].mxu0 }
 0x3cc   : > { %v6935_v16 = vadd.f32 %v11681_v9, %v6934_v18  ;;  %v7070_v51 = vadd.f32 %v7069_v57, %v7007_v15  ;;  %7158 = vst [vmem:[#allocation5 + $0x90] sm:$0xff] %v7123_v54  ;;  %v11287_v39 = vpop.f32.mrb[40].mxu1  ;;  %v11608_v22 = vpop.f32.mrb[42].mxu0 }
 0x3cd   : > { %v11685_v46 = vadd.f32 %v11607_v48, %v11287_v39  ;;  %v4467_v6 = vpop.f32.mrb[41].mxu1  ;;  %v6741_v29 = vpop.f32.mrb[43].mxu0 }
 0x3ce   : > { %v7071_v7 = vadd.f32 %v7070_v51, %v7008_v26  ;;  %v11686_v21 = vadd.f32 %v6738_v27, %v4467_v6  ;;  %v6936_v52 = vadd.f32 %v11683_v34, %v6935_v16  ;;  %v11288_v31 = vpop.f32.mrb[42].mxu1 }
 0x3cf   : > { %v11687_v30 = vadd.f32 %v11608_v22, %v11288_v31  ;;  %v4470_v53 = vpop.f32.mrb[43].mxu1  ;;  %v7012_v33 = vmul.f32 %v11685_v46, %v11685_v46 }
 0x3d0   : > { %v6937_v25 = vadd.f32 %v11686_v21, %v6936_v52  ;;  %v7010_v35 = vmul.f32 %v11686_v21, %v11686_v21  ;;  %v7072_v37 = vadd.f32 %v7071_v7, %v7009_v14  ;;  %v11688_v42 = vadd.f32 %v6741_v29, %v4470_v53 }
 0x3d1   : > { %v7126_v41 = vpack.c.bf16 %v11687_v30, %v11685_v46  ;;  %v7013_v59 = vmul.f32 %v11687_v30, %v11687_v30 }
 0x3d2   : > { %v7073_v55 = vadd.f32 %v7072_v37, %v7010_v35  ;;  %v6938_v40 = vadd.f32 %v11688_v42, %v6937_v25  ;;  %v7011_v11 = vmul.f32 %v11688_v42, %v11688_v42  ;;  %v7125_v44 = vpack.c.bf16 %v11688_v42, %v11686_v21  ;;  %v11611_v1 = vpop.f32.mrb[44].mxu0 }
 0x3d3   : > { %7161 = vst [vmem:[#allocation5 + $0xa8] sm:$0xff] %v7126_v41  ;;  %v6754_v13 = vpop.f32.mrb[45].mxu0 }
 0x3d4   : > { %v6939_v32 = vadd.f32 %v11685_v46, %v6938_v40  ;;  %v7074_v5 = vadd.f32 %v7073_v55, %v7011_v11  ;;  %7160 = vst [vmem:[#allocation5 + $0xa0] sm:$0xff] %v7125_v44  ;;  %v11291_v0 = vpop.f32.mrb[44].mxu1  ;;  %v11612_v47 = vpop.f32.mrb[46].mxu0 }
 0x3d5   : > { %v11689_v62 = vadd.f32 %v11611_v1, %v11291_v0  ;;  %v4483_v10 = vpop.f32.mrb[45].mxu1  ;;  %v6757_v36 = vpop.f32.mrb[47].mxu0 }
 0x3d6   : > { %v7075_v8 = vadd.f32 %v7074_v5, %v7012_v33  ;;  %v11690_v58 = vadd.f32 %v6754_v13, %v4483_v10  ;;  %v6940_v28 = vadd.f32 %v11687_v30, %v6939_v32  ;;  %v11292_v61 = vpop.f32.mrb[46].mxu1 }
 0x3d7   : > { %v11691_v38 = vadd.f32 %v11612_v47, %v11292_v61  ;;  %v4486_v45 = vpop.f32.mrb[47].mxu1  ;;  %v7016_v34 = vmul.f32 %v11689_v62, %v11689_v62 }
 0x3d8   : > { %v6941_v9 = vadd.f32 %v11690_v58, %v6940_v28  ;;  %v7014_v63 = vmul.f32 %v11690_v58, %v11690_v58  ;;  %v7076_v17 = vadd.f32 %v7075_v8, %v7013_v59  ;;  %v11692_v3 = vadd.f32 %v6757_v36, %v4486_v45 }
 0x3d9   : > { %v7128_v50 = vpack.c.bf16 %v11691_v38, %v11689_v62  ;;  %v7017_v57 = vmul.f32 %v11691_v38, %v11691_v38 }
 0x3da   : > { %v7077_v20 = vadd.f32 %v7076_v17, %v7014_v63  ;;  %v6942_v2 = vadd.f32 %v11692_v3, %v6941_v9  ;;  %v7015_v12 = vmul.f32 %v11692_v3, %v11692_v3  ;;  %v7127_v23 = vpack.c.bf16 %v11692_v3, %v11690_v58  ;;  %v11615_v56 = vpop.f32.mrb[48].mxu0 }
 0x3db   : > { %7163 = vst [vmem:[#allocation5 + $0xb8] sm:$0xff] %v7128_v50  ;;  %v6770_v60 = vpop.f32.mrb[49].mxu0 }
 0x3dc   : > { %v6943_v49 = vadd.f32 %v11689_v62, %v6942_v2  ;;  %v7078_v43 = vadd.f32 %v7077_v20, %v7015_v12  ;;  %7162 = vst [vmem:[#allocation5 + $0xb0] sm:$0xff] %v7127_v23  ;;  %v11295_v4 = vpop.f32.mrb[48].mxu1  ;;  %v11616_v16 = vpop.f32.mrb[50].mxu0 }
 0x3dd   : > { %v11693_v19 = vadd.f32 %v11615_v56, %v11295_v4  ;;  %v4499_v24 = vpop.f32.mrb[49].mxu1  ;;  %v6773_v48 = vpop.f32.mrb[51].mxu0 }
 0x3de   : > { %v7079_v18 = vadd.f32 %v7078_v43, %v7016_v34  ;;  %v11694_v15 = vadd.f32 %v6770_v60, %v4499_v24  ;;  %v6944_v54 = vadd.f32 %v11691_v38, %v6943_v49  ;;  %v11296_v26 = vpop.f32.mrb[50].mxu1 }
 0x3df   : > { %v11695_v51 = vadd.f32 %v11616_v16, %v11296_v26  ;;  %v4502_v39 = vpop.f32.mrb[51].mxu1  ;;  %v7020_v30 = vmul.f32 %v11693_v19, %v11693_v19 }
 0x3e0   : > { %v6945_v46 = vadd.f32 %v11694_v15, %v6944_v54  ;;  %v7018_v6 = vmul.f32 %v11694_v15, %v11694_v15  ;;  %v7080_v27 = vadd.f32 %v7079_v18, %v7017_v57  ;;  %v11696_v14 = vadd.f32 %v6773_v48, %v4502_v39 }
 0x3e1   : > { %v7130_v7 = vpack.c.bf16 %v11695_v51, %v11693_v19  ;;  %v7021_v55 = vmul.f32 %v11695_v51, %v11695_v51 }
 0x3e2   : > { %v7081_v21 = vadd.f32 %v7080_v27, %v7018_v6  ;;  %v6946_v52 = vadd.f32 %v11696_v14, %v6945_v46  ;;  %v7019_v31 = vmul.f32 %v11696_v14, %v11696_v14  ;;  %v7129_v22 = vpack.c.bf16 %v11696_v14, %v11694_v15  ;;  %v11619_v35 = vpop.f32.mrb[52].mxu0 }
 0x3e3   : > { %7165 = vst [vmem:[#allocation5 + $0xc8] sm:$0xff] %v7130_v7  ;;  %v6786_v41 = vpop.f32.mrb[53].mxu0 }
 0x3e4   : > { %v6947_v53 = vadd.f32 %v11693_v19, %v6946_v52  ;;  %v7082_v29 = vadd.f32 %v7081_v21, %v7019_v31  ;;  %7164 = vst [vmem:[#allocation5 + $0xc0] sm:$0xff] %v7129_v22  ;;  %v11299_v25 = vpop.f32.mrb[52].mxu1  ;;  %v11620_v32 = vpop.f32.mrb[54].mxu0 }
 0x3e5   : > { %v11697_v37 = vadd.f32 %v11619_v35, %v11299_v25  ;;  %v4515_v42 = vpop.f32.mrb[53].mxu1  ;;  %v6789_v1 = vpop.f32.mrb[55].mxu0 }
 0x3e6   : > { %v7083_v40 = vadd.f32 %v7082_v29, %v7020_v30  ;;  %v11698_v11 = vadd.f32 %v6786_v41, %v4515_v42  ;;  %v6948_v44 = vadd.f32 %v11695_v51, %v6947_v53  ;;  %v11300_v33 = vpop.f32.mrb[54].mxu1 }
 0x3e7   : > { %v11699_v5 = vadd.f32 %v11620_v32, %v11300_v33  ;;  %v4518_v0 = vpop.f32.mrb[55].mxu1  ;;  %v7024_v38 = vmul.f32 %v11697_v37, %v11697_v37 }
 0x3e8   : > { %v6949_v62 = vadd.f32 %v11698_v11, %v6948_v44  ;;  %v7022_v10 = vmul.f32 %v11698_v11, %v11698_v11  ;;  %v7084_v13 = vadd.f32 %v7083_v40, %v7021_v55  ;;  %v11700_v59 = vadd.f32 %v6789_v1, %v4518_v0 }
 0x3e9   : > { %v7132_v8 = vpack.c.bf16 %v11699_v5, %v11697_v37  ;;  %v7025_v20 = vmul.f32 %v11699_v5, %v11699_v5 }
 0x3ea   : > { %v7085_v58 = vadd.f32 %v7084_v13, %v7022_v10  ;;  %v6950_v28 = vadd.f32 %v11700_v59, %v6949_v62  ;;  %v7023_v61 = vmul.f32 %v11700_v59, %v11700_v59  ;;  %v7131_v47 = vpack.c.bf16 %v11700_v59, %v11698_v11  ;;  %v11623_v63 = vpop.f32.mrb[56].mxu0 }
 0x3eb   : > { %7167 = vst [vmem:[#allocation5 + $0xd8] sm:$0xff] %v7132_v8  ;;  %v6802_v50 = vpop.f32.mrb[57].mxu0 }
 0x3ec   : > { %v6951_v45 = vadd.f32 %v11697_v37, %v6950_v28  ;;  %v7086_v36 = vadd.f32 %v7085_v58, %v7023_v61  ;;  %7166 = vst [vmem:[#allocation5 + $0xd0] sm:$0xff] %v7131_v47  ;;  %v11303_v9 = vpop.f32.mrb[56].mxu1  ;;  %v11624_v49 = vpop.f32.mrb[58].mxu0 }
 0x3ed   : > { %v11701_v17 = vadd.f32 %v11623_v63, %v11303_v9  ;;  %v4531_v3 = vpop.f32.mrb[57].mxu1  ;;  %v6805_v56 = vpop.f32.mrb[59].mxu0  ;;  %v6897_v63 = vld [vmem:[#allocation3] sm:$0x1] }
 0x3ee   : > { %v7087_v2 = vadd.f32 %v7086_v36, %v7024_v38  ;;  %v11702_v12 = vadd.f32 %v6802_v50, %v4531_v3  ;;  %v6952_v23 = vadd.f32 %v11699_v5, %v6951_v45  ;;  %v11304_v34 = vpop.f32.mrb[58].mxu1  ;;  %v6969_v50 = vld [vmem:[#allocation4] sm:$0x1] }
 0x3ef   : > { %v11703_v43 = vadd.f32 %v11624_v49, %v11304_v34  ;;  %v4534_v4 = vpop.f32.mrb[59].mxu1  ;;  %v7028_v51 = vmul.f32 %v11701_v17, %v11701_v17 }
 0x3f0   : > { %v6953_v19 = vadd.f32 %v11702_v12, %v6952_v23  ;;  %v7026_v24 = vmul.f32 %v11702_v12, %v11702_v12  ;;  %v7088_v60 = vadd.f32 %v7087_v2, %v7025_v20  ;;  %v11704_v57 = vadd.f32 %v6805_v56, %v4534_v4 }
 0x3f1   : > { %v7134_v18 = vpack.c.bf16 %v11703_v43, %v11701_v17  ;;  %v7029_v21 = vmul.f32 %v11703_v43, %v11703_v43 }
 0x3f2   : > { %v7089_v15 = vadd.f32 %v7088_v60, %v7026_v24  ;;  %v6954_v54 = vadd.f32 %v11704_v57, %v6953_v19  ;;  %v7027_v26 = vmul.f32 %v11704_v57, %v11704_v57  ;;  %v7133_v16 = vpack.c.bf16 %v11704_v57, %v11702_v12  ;;  %v11627_v6 = vpop.f32.mrb[60].mxu0 }
 0x3f3   : > { %7169 = vst [vmem:[#allocation5 + $0xe8] sm:$0xff] %v7134_v18  ;;  %v6818_v7 = vpop.f32.mrb[61].mxu0 }
 0x3f4   : > { %v6955_v39 = vadd.f32 %v11701_v17, %v6954_v54  ;;  %v7090_v48 = vadd.f32 %v7089_v15, %v7027_v26  ;;  %7168 = vst [vmem:[#allocation5 + $0xe0] sm:$0xff] %v7133_v16  ;;  %v11307_v46 = vpop.f32.mrb[60].mxu1  ;;  %v11628_v53 = vpop.f32.mrb[62].mxu0 }
 0x3f5   : > { %v11705_v27 = vadd.f32 %v11627_v6, %v11307_v46  ;;  %v4547_v14 = vpop.f32.mrb[61].mxu1  ;;  %v6821_v35 = vpop.f32.mrb[63].mxu0 }
 0x3f6   : > { %v7091_v52 = vadd.f32 %v7090_v48, %v7028_v51  ;;  %v11706_v31 = vadd.f32 %v6818_v7, %v4547_v14  ;;  %v6956_v22 = vadd.f32 %v11703_v43, %v6955_v39  ;;  %v11308_v30 = vpop.f32.mrb[62].mxu1 }
 0x3f7   : > { %v11707_v29 = vadd.f32 %v11628_v53, %v11308_v30  ;;  %v4550_v25 = vpop.f32.mrb[63].mxu1  ;;  %v7032_v5 = vmul.f32 %v11705_v27, %v11705_v27 }
 0x3f8   : > { %v6957_v37 = vadd.f32 %v11706_v31, %v6956_v22  ;;  %v7030_v42 = vmul.f32 %v11706_v31, %v11706_v31  ;;  %v7092_v41 = vadd.f32 %v7091_v52, %v7029_v21  ;;  %v11708_v55 = vadd.f32 %v6821_v35, %v4550_v25 }
 0x3f9   : > { %v7136_v40 = vpack.c.bf16 %v11707_v29, %v11705_v27  ;;  %v7033_v62 = vmul.f32 %v11707_v29, %v11707_v29 }
 0x3fa   : > { %v7093_v11 = vadd.f32 %v7092_v41, %v7030_v42  ;;  %v6958_v44 = vadd.f32 %v11708_v55, %v6957_v37  ;;  %v7031_v33 = vmul.f32 %v11708_v55, %v11708_v55  ;;  %v7135_v32 = vpack.c.bf16 %v11708_v55, %v11706_v31 }
 0x3fb   : > { %7171 = vst [vmem:[#allocation5 + $0xf8] sm:$0xff] %v7136_v40 }
 0x3fc   : > { %v6959_v0 = vadd.f32 %v11705_v27, %v6958_v44  ;;  %v7094_v1 = vadd.f32 %v7093_v11, %v7031_v33  ;;  %7170 = vst [vmem:[#allocation5 + $0xf0] sm:$0xff] %v7135_v32 }
 0x3fe   : > { %v6960_v10 = vadd.f32 %v11707_v29, %v6959_v0  ;;  %v7095_v13 = vadd.f32 %v7094_v1, %v7032_v5 }
 0x400   : > { %v6961_v59 = vrot.slane %v6960_v10, 4  ;;  %v7096_v8 = vadd.f32 %v7095_v13, %v7033_v62 }
 0x402   : > { %v6962_v58 = vadd.f32 %v6961_v59, %v6960_v10  ;;  %v7097_v28 = vrot.slane %v7096_v8, 4 }
 0x404   : > { %v6963_v61 = vrot.slane %v6962_v58, 2  ;;  %v7098_v47 = vadd.f32 %v7097_v28, %v7096_v8 }
 0x406   : > { %v6964_v38 = vadd.f32 %v6963_v61, %v6962_v58  ;;  %v7099_v45 = vrot.slane %v7098_v47, 2 }
 0x408   : > { %v6965_v36 = vrot.slane %v6964_v38, 1  ;;  %v7100_v9 = vadd.f32 %v7099_v45, %v7098_v47 }
 0x40a   : > { %v6966_v17 = vadd.f32 %v6965_v36, %v6964_v38  ;;  %v7101_v3 = vrot.slane %v7100_v9, 1 }
 0x40c   : > { %v6967_v20 = vadd.f32 %v6966_v17, %v6897_v63  ;;  %v7102_v2 = vadd.f32 %v7101_v3, %v7100_v9 }
 0x40e   : > { %6968 = vst [vmem:[#allocation3] sm:$0x1] %v6967_v20  ;;  %v7103_v12 = vadd.f32 %v7102_v2, %v6969_v50 }
 0x410   : > { %7104 = vst [vmem:[#allocation4] sm:$0x1] %v7103_v12 }
 0x411 PF: > { %p10287_p7 = scmp.ne.s32.totalorder %s12549_s15, 1 }
 0x413   : > { %7191 = sbr.rel (%p10287_p7) target bundleno = 1547 (0x60b), region = 56 }
 0x41a   : > { %v7291_v23 = vld [vmem:[#allocation3] sm:$0x1]  ;;  %v7293_v34 = vld [vmem:[#allocation4] sm:$0x1]  ;;  %v14059_v19 = vld [vmem:[#allocation5] sm:$0xff]  ;;  %v7306_v54 = vlaneseq  ;;  %vm8245_vm14 = vcmask 1041408  }
 0x41b   : > { %v14055_v49 = vmul.f32 0.001953125, %v7291_v23  ;;  %v7294_v43 = vmul.f32 0.001953125, %v7293_v34  ;;  %v14061_v24 = vld [vmem:[#allocation5 + $0x8] sm:$0xff]  ;;  %v14063_v60 = vld [vmem:[#allocation5 + $0x10] sm:$0xff]  ;;  %v14065_v57 = vld [vmem:[#allocation5 + $0x18] sm:$0xff]  ;;  %v7227_v51 = vunpack.c.l.bf16 %v14059_v19  ;;  %v7228_v39 = vunpack.c.h.bf16 %v14059_v19 }
 0x41c   : > { %v14067_v15 = vld [vmem:[#allocation5 + $0x20] sm:$0xff]  ;;  %v14069_v26 = vld [vmem:[#allocation5 + $0x28] sm:$0xff]  ;;  %v14071_v16 = vld [vmem:[#allocation5 + $0x30] sm:$0xff]  ;;  %v7229_v48 = vunpack.c.l.bf16 %v14061_v24  ;;  %v7230_v14 = vunpack.c.h.bf16 %v14061_v24  ;;  %v7231_v7 = vunpack.c.l.bf16 %v14063_v60  ;;  %v7232_v21 = vunpack.c.h.bf16 %v14063_v60 }
 0x41d   : > { %v7295_v4 = vmul.f32 %v14055_v49, %v14055_v49  ;;  %v14076_v6 = vld [vmem:[#allocation5 + $0x38] sm:$0xff]  ;;  %v14078_v27 = vld [vmem:[#allocation5 + $0x40] sm:$0xff]  ;;  %v7233_v52 = vunpack.c.l.bf16 %v14065_v57  ;;  %v14084_v31 = vld [vmem:[#allocation5 + $0x48] sm:$0xff]  ;;  %v7234_v30 = vunpack.c.h.bf16 %v14065_v57  ;;  %v7235_v53 = vunpack.c.l.bf16 %v14067_v15 }
 0x41e   : > { %v14086_v22 = vld [vmem:[#allocation5 + $0x50] sm:$0xff]  ;;  %v7236_v29 = vunpack.c.h.bf16 %v14067_v15  ;;  %v14091_v25 = vld [vmem:[#allocation5 + $0x58] sm:$0xff]  ;;  %v14093_v35 = vld [vmem:[#allocation5 + $0x60] sm:$0xff]  ;;  %v7237_v37 = vunpack.c.l.bf16 %v14069_v26  ;;  %v7238_v42 = vunpack.c.h.bf16 %v14069_v26  ;;  %v7239_v41 = vunpack.c.l.bf16 %v14071_v16 }
 0x41f   : > { %v7296_v56 = vsub.f32 %v7294_v43, %v7295_v4  ;;  %v7240_v55 = vunpack.c.h.bf16 %v14071_v16  ;;  %v14099_v40 = vld [vmem:[#allocation5 + $0x68] sm:$0xff]  ;;  %v14101_v11 = vld [vmem:[#allocation5 + $0x70] sm:$0xff]  ;;  %v7241_v44 = vunpack.c.l.bf16 %v14076_v6  ;;  %v7242_v33 = vunpack.c.h.bf16 %v14076_v6  ;;  %v14107_v0 = vld [vmem:[#allocation5 + $0x78] sm:$0xff] }
 0x420   : > { %v14109_v1 = vld [vmem:[#allocation5 + $0x80] sm:$0xff]  ;;  %v14115_v8 = vld [vmem:[#allocation5 + $0x88] sm:$0xff]  ;;  %v14117_v58 = vld [vmem:[#allocation5 + $0x90] sm:$0xff]  ;;  %v14128_v17 = vshrl.u32 %v7306_v54, 7  ;;  %v12566_v63 = vmov 1983009808   ;;  %v17504_v16 = vunpack.c.h.bf16 %v14078_v27  ;;  %v17506_v6 = vunpack.c.h.bf16 %v14084_v31 }
 0x421   : > { %v7297_v18 = vmax.f32 %v7296_v56, 0.0  ;;  %v14123_v45 = vld [vmem:[#allocation5 + $0x98] sm:$0xff]  ;;  %v14130_v3 = vld [vmem:[#allocation5 + $0xa0] sm:$0xff]  ;;  %v14132_v50 = vld [vmem:[#allocation5 + $0xa8] sm:$0xff]  ;;  %v7575_v4 = vunpack.c.l.s4 %v12566_v63  ;;  %v17521_v2 = vunpack.c.l.bf16 %v14115_v8  ;;  %v17523_v61 = vunpack.c.l.bf16 %v14117_v58 }
 0x422   : > { %v14138_v34 = vld [vmem:[#allocation5 + $0xb0] sm:$0xff]  ;;  %v14140_v43 = vld [vmem:[#allocation5 + $0xb8] sm:$0xff]  ;;  %v7300_v20 = vld [vmem:[%s17150_s2] sm:$0x1]  ;;  %v17223_v12 = vsub.s32 0, %v14128_v17  ;;  %v17525_v5 = vunpack.c.l.bf16 %v14123_v45  ;;  %v17530_v63 = vunpack.c.l.bf16 %v14132_v50  ;;  %vm9782_vm15 = vcmask 1041409  }
 0x423   : > { %v7298_v46 = vadd.f32 1e-05, %v7297_v18  ;;  %v14154_v9 = vld [vmem:[#allocation5 + $0xc8] sm:$0xff]  ;;  %v14156_v56 = vld [vmem:[#allocation5 + $0xd0] sm:$0xff]  ;;  %v14162_v23 = vld [vmem:[#allocation5 + $0xd8] sm:$0xff]  ;;  %v7576_v62 = vunpack.c.0.s8 %v7575_v4  ;;  %v17527_v4 = vunpack.c.l.bf16 %v14130_v3  ;;  %vm9784_vm0 = vcmask 1042434  }
 0x424   : > { %v14168_v28 = vld [vmem:[#allocation5 + $0xe0] sm:$0xff]  ;;  %v14170_v54 = vld [vmem:[#allocation5 + $0xe8] sm:$0xff]  ;;  %v14175_v10 = vld [vmem:[#allocation5 + $0xf0] sm:$0xff]  ;;  %vm9786_vm1 = vcmask 1043459   ;;  %vm9788_vm2 = vcmask 1044484   ;;  %vm9790_vm3 = vcmask 1045509  }
 0x425   : > { %12439 = vrsqrt.f32 %v7298_v46  ;;  %v14146_v46 = vld [vmem:[#allocation5 + $0xc0] sm:$0xff]  ;;  %v14177_v38 = vld [vmem:[#allocation5 + $0xf8] sm:$0xff]  ;;  %v14187_v59 = vld [vmem:[%s17151_s3] sm:$0x1]  ;;  %v14213_v18 = vsub.s32 %v7576_v62, %v14128_v17  ;;  %vm9792_vm4 = vcmask 1046534   ;;  %vm9794_vm5 = vcmask 1047559  }
 0x427   : > { %17502 = vst [vmem:[#allocation59_spill] sm:$0xff] %v14213_v18  ;;  %v17533_v18 = vunpack.c.l.bf16 %v14138_v34 }
 0x42f   : > { %v12440_v36 = vpop.eup %12439 }
 0x430   : > { %v7301_v13 = vmul.f32 %v12440_v36, %v7300_v20 }
 0x432   : > { %v14190_v36 = vmul.f32 %v7301_v13, %v14055_v49  ;;  %v14194_v20 = vrot.slane %v7301_v13, %v17223_v12  ;;  %v17519_v49 = vunpack.c.l.bf16 %v14109_v1 }
 0x434   : > { %v7304_v13 = vsub.f32 %v14187_v59, %v14190_v36  ;;  %v14210_v12 = vmul.f32 %v14194_v20, %v7227_v51  ;;  %v14218_v47 = vmul.f32 %v14194_v20, %v7228_v39  ;;  %v14223_v32 = vmul.f32 %v14194_v20, %v7229_v48 }
 0x435   : > { %v14228_v59 = vmul.f32 %v14194_v20, %v7230_v14  ;;  %v14233_v51 = vmul.f32 %v14194_v20, %v7231_v7  ;;  %v14238_v19 = vmul.f32 %v14194_v20, %v7232_v21  ;;  %v14243_v39 = vmul.f32 %v14194_v20, %v7233_v52 }
 0x436   : > { %v14248_v24 = vmul.f32 %v14194_v20, %v7234_v30  ;;  %v14253_v48 = vmul.f32 %v14194_v20, %v7235_v53  ;;  %v14258_v60 = vmul.f32 %v14194_v20, %v7236_v29  ;;  %v14263_v14 = vmul.f32 %v14194_v20, %v7237_v37 }
 0x437   : > { %v14268_v57 = vmul.f32 %v14194_v20, %v7238_v42  ;;  %v14273_v7 = vmul.f32 %v14194_v20, %v7239_v41  ;;  %v14278_v15 = vmul.f32 %v14194_v20, %v7240_v55  ;;  %v14283_v21 = vmul.f32 %v14194_v20, %v7241_v44 }
 0x438   : > { %v14288_v26 = vmul.f32 %v14194_v20, %v7242_v33  ;;  %v17503_v52 = vunpack.c.l.bf16 %v14078_v27  ;;  %v14298_v53 = vmul.f32 %v14194_v20, %v17504_v16  ;;  %v17505_v29 = vunpack.c.l.bf16 %v14084_v31 }
 0x439   : > { %v14308_v42 = vmul.f32 %v14194_v20, %v17506_v6  ;;  %v17507_v41 = vunpack.c.l.bf16 %v14086_v22  ;;  %v17508_v27 = vunpack.c.h.bf16 %v14086_v22  ;;  %v17509_v33 = vunpack.c.l.bf16 %v14091_v25 }
 0x43a   : > { %v14293_v30 = vmul.f32 %v14194_v20, %v17503_v52  ;;  %v14303_v37 = vmul.f32 %v14194_v20, %v17505_v29  ;;  %v17510_v31 = vunpack.c.h.bf16 %v14091_v25  ;;  %v17511_v52 = vunpack.c.l.bf16 %v14093_v35 }
 0x43b   : > { %v14313_v55 = vmul.f32 %v14194_v20, %v17507_v41  ;;  %v14318_v44 = vmul.f32 %v14194_v20, %v17508_v27  ;;  %v14323_v62 = vmul.f32 %v14194_v20, %v17509_v33  ;;  %v17512_v22 = vunpack.c.h.bf16 %v14093_v35 }
 0x43c   : > { %v14328_v36 = vmul.f32 %v14194_v20, %v17510_v31  ;;  %v14333_v16 = vmul.f32 %v14194_v20, %v17511_v52  ;;  %v17513_v6 = vunpack.c.l.bf16 %v14099_v40  ;;  %v17514_v25 = vunpack.c.h.bf16 %v14099_v40 }
 0x43d   : > { %v14338_v29 = vmul.f32 %v14194_v20, %v17512_v22  ;;  %v17515_v33 = vunpack.c.l.bf16 %v14101_v11  ;;  %v17516_v35 = vunpack.c.h.bf16 %v14101_v11  ;;  %v17517_v22 = vunpack.c.l.bf16 %v14107_v0 }
 0x43e   : > { %v14343_v41 = vmul.f32 %v14194_v20, %v17513_v6  ;;  %v14348_v27 = vmul.f32 %v14194_v20, %v17514_v25  ;;  %v17518_v40 = vunpack.c.h.bf16 %v14107_v0  ;;  %v17520_v11 = vunpack.c.h.bf16 %v14109_v1 }
 0x43f   : > { %v14353_v31 = vmul.f32 %v14194_v20, %v17515_v33  ;;  %v14358_v52 = vmul.f32 %v14194_v20, %v17516_v35  ;;  %v14363_v6 = vmul.f32 %v14194_v20, %v17517_v22  ;;  %v14373_v33 = vmul.f32 %v14194_v20, %v17519_v49 }
 0x440   : > { %v14368_v25 = vmul.f32 %v14194_v20, %v17518_v40  ;;  %v14378_v35 = vmul.f32 %v14194_v20, %v17520_v11  ;;  %v14383_v22 = vmul.f32 %v14194_v20, %v17521_v2  ;;  %v17522_v0 = vunpack.c.h.bf16 %v14115_v8 }
 0x441   : > { %v14393_v49 = vmul.f32 %v14194_v20, %v17523_v61  ;;  %v17524_v1 = vunpack.c.h.bf16 %v14117_v58  ;;  %v14403_v2 = vmul.f32 %v14194_v20, %v17525_v5  ;;  %v17526_v8 = vunpack.c.h.bf16 %v14123_v45 }
 0x442   : > { %v14388_v40 = vmul.f32 %v14194_v20, %v17522_v0  ;;  %v14413_v61 = vmul.f32 %v14194_v20, %v17527_v4  ;;  %v17528_v58 = vunpack.c.h.bf16 %v14130_v3  ;;  %v14423_v5 = vmul.f32 %v14194_v20, %v17530_v63 }
 0x443   : > { %v14398_v11 = vmul.f32 %v14194_v20, %v17524_v1  ;;  %v14408_v0 = vmul.f32 %v14194_v20, %v17526_v8  ;;  %v17531_v45 = vunpack.c.h.bf16 %v14132_v50  ;;  %v14433_v4 = vmul.f32 %v14194_v20, %v17533_v18 }
 0x444   : > { %v14418_v1 = vmul.f32 %v14194_v20, %v17528_v58  ;;  %v17534_v3 = vunpack.c.h.bf16 %v14138_v34  ;;  %v17537_v50 = vunpack.c.h.bf16 %v14140_v43  ;;  %v17540_v34 = vunpack.c.h.bf16 %v14146_v46 }
 0x445   : > { %v14428_v8 = vmul.f32 %v14194_v20, %v17531_v45 }
 0x446   : > { %17529 = vst [vmem:[#allocation60_spill] sm:$0xff] %v14418_v1  ;;  %v14438_v58 = vmul.f32 %v14194_v20, %v17534_v3  ;;  %v17536_v1 = vunpack.c.l.bf16 %v14140_v43  ;;  %v14448_v45 = vmul.f32 %v14194_v20, %v17537_v50  ;;  %v14458_v3 = vmul.f32 %v14194_v20, %v17540_v34 }
 0x447   : > { %17532 = vst [vmem:[#allocation61_spill] sm:$0xff] %v14428_v8  ;;  %v17539_v8 = vunpack.c.l.bf16 %v14146_v46  ;;  %v17543_v43 = vunpack.c.h.bf16 %v14154_v9  ;;  %v17546_v46 = vunpack.c.h.bf16 %v14156_v56 }
 0x448   : > { %17535 = vst [vmem:[#allocation62_spill] sm:$0xff] %v14438_v58  ;;  %v14443_v63 = vmul.f32 %v14194_v20, %v17536_v1  ;;  %17538 = vst [vmem:[#allocation63_spill] sm:$0xff] %v14448_v45  ;;  %v17542_v58 = vunpack.c.l.bf16 %v14154_v9  ;;  %v17545_v45 = vunpack.c.l.bf16 %v14156_v56  ;;  %v17550_v9 = vunpack.c.h.bf16 %v14162_v23 }
 0x449   : > { %v14453_v18 = vmul.f32 %v14194_v20, %v17539_v8  ;;  %17541 = vst [vmem:[#allocation64_spill] sm:$0xff] %v14458_v3  ;;  %v14468_v50 = vmul.f32 %v14194_v20, %v17543_v43  ;;  %v14478_v34 = vmul.f32 %v14194_v20, %v17546_v46  ;;  %v17548_v3 = vunpack.c.l.bf16 %v14162_v23 }
 0x44a   : > { %v14463_v1 = vmul.f32 %v14194_v20, %v17542_v58  ;;  %v14473_v8 = vmul.f32 %v14194_v20, %v17545_v45  ;;  %v14488_v43 = vmul.f32 %v14194_v20, %v17550_v9  ;;  %v17553_v56 = vunpack.c.h.bf16 %v14168_v28 }
 0x44b   : > { %17544 = vst [vmem:[#allocation65_spill] sm:$0xff] %v14468_v50  ;;  %17547 = vst [vmem:[#allocation66_spill] sm:$0xff] %v14478_v34  ;;  %v14483_v58 = vmul.f32 %v14194_v20, %v17548_v3  ;;  %v17552_v50 = vunpack.c.l.bf16 %v14168_v28  ;;  %v17555_v34 = vunpack.c.l.bf16 %v14170_v54  ;;  %v17556_v23 = vunpack.c.h.bf16 %v14170_v54 }
 0x44c   : > { %17551 = vst [vmem:[#allocation68_spill] sm:$0xff] %v14488_v43  ;;  %v14498_v46 = vmul.f32 %v14194_v20, %v17553_v56  ;;  %v17557_v43 = vsub.s32 0, %v14128_v17  ;;  %v17559_v56 = vunpack.c.h.bf16 %v14175_v10 }
 0x44d   : > { %17549 = vst [vmem:[#allocation67_spill] sm:$0xff] %v14483_v58  ;;  %v14493_v45 = vmul.f32 %v14194_v20, %v17552_v50  ;;  %v14503_v3 = vmul.f32 %v14194_v20, %v17555_v34  ;;  %v14508_v9 = vmul.f32 %v14194_v20, %v17556_v23  ;;  %v17558_v50 = vunpack.c.l.bf16 %v14175_v10 }
 0x44e   : > { %17554 = vst [vmem:[#allocation69_spill] sm:$0xff] %v14498_v46  ;;  %v14512_v58 = vrot.slane %v7304_v13, %v17557_v43  ;;  %v14522_v46 = vmul.f32 %v14194_v20, %v17559_v56  ;;  %v17560_v34 = vunpack.c.l.bf16 %v14177_v38  ;;  %v17561_v23 = vunpack.c.h.bf16 %v14177_v38  ;;  %v17565_v56 = vld [vmem:[#allocation61_spill] sm:$0xff] }
 0x44f   : > { %v14517_v28 = vmul.f32 %v14194_v20, %v17558_v50 }
 0x450   : > { %v14527_v54 = vmul.f32 %v14194_v20, %v17560_v34  ;;  %v14532_v17 = vmul.f32 %v14194_v20, %v17561_v23  ;;  %v14536_v13 = vadd.f32 %v14512_v58, %v14210_v12  ;;  %v14540_v10 = vadd.f32 %v14512_v58, %v14218_v47  ;;  %v17567_v34 = vld [vmem:[#allocation62_spill] sm:$0xff] }
 0x451   : > { %v14544_v43 = vadd.f32 %v14512_v58, %v14223_v32  ;;  %v14548_v50 = vadd.f32 %v14512_v58, %v14228_v59  ;;  %v14552_v38 = vadd.f32 %v14512_v58, %v14233_v51  ;;  %v14556_v12 = vadd.f32 %v14512_v58, %v14238_v19 }
 0x452   : > { %17562 = vst [vmem:[#allocation70_spill] sm:$0xff] %v14536_v13  ;;  %17563 = vst [vmem:[#allocation71_spill] sm:$0xff] %v14540_v10  ;;  %v14560_v47 = vadd.f32 %v14512_v58, %v14243_v39  ;;  %v14564_v32 = vadd.f32 %v14512_v58, %v14248_v24  ;;  %v14568_v20 = vadd.f32 %v14512_v58, %v14253_v48 }
 0x453   : > { %v14572_v59 = vadd.f32 %v14512_v58, %v14258_v60  ;;  %v14576_v51 = vadd.f32 %v14512_v58, %v14263_v14  ;;  %v14580_v19 = vadd.f32 %v14512_v58, %v14268_v57  ;;  %v14584_v39 = vadd.f32 %v14512_v58, %v14273_v7 }
 0x454   : > { %v14588_v24 = vadd.f32 %v14512_v58, %v14278_v15  ;;  %v14592_v48 = vadd.f32 %v14512_v58, %v14283_v21  ;;  %v14596_v60 = vadd.f32 %v14512_v58, %v14288_v26  ;;  %v14600_v14 = vadd.f32 %v14512_v58, %v14293_v30 }
 0x455   : > { %v14604_v57 = vadd.f32 %v14512_v58, %v14298_v53  ;;  %v14608_v7 = vadd.f32 %v14512_v58, %v14303_v37  ;;  %v14612_v15 = vadd.f32 %v14512_v58, %v14308_v42  ;;  %v14616_v21 = vadd.f32 %v14512_v58, %v14313_v55 }
 0x456   : > { %v14620_v26 = vadd.f32 %v14512_v58, %v14318_v44  ;;  %v14624_v30 = vadd.f32 %v14512_v58, %v14323_v62  ;;  %v14628_v53 = vadd.f32 %v14512_v58, %v14328_v36  ;;  %v14632_v37 = vadd.f32 %v14512_v58, %v14333_v16 }
 0x457   : > { %v14636_v42 = vadd.f32 %v14512_v58, %v14338_v29  ;;  %v14640_v55 = vadd.f32 %v14512_v58, %v14343_v41  ;;  %v14644_v44 = vadd.f32 %v14512_v58, %v14348_v27  ;;  %v14648_v62 = vadd.f32 %v14512_v58, %v14353_v31 }
 0x458   : > { %v14652_v36 = vadd.f32 %v14512_v58, %v14358_v52  ;;  %v14656_v16 = vadd.f32 %v14512_v58, %v14363_v6  ;;  %v14660_v29 = vadd.f32 %v14512_v58, %v14368_v25  ;;  %v14664_v41 = vadd.f32 %v14512_v58, %v14373_v33 }
 0x459   : > { %v14668_v27 = vadd.f32 %v14512_v58, %v14378_v35  ;;  %v14672_v31 = vadd.f32 %v14512_v58, %v14383_v22  ;;  %v14676_v52 = vadd.f32 %v14512_v58, %v14388_v40  ;;  %v14680_v6 = vadd.f32 %v14512_v58, %v14393_v49  ;;  %v17564_v40 = vld [vmem:[#allocation60_spill] sm:$0xff] }
 0x45a   : > { %v14684_v25 = vadd.f32 %v14512_v58, %v14398_v11  ;;  %v14688_v33 = vadd.f32 %v14512_v58, %v14403_v2  ;;  %v14692_v35 = vadd.f32 %v14512_v58, %v14408_v0  ;;  %v14696_v22 = vadd.f32 %v14512_v58, %v14413_v61 }
 0x45b   : > { %v14700_v49 = vadd.f32 %v14512_v58, %v17564_v40  ;;  %v14704_v11 = vadd.f32 %v14512_v58, %v14423_v5  ;;  %v14708_v2 = vadd.f32 %v14512_v58, %v17565_v56  ;;  %v14712_v0 = vadd.f32 %v14512_v58, %v14433_v4  ;;  %v17569_v40 = vld [vmem:[#allocation63_spill] sm:$0xff] }
 0x45c   : > { %v14716_v61 = vadd.f32 %v14512_v58, %v17567_v34  ;;  %v14720_v23 = vadd.f32 %v14512_v58, %v14443_v63  ;;  %v14724_v5 = vadd.f32 %v14512_v58, %v17569_v40  ;;  %v14728_v56 = vadd.f32 %v14512_v58, %v14453_v18 }
 0x45d   : > { %17566 = vst [vmem:[#allocation60_spill] sm:$0xff] %v14708_v2  ;;  %v17572_v2 = vld [vmem:[#allocation64_spill] sm:$0xff]  ;;  %v14736_v34 = vadd.f32 %v14512_v58, %v14463_v1  ;;  %v14744_v40 = vadd.f32 %v14512_v58, %v14473_v8 }
 0x45e   : > { %17568 = vst [vmem:[#allocation61_spill] sm:$0xff] %v14716_v61  ;;  %17570 = vst [vmem:[#allocation62_spill] sm:$0xff] %v14724_v5  ;;  %v14732_v4 = vadd.f32 %v14512_v58, %v17572_v2  ;;  %v17574_v61 = vld [vmem:[#allocation65_spill] sm:$0xff]  ;;  %v17576_v5 = vld [vmem:[#allocation66_spill] sm:$0xff] }
 0x45f   : > { %17571 = vst [vmem:[#allocation63_spill] sm:$0xff] %v14728_v56  ;;  %v14740_v63 = vadd.f32 %v14512_v58, %v17574_v61  ;;  %v14748_v18 = vadd.f32 %v14512_v58, %v17576_v5  ;;  %v17577_v56 = vld [vmem:[#allocation67_spill] sm:$0xff]  ;;  %v14760_v61 = vadd.f32 %v14512_v58, %v14493_v45  ;;  %v14768_v5 = vadd.f32 %v14512_v58, %v14503_v3 }
 0x460   : > { %17573 = vst [vmem:[#allocation64_spill] sm:$0xff] %v14732_v4  ;;  %v14752_v2 = vadd.f32 %v14512_v58, %v17577_v56  ;;  %v17578_v4 = vld [vmem:[#allocation68_spill] sm:$0xff]  ;;  %v14772_v56 = vadd.f32 %v14512_v58, %v14508_v9  ;;  %v14780_v45 = vadd.f32 %v14512_v58, %v14522_v46  ;;  %v14788_v3 = vadd.f32 %v14512_v58, %v14532_v17 }
 0x461   : > { %17575 = vst [vmem:[#allocation65_spill] sm:$0xff] %v14740_v63  ;;  %v14756_v1 = vadd.f32 %v14512_v58, %v17578_v4  ;;  %17579 = vst [vmem:[#allocation66_spill] sm:$0xff] %v14760_v61  ;;  %v17580_v63 = vld [vmem:[#allocation69_spill] sm:$0xff]  ;;  %v14776_v4 = vadd.f32 %v14512_v58, %v14517_v28  ;;  %v7448_v28 = vmax.f32 %v14548_v50, 0.0  ;;  %v7450_v46 = vmax.f32 %v14556_v12, 0.0 }
 0x462   : > { %v14764_v8 = vadd.f32 %v14512_v58, %v17580_v63  ;;  %17582 = vst [vmem:[#allocation68_spill] sm:$0xff] %v14768_v5  ;;  %17583 = vst [vmem:[#allocation69_spill] sm:$0xff] %v14772_v56  ;;  %v14784_v63 = vadd.f32 %v14512_v58, %v14527_v54  ;;  %v7447_v56 = vmax.f32 %v14544_v43, 0.0  ;;  %v7452_v54 = vmax.f32 %v14564_v32, 0.0 }
 0x463   : > { %17584 = vst [vmem:[#allocation72_spill] sm:$0xff] %v14776_v4  ;;  %17585 = vst [vmem:[#allocation73_spill] sm:$0xff] %v14780_v45  ;;  %v7449_v4 = vmax.f32 %v14552_v38, 0.0  ;;  %v7451_v45 = vmax.f32 %v14560_v47, 0.0  ;;  %v7454_v58 = vmax.f32 %v14572_v59, 0.0  ;;  %v7455_v17 = vmax.f32 %v14576_v51, 0.0 }
 0x464   : > { %17581 = vst [vmem:[#allocation67_spill] sm:$0xff] %v14764_v8  ;;  %17586 = vst [vmem:[#allocation74_spill] sm:$0xff] %v14784_v63  ;;  %v7453_v63 = vmax.f32 %v14568_v20, 0.0  ;;  %v7456_v9 = vmax.f32 %v14580_v19, 0.0  ;;  %v7457_v43 = vmax.f32 %v14584_v39, 0.0  ;;  %v7458_v50 = vmax.f32 %v14588_v24, 0.0 }
 0x465   : > { %17587 = vst [vmem:[#allocation75_spill] sm:$0xff] %v14788_v3  ;;  %v7459_v38 = vmax.f32 %v14592_v48, 0.0  ;;  %v7460_v12 = vmax.f32 %v14596_v60, 0.0  ;;  %v7461_v47 = vmax.f32 %v14600_v14, 0.0  ;;  %v7462_v32 = vmax.f32 %v14604_v57, 0.0  ;;  %v17588_v5 = vld [vmem:[#allocation60_spill] sm:$0xff] }
 0x466   : > { %v7463_v20 = vmax.f32 %v14608_v7, 0.0  ;;  %v7464_v59 = vmax.f32 %v14612_v15, 0.0  ;;  %v7465_v51 = vmax.f32 %v14616_v21, 0.0  ;;  %v7466_v19 = vmax.f32 %v14620_v26, 0.0  ;;  %v17589_v10 = vld [vmem:[#allocation61_spill] sm:$0xff]  ;;  %v17590_v13 = vld [vmem:[#allocation62_spill] sm:$0xff] }
 0x467   : > { %v7467_v39 = vmax.f32 %v14624_v30, 0.0  ;;  %v7468_v24 = vmax.f32 %v14628_v53, 0.0  ;;  %v7469_v48 = vmax.f32 %v14632_v37, 0.0  ;;  %v7470_v60 = vmax.f32 %v14636_v42, 0.0  ;;  %v17591_v3 = vld [vmem:[#allocation63_spill] sm:$0xff]  ;;  %v17592_v8 = vld [vmem:[#allocation64_spill] sm:$0xff] }
 0x468   : > { %v7471_v14 = vmax.f32 %v14640_v55, 0.0  ;;  %v7472_v57 = vmax.f32 %v14644_v44, 0.0  ;;  %v7473_v7 = vmax.f32 %v14648_v62, 0.0  ;;  %v7474_v15 = vmax.f32 %v14652_v36, 0.0  ;;  %v17593_v61 = vld [vmem:[#allocation65_spill] sm:$0xff] }
 0x469   : > { %v7475_v21 = vmax.f32 %v14656_v16, 0.0  ;;  %v7476_v26 = vmax.f32 %v14660_v29, 0.0  ;;  %v7477_v30 = vmax.f32 %v14664_v41, 0.0  ;;  %v7478_v53 = vmax.f32 %v14668_v27, 0.0 }
 0x46a   : > { %v7479_v37 = vmax.f32 %v14672_v31, 0.0  ;;  %v7480_v42 = vmax.f32 %v14676_v52, 0.0  ;;  %v7481_v55 = vmax.f32 %v14680_v6, 0.0  ;;  %v7482_v44 = vmax.f32 %v14684_v25, 0.0 }
 0x46b   : > { %v7483_v62 = vmax.f32 %v14688_v33, 0.0  ;;  %v7484_v36 = vmax.f32 %v14692_v35, 0.0  ;;  %v7485_v16 = vmax.f32 %v14696_v22, 0.0  ;;  %v7486_v29 = vmax.f32 %v14700_v49, 0.0 }
 0x46c   : > { %v7487_v41 = vmax.f32 %v14704_v11, 0.0  ;;  %v7488_v27 = vmax.f32 %v17588_v5, 0.0  ;;  %v7489_v31 = vmax.f32 %v14712_v0, 0.0  ;;  %v7490_v52 = vmax.f32 %v17589_v10, 0.0 }
 0x46d   : > { %v7491_v6 = vmax.f32 %v14720_v23, 0.0  ;;  %v7492_v25 = vmax.f32 %v17590_v13, 0.0  ;;  %v7493_v33 = vmax.f32 %v17591_v3, 0.0  ;;  %v7494_v35 = vmax.f32 %v17592_v8, 0.0  ;;  %v17594_v23 = vld [vmem:[#allocation66_spill] sm:$0xff]  ;;  %v17595_v3 = vld [vmem:[#allocation67_spill] sm:$0xff] }
 0x46e   : > { %v7495_v22 = vmax.f32 %v14736_v34, 0.0  ;;  %v7496_v49 = vmax.f32 %v17593_v61, 0.0  ;;  %v7497_v11 = vmax.f32 %v14744_v40, 0.0  ;;  %v7498_v5 = vmax.f32 %v14748_v18, 0.0  ;;  %v17596_v34 = vld [vmem:[#allocation68_spill] sm:$0xff]  ;;  %v17597_v40 = vld [vmem:[#allocation69_spill] sm:$0xff] }
 0x46f   : > { %v7499_v0 = vmax.f32 %v14752_v2, 0.0  ;;  %v7500_v10 = vmax.f32 %v14756_v1, 0.0  ;;  %v7501_v13 = vmax.f32 %v17594_v23, 0.0  ;;  %v7502_v8 = vmax.f32 %v17595_v3, 0.0  ;;  %v17598_v2 = vld [vmem:[#allocation72_spill] sm:$0xff]  ;;  %v17599_v23 = vld [vmem:[#allocation73_spill] sm:$0xff] }
 0x470   : > { %v7503_v61 = vmax.f32 %v17596_v34, 0.0  ;;  %v7504_v18 = vmax.f32 %v17597_v40, 0.0  ;;  %v7505_v1 = vmax.f32 %v17598_v2, 0.0  ;;  %v7506_v3 = vmax.f32 %v17599_v23, 0.0  ;;  %v17600_v34 = vld [vmem:[#allocation74_spill] sm:$0xff]  ;;  %v17601_v2 = vld [vmem:[#allocation75_spill] sm:$0xff] }
 0x471   : > { %v7507_v40 = vmax.f32 %v17600_v34, 0.0  ;;  %v7508_v23 = vmax.f32 %v17601_v2, 0.0  ;;  %v17602_v34 = vld [vmem:[#allocation70_spill] sm:$0xff] }
 0x472   : > { %v17603_v2 = vmax.f32 %v17602_v34, 0.0 }
 0x474   : > { %v7509_v34 = vmax.f32 %v17603_v2, %v7447_v56  ;;  %v17604_v2 = vld [vmem:[#allocation71_spill] sm:$0xff] }
 0x475   : > { %v17605_v56 = vmax.f32 %v17604_v2, 0.0 }
 0x477   : > { %v7510_v2 = vmax.f32 %v17605_v56, %v7448_v28  ;;  %v7511_v28 = vmax.f32 %v7449_v4, %v7451_v45  ;;  %v7512_v56 = vmax.f32 %v7450_v46, %v7452_v54  ;;  %v7513_v4 = vmax.f32 %v7453_v63, %v7455_v17 }
 0x478   : > { %v7514_v45 = vmax.f32 %v7454_v58, %v7456_v9  ;;  %v7515_v46 = vmax.f32 %v7457_v43, %v7459_v38  ;;  %v14858_v54 = vmax.f32 %v7458_v50, %v7460_v12  ;;  %v14860_v17 = vmax.f32 %v7461_v47, %v7463_v20 }
 0x479   : > { %v14862_v63 = vmax.f32 %v7462_v32, %v7464_v59  ;;  %v14864_v9 = vmax.f32 %v7465_v51, %v7467_v39  ;;  %v14866_v58 = vmax.f32 %v7466_v19, %v7468_v24  ;;  %v14868_v38 = vmax.f32 %v7469_v48, %v7471_v14 }
 0x47a   : > { %17606 = vst [vmem:[#allocation60_spill] sm:$0xff] %v14858_v54  ;;  %v14870_v43 = vmax.f32 %v7470_v60, %v7472_v57  ;;  %v14872_v12 = vmax.f32 %v7473_v7, %v7475_v21  ;;  %v14874_v50 = vmax.f32 %v7474_v15, %v7476_v26  ;;  %v14876_v54 = vmax.f32 %v7477_v30, %v7479_v37  ;;  %v17607_v30 = vld [vmem:[#allocation59_spill] sm:$0xff] }
 0x47b   : > { %v14878_v20 = vmax.f32 %v7478_v53, %v7480_v42  ;;  %v14880_v47 = vmax.f32 %v7481_v55, %v7483_v62  ;;  %v14882_v32 = vmax.f32 %v7482_v44, %v7484_v36  ;;  %v14884_v59 = vmax.f32 %v7485_v16, %v7487_v41 }
 0x47c   : > { %v14886_v51 = vmax.f32 %v7486_v29, %v7488_v27  ;;  %v14888_v19 = vmax.f32 %v7489_v31, %v7491_v6  ;;  %v14890_v39 = vmax.f32 %v7490_v52, %v7492_v25  ;;  %v14892_v24 = vmax.f32 %v7493_v33, %v7495_v22 }
 0x47d   : > { %v14894_v48 = vmax.f32 %v7494_v35, %v7496_v49  ;;  %v14896_v60 = vmax.f32 %v7497_v11, %v7499_v0  ;;  %v14898_v14 = vmax.f32 %v7498_v5, %v7500_v10  ;;  %v14900_v57 = vmax.f32 %v7501_v13, %v7503_v61 }
 0x47e   : > { %v14902_v7 = vmax.f32 %v7502_v8, %v7504_v18  ;;  %v14904_v15 = vmax.f32 %v7505_v1, %v7507_v40  ;;  %v14906_v21 = vmax.f32 %v7506_v3, %v7508_v23  ;;  %v7573_v26 = vcombine.high %v7509_v34, %v7509_v34 }
 0x47f   : > { %v14909_v53 = vrot.slane %v7509_v34, %v17607_v30  ;;  %v7590_v37 = vcombine.high %v7510_v2, %v7510_v2  ;;  %v14912_v42 = vrot.slane %v7510_v2, %v17607_v30  ;;  %v7607_v55 = vcombine.high %v7511_v28, %v7511_v28 }
 0x480   : > { %v14915_v44 = vrot.slane %v7511_v28, %v17607_v30  ;;  %v7624_v62 = vcombine.high %v7512_v56, %v7512_v56  ;;  %v14918_v36 = vrot.slane %v7512_v56, %v17607_v30  ;;  %v14921_v16 = vrot.slane %v7573_v26, %v17607_v30 }
 0x481   : > { %v14926_v41 = vrot.slane %v7590_v37, %v17607_v30  ;;  %v14931_v31 = vrot.slane %v7607_v55, %v17607_v30  ;;  %v7641_v22 = vcombine.high %v7513_v4, %v7513_v4  ;;  %v14945_v49 = vrot.slane %v7513_v4, %v17607_v30  ;;  %v17608_v40 = vld [vmem:[#allocation60_spill] sm:$0xff] }
 0x482   : > { %v14936_v6 = vrot.slane %v7624_v62, %v17607_v30  ;;  %v7658_v0 = vcombine.high %v7514_v45, %v7514_v45  ;;  %v14952_v10 = vrot.slane %v7514_v45, %v17607_v30  ;;  %v7675_v61 = vcombine.high %v7515_v46, %v7515_v46 }
 0x483   : > { %v14955_v13 = vrot.slane %v7641_v22, %v17607_v30  ;;  %v14960_v18 = vrot.slane %v7515_v46, %v17607_v30  ;;  %v7692_v23 = vcombine.high %v17608_v40, %v17608_v40  ;;  %v14971_v34 = vrot.slane %v17608_v40, %v17607_v30 }
 0x484   : > { %v14963_v1 = vrot.slane %v7658_v0, %v17607_v30  ;;  %v14976_v28 = vrot.slane %v7675_v61, %v17607_v30  ;;  %v7709_v4 = vcombine.high %v14860_v17, %v14860_v17  ;;  %v14991_v37 = vrot.slane %v14860_v17, %v17607_v30 }
 0x485   : > { %v14985_v46 = vrot.slane %v7692_v23, %v17607_v30  ;;  %v7726_v22 = vcombine.high %v14862_v63, %v14862_v63  ;;  %v15002_v0 = vrot.slane %v14862_v63, %v17607_v30  ;;  %v7743_v40 = vcombine.high %v14864_v9, %v14864_v9 }
 0x486   : > { %v14996_v62 = vrot.slane %v7709_v4, %v17607_v30  ;;  %v15012_v23 = vrot.slane %v14864_v9, %v17607_v30  ;;  %v7760_v61 = vcombine.high %v14866_v58, %v14866_v58  ;;  %v15030_v9 = vrot.slane %v14866_v58, %v17607_v30 }
 0x487   : > { %v15017_v26 = vrot.slane %v7726_v22, %v17607_v30  ;;  %v15024_v17 = vrot.slane %v7743_v40, %v17607_v30  ;;  %v7777_v22 = vcombine.high %v14868_v38, %v14868_v38  ;;  %v15041_v40 = vrot.slane %v14868_v38, %v17607_v30 }
 0x488   : > { %v15037_v63 = vrot.slane %v7760_v61, %v17607_v30  ;;  %v7794_v55 = vcombine.high %v14870_v43, %v14870_v43  ;;  %v15054_v61 = vrot.slane %v14870_v43, %v17607_v30  ;;  %v7811_v58 = vcombine.high %v14872_v12, %v14872_v12 }
 0x489   : > { %v15050_v45 = vrot.slane %v7777_v22, %v17607_v30  ;;  %v15071_v43 = vrot.slane %v14872_v12, %v17607_v30  ;;  %v7828_v38 = vcombine.high %v14874_v50, %v14874_v50  ;;  %v15082_v2 = vrot.slane %v14874_v50, %v17607_v30 }
 0x48a   : > { %v15061_v3 = vrot.slane %v7794_v55, %v17607_v30  ;;  %v15078_v4 = vrot.slane %v7811_v58, %v17607_v30  ;;  %v7845_v56 = vcombine.high %v14876_v54, %v14876_v54  ;;  %v15093_v8 = vrot.slane %v14876_v54, %v17607_v30 }
 0x48b   : > { %v15089_v22 = vrot.slane %v7828_v38, %v17607_v30  ;;  %v7862_v58 = vcombine.high %v14878_v20, %v14878_v20  ;;  %v15106_v38 = vrot.slane %v14878_v20, %v17607_v30  ;;  %v7879_v50 = vcombine.high %v14880_v47, %v14880_v47 }
 0x48c   : > { %v15102_v5 = vrot.slane %v7845_v56, %v17607_v30  ;;  %v15123_v20 = vrot.slane %v14880_v47, %v17607_v30  ;;  %v7896_v54 = vcombine.high %v14882_v32, %v14882_v32  ;;  %v15134_v11 = vrot.slane %v14882_v32, %v17607_v30 }
 0x48d   : > { %v15113_v25 = vrot.slane %v7862_v58, %v17607_v30  ;;  %v15130_v12 = vrot.slane %v7879_v50, %v17607_v30  ;;  %v7913_v55 = vcombine.high %v14884_v59, %v14884_v59  ;;  %v15145_v52 = vrot.slane %v14884_v59, %v17607_v30 }
 0x48e   : > { %17610 = vst [vmem:[#allocation62_spill] sm:$0xff] %v15134_v11  ;;  %v15141_v56 = vrot.slane %v7896_v54, %v17607_v30  ;;  %v7930_v50 = vcombine.high %v14886_v51, %v14886_v51  ;;  %v15158_v54 = vrot.slane %v14886_v51, %v17607_v30  ;;  %v7947_v32 = vcombine.high %v14888_v19, %v14888_v19 }
 0x48f   : > { %17609 = vst [vmem:[#allocation61_spill] sm:$0xff] %v15130_v12  ;;  %17612 = vst [vmem:[#allocation64_spill] sm:$0xff] %v15145_v52  ;;  %v15154_v35 = vrot.slane %v7913_v55, %v17607_v30  ;;  %v15175_v51 = vrot.slane %v14888_v19, %v17607_v30  ;;  %v7964_v59 = vcombine.high %v14890_v39, %v14890_v39 }
 0x490   : > { %17611 = vst [vmem:[#allocation63_spill] sm:$0xff] %v15141_v56  ;;  %17614 = vst [vmem:[#allocation66_spill] sm:$0xff] %v15158_v54  ;;  %v15165_v27 = vrot.slane %v7930_v50, %v17607_v30  ;;  %v15182_v47 = vrot.slane %v7947_v32, %v17607_v30  ;;  %v15186_v55 = vrot.slane %v14890_v39, %v17607_v30 }
 0x491   : > { %17613 = vst [vmem:[#allocation65_spill] sm:$0xff] %v15154_v35  ;;  %17616 = vst [vmem:[#allocation68_spill] sm:$0xff] %v15175_v51  ;;  %v7981_v58 = vcombine.high %v14892_v24, %v14892_v24  ;;  %v15193_v33 = vrot.slane %v7964_v59, %v17607_v30  ;;  %v15197_v29 = vrot.slane %v14892_v24, %v17607_v30 }
 0x492   : > { %17615 = vst [vmem:[#allocation67_spill] sm:$0xff] %v15165_v27  ;;  %17617 = vst [vmem:[#allocation69_spill] sm:$0xff] %v15182_v47  ;;  %v7998_v32 = vcombine.high %v14894_v48, %v14894_v48  ;;  %v15210_v59 = vrot.slane %v14894_v48, %v17607_v30  ;;  %v8015_v39 = vcombine.high %v14896_v60, %v14896_v60 }
 0x493   : > { %17618 = vst [vmem:[#allocation72_spill] sm:$0xff] %v15186_v55  ;;  %17619 = vst [vmem:[#allocation73_spill] sm:$0xff] %v15193_v33  ;;  %v15206_v27 = vrot.slane %v7981_v58, %v17607_v30  ;;  %v15227_v48 = vrot.slane %v14896_v60, %v17607_v30  ;;  %v8032_v24 = vcombine.high %v14898_v14, %v14898_v14 }
 0x494   : > { %17620 = vst [vmem:[#allocation74_spill] sm:$0xff] %v15197_v29  ;;  %17622 = vst [vmem:[#allocation70_spill] sm:$0xff] %v15210_v59  ;;  %v15217_v51 = vrot.slane %v7998_v32, %v17607_v30  ;;  %v15234_v19 = vrot.slane %v8015_v39, %v17607_v30  ;;  %v15238_v29 = vrot.slane %v14898_v14, %v17607_v30  ;;  %v8246_v32 = vsel %vm8245_vm14, %v14909_v53, -inf }
 0x495   : > { %17621 = vst [vmem:[#allocation75_spill] sm:$0xff] %v15206_v27  ;;  %17624 = vst [vmem:[#allocation59_spill] sm:$0xff] %v15227_v48  ;;  %v8049_v50 = vcombine.high %v14900_v57, %v14900_v57  ;;  %v15245_v58 = vrot.slane %v8032_v24, %v17607_v30  ;;  %v15249_v59 = vrot.slane %v14900_v57, %v17607_v30 }
 0x496   : > { %17623 = vst [vmem:[#allocation71_spill] sm:$0xff] %v15217_v51  ;;  %17625 = vst [vmem:[#allocation60_spill] sm:$0xff] %v15234_v19  ;;  %v8066_v39 = vcombine.high %v14902_v7, %v14902_v7  ;;  %v15262_v24 = vrot.slane %v14902_v7, %v17607_v30  ;;  %v8083_v14 = vcombine.high %v14904_v15, %v14904_v15 }
 0x497   : > { %17626 = vst [vmem:[#allocation76_spill] sm:$0xff] %v15238_v29  ;;  %17627 = vst [vmem:[#allocation77_spill] sm:$0xff] %v15245_v58  ;;  %v15258_v51 = vrot.slane %v8049_v50, %v17607_v30  ;;  %v15279_v7 = vrot.slane %v14904_v15, %v17607_v30  ;;  %v8100_v57 = vcombine.high %v14906_v21, %v14906_v21  ;;  %v8260_v58 = vsel %vm8245_vm14, %v14921_v16, -inf }
 0x498   : > { %17628 = vst [vmem:[#allocation78_spill] sm:$0xff] %v15249_v59  ;;  %17630 = vst [vmem:[#allocation80_spill] sm:$0xff] %v15262_v24  ;;  %v15269_v48 = vrot.slane %v8066_v39, %v17607_v30  ;;  %v15286_v60 = vrot.slane %v8083_v14, %v17607_v30  ;;  %v15290_v59 = vrot.slane %v14906_v21, %v17607_v30  ;;  %v8247_v24 = vrot.slane %v8246_v32, 4 }
 0x499   : > { %17629 = vst [vmem:[#allocation79_spill] sm:$0xff] %v15258_v51  ;;  %17632 = vst [vmem:[#allocation82_spill] sm:$0xff] %v15279_v7  ;;  %v15297_v50 = vrot.slane %v8100_v57, %v17607_v30  ;;  %v17636_v39 = vcombine.high %v14909_v53, %v14909_v53  ;;  %v8261_v15 = vrot.slane %v8260_v58, 4  ;;  %v17637_v53 = vcombine.high %v14921_v16, %v14921_v16 }
 0x49a   : > { %17631 = vst [vmem:[#allocation81_spill] sm:$0xff] %v15269_v48  ;;  %17633 = vst [vmem:[#allocation83_spill] sm:$0xff] %v15286_v60  ;;  %v8248_v57 = vmax.f32 %v8246_v32, %v8247_v24  ;;  %v8274_v48 = vsel %vm8245_vm14, %v14912_v42, -inf  ;;  %v17638_v21 = vcombine.high %v14912_v42, %v14912_v42  ;;  %v8288_v16 = vsel %vm8245_vm14, %v14926_v41, -inf }
 0x49b   : > { %17634 = vst [vmem:[#allocation84_spill] sm:$0xff] %v15290_v59  ;;  %17635 = vst [vmem:[#allocation85_spill] sm:$0xff] %v15297_v50  ;;  %v8253_v14 = vsel %vm8245_vm14, %v17636_v39, -inf  ;;  %v8267_v39 = vsel %vm8245_vm14, %v17637_v53, -inf  ;;  %v8262_v19 = vmax.f32 %v8260_v58, %v8261_v15  ;;  %v8275_v30 = vrot.slane %v8274_v48, 4 }
 0x49c   : > { %v8254_v51 = vrot.slane %v8253_v14, 4  ;;  %v8268_v29 = vrot.slane %v8267_v39, 4  ;;  %v8281_v59 = vsel %vm8245_vm14, %v17638_v21, -inf  ;;  %v8249_v60 = vrot.slane %v8248_v57, 2 }
 0x49d   : > { %v8282_v32 = vrot.slane %v8281_v59, 4  ;;  %v8263_v27 = vrot.slane %v8262_v19, 2  ;;  %v8276_v33 = vmax.f32 %v8274_v48, %v8275_v30  ;;  %v8289_v47 = vrot.slane %v8288_v16, 4 }
 0x49e   : > { %v8255_v7 = vmax.f32 %v8253_v14, %v8254_v51  ;;  %v8269_v50 = vmax.f32 %v8267_v39, %v8268_v29  ;;  %v17639_v51 = vcombine.high %v14926_v41, %v14926_v41  ;;  %v8250_v53 = vmax.f32 %v8248_v57, %v8249_v60 }
 0x49f   : > { %v8283_v42 = vmax.f32 %v8281_v59, %v8282_v32  ;;  %v8264_v54 = vmax.f32 %v8262_v19, %v8263_v27  ;;  %v8277_v35 = vrot.slane %v8276_v33, 2  ;;  %v8290_v56 = vmax.f32 %v8288_v16, %v8289_v47 }
 0x4a0   : > { %v8256_v24 = vrot.slane %v8255_v7, 2  ;;  %v8295_v14 = vsel %vm8245_vm14, %v17639_v51, -inf  ;;  %v8270_v21 = vrot.slane %v8269_v50, 2  ;;  %v8251_v15 = vrot.slane %v8250_v53, 1 }
 0x4a1   : > { %v8296_v58 = vrot.slane %v8295_v14, 4  ;;  %v8284_v29 = vrot.slane %v8283_v42, 2  ;;  %v8265_v41 = vrot.slane %v8264_v54, 1  ;;  %v8278_v51 = vmax.f32 %v8276_v33, %v8277_v35 }
 0x4a2   : > { %v8257_v55 = vmax.f32 %v8255_v7, %v8256_v24  ;;  %v8271_v52 = vmax.f32 %v8269_v50, %v8270_v21  ;;  %v15327_v12 = vmax.f32 %v8250_v53, %v8251_v15  ;;  %v8291_v48 = vrot.slane %v8290_v56, 2 }
 0x4a3   : > { %v8297_v11 = vmax.f32 %v8295_v14, %v8296_v58  ;;  %v8285_v60 = vmax.f32 %v8283_v42, %v8284_v29  ;;  %v15331_v30 = vmax.f32 %v8264_v54, %v8265_v41  ;;  %v8279_v32 = vrot.slane %v8278_v51, 1 }
 0x4a4   : > { %v8258_v39 = vrot.slane %v8257_v55, 1  ;;  %v8272_v59 = vrot.slane %v8271_v52, 1  ;;  %v8302_v19 = vsel %vm8245_vm14, %v14915_v44, -inf  ;;  %v8292_v47 = vmax.f32 %v8290_v56, %v8291_v48 }
 0x4a5   : > { %v8298_v7 = vrot.slane %v8297_v11, 2  ;;  %v8286_v27 = vrot.slane %v8285_v60, 1  ;;  %v8303_v16 = vrot.slane %v8302_v19, 4  ;;  %v15337_v14 = vmax.f32 %v8278_v51, %v8279_v32 }
 0x4a6   : > { %v15329_v57 = vmax.f32 %v8257_v55, %v8258_v39  ;;  %v15335_v50 = vmax.f32 %v8271_v52, %v8272_v59  ;;  %v17643_v35 = vcombine.high %v14915_v44, %v14915_v44  ;;  %v8316_v55 = vsel %vm8245_vm14, %v14931_v31, -inf }
 0x4a7   : > { %v8299_v24 = vmax.f32 %v8297_v11, %v8298_v7  ;;  %17641 = vst [vmem:[#allocation87_spill] sm:$0xff] %v15337_v14  ;;  %v15339_v33 = vmax.f32 %v8285_v60, %v8286_v27  ;;  %v8293_v53 = vrot.slane %v8292_v47, 1  ;;  %v8304_v21 = vmax.f32 %v8302_v19, %v8303_v16 }
 0x4a8   : > { %17640 = vst [vmem:[#allocation86_spill] sm:$0xff] %v15335_v50  ;;  %v8309_v54 = vsel %vm8245_vm14, %v17643_v35, -inf  ;;  %v8317_v58 = vrot.slane %v8316_v55, 4  ;;  %v17644_v11 = vcombine.high %v14931_v31, %v14931_v31  ;;  %v8330_v15 = vsel %vm8245_vm14, %v14918_v36, -inf }
 0x4a9   : > { %17642 = vst [vmem:[#allocation88_spill] sm:$0xff] %v15339_v33  ;;  %v8300_v42 = vrot.slane %v8299_v24, 1  ;;  %v8310_v52 = vrot.slane %v8309_v54, 4  ;;  %v17645_v44 = vcombine.high %v14918_v36, %v14918_v36  ;;  %v15357_v39 = vmax.f32 %v8292_v47, %v8293_v53 }
 0x4aa   : > { %v8323_v56 = vsel %vm8245_vm14, %v17644_v11, -inf  ;;  %v8305_v51 = vrot.slane %v8304_v21, 2  ;;  %v8318_v59 = vmax.f32 %v8316_v55, %v8317_v58  ;;  %v8331_v7 = vrot.slane %v8330_v15, 4 }
 0x4ab   : > { %v8337_v29 = vsel %vm8245_vm14, %v17645_v44, -inf  ;;  %17646 = vst [vmem:[#allocation89_spill] sm:$0xff] %v15357_v39  ;;  %v15359_v41 = vmax.f32 %v8299_v24, %v8300_v42  ;;  %v8311_v60 = vmax.f32 %v8309_v54, %v8310_v52  ;;  %v8324_v48 = vrot.slane %v8323_v56, 4 }
 0x4ac   : > { %v8338_v31 = vrot.slane %v8337_v29, 4  ;;  %v8306_v32 = vmax.f32 %v8304_v21, %v8305_v51  ;;  %v8344_v19 = vsel %vm8245_vm14, %v14936_v6, -inf  ;;  %v17648_v36 = vcombine.high %v14936_v6, %v14936_v6 }
 0x4ad   : > { %17647 = vst [vmem:[#allocation90_spill] sm:$0xff] %v15359_v41  ;;  %v8312_v27 = vrot.slane %v8311_v60, 2  ;;  %v8319_v47 = vrot.slane %v8318_v59, 2  ;;  %v8325_v35 = vmax.f32 %v8323_v56, %v8324_v48  ;;  %v8332_v24 = vmax.f32 %v8330_v15, %v8331_v7 }
 0x4ae   : > { %v8351_v16 = vsel %vm8245_vm14, %v17648_v36, -inf  ;;  %v8339_v53 = vmax.f32 %v8337_v29, %v8338_v31  ;;  %v8307_v42 = vrot.slane %v8306_v32, 1  ;;  %v8345_v55 = vrot.slane %v8344_v19, 4 }
 0x4af   : > { %v8313_v54 = vmax.f32 %v8311_v60, %v8312_v27  ;;  %v8352_v52 = vrot.slane %v8351_v16, 4  ;;  %v8320_v58 = vmax.f32 %v8318_v59, %v8319_v47  ;;  %v8326_v11 = vrot.slane %v8325_v35, 2 }
 0x4b0   : > { %v8333_v21 = vrot.slane %v8332_v24, 2  ;;  %v8340_v44 = vrot.slane %v8339_v53, 2  ;;  %v15367_v51 = vmax.f32 %v8306_v32, %v8307_v42  ;;  %v8346_v39 = vmax.f32 %v8344_v19, %v8345_v55 }
 0x4b1   : > { %v8314_v41 = vrot.slane %v8313_v54, 1  ;;  %v8353_v33 = vmax.f32 %v8351_v16, %v8352_v52  ;;  %v8321_v6 = vrot.slane %v8320_v58, 1  ;;  %v8327_v14 = vmax.f32 %v8325_v35, %v8326_v11 }
 0x4b2   : > { %v8334_v36 = vmax.f32 %v8332_v24, %v8333_v21  ;;  %v8341_v50 = vmax.f32 %v8339_v53, %v8340_v44  ;;  %v8347_v15 = vrot.slane %v8346_v39, 2  ;;  %v8358_v60 = vsel %vm8245_vm14, %v14945_v49, -inf }
 0x4b3   : > { %v15369_v56 = vmax.f32 %v8313_v54, %v8314_v41  ;;  %v8354_v29 = vrot.slane %v8353_v33, 2  ;;  %v15373_v59 = vmax.f32 %v8320_v58, %v8321_v6  ;;  %v8328_v48 = vrot.slane %v8327_v14, 1 }
 0x4b4   : > { %v8335_v7 = vrot.slane %v8334_v36, 1  ;;  %v8342_v31 = vrot.slane %v8341_v50, 1  ;;  %v8348_v32 = vmax.f32 %v8346_v39, %v8347_v15  ;;  %v8359_v19 = vrot.slane %v8358_v60, 4 }
 0x4b5   : > { %v8355_v27 = vmax.f32 %v8353_v33, %v8354_v29  ;;  %v17649_v16 = vcombine.high %v14945_v49, %v14945_v49  ;;  %v15379_v41 = vmax.f32 %v8327_v14, %v8328_v48  ;;  %v8372_v39 = vsel %vm8245_vm14, %v14955_v13, -inf }
 0x4b6   : > { %v15381_v35 = vmax.f32 %v8334_v36, %v8335_v7  ;;  %v15383_v24 = vmax.f32 %v8341_v50, %v8342_v31  ;;  %v8349_v42 = vrot.slane %v8348_v32, 1  ;;  %v8360_v55 = vmax.f32 %v8358_v60, %v8359_v19 }
 0x4b7   : > { %v8365_v47 = vsel %vm8245_vm14, %v17649_v16, -inf  ;;  %v8356_v54 = vrot.slane %v8355_v27, 1  ;;  %v8373_v52 = vrot.slane %v8372_v39, 4  ;;  %v17650_v49 = vcombine.high %v14955_v13, %v14955_v13 }
 0x4b8   : > { %v8366_v53 = vrot.slane %v8365_v47, 4  ;;  %v8386_v14 = vsel %vm8245_vm14, %v14952_v10, -inf  ;;  %v15393_v11 = vmax.f32 %v8348_v32, %v8349_v42  ;;  %v8361_v21 = vrot.slane %v8360_v55, 2 }
 0x4b9   : > { %v8379_v58 = vsel %vm8245_vm14, %v17650_v49, -inf  ;;  %v15395_v50 = vmax.f32 %v8355_v27, %v8356_v54  ;;  %v8374_v36 = vmax.f32 %v8372_v39, %v8373_v52  ;;  %v8387_v15 = vrot.slane %v8386_v14, 4 }
 0x4ba   : > { %v8367_v33 = vmax.f32 %v8365_v47, %v8366_v53  ;;  %v8380_v44 = vrot.slane %v8379_v58, 4  ;;  %v17652_v29 = vcombine.high %v14952_v10, %v14952_v10  ;;  %v8362_v13 = vmax.f32 %v8360_v55, %v8361_v21 }
 0x4bb   : > { %17651 = vst [vmem:[#allocation91_spill] sm:$0xff] %v15395_v50  ;;  %v8400_v31 = vsel %vm8245_vm14, %v14963_v1, -inf  ;;  %v8375_v19 = vrot.slane %v8374_v36, 2  ;;  %v8388_v27 = vmax.f32 %v8386_v14, %v8387_v15  ;;  %v17653_v54 = vcombine.high %v14963_v1, %v14963_v1 }
 0x4bc   : > { %v8368_v6 = vrot.slane %v8367_v33, 2  ;;  %v8393_v60 = vsel %vm8245_vm14, %v17652_v29, -inf  ;;  %v8381_v48 = vmax.f32 %v8379_v58, %v8380_v44  ;;  %v8401_v16 = vrot.slane %v8400_v31, 4 }
 0x4bd   : > { %v8394_v7 = vrot.slane %v8393_v60, 4  ;;  %v8363_v47 = vrot.slane %v8362_v13, 1  ;;  %v8407_v10 = vsel %vm8245_vm14, %v17653_v54, -inf  ;;  %v8376_v52 = vmax.f32 %v8374_v36, %v8375_v19 }
 0x4be   : > { %v8369_v32 = vmax.f32 %v8367_v33, %v8368_v6  ;;  %v8382_v53 = vrot.slane %v8381_v48, 2  ;;  %v8389_v55 = vrot.slane %v8388_v27, 2  ;;  %v8402_v49 = vmax.f32 %v8400_v31, %v8401_v16 }
 0x4bf   : > { %v8395_v42 = vmax.f32 %v8393_v60, %v8394_v7  ;;  %v15407_v58 = vmax.f32 %v8362_v13, %v8363_v47  ;;  %v8408_v33 = vrot.slane %v8407_v10, 4  ;;  %v8377_v14 = vrot.slane %v8376_v52, 1 }
 0x4c0   : > { %v8370_v39 = vrot.slane %v8369_v32, 1  ;;  %v8383_v21 = vmax.f32 %v8381_v48, %v8382_v53  ;;  %v8390_v15 = vmax.f32 %v8388_v27, %v8389_v55  ;;  %v8403_v29 = vrot.slane %v8402_v49, 2 }
 0x4c1   : > { %v8396_v44 = vrot.slane %v8395_v42, 2  ;;  %v8409_v50 = vmax.f32 %v8407_v10, %v8408_v33  ;;  %v8414_v1 = vsel %vm8245_vm14, %v14960_v18, -inf  ;;  %v15413_v54 = vmax.f32 %v8376_v52, %v8377_v14 }
 0x4c2   : > { %v15409_v6 = vmax.f32 %v8369_v32, %v8370_v39  ;;  %v8384_v60 = vrot.slane %v8383_v21, 1  ;;  %v8391_v36 = vrot.slane %v8390_v15, 1  ;;  %v8404_v31 = vmax.f32 %v8402_v49, %v8403_v29 }
 0x4c3   : > { %v8397_v7 = vmax.f32 %v8395_v42, %v8396_v44  ;;  %v8415_v13 = vrot.slane %v8414_v1, 4  ;;  %v8410_v16 = vrot.slane %v8409_v50, 2  ;;  %v17654_v32 = vcombine.high %v14960_v18, %v14960_v18 }
 0x4c4   : > { %v15415_v19 = vmax.f32 %v8383_v21, %v8384_v60  ;;  %v15421_v47 = vmax.f32 %v8390_v15, %v8391_v36  ;;  %v8405_v53 = vrot.slane %v8404_v31, 1  ;;  %v8428_v55 = vsel %vm8245_vm14, %v14976_v28, -inf }
 0x4c5   : > { %v8398_v48 = vrot.slane %v8397_v7, 1  ;;  %v8421_v27 = vsel %vm8245_vm14, %v17654_v32, -inf  ;;  %v8416_v42 = vmax.f32 %v8414_v1, %v8415_v13  ;;  %v8411_v52 = vmax.f32 %v8409_v50, %v8410_v16 }
 0x4c6   : > { %v8422_v10 = vrot.slane %v8421_v27, 4  ;;  %v17656_v49 = vcombine.high %v14976_v28, %v14976_v28  ;;  %v15431_v44 = vmax.f32 %v8404_v31, %v8405_v53  ;;  %v8429_v14 = vrot.slane %v8428_v55, 4 }
 0x4c7   : > { %v15423_v39 = vmax.f32 %v8397_v7, %v8398_v48  ;;  %v8417_v18 = vrot.slane %v8416_v42, 2  ;;  %v8412_v15 = vrot.slane %v8411_v52, 1  ;;  %v8442_v60 = vsel %vm8245_vm14, %v14971_v34, -inf }
 0x4c8   : > { %v8435_v21 = vsel %vm8245_vm14, %v17656_v49, -inf  ;;  %17657 = vst [vmem:[#allocation93_spill] sm:$0xff] %v15431_v44  ;;  %v8423_v33 = vmax.f32 %v8421_v27, %v8422_v10  ;;  %v17658_v50 = vcombine.high %v14971_v34, %v14971_v34  ;;  %v8430_v28 = vmax.f32 %v8428_v55, %v8429_v14 }
 0x4c9   : > { %17655 = vst [vmem:[#allocation92_spill] sm:$0xff] %v15423_v39  ;;  %v8436_v29 = vrot.slane %v8435_v21, 4  ;;  %v8418_v1 = vmax.f32 %v8416_v42, %v8417_v18  ;;  %v8443_v13 = vrot.slane %v8442_v60, 4  ;;  %v15439_v48 = vmax.f32 %v8411_v52, %v8412_v15 }
 0x4ca   : > { %v8449_v7 = vsel %vm8245_vm14, %v17658_v50, -inf  ;;  %v8424_v36 = vrot.slane %v8423_v33, 2  ;;  %v8456_v32 = vsel %vm8245_vm14, %v14985_v46, -inf  ;;  %v8431_v10 = vrot.slane %v8430_v28, 2 }
 0x4cb   : > { %17659 = vst [vmem:[#allocation94_spill] sm:$0xff] %v15439_v48  ;;  %v8437_v31 = vmax.f32 %v8435_v21, %v8436_v29  ;;  %v8450_v16 = vrot.slane %v8449_v7, 4  ;;  %v8419_v27 = vrot.slane %v8418_v1, 1  ;;  %v8444_v49 = vmax.f32 %v8442_v60, %v8443_v13 }
 0x4cc   : > { %v8425_v53 = vmax.f32 %v8423_v33, %v8424_v36  ;;  %v8457_v34 = vrot.slane %v8456_v32, 4  ;;  %v17660_v42 = vcombine.high %v14985_v46, %v14985_v46  ;;  %v8432_v21 = vmax.f32 %v8430_v28, %v8431_v10 }
 0x4cd   : > { %v8438_v44 = vrot.slane %v8437_v31, 2  ;;  %v8451_v39 = vmax.f32 %v8449_v7, %v8450_v16  ;;  %v15447_v18 = vmax.f32 %v8418_v1, %v8419_v27  ;;  %v8445_v14 = vrot.slane %v8444_v49, 2 }
 0x4ce   : > { %v8463_v55 = vsel %vm8245_vm14, %v17660_v42, -inf  ;;  %v8426_v52 = vrot.slane %v8425_v53, 1  ;;  %v8458_v50 = vmax.f32 %v8456_v32, %v8457_v34  ;;  %v8433_v60 = vrot.slane %v8432_v21, 1 }
 0x4cf   : > { %17661 = vst [vmem:[#allocation95_spill] sm:$0xff] %v15447_v18  ;;  %v8439_v15 = vmax.f32 %v8437_v31, %v8438_v44  ;;  %v8452_v29 = vrot.slane %v8451_v39, 2  ;;  %v8464_v48 = vrot.slane %v8463_v55, 4  ;;  %v8446_v36 = vmax.f32 %v8444_v49, %v8445_v14 }
 0x4d0   : > { %v15449_v33 = vmax.f32 %v8425_v53, %v8426_v52  ;;  %v8470_v7 = vsel %vm8245_vm14, %v14991_v37, -inf  ;;  %v8459_v16 = vrot.slane %v8458_v50, 2  ;;  %v15453_v1 = vmax.f32 %v8432_v21, %v8433_v60 }
 0x4d1   : > { %v8440_v13 = vrot.slane %v8439_v15, 1  ;;  %v8453_v46 = vmax.f32 %v8451_v39, %v8452_v29  ;;  %v8465_v42 = vmax.f32 %v8463_v55, %v8464_v48  ;;  %v8447_v27 = vrot.slane %v8446_v36, 1 }
 0x4d2   : > { %v8471_v28 = vrot.slane %v8470_v7, 4  ;;  %v17662_v44 = vcombine.high %v14991_v37, %v14991_v37  ;;  %v8460_v10 = vmax.f32 %v8458_v50, %v8459_v16  ;;  %v8484_v48 = vsel %vm8245_vm14, %v14996_v62, -inf }
 0x4d3   : > { %v15459_v32 = vmax.f32 %v8439_v15, %v8440_v13  ;;  %v8454_v53 = vrot.slane %v8453_v46, 1  ;;  %v8466_v49 = vrot.slane %v8465_v42, 2  ;;  %v15461_v34 = vmax.f32 %v8446_v36, %v8447_v27 }
 0x4d4   : > { %v8477_v31 = vsel %vm8245_vm14, %v17662_v44, -inf  ;;  %v8472_v52 = vmax.f32 %v8470_v7, %v8471_v28  ;;  %v8461_v21 = vrot.slane %v8460_v10, 1  ;;  %v8485_v29 = vrot.slane %v8484_v48, 4 }
 0x4d5   : > { %17663 = vst [vmem:[#allocation96_spill] sm:$0xff] %v15461_v34  ;;  %v8478_v39 = vrot.slane %v8477_v31, 4  ;;  %v15465_v55 = vmax.f32 %v8453_v46, %v8454_v53  ;;  %v8467_v14 = vmax.f32 %v8465_v42, %v8466_v49  ;;  %v17665_v15 = vcombine.high %v14996_v62, %v14996_v62 }
 0x4d6   : > { %v8473_v37 = vrot.slane %v8472_v52, 2  ;;  %v8498_v36 = vsel %vm8245_vm14, %v15002_v0, -inf  ;;  %v15473_v7 = vmax.f32 %v8460_v10, %v8461_v21  ;;  %v8486_v16 = vmax.f32 %v8484_v48, %v8485_v29 }
 0x4d7   : > { %17664 = vst [vmem:[#allocation97_spill] sm:$0xff] %v15465_v55  ;;  %v8479_v60 = vmax.f32 %v8477_v31, %v8478_v39  ;;  %v8491_v50 = vsel %vm8245_vm14, %v17665_v15, -inf  ;;  %v8468_v13 = vrot.slane %v8467_v14, 1  ;;  %v8499_v44 = vrot.slane %v8498_v36, 4 }
 0x4d8   : > { %17666 = vst [vmem:[#allocation98_spill] sm:$0xff] %v15473_v7  ;;  %v8492_v27 = vrot.slane %v8491_v50, 4  ;;  %v8474_v46 = vmax.f32 %v8472_v52, %v8473_v37  ;;  %v17667_v42 = vcombine.high %v15002_v0, %v15002_v0  ;;  %v8487_v62 = vrot.slane %v8486_v16, 2 }
 0x4d9   : > { %v8480_v28 = vrot.slane %v8479_v60, 2  ;;  %v15479_v53 = vmax.f32 %v8467_v14, %v8468_v13  ;;  %v8500_v10 = vmax.f32 %v8498_v36, %v8499_v44  ;;  %v8512_v48 = vsel %vm8245_vm14, %v15017_v26, -inf }
 0x4da   : > { %v8505_v31 = vsel %vm8245_vm14, %v17667_v42, -inf  ;;  %v8493_v49 = vmax.f32 %v8491_v50, %v8492_v27  ;;  %v8475_v15 = vrot.slane %v8474_v46, 1  ;;  %v8488_v21 = vmax.f32 %v8486_v16, %v8487_v62 }
 0x4db   : > { %v8506_v39 = vrot.slane %v8505_v31, 4  ;;  %v8481_v55 = vmax.f32 %v8479_v60, %v8480_v28  ;;  %v8513_v37 = vrot.slane %v8512_v48, 4  ;;  %v8501_v34 = vrot.slane %v8500_v10, 2 }
 0x4dc   : > { %v8494_v52 = vrot.slane %v8493_v49, 2  ;;  %v15483_v7 = vmax.f32 %v8474_v46, %v8475_v15  ;;  %v17669_v14 = vcombine.high %v15017_v26, %v15017_v26  ;;  %v8489_v13 = vrot.slane %v8488_v21, 1 }
 0x4dd   : > { %v8507_v29 = vmax.f32 %v8505_v31, %v8506_v39  ;;  %v8482_v0 = vrot.slane %v8481_v55, 1  ;;  %v8514_v36 = vmax.f32 %v8512_v48, %v8513_v37  ;;  %v8502_v44 = vmax.f32 %v8500_v10, %v8501_v34 }
 0x4de   : > { %17668 = vst [vmem:[#allocation99_spill] sm:$0xff] %v15483_v7  ;;  %v8519_v50 = vsel %vm8245_vm14, %v17669_v14, -inf  ;;  %v8495_v27 = vmax.f32 %v8493_v49, %v8494_v52  ;;  %v8526_v42 = vsel %vm8245_vm14, %v15012_v23, -inf  ;;  %v15493_v46 = vmax.f32 %v8488_v21, %v8489_v13 }
 0x4df   : > { %v8508_v60 = vrot.slane %v8507_v29, 2  ;;  %v15489_v28 = vmax.f32 %v8481_v55, %v8482_v0  ;;  %v8520_v16 = vrot.slane %v8519_v50, 4  ;;  %v8515_v39 = vrot.slane %v8514_v36, 2 }
 0x4e0   : > { %v8496_v31 = vrot.slane %v8495_v27, 1  ;;  %v8503_v15 = vrot.slane %v8502_v44, 1  ;;  %v8527_v7 = vrot.slane %v8526_v42, 4  ;;  %v17670_v49 = vcombine.high %v15012_v23, %v15012_v23 }
 0x4e1   : > { %v8509_v62 = vmax.f32 %v8507_v29, %v8508_v60  ;;  %v8521_v26 = vmax.f32 %v8519_v50, %v8520_v16  ;;  %v8516_v10 = vmax.f32 %v8514_v36, %v8515_v39  ;;  %v8540_v29 = vsel %vm8245_vm14, %v15024_v17, -inf }
 0x4e2   : > { %v8533_v48 = vsel %vm8245_vm14, %v17670_v49, -inf  ;;  %v15499_v55 = vmax.f32 %v8495_v27, %v8496_v31  ;;  %v15501_v37 = vmax.f32 %v8502_v44, %v8503_v15  ;;  %v8528_v0 = vmax.f32 %v8526_v42, %v8527_v7 }
 0x4e3   : > { %v8510_v34 = vrot.slane %v8509_v62, 1  ;;  %v8534_v52 = vrot.slane %v8533_v48, 4  ;;  %v8522_v21 = vrot.slane %v8521_v26, 2  ;;  %v8517_v50 = vrot.slane %v8516_v10, 1 }
 0x4e4   : > { %17671 = vst [vmem:[#allocation100_spill] sm:$0xff] %v15501_v37  ;;  %v8541_v60 = vrot.slane %v8540_v29, 4  ;;  %v8529_v16 = vrot.slane %v8528_v0, 2  ;;  %v17673_v27 = vcombine.high %v15024_v17, %v15024_v17  ;;  %v8554_v44 = vsel %vm8245_vm14, %v15030_v9, -inf }
 0x4e5   : > { %v15505_v14 = vmax.f32 %v8509_v62, %v8510_v34  ;;  %v8535_v13 = vmax.f32 %v8533_v48, %v8534_v52  ;;  %v8523_v23 = vmax.f32 %v8521_v26, %v8522_v21  ;;  %v15513_v31 = vmax.f32 %v8516_v10, %v8517_v50 }
 0x4e6   : > { %v8547_v36 = vsel %vm8245_vm14, %v17673_v27, -inf  ;;  %v8542_v42 = vmax.f32 %v8540_v29, %v8541_v60  ;;  %v8530_v15 = vmax.f32 %v8528_v0, %v8529_v16  ;;  %v8555_v49 = vrot.slane %v8554_v44, 4 }
 0x4e7   : > { %17672 = vst [vmem:[#allocation101_spill] sm:$0xff] %v15505_v14  ;;  %17674 = vst [vmem:[#allocation102_spill] sm:$0xff] %v15513_v31  ;;  %v8536_v7 = vrot.slane %v8535_v13, 2  ;;  %v8548_v39 = vrot.slane %v8547_v36, 4  ;;  %v8524_v62 = vrot.slane %v8523_v23, 1  ;;  %v17675_v26 = vcombine.high %v15030_v9, %v15030_v9 }
 0x4e8   : > { %v8543_v17 = vrot.slane %v8542_v42, 2  ;;  %v8531_v14 = vrot.slane %v8530_v15, 1  ;;  %v8556_v10 = vmax.f32 %v8554_v44, %v8555_v49  ;;  %v8568_v29 = vsel %vm8245_vm14, %v15037_v63, -inf }
 0x4e9   : > { %v8561_v48 = vsel %vm8245_vm14, %v17675_v26, -inf  ;;  %v8537_v34 = vmax.f32 %v8535_v13, %v8536_v7  ;;  %v8549_v52 = vmax.f32 %v8547_v36, %v8548_v39  ;;  %v15519_v27 = vmax.f32 %v8523_v23, %v8524_v62 }
 0x4ea   : > { %v8562_v21 = vrot.slane %v8561_v48, 4  ;;  %v8544_v60 = vmax.f32 %v8542_v42, %v8543_v17  ;;  %v15523_v31 = vmax.f32 %v8530_v15, %v8531_v14  ;;  %v8557_v9 = vrot.slane %v8556_v10, 2 }
 0x4eb   : > { %v8538_v50 = vrot.slane %v8537_v34, 1  ;;  %v8550_v0 = vrot.slane %v8549_v52, 2  ;;  %v8569_v37 = vrot.slane %v8568_v29, 4  ;;  %v17677_v13 = vcombine.high %v15037_v63, %v15037_v63 }
 0x4ec   : > { %v8563_v16 = vmax.f32 %v8561_v48, %v8562_v21  ;;  %17676 = vst [vmem:[#allocation103_spill] sm:$0xff] %v15523_v31  ;;  %v8545_v7 = vrot.slane %v8544_v60, 1  ;;  %v8558_v62 = vmax.f32 %v8556_v10, %v8557_v9  ;;  %v8582_v42 = vsel %vm8245_vm14, %v15041_v40, -inf }
 0x4ed   : > { %v8575_v36 = vsel %vm8245_vm14, %v17677_v13, -inf  ;;  %v15529_v23 = vmax.f32 %v8537_v34, %v8538_v50  ;;  %v8551_v44 = vmax.f32 %v8549_v52, %v8550_v0  ;;  %v8570_v49 = vmax.f32 %v8568_v29, %v8569_v37 }
 0x4ee   : > { %v8564_v39 = vrot.slane %v8563_v16, 2  ;;  %v8576_v26 = vrot.slane %v8575_v36, 4  ;;  %v15533_v14 = vmax.f32 %v8544_v60, %v8545_v7  ;;  %v8583_v17 = vrot.slane %v8582_v42, 4 }
 0x4ef   : > { %v8552_v15 = vrot.slane %v8551_v44, 1  ;;  %v8559_v21 = vrot.slane %v8558_v62, 1  ;;  %v8571_v63 = vrot.slane %v8570_v49, 2  ;;  %v17678_v34 = vcombine.high %v15041_v40, %v15041_v40 }
 0x4f0   : > { %v8565_v48 = vmax.f32 %v8563_v16, %v8564_v39  ;;  %v8577_v31 = vmax.f32 %v8575_v36, %v8576_v26  ;;  %v8584_v10 = vmax.f32 %v8582_v42, %v8583_v17  ;;  %v8596_v16 = vsel %vm8245_vm14, %v15050_v45, -inf }
 0x4f1   : > { %v8589_v52 = vsel %vm8245_vm14, %v17678_v34, -inf  ;;  %v15539_v50 = vmax.f32 %v8551_v44, %v8552_v15  ;;  %v15541_v0 = vmax.f32 %v8558_v62, %v8559_v21  ;;  %v8572_v60 = vmax.f32 %v8570_v49, %v8571_v63 }
 0x4f2   : > { %v8566_v37 = vrot.slane %v8565_v48, 1  ;;  %v8590_v29 = vrot.slane %v8589_v52, 4  ;;  %v8578_v9 = vrot.slane %v8577_v31, 2  ;;  %v8585_v36 = vrot.slane %v8584_v10, 2 }
 0x4f3   : > { %17679 = vst [vmem:[#allocation104_spill] sm:$0xff] %v15541_v0  ;;  %v8597_v39 = vrot.slane %v8596_v16, 4  ;;  %v8573_v40 = vrot.slane %v8572_v60, 1  ;;  %v17681_v44 = vcombine.high %v15050_v45, %v15050_v45  ;;  %v8610_v62 = vsel %vm8245_vm14, %v15054_v61, -inf }
 0x4f4   : > { %v15545_v13 = vmax.f32 %v8565_v48, %v8566_v37  ;;  %v8591_v7 = vmax.f32 %v8589_v52, %v8590_v29  ;;  %v8579_v26 = vmax.f32 %v8577_v31, %v8578_v9  ;;  %v8586_v49 = vmax.f32 %v8584_v10, %v8585_v36 }
 0x4f5   : > { %v8603_v42 = vsel %vm8245_vm14, %v17681_v44, -inf  ;;  %v8598_v17 = vmax.f32 %v8596_v16, %v8597_v39  ;;  %v15553_v63 = vmax.f32 %v8572_v60, %v8573_v40  ;;  %v8611_v34 = vrot.slane %v8610_v62, 4 }
 0x4f6   : > { %17680 = vst [vmem:[#allocation105_spill] sm:$0xff] %v15545_v13  ;;  %v8592_v15 = vrot.slane %v8591_v7, 2  ;;  %v8604_v21 = vrot.slane %v8603_v42, 4  ;;  %v8580_v48 = vrot.slane %v8579_v26, 1  ;;  %v17683_v52 = vcombine.high %v15054_v61, %v15054_v61 }
 0x4f7   : > { %17682 = vst [vmem:[#allocation106_spill] sm:$0xff] %v15553_v63  ;;  %v8587_v37 = vrot.slane %v8586_v49, 1  ;;  %v8599_v29 = vrot.slane %v8598_v17, 2  ;;  %v8612_v13 = vmax.f32 %v8610_v62, %v8611_v34  ;;  %v8624_v16 = vsel %vm8245_vm14, %v15061_v3, -inf }
 0x4f8   : > { %v8617_v31 = vsel %vm8245_vm14, %v17683_v52, -inf  ;;  %v8593_v45 = vmax.f32 %v8591_v7, %v8592_v15  ;;  %v8605_v9 = vmax.f32 %v8603_v42, %v8604_v21  ;;  %v15559_v44 = vmax.f32 %v8579_v26, %v8580_v48 }
 0x4f9   : > { %v8618_v10 = vrot.slane %v8617_v31, 4  ;;  %v15563_v60 = vmax.f32 %v8586_v49, %v8587_v37  ;;  %v8600_v39 = vmax.f32 %v8598_v17, %v8599_v29  ;;  %v8613_v63 = vrot.slane %v8612_v13, 2 }
 0x4fa   : > { %v8594_v36 = vrot.slane %v8593_v45, 1  ;;  %v8606_v40 = vrot.slane %v8605_v9, 2  ;;  %v8625_v0 = vrot.slane %v8624_v16, 4  ;;  %v17685_v7 = vcombine.high %v15061_v3, %v15061_v3 }
 0x4fb   : > { %17684 = vst [vmem:[#allocation107_spill] sm:$0xff] %v15563_v60  ;;  %v8619_v61 = vmax.f32 %v8617_v31, %v8618_v10  ;;  %v8601_v62 = vrot.slane %v8600_v39, 1  ;;  %v8614_v48 = vmax.f32 %v8612_v13, %v8613_v63  ;;  %v8638_v17 = vsel %vm8245_vm14, %v15071_v43, -inf }
 0x4fc   : > { %v8631_v42 = vsel %vm8245_vm14, %v17685_v7, -inf  ;;  %v15569_v26 = vmax.f32 %v8593_v45, %v8594_v36  ;;  %v8607_v15 = vmax.f32 %v8605_v9, %v8606_v40  ;;  %v8626_v49 = vmax.f32 %v8624_v16, %v8625_v0 }
 0x4fd   : > { %v8632_v21 = vrot.slane %v8631_v42, 4  ;;  %v8620_v34 = vrot.slane %v8619_v61, 2  ;;  %v15573_v52 = vmax.f32 %v8600_v39, %v8601_v62  ;;  %v8639_v29 = vrot.slane %v8638_v17, 4 }
 0x4fe   : > { %v8608_v31 = vrot.slane %v8607_v15, 1  ;;  %v8615_v10 = vrot.slane %v8614_v48, 1  ;;  %v8627_v60 = vrot.slane %v8626_v49, 2  ;;  %v17686_v45 = vcombine.high %v15071_v43, %v15071_v43 }
 0x4ff   : > { %v8633_v37 = vmax.f32 %v8631_v42, %v8632_v21  ;;  %v8621_v3 = vmax.f32 %v8619_v61, %v8620_v34  ;;  %v8640_v0 = vmax.f32 %v8638_v17, %v8639_v29  ;;  %v8652_v7 = vsel %vm8245_vm14, %v15078_v4, -inf }
 0x500   : > { %v8645_v9 = vsel %vm8245_vm14, %v17686_v45, -inf  ;;  %v15579_v36 = vmax.f32 %v8607_v15, %v8608_v31  ;;  %v15581_v16 = vmax.f32 %v8614_v48, %v8615_v10  ;;  %v8628_v40 = vmax.f32 %v8626_v49, %v8627_v60 }
 0x501   : > { %v8634_v13 = vrot.slane %v8633_v37, 2  ;;  %v8646_v63 = vrot.slane %v8645_v9, 4  ;;  %v8622_v39 = vrot.slane %v8621_v3, 1  ;;  %v8641_v61 = vrot.slane %v8640_v0, 2 }
 0x502   : > { %17687 = vst [vmem:[#allocation108_spill] sm:$0xff] %v15581_v16  ;;  %v8653_v21 = vrot.slane %v8652_v7, 4  ;;  %v8629_v43 = vrot.slane %v8628_v40, 1  ;;  %v17689_v15 = vcombine.high %v15078_v4, %v15078_v4  ;;  %v8666_v48 = vsel %vm8245_vm14, %v15082_v2, -inf }
 0x503   : > { %v8635_v42 = vmax.f32 %v8633_v37, %v8634_v13  ;;  %v8647_v62 = vmax.f32 %v8645_v9, %v8646_v63  ;;  %v15585_v34 = vmax.f32 %v8621_v3, %v8622_v39  ;;  %v8642_v60 = vmax.f32 %v8640_v0, %v8641_v61 }
 0x504   : > { %v8659_v17 = vsel %vm8245_vm14, %v17689_v15, -inf  ;;  %v8654_v29 = vmax.f32 %v8652_v7, %v8653_v21  ;;  %v15593_v10 = vmax.f32 %v8628_v40, %v8629_v43  ;;  %v8667_v45 = vrot.slane %v8666_v48, 4 }
 0x505   : > { %17688 = vst [vmem:[#allocation109_spill] sm:$0xff] %v15585_v34  ;;  %v8636_v31 = vrot.slane %v8635_v42, 1  ;;  %v8648_v49 = vrot.slane %v8647_v62, 2  ;;  %v8660_v37 = vrot.slane %v8659_v17, 4  ;;  %v17691_v3 = vcombine.high %v15082_v2, %v15082_v2 }
 0x506   : > { %17690 = vst [vmem:[#allocation110_spill] sm:$0xff] %v15593_v10  ;;  %v8643_v4 = vrot.slane %v8642_v60, 1  ;;  %v8655_v39 = vrot.slane %v8654_v29, 2  ;;  %v8668_v34 = vmax.f32 %v8666_v48, %v8667_v45  ;;  %v8680_v0 = vsel %vm8245_vm14, %v15089_v22, -inf }
 0x507   : > { %v8673_v9 = vsel %vm8245_vm14, %v17691_v3, -inf  ;;  %v15599_v13 = vmax.f32 %v8635_v42, %v8636_v31  ;;  %v8649_v63 = vmax.f32 %v8647_v62, %v8648_v49  ;;  %v8661_v15 = vmax.f32 %v8659_v17, %v8660_v37 }
 0x508   : > { %v8674_v16 = vrot.slane %v8673_v9, 4  ;;  %v15603_v40 = vmax.f32 %v8642_v60, %v8643_v4  ;;  %v8656_v61 = vmax.f32 %v8654_v29, %v8655_v39  ;;  %v8681_v21 = vrot.slane %v8680_v0, 4 }
 0x509   : > { %v8650_v7 = vrot.slane %v8649_v63, 1  ;;  %v8662_v43 = vrot.slane %v8661_v15, 2  ;;  %v8669_v2 = vrot.slane %v8668_v34, 2  ;;  %v17693_v42 = vcombine.high %v15089_v22, %v15089_v22 }
 0x50a   : > { %17692 = vst [vmem:[#allocation111_spill] sm:$0xff] %v15603_v40  ;;  %v8675_v10 = vmax.f32 %v8673_v9, %v8674_v16  ;;  %v8657_v17 = vrot.slane %v8656_v61, 1  ;;  %v8682_v48 = vmax.f32 %v8680_v0, %v8681_v21  ;;  %v8694_v29 = vsel %vm8245_vm14, %v15093_v8, -inf }
 0x50b   : > { %v8687_v62 = vsel %vm8245_vm14, %v17693_v42, -inf  ;;  %v15609_v31 = vmax.f32 %v8649_v63, %v8650_v7  ;;  %v8663_v37 = vmax.f32 %v8661_v15, %v8662_v43  ;;  %v8670_v45 = vmax.f32 %v8668_v34, %v8669_v2 }
 0x50c   : > { %v8688_v49 = vrot.slane %v8687_v62, 4  ;;  %v8676_v60 = vrot.slane %v8675_v10, 2  ;;  %v15613_v3 = vmax.f32 %v8656_v61, %v8657_v17  ;;  %v8683_v4 = vrot.slane %v8682_v48, 2 }
 0x50d   : > { %17694 = vst [vmem:[#allocation112_spill] sm:$0xff] %v15609_v31  ;;  %v8695_v9 = vrot.slane %v8694_v29, 4  ;;  %v8664_v39 = vrot.slane %v8663_v37, 1  ;;  %v8671_v22 = vrot.slane %v8670_v45, 1  ;;  %v17696_v63 = vcombine.high %v15093_v8, %v15093_v8 }
 0x50e   : > { %17695 = vst [vmem:[#allocation113_spill] sm:$0xff] %v15613_v3  ;;  %v8689_v16 = vmax.f32 %v8687_v62, %v8688_v49  ;;  %v8677_v40 = vmax.f32 %v8675_v10, %v8676_v60  ;;  %v8684_v7 = vmax.f32 %v8682_v48, %v8683_v4  ;;  %v8708_v42 = vsel %vm8245_vm14, %v15102_v5, -inf }
 0x50f   : > { %v8701_v0 = vsel %vm8245_vm14, %v17696_v63, -inf  ;;  %v8696_v34 = vmax.f32 %v8694_v29, %v8695_v9  ;;  %v15619_v43 = vmax.f32 %v8663_v37, %v8664_v39  ;;  %v15621_v2 = vmax.f32 %v8670_v45, %v8671_v22 }
 0x510   : > { %v8690_v15 = vrot.slane %v8689_v16, 2  ;;  %v8702_v21 = vrot.slane %v8701_v0, 4  ;;  %v8678_v61 = vrot.slane %v8677_v40, 1  ;;  %v8685_v62 = vrot.slane %v8684_v7, 1 }
 0x511   : > { %17697 = vst [vmem:[#allocation114_spill] sm:$0xff] %v15619_v43  ;;  %17698 = vst [vmem:[#allocation115_spill] sm:$0xff] %v15621_v2  ;;  %v8697_v10 = vrot.slane %v8696_v34, 2  ;;  %v8709_v8 = vrot.slane %v8708_v42, 4  ;;  %v17700_v48 = vcombine.high %v15102_v5, %v15102_v5  ;;  %v8722_v37 = vsel %vm8245_vm14, %v15106_v38, -inf }
 0x512   : > { %v8691_v17 = vmax.f32 %v8689_v16, %v8690_v15  ;;  %v8703_v49 = vmax.f32 %v8701_v0, %v8702_v21  ;;  %v15625_v60 = vmax.f32 %v8677_v40, %v8678_v61  ;;  %v15633_v45 = vmax.f32 %v8684_v7, %v8685_v62 }
 0x513   : > { %v8715_v29 = vsel %vm8245_vm14, %v17700_v48, -inf  ;;  %v8698_v9 = vmax.f32 %v8696_v34, %v8697_v10  ;;  %v8710_v22 = vmax.f32 %v8708_v42, %v8709_v8  ;;  %v8723_v63 = vrot.slane %v8722_v37, 4 }
 0x514   : > { %17699 = vst [vmem:[#allocation116_spill] sm:$0xff] %v15625_v60  ;;  %17701 = vst [vmem:[#allocation117_spill] sm:$0xff] %v15633_v45  ;;  %v8692_v4 = vrot.slane %v8691_v17, 1  ;;  %v8704_v39 = vrot.slane %v8703_v49, 2  ;;  %v8716_v16 = vrot.slane %v8715_v29, 4  ;;  %v17702_v40 = vcombine.high %v15106_v38, %v15106_v38 }
 0x515   : > { %v8699_v5 = vrot.slane %v8698_v9, 1  ;;  %v8711_v48 = vrot.slane %v8710_v22, 2  ;;  %v8724_v7 = vmax.f32 %v8722_v37, %v8723_v63  ;;  %v8736_v34 = vsel %vm8245_vm14, %v15113_v25, -inf }
 0x516   : > { %v8729_v0 = vsel %vm8245_vm14, %v17702_v40, -inf  ;;  %v15639_v15 = vmax.f32 %v8691_v17, %v8692_v4  ;;  %v8705_v21 = vmax.f32 %v8703_v49, %v8704_v39  ;;  %v8717_v60 = vmax.f32 %v8715_v29, %v8716_v16 }
 0x517   : > { %v8730_v61 = vrot.slane %v8729_v0, 4  ;;  %v15643_v62 = vmax.f32 %v8698_v9, %v8699_v5  ;;  %v8737_v8 = vrot.slane %v8736_v34, 4  ;;  %v8712_v45 = vmax.f32 %v8710_v22, %v8711_v48 }
 0x518   : > { %17703 = vst [vmem:[#allocation118_spill] sm:$0xff] %v15639_v15  ;;  %v8706_v42 = vrot.slane %v8705_v21, 1  ;;  %v8718_v38 = vrot.slane %v8717_v60, 2  ;;  %v8725_v2 = vrot.slane %v8724_v7, 2  ;;  %v17705_v17 = vcombine.high %v15113_v25, %v15113_v25 }
 0x519   : > { %17704 = vst [vmem:[#allocation119_spill] sm:$0xff] %v15643_v62  ;;  %v8731_v10 = vmax.f32 %v8729_v0, %v8730_v61  ;;  %v8738_v37 = vmax.f32 %v8736_v34, %v8737_v8  ;;  %v8713_v16 = vrot.slane %v8712_v45, 1  ;;  %v8750_v40 = vsel %vm8245_vm14, %v15123_v20, -inf }
 0x51a   : > { %v8743_v49 = vsel %vm8245_vm14, %v17705_v17, -inf  ;;  %v15649_v4 = vmax.f32 %v8705_v21, %v8706_v42  ;;  %v8719_v63 = vmax.f32 %v8717_v60, %v8718_v38  ;;  %v8726_v9 = vmax.f32 %v8724_v7, %v8725_v2  ;;  %v17711_v17 = vld [vmem:[#allocation61_spill] sm:$0xff] }
 0x51b   : > { %v8732_v29 = vrot.slane %v8731_v10, 2  ;;  %v8744_v39 = vrot.slane %v8743_v49, 4  ;;  %v8739_v22 = vrot.slane %v8738_v37, 2  ;;  %v8751_v61 = vrot.slane %v8750_v40, 4 }
 0x51c   : > { %17706 = vst [vmem:[#allocation120_spill] sm:$0xff] %v15649_v4  ;;  %v15653_v48 = vmax.f32 %v8712_v45, %v8713_v16  ;;  %v8720_v25 = vrot.slane %v8719_v63, 1  ;;  %v8727_v62 = vrot.slane %v8726_v9, 1  ;;  %v17708_v21 = vcombine.high %v15123_v20, %v15123_v20 }
 0x51d   : > { %v8733_v0 = vmax.f32 %v8731_v10, %v8732_v29  ;;  %v8745_v5 = vmax.f32 %v8743_v49, %v8744_v39  ;;  %v8740_v8 = vmax.f32 %v8738_v37, %v8739_v22  ;;  %v8752_v2 = vmax.f32 %v8750_v40, %v8751_v61 }
 0x51e   : > { %17707 = vst [vmem:[#allocation121_spill] sm:$0xff] %v15653_v48  ;;  %v8757_v34 = vsel %vm8245_vm14, %v17708_v21, -inf  ;;  %v15659_v7 = vmax.f32 %v8719_v63, %v8720_v25  ;;  %v15661_v38 = vmax.f32 %v8726_v9, %v8727_v62  ;;  %v8764_v45 = vsel %vm8245_vm14, %v17711_v17, -inf  ;;  %v17714_v63 = vld [vmem:[#allocation62_spill] sm:$0xff] }
 0x51f   : > { %v8734_v42 = vrot.slane %v8733_v0, 1  ;;  %v8746_v60 = vrot.slane %v8745_v5, 2  ;;  %v8758_v10 = vrot.slane %v8757_v34, 4  ;;  %v8741_v29 = vrot.slane %v8740_v8, 1 }
 0x520   : > { %17709 = vst [vmem:[#allocation122_spill] sm:$0xff] %v15659_v7  ;;  %17710 = vst [vmem:[#allocation123_spill] sm:$0xff] %v15661_v38  ;;  %v8753_v16 = vrot.slane %v8752_v2, 2  ;;  %v8765_v48 = vrot.slane %v8764_v45, 4  ;;  %v17713_v37 = vcombine.high %v17711_v17, %v17711_v17  ;;  %v8778_v62 = vsel %vm8245_vm14, %v17714_v63, -inf }
 0x521   : > { %v15665_v49 = vmax.f32 %v8733_v0, %v8734_v42  ;;  %v8747_v39 = vmax.f32 %v8745_v5, %v8746_v60  ;;  %v8759_v20 = vmax.f32 %v8757_v34, %v8758_v10  ;;  %v15673_v9 = vmax.f32 %v8740_v8, %v8741_v29  ;;  %v17718_v29 = vld [vmem:[#allocation63_spill] sm:$0xff] }
 0x522   : > { %v8771_v40 = vsel %vm8245_vm14, %v17713_v37, -inf  ;;  %v8754_v61 = vmax.f32 %v8752_v2, %v8753_v16  ;;  %v8766_v21 = vmax.f32 %v8764_v45, %v8765_v48  ;;  %v8779_v42 = vrot.slane %v8778_v62, 4 }
 0x523   : > { %17712 = vst [vmem:[#allocation61_spill] sm:$0xff] %v15665_v49  ;;  %17715 = vst [vmem:[#allocation62_spill] sm:$0xff] %v15673_v9  ;;  %v8748_v22 = vrot.slane %v8747_v39, 1  ;;  %v8772_v25 = vrot.slane %v8771_v40, 4  ;;  %v8760_v0 = vrot.slane %v8759_v20, 2  ;;  %v17716_v5 = vcombine.high %v17714_v63, %v17714_v63 }
 0x524   : > { %v8755_v10 = vrot.slane %v8754_v61, 1  ;;  %v8767_v38 = vrot.slane %v8766_v21, 2  ;;  %v8780_v8 = vmax.f32 %v8778_v62, %v8779_v42  ;;  %v8792_v2 = vsel %vm8245_vm14, %v17718_v29, -inf }
 0x525   : > { %v8785_v34 = vsel %vm8245_vm14, %v17716_v5, -inf  ;;  %v15679_v60 = vmax.f32 %v8747_v39, %v8748_v22  ;;  %v8773_v17 = vmax.f32 %v8771_v40, %v8772_v25  ;;  %v8761_v49 = vmax.f32 %v8759_v20, %v8760_v0  ;;  %v17722_v5 = vld [vmem:[#allocation64_spill] sm:$0xff] }
 0x526   : > { %v8786_v37 = vrot.slane %v8785_v34, 4  ;;  %v15683_v16 = vmax.f32 %v8754_v61, %v8755_v10  ;;  %v8793_v9 = vrot.slane %v8792_v2, 4  ;;  %v8768_v63 = vmax.f32 %v8766_v21, %v8767_v38 }
 0x527   : > { %17717 = vst [vmem:[#allocation124_spill] sm:$0xff] %v15679_v60  ;;  %v8774_v48 = vrot.slane %v8773_v17, 2  ;;  %v8762_v7 = vrot.slane %v8761_v49, 1  ;;  %v8781_v4 = vrot.slane %v8780_v8, 2  ;;  %v17720_v39 = vcombine.high %v17718_v29, %v17718_v29 }
 0x528   : > { %17719 = vst [vmem:[#allocation63_spill] sm:$0xff] %v15683_v16  ;;  %v8787_v45 = vmax.f32 %v8785_v34, %v8786_v37  ;;  %v8794_v25 = vmax.f32 %v8792_v2, %v8793_v9  ;;  %v8769_v42 = vrot.slane %v8768_v63, 1  ;;  %v8806_v34 = vsel %vm8245_vm14, %v17722_v5, -inf }
 0x529   : > { %v8799_v40 = vsel %vm8245_vm14, %v17720_v39, -inf  ;;  %v8775_v22 = vmax.f32 %v8773_v17, %v8774_v48  ;;  %v15689_v0 = vmax.f32 %v8761_v49, %v8762_v7  ;;  %v8782_v61 = vmax.f32 %v8780_v8, %v8781_v4  ;;  %v17727_v39 = vld [vmem:[#allocation65_spill] sm:$0xff] }
 0x52a   : > { %v8788_v20 = vrot.slane %v8787_v45, 2  ;;  %v8800_v62 = vrot.slane %v8799_v40, 4  ;;  %v8795_v38 = vrot.slane %v8794_v25, 2  ;;  %v15693_v16 = vmax.f32 %v8768_v63, %v8769_v42 }
 0x52b   : > { %17721 = vst [vmem:[#allocation125_spill] sm:$0xff] %v15689_v0  ;;  %v8776_v10 = vrot.slane %v8775_v22, 1  ;;  %v8783_v29 = vrot.slane %v8782_v61, 1  ;;  %v8807_v60 = vrot.slane %v8806_v34, 4  ;;  %v17724_v17 = vcombine.high %v17722_v5, %v17722_v5 }
 0x52c   : > { %v8789_v37 = vmax.f32 %v8787_v45, %v8788_v20  ;;  %v8801_v21 = vmax.f32 %v8799_v40, %v8800_v62  ;;  %17723 = vst [vmem:[#allocation64_spill] sm:$0xff] %v15693_v16  ;;  %v8796_v4 = vmax.f32 %v8794_v25, %v8795_v38  ;;  %v8820_v63 = vsel %vm8245_vm14, %v17727_v39, -inf }
 0x52d   : > { %v8813_v9 = vsel %vm8245_vm14, %v17724_v17, -inf  ;;  %v15699_v7 = vmax.f32 %v8775_v22, %v8776_v10  ;;  %v15701_v2 = vmax.f32 %v8782_v61, %v8783_v29  ;;  %v8808_v48 = vmax.f32 %v8806_v34, %v8807_v60  ;;  %v17730_v10 = vld [vmem:[#allocation66_spill] sm:$0xff] }
 0x52e   : > { %v8790_v49 = vrot.slane %v8789_v37, 1  ;;  %v8802_v8 = vrot.slane %v8801_v21, 2  ;;  %v8814_v45 = vrot.slane %v8813_v9, 4  ;;  %v8797_v20 = vrot.slane %v8796_v4, 1 }
 0x52f   : > { %17725 = vst [vmem:[#allocation126_spill] sm:$0xff] %v15699_v7  ;;  %17726 = vst [vmem:[#allocation127_spill] sm:$0xff] %v15701_v2  ;;  %v8821_v42 = vrot.slane %v8820_v63, 4  ;;  %v8809_v5 = vrot.slane %v8808_v48, 2  ;;  %v17729_v22 = vcombine.high %v17727_v39, %v17727_v39  ;;  %v8834_v61 = vsel %vm8245_vm14, %v17730_v10, -inf }
 0x530   : > { %v15705_v40 = vmax.f32 %v8789_v37, %v8790_v49  ;;  %v8803_v62 = vmax.f32 %v8801_v21, %v8802_v8  ;;  %v8815_v16 = vmax.f32 %v8813_v9, %v8814_v45  ;;  %v15713_v60 = vmax.f32 %v8796_v4, %v8797_v20  ;;  %v17734_v20 = vld [vmem:[#allocation67_spill] sm:$0xff] }
 0x531   : > { %v8827_v25 = vsel %vm8245_vm14, %v17729_v22, -inf  ;;  %v8822_v38 = vmax.f32 %v8820_v63, %v8821_v42  ;;  %v8810_v37 = vmax.f32 %v8808_v48, %v8809_v5  ;;  %v8835_v49 = vrot.slane %v8834_v61, 4 }
 0x532   : > { %17728 = vst [vmem:[#allocation65_spill] sm:$0xff] %v15705_v40  ;;  %17731 = vst [vmem:[#allocation66_spill] sm:$0xff] %v15713_v60  ;;  %v8804_v34 = vrot.slane %v8803_v62, 1  ;;  %v8828_v29 = vrot.slane %v8827_v25, 4  ;;  %v8816_v17 = vrot.slane %v8815_v16, 2  ;;  %v17732_v21 = vcombine.high %v17730_v10, %v17730_v10 }
 0x533   : > { %v8823_v45 = vrot.slane %v8822_v38, 2  ;;  %v8811_v40 = vrot.slane %v8810_v37, 1  ;;  %v8836_v4 = vmax.f32 %v8834_v61, %v8835_v49  ;;  %v8848_v63 = vsel %vm8245_vm14, %v17734_v20, -inf }
 0x534   : > { %v8841_v9 = vsel %vm8245_vm14, %v17732_v21, -inf  ;;  %v15719_v8 = vmax.f32 %v8803_v62, %v8804_v34  ;;  %v8829_v39 = vmax.f32 %v8827_v25, %v8828_v29  ;;  %v8817_v2 = vmax.f32 %v8815_v16, %v8816_v17  ;;  %v17738_v21 = vld [vmem:[#allocation68_spill] sm:$0xff] }
 0x535   : > { %v8842_v22 = vrot.slane %v8841_v9, 4  ;;  %v8824_v42 = vmax.f32 %v8822_v38, %v8823_v45  ;;  %v8849_v60 = vrot.slane %v8848_v63, 4  ;;  %v15723_v7 = vmax.f32 %v8810_v37, %v8811_v40 }
 0x536   : > { %17733 = vst [vmem:[#allocation128_spill] sm:$0xff] %v15719_v8  ;;  %v8830_v48 = vrot.slane %v8829_v39, 2  ;;  %v8818_v10 = vrot.slane %v8817_v2, 1  ;;  %v8837_v0 = vrot.slane %v8836_v4, 2  ;;  %v17736_v62 = vcombine.high %v17734_v20, %v17734_v20 }
 0x537   : > { %v8843_v5 = vmax.f32 %v8841_v9, %v8842_v22  ;;  %17735 = vst [vmem:[#allocation67_spill] sm:$0xff] %v15723_v7  ;;  %v8825_v34 = vrot.slane %v8824_v42, 1  ;;  %v8850_v61 = vmax.f32 %v8848_v63, %v8849_v60  ;;  %v8862_v9 = vsel %vm8245_vm14, %v17738_v21, -inf }
 0x538   : > { %v8855_v25 = vsel %vm8245_vm14, %v17736_v62, -inf  ;;  %v8831_v29 = vmax.f32 %v8829_v39, %v8830_v48  ;;  %v15729_v17 = vmax.f32 %v8817_v2, %v8818_v10  ;;  %v8838_v49 = vmax.f32 %v8836_v4, %v8837_v0  ;;  %v17743_v62 = vld [vmem:[#allocation69_spill] sm:$0xff] }
 0x539   : > { %v8844_v16 = vrot.slane %v8843_v5, 2  ;;  %v8856_v38 = vrot.slane %v8855_v25, 4  ;;  %v15733_v40 = vmax.f32 %v8824_v42, %v8825_v34  ;;  %v8851_v22 = vrot.slane %v8850_v61, 2 }
 0x53a   : > { %17737 = vst [vmem:[#allocation129_spill] sm:$0xff] %v15729_v17  ;;  %v8832_v37 = vrot.slane %v8831_v29, 1  ;;  %v8839_v7 = vrot.slane %v8838_v49, 1  ;;  %v8863_v8 = vrot.slane %v8862_v9, 4  ;;  %v17740_v39 = vcombine.high %v17738_v21, %v17738_v21 }
 0x53b   : > { %17739 = vst [vmem:[#allocation68_spill] sm:$0xff] %v15733_v40  ;;  %v8845_v45 = vmax.f32 %v8843_v5, %v8844_v16  ;;  %v8857_v20 = vmax.f32 %v8855_v25, %v8856_v38  ;;  %v8852_v4 = vmax.f32 %v8850_v61, %v8851_v22  ;;  %v8876_v5 = vsel %vm8245_vm14, %v17743_v62, -inf }
 0x53c   : > { %v8869_v60 = vsel %vm8245_vm14, %v17740_v39, -inf  ;;  %v15739_v2 = vmax.f32 %v8831_v29, %v8832_v37  ;;  %v15741_v48 = vmax.f32 %v8838_v49, %v8839_v7  ;;  %v8864_v10 = vmax.f32 %v8862_v9, %v8863_v8  ;;  %v17746_v37 = vld [vmem:[#allocation72_spill] sm:$0xff] }
 0x53d   : > { %v8846_v0 = vrot.slane %v8845_v45, 1  ;;  %v8870_v63 = vrot.slane %v8869_v60, 4  ;;  %v8858_v42 = vrot.slane %v8857_v20, 2  ;;  %v8853_v25 = vrot.slane %v8852_v4, 1 }
 0x53e   : > { %17741 = vst [vmem:[#allocation130_spill] sm:$0xff] %v15739_v2  ;;  %17742 = vst [vmem:[#allocation131_spill] sm:$0xff] %v15741_v48  ;;  %v8877_v38 = vrot.slane %v8876_v5, 4  ;;  %v8865_v40 = vrot.slane %v8864_v10, 2  ;;  %v17745_v29 = vcombine.high %v17743_v62, %v17743_v62  ;;  %v8890_v7 = vsel %vm8245_vm14, %v17746_v37, -inf }
 0x53f   : > { %v15745_v34 = vmax.f32 %v8845_v45, %v8846_v0  ;;  %v8871_v16 = vmax.f32 %v8869_v60, %v8870_v63  ;;  %v8859_v21 = vmax.f32 %v8857_v20, %v8858_v42  ;;  %v15753_v49 = vmax.f32 %v8852_v4, %v8853_v25  ;;  %v17750_v25 = vld [vmem:[#allocation73_spill] sm:$0xff] }
 0x540   : > { %v8883_v61 = vsel %vm8245_vm14, %v17745_v29, -inf  ;;  %v8878_v9 = vmax.f32 %v8876_v5, %v8877_v38  ;;  %v8866_v39 = vmax.f32 %v8864_v10, %v8865_v40  ;;  %v8891_v0 = vrot.slane %v8890_v7, 4 }
 0x541   : > { %17744 = vst [vmem:[#allocation69_spill] sm:$0xff] %v15745_v34  ;;  %17747 = vst [vmem:[#allocation72_spill] sm:$0xff] %v15753_v49  ;;  %v8872_v8 = vrot.slane %v8871_v16, 2  ;;  %v8884_v22 = vrot.slane %v8883_v61, 4  ;;  %v8860_v45 = vrot.slane %v8859_v21, 1  ;;  %v17748_v20 = vcombine.high %v17746_v37, %v17746_v37 }
 0x542   : > { %v8879_v42 = vrot.slane %v8878_v9, 2  ;;  %v8867_v48 = vrot.slane %v8866_v39, 1  ;;  %v8892_v4 = vmax.f32 %v8890_v7, %v8891_v0  ;;  %v8904_v5 = vsel %vm8245_vm14, %v17750_v25, -inf }
 0x543   : > { %v8897_v60 = vsel %vm8245_vm14, %v17748_v20, -inf  ;;  %v8873_v63 = vmax.f32 %v8871_v16, %v8872_v8  ;;  %v8885_v62 = vmax.f32 %v8883_v61, %v8884_v22  ;;  %v15759_v34 = vmax.f32 %v8859_v21, %v8860_v45 }
 0x544   : > { %v8898_v29 = vrot.slane %v8897_v60, 4  ;;  %v8880_v49 = vmax.f32 %v8878_v9, %v8879_v42  ;;  %v15763_v2 = vmax.f32 %v8866_v39, %v8867_v48  ;;  %v8893_v37 = vrot.slane %v8892_v4, 2  ;;  %v17754_v9 = vld [vmem:[#allocation74_spill] sm:$0xff] }
 0x545   : > { %17749 = vst [vmem:[#allocation132_spill] sm:$0xff] %v15759_v34  ;;  %v8874_v38 = vrot.slane %v8873_v63, 1  ;;  %v8886_v40 = vrot.slane %v8885_v62, 2  ;;  %v8905_v17 = vrot.slane %v8904_v5, 4  ;;  %v17752_v16 = vcombine.high %v17750_v25, %v17750_v25 }
 0x546   : > { %v8899_v10 = vmax.f32 %v8897_v60, %v8898_v29  ;;  %17751 = vst [vmem:[#allocation73_spill] sm:$0xff] %v15763_v2  ;;  %v8881_v8 = vrot.slane %v8880_v49, 1  ;;  %v8894_v45 = vmax.f32 %v8892_v4, %v8893_v37  ;;  %v8918_v60 = vsel %vm8245_vm14, %v17754_v9, -inf }
 0x547   : > { %v8911_v61 = vsel %vm8245_vm14, %v17752_v16, -inf  ;;  %v15769_v21 = vmax.f32 %v8873_v63, %v8874_v38  ;;  %v8887_v7 = vmax.f32 %v8885_v62, %v8886_v40  ;;  %v8906_v0 = vmax.f32 %v8904_v5, %v8905_v17  ;;  %v17759_v16 = vld [vmem:[#allocation75_spill] sm:$0xff] }
 0x548   : > { %v8900_v22 = vrot.slane %v8899_v10, 2  ;;  %v8912_v20 = vrot.slane %v8911_v61, 4  ;;  %v15773_v48 = vmax.f32 %v8880_v49, %v8881_v8  ;;  %v8919_v29 = vrot.slane %v8918_v60, 4 }
 0x549   : > { %17753 = vst [vmem:[#allocation133_spill] sm:$0xff] %v15769_v21  ;;  %v8888_v39 = vrot.slane %v8887_v7, 1  ;;  %v8895_v2 = vrot.slane %v8894_v45, 1  ;;  %v8907_v25 = vrot.slane %v8906_v0, 2  ;;  %v17756_v63 = vcombine.high %v17754_v9, %v17754_v9 }
 0x54a   : > { %17755 = vst [vmem:[#allocation74_spill] sm:$0xff] %v15773_v48  ;;  %v8901_v42 = vmax.f32 %v8899_v10, %v8900_v22  ;;  %v8913_v34 = vmax.f32 %v8911_v61, %v8912_v20  ;;  %v8920_v4 = vmax.f32 %v8918_v60, %v8919_v29  ;;  %v8932_v10 = vsel %vm8245_vm14, %v17759_v16, -inf }
 0x54b   : > { %v8925_v62 = vsel %vm8245_vm14, %v17756_v63, -inf  ;;  %v15779_v38 = vmax.f32 %v8887_v7, %v8888_v39  ;;  %v15781_v40 = vmax.f32 %v8894_v45, %v8895_v2  ;;  %v8908_v49 = vmax.f32 %v8906_v0, %v8907_v25  ;;  %v17762_v39 = vld [vmem:[#allocation70_spill] sm:$0xff] }
 0x54c   : > { %v8902_v17 = vrot.slane %v8901_v42, 1  ;;  %v8926_v5 = vrot.slane %v8925_v62, 4  ;;  %v8914_v37 = vrot.slane %v8913_v34, 2  ;;  %v8921_v61 = vrot.slane %v8920_v4, 2 }
 0x54d   : > { %17757 = vst [vmem:[#allocation134_spill] sm:$0xff] %v15779_v38  ;;  %17758 = vst [vmem:[#allocation135_spill] sm:$0xff] %v15781_v40  ;;  %v8933_v20 = vrot.slane %v8932_v10, 4  ;;  %v8909_v9 = vrot.slane %v8908_v49, 1  ;;  %v17761_v7 = vcombine.high %v17759_v16, %v17759_v16  ;;  %v8946_v2 = vsel %vm8245_vm14, %v17762_v39, -inf }
 0x54e   : > { %v15785_v8 = vmax.f32 %v8901_v42, %v8902_v17  ;;  %v8927_v22 = vmax.f32 %v8925_v62, %v8926_v5  ;;  %v8915_v48 = vmax.f32 %v8913_v34, %v8914_v37  ;;  %v8922_v45 = vmax.f32 %v8920_v4, %v8921_v61  ;;  %v17766_v61 = vld [vmem:[#allocation71_spill] sm:$0xff] }
 0x54f   : > { %v8939_v60 = vsel %vm8245_vm14, %v17761_v7, -inf  ;;  %v8934_v29 = vmax.f32 %v8932_v10, %v8933_v20  ;;  %v15793_v63 = vmax.f32 %v8908_v49, %v8909_v9  ;;  %v8947_v17 = vrot.slane %v8946_v2, 4 }
 0x550   : > { %17760 = vst [vmem:[#allocation75_spill] sm:$0xff] %v15785_v8  ;;  %v8928_v0 = vrot.slane %v8927_v22, 2  ;;  %v8940_v25 = vrot.slane %v8939_v60, 4  ;;  %v8916_v42 = vrot.slane %v8915_v48, 1  ;;  %v17764_v62 = vcombine.high %v17762_v39, %v17762_v39 }
 0x551   : > { %17763 = vst [vmem:[#allocation70_spill] sm:$0xff] %v15793_v63  ;;  %v8923_v5 = vrot.slane %v8922_v45, 1  ;;  %v8935_v16 = vrot.slane %v8934_v29, 2  ;;  %v8948_v40 = vmax.f32 %v8946_v2, %v8947_v17  ;;  %v8960_v10 = vsel %vm8245_vm14, %v17766_v61, -inf }
 0x552   : > { %v8953_v34 = vsel %vm8245_vm14, %v17764_v62, -inf  ;;  %v8929_v37 = vmax.f32 %v8927_v22, %v8928_v0  ;;  %v8941_v7 = vmax.f32 %v8939_v60, %v8940_v25  ;;  %v15799_v8 = vmax.f32 %v8915_v48, %v8916_v42  ;;  %v17770_v62 = vld [vmem:[#allocation59_spill] sm:$0xff] }
 0x553   : > { %v8954_v4 = vrot.slane %v8953_v34, 4  ;;  %v15803_v49 = vmax.f32 %v8922_v45, %v8923_v5  ;;  %v8936_v9 = vmax.f32 %v8934_v29, %v8935_v16  ;;  %v8949_v38 = vrot.slane %v8948_v40, 2 }
 0x554   : > { %17765 = vst [vmem:[#allocation136_spill] sm:$0xff] %v15799_v8  ;;  %v8930_v20 = vrot.slane %v8929_v37, 1  ;;  %v8942_v63 = vrot.slane %v8941_v7, 2  ;;  %v8961_v21 = vrot.slane %v8960_v10, 4  ;;  %v17768_v22 = vcombine.high %v17766_v61, %v17766_v61 }
 0x555   : > { %17767 = vst [vmem:[#allocation71_spill] sm:$0xff] %v15803_v49  ;;  %v8955_v39 = vmax.f32 %v8953_v34, %v8954_v4  ;;  %v8937_v2 = vrot.slane %v8936_v9, 1  ;;  %v8950_v42 = vmax.f32 %v8948_v40, %v8949_v38  ;;  %v8974_v29 = vsel %vm8245_vm14, %v17770_v62, -inf }
 0x556   : > { %v8967_v60 = vsel %vm8245_vm14, %v17768_v22, -inf  ;;  %v15809_v48 = vmax.f32 %v8929_v37, %v8930_v20  ;;  %v8943_v0 = vmax.f32 %v8941_v7, %v8942_v63  ;;  %v8962_v45 = vmax.f32 %v8960_v10, %v8961_v21  ;;  %v17775_v22 = vld [vmem:[#allocation60_spill] sm:$0xff] }
 0x557   : > { %v8968_v25 = vrot.slane %v8967_v60, 4  ;;  %v8956_v17 = vrot.slane %v8955_v39, 2  ;;  %v15813_v5 = vmax.f32 %v8936_v9, %v8937_v2  ;;  %v8975_v4 = vrot.slane %v8974_v29, 4 }
 0x558   : > { %17769 = vst [vmem:[#allocation137_spill] sm:$0xff] %v15809_v48  ;;  %v8944_v34 = vrot.slane %v8943_v0, 1  ;;  %v8951_v49 = vrot.slane %v8950_v42, 1  ;;  %v8963_v8 = vrot.slane %v8962_v45, 2  ;;  %v17772_v37 = vcombine.high %v17770_v62, %v17770_v62 }
 0x559   : > { %17771 = vst [vmem:[#allocation59_spill] sm:$0xff] %v15813_v5  ;;  %v8969_v16 = vmax.f32 %v8967_v60, %v8968_v25  ;;  %v8957_v61 = vmax.f32 %v8955_v39, %v8956_v17  ;;  %v8976_v21 = vmax.f32 %v8974_v29, %v8975_v4  ;;  %v8988_v60 = vsel %vm8245_vm14, %v17775_v22, -inf }
 0x55a   : > { %v8981_v63 = vsel %vm8245_vm14, %v17772_v37, -inf  ;;  %v15819_v7 = vmax.f32 %v8943_v0, %v8944_v34  ;;  %v15821_v10 = vmax.f32 %v8950_v42, %v8951_v49  ;;  %v8964_v9 = vmax.f32 %v8962_v45, %v8963_v8  ;;  %v17778_v34 = vld [vmem:[#allocation76_spill] sm:$0xff] }
 0x55b   : > { %v8970_v38 = vrot.slane %v8969_v16, 2  ;;  %v8982_v40 = vrot.slane %v8981_v63, 4  ;;  %v8958_v20 = vrot.slane %v8957_v61, 1  ;;  %v8977_v39 = vrot.slane %v8976_v21, 2 }
 0x55c   : > { %17773 = vst [vmem:[#allocation138_spill] sm:$0xff] %v15819_v7  ;;  %17774 = vst [vmem:[#allocation139_spill] sm:$0xff] %v15821_v10  ;;  %v8989_v17 = vrot.slane %v8988_v60, 4  ;;  %v8965_v62 = vrot.slane %v8964_v9, 1  ;;  %v17777_v0 = vcombine.high %v17775_v22, %v17775_v22  ;;  %v9002_v49 = vsel %vm8245_vm14, %v17778_v34, -inf }
 0x55d   : > { %v8971_v2 = vmax.f32 %v8969_v16, %v8970_v38  ;;  %v8983_v25 = vmax.f32 %v8981_v63, %v8982_v40  ;;  %v15825_v5 = vmax.f32 %v8957_v61, %v8958_v20  ;;  %v8978_v8 = vmax.f32 %v8976_v21, %v8977_v39  ;;  %v17782_v21 = vld [vmem:[#allocation77_spill] sm:$0xff] }
 0x55e   : > { %v8995_v29 = vsel %vm8245_vm14, %v17777_v0, -inf  ;;  %v8990_v4 = vmax.f32 %v8988_v60, %v8989_v17  ;;  %v15833_v37 = vmax.f32 %v8964_v9, %v8965_v62  ;;  %v9003_v63 = vrot.slane %v9002_v49, 4 }
 0x55f   : > { %17776 = vst [vmem:[#allocation60_spill] sm:$0xff] %v15825_v5  ;;  %v8972_v42 = vrot.slane %v8971_v2, 1  ;;  %v8984_v45 = vrot.slane %v8983_v25, 2  ;;  %v8996_v16 = vrot.slane %v8995_v29, 4  ;;  %v17780_v61 = vcombine.high %v17778_v34, %v17778_v34 }
 0x560   : > { %17779 = vst [vmem:[#allocation76_spill] sm:$0xff] %v15833_v37  ;;  %v8979_v20 = vrot.slane %v8978_v8, 1  ;;  %v8991_v0 = vrot.slane %v8990_v4, 2  ;;  %v9004_v10 = vmax.f32 %v9002_v49, %v9003_v63  ;;  %v9016_v60 = vsel %vm8245_vm14, %v17782_v21, -inf }
 0x561   : > { %v9009_v38 = vsel %vm8245_vm14, %v17780_v61, -inf  ;;  %v15839_v40 = vmax.f32 %v8971_v2, %v8972_v42  ;;  %v8985_v22 = vmax.f32 %v8983_v25, %v8984_v45  ;;  %v8997_v5 = vmax.f32 %v8995_v29, %v8996_v16  ;;  %v17786_v61 = vld [vmem:[#allocation78_spill] sm:$0xff] }
 0x562   : > { %v9010_v7 = vrot.slane %v9009_v38, 4  ;;  %v15843_v9 = vmax.f32 %v8978_v8, %v8979_v20  ;;  %v8992_v17 = vmax.f32 %v8990_v4, %v8991_v0  ;;  %v9017_v62 = vrot.slane %v9016_v60, 4 }
 0x563   : > { %17781 = vst [vmem:[#allocation140_spill] sm:$0xff] %v15839_v40  ;;  %v8986_v39 = vrot.slane %v8985_v22, 1  ;;  %v8998_v37 = vrot.slane %v8997_v5, 2  ;;  %v9005_v34 = vrot.slane %v9004_v10, 2  ;;  %v17784_v2 = vcombine.high %v17782_v21, %v17782_v21 }
 0x564   : > { %17783 = vst [vmem:[#allocation77_spill] sm:$0xff] %v15843_v9  ;;  %v9011_v48 = vmax.f32 %v9009_v38, %v9010_v7  ;;  %v8993_v29 = vrot.slane %v8992_v17, 1  ;;  %v9018_v49 = vmax.f32 %v9016_v60, %v9017_v62  ;;  %v9030_v4 = vsel %vm8245_vm14, %v17786_v61, -inf }
 0x565   : > { %v9023_v25 = vsel %vm8245_vm14, %v17784_v2, -inf  ;;  %v15849_v42 = vmax.f32 %v8985_v22, %v8986_v39  ;;  %v8999_v16 = vmax.f32 %v8997_v5, %v8998_v37  ;;  %v9006_v63 = vmax.f32 %v9004_v10, %v9005_v34  ;;  %v17791_v2 = vld [vmem:[#allocation79_spill] sm:$0xff] }
 0x566   : > { %v9024_v45 = vrot.slane %v9023_v25, 4  ;;  %v9012_v8 = vrot.slane %v9011_v48, 2  ;;  %v15853_v20 = vmax.f32 %v8992_v17, %v8993_v29  ;;  %v9019_v0 = vrot.slane %v9018_v49, 2 }
 0x567   : > { %17785 = vst [vmem:[#allocation141_spill] sm:$0xff] %v15849_v42  ;;  %v9031_v38 = vrot.slane %v9030_v4, 4  ;;  %v9000_v9 = vrot.slane %v8999_v16, 1  ;;  %v9007_v21 = vrot.slane %v9006_v63, 1  ;;  %v17788_v22 = vcombine.high %v17786_v61, %v17786_v61 }
 0x568   : > { %17787 = vst [vmem:[#allocation78_spill] sm:$0xff] %v15853_v20  ;;  %v9025_v7 = vmax.f32 %v9023_v25, %v9024_v45  ;;  %v9013_v40 = vmax.f32 %v9011_v48, %v9012_v8  ;;  %v9020_v39 = vmax.f32 %v9018_v49, %v9019_v0  ;;  %v9044_v25 = vsel %vm8245_vm14, %v17791_v2, -inf }
 0x569   : > { %v9037_v60 = vsel %vm8245_vm14, %v17788_v22, -inf  ;;  %v9032_v10 = vmax.f32 %v9030_v4, %v9031_v38  ;;  %v15859_v62 = vmax.f32 %v8999_v16, %v9000_v9  ;;  %v15861_v34 = vmax.f32 %v9006_v63, %v9007_v21  ;;  %v17794_v9 = vld [vmem:[#allocation80_spill] sm:$0xff] }
 0x56a   : > { %v9026_v5 = vrot.slane %v9025_v7, 2  ;;  %v9038_v37 = vrot.slane %v9037_v60, 4  ;;  %v9014_v17 = vrot.slane %v9013_v40, 1  ;;  %v9021_v29 = vrot.slane %v9020_v39, 1 }
 0x56b   : > { %17789 = vst [vmem:[#allocation142_spill] sm:$0xff] %v15859_v62  ;;  %17790 = vst [vmem:[#allocation143_spill] sm:$0xff] %v15861_v34  ;;  %v9033_v48 = vrot.slane %v9032_v10, 2  ;;  %v9045_v61 = vrot.slane %v9044_v25, 4  ;;  %v17793_v49 = vcombine.high %v17791_v2, %v17791_v2  ;;  %v9058_v16 = vsel %vm8245_vm14, %v17794_v9, -inf }
 0x56c   : > { %v9027_v45 = vmax.f32 %v9025_v7, %v9026_v5  ;;  %v9039_v8 = vmax.f32 %v9037_v60, %v9038_v37  ;;  %v15865_v20 = vmax.f32 %v9013_v40, %v9014_v17  ;;  %v15873_v63 = vmax.f32 %v9020_v39, %v9021_v29  ;;  %v17798_v29 = vld [vmem:[#allocation81_spill] sm:$0xff] }
 0x56d   : > { %v9051_v4 = vsel %vm8245_vm14, %v17793_v49, -inf  ;;  %v9034_v38 = vmax.f32 %v9032_v10, %v9033_v48  ;;  %v9046_v22 = vmax.f32 %v9044_v25, %v9045_v61  ;;  %v9059_v5 = vrot.slane %v9058_v16, 4 }
 0x56e   : > { %17792 = vst [vmem:[#allocation79_spill] sm:$0xff] %v15865_v20  ;;  %17795 = vst [vmem:[#allocation80_spill] sm:$0xff] %v15873_v63  ;;  %v9028_v0 = vrot.slane %v9027_v45, 1  ;;  %v9040_v21 = vrot.slane %v9039_v8, 2  ;;  %v9052_v7 = vrot.slane %v9051_v4, 4  ;;  %v17796_v40 = vcombine.high %v17794_v9, %v17794_v9 }
 0x56f   : > { %v9035_v17 = vrot.slane %v9034_v38, 1  ;;  %v9047_v20 = vrot.slane %v9046_v22, 2  ;;  %v9060_v39 = vmax.f32 %v9058_v16, %v9059_v5  ;;  %v9072_v10 = vsel %vm8245_vm14, %v17798_v29, -inf }
 0x570   : > { %v9065_v60 = vsel %vm8245_vm14, %v17796_v40, -inf  ;;  %v15879_v37 = vmax.f32 %v9027_v45, %v9028_v0  ;;  %v9041_v2 = vmax.f32 %v9039_v8, %v9040_v21  ;;  %v9053_v34 = vmax.f32 %v9051_v4, %v9052_v7  ;;  %v17802_v40 = vld [vmem:[#allocation82_spill] sm:$0xff] }
 0x571   : > { %v9066_v49 = vrot.slane %v9065_v60, 4  ;;  %v15883_v48 = vmax.f32 %v9034_v38, %v9035_v17  ;;  %v9073_v63 = vrot.slane %v9072_v10, 4  ;;  %v9048_v62 = vmax.f32 %v9046_v22, %v9047_v20 }
 0x572   : > { %17797 = vst [vmem:[#allocation144_spill] sm:$0xff] %v15879_v37  ;;  %v9042_v25 = vrot.slane %v9041_v2, 1  ;;  %v9054_v9 = vrot.slane %v9053_v34, 2  ;;  %v9061_v42 = vrot.slane %v9060_v39, 2  ;;  %v17800_v45 = vcombine.high %v17798_v29, %v17798_v29 }
 0x573   : > { %17799 = vst [vmem:[#allocation81_spill] sm:$0xff] %v15883_v48  ;;  %v9067_v61 = vmax.f32 %v9065_v60, %v9066_v49  ;;  %v9074_v16 = vmax.f32 %v9072_v10, %v9073_v63  ;;  %v9049_v7 = vrot.slane %v9048_v62, 1  ;;  %v9086_v60 = vsel %vm8245_vm14, %v17802_v40, -inf }
 0x574   : > { %v9079_v8 = vsel %vm8245_vm14, %v17800_v45, -inf  ;;  %v15889_v0 = vmax.f32 %v9041_v2, %v9042_v25  ;;  %v9055_v5 = vmax.f32 %v9053_v34, %v9054_v9  ;;  %v9062_v38 = vmax.f32 %v9060_v39, %v9061_v42  ;;  %v17807_v45 = vld [vmem:[#allocation83_spill] sm:$0xff] }
 0x575   : > { %v9068_v4 = vrot.slane %v9067_v61, 2  ;;  %v9080_v21 = vrot.slane %v9079_v8, 4  ;;  %v9075_v20 = vrot.slane %v9074_v16, 2  ;;  %v9087_v49 = vrot.slane %v9086_v60, 4 }
 0x576   : > { %17801 = vst [vmem:[#allocation145_spill] sm:$0xff] %v15889_v0  ;;  %v15893_v48 = vmax.f32 %v9048_v62, %v9049_v7  ;;  %v9056_v29 = vrot.slane %v9055_v5, 1  ;;  %v9063_v37 = vrot.slane %v9062_v38, 1  ;;  %v17804_v2 = vcombine.high %v17802_v40, %v17802_v40 }
 0x577   : > { %v9069_v17 = vmax.f32 %v9067_v61, %v9068_v4  ;;  %v9081_v22 = vmax.f32 %v9079_v8, %v9080_v21  ;;  %v9076_v25 = vmax.f32 %v9074_v16, %v9075_v20  ;;  %v9088_v42 = vmax.f32 %v9086_v60, %v9087_v49 }
 0x578   : > { %17803 = vst [vmem:[#allocation82_spill] sm:$0xff] %v15893_v48  ;;  %v9093_v63 = vsel %vm8245_vm14, %v17804_v2, -inf  ;;  %v15899_v39 = vmax.f32 %v9055_v5, %v9056_v29  ;;  %v15901_v9 = vmax.f32 %v9062_v38, %v9063_v37  ;;  %v9100_v62 = vsel %vm8245_vm14, %v17807_v45, -inf  ;;  %v17810_v5 = vld [vmem:[#allocation84_spill] sm:$0xff] }
 0x579   : > { %v9070_v10 = vrot.slane %v9069_v17, 1  ;;  %v9082_v34 = vrot.slane %v9081_v22, 2  ;;  %v9094_v61 = vrot.slane %v9093_v63, 4  ;;  %v9077_v4 = vrot.slane %v9076_v25, 1  ;;  %v17892_v15 = vld [vmem:[#allocation144_spill] sm:$0xff] }
 0x57a   : > { %17805 = vst [vmem:[#allocation146_spill] sm:$0xff] %v15899_v39  ;;  %17806 = vst [vmem:[#allocation147_spill] sm:$0xff] %v15901_v9  ;;  %v9089_v7 = vrot.slane %v9088_v42, 2  ;;  %v9101_v48 = vrot.slane %v9100_v62, 4  ;;  %v17809_v16 = vcombine.high %v17807_v45, %v17807_v45  ;;  %v9114_v37 = vsel %vm8245_vm14, %v17810_v5, -inf  ;;  %v17893_v18 = vld [vmem:[#allocation81_spill] sm:$0xff] }
 0x57b   : > { %v15905_v8 = vmax.f32 %v9069_v17, %v9070_v10  ;;  %v9083_v21 = vmax.f32 %v9081_v22, %v9082_v34  ;;  %v9095_v40 = vmax.f32 %v9093_v63, %v9094_v61  ;;  %v15913_v38 = vmax.f32 %v9076_v25, %v9077_v4  ;;  %v17813_v4 = vld [vmem:[#allocation85_spill] sm:$0xff] }
 0x57c   : > { %v9107_v60 = vsel %vm8245_vm14, %v17809_v16, -inf  ;;  %v9090_v49 = vmax.f32 %v9088_v42, %v9089_v7  ;;  %v9102_v2 = vmax.f32 %v9100_v62, %v9101_v48  ;;  %v9115_v10 = vrot.slane %v9114_v37, 4 }
 0x57d   : > { %17808 = vst [vmem:[#allocation83_spill] sm:$0xff] %v15905_v8  ;;  %17811 = vst [vmem:[#allocation84_spill] sm:$0xff] %v15913_v38  ;;  %v9084_v20 = vrot.slane %v9083_v21, 1  ;;  %v9108_v29 = vrot.slane %v9107_v60, 4  ;;  %v9096_v17 = vrot.slane %v9095_v40, 2  ;;  %v17812_v22 = vcombine.high %v17810_v5, %v17810_v5  ;;  %v17894_v31 = vld [vmem:[#allocation145_spill] sm:$0xff] }
 0x57e   : > { %v9091_v61 = vrot.slane %v9090_v49, 1  ;;  %v9103_v9 = vrot.slane %v9102_v2, 2  ;;  %v9116_v25 = vmax.f32 %v9114_v37, %v9115_v10  ;;  %v9128_v42 = vsel %vm8245_vm14, %v17813_v4, -inf }
 0x57f   : > { %v9121_v63 = vsel %vm8245_vm14, %v17812_v22, -inf  ;;  %v15919_v34 = vmax.f32 %v9083_v21, %v9084_v20  ;;  %v9109_v45 = vmax.f32 %v9107_v60, %v9108_v29  ;;  %v9097_v8 = vmax.f32 %v9095_v40, %v9096_v17  ;;  %v17895_v3 = vld [vmem:[#allocation82_spill] sm:$0xff] }
 0x580   : > { %v9122_v16 = vrot.slane %v9121_v63, 4  ;;  %v15923_v7 = vmax.f32 %v9090_v49, %v9091_v61  ;;  %v9129_v38 = vrot.slane %v9128_v42, 4  ;;  %v9104_v5 = vmax.f32 %v9102_v2, %v9103_v9 }
 0x581   : > { %v9110_v48 = vrot.slane %v9109_v45, 2  ;;  %v9098_v39 = vrot.slane %v9097_v8, 1  ;;  %v9117_v0 = vrot.slane %v9116_v25, 2  ;;  %v17814_v21 = vcombine.high %v17813_v4, %v17813_v4  ;;  %v17896_v43 = vld [vmem:[#allocation146_spill] sm:$0xff] }
 0x582   : > { %v9123_v62 = vmax.f32 %v9121_v63, %v9122_v16  ;;  %v9130_v29 = vmax.f32 %v9128_v42, %v9129_v38  ;;  %v9105_v10 = vrot.slane %v9104_v5, 1 }
 0x583   : > { %v9135_v60 = vsel %vm8245_vm14, %v17814_v21, -inf  ;;  %v9111_v20 = vmax.f32 %v9109_v45, %v9110_v48  ;;  %v15929_v17 = vmax.f32 %v9097_v8, %v9098_v39  ;;  %v9118_v49 = vmax.f32 %v9116_v25, %v9117_v0  ;;  %v17816_v48 = vld [vmem:[#allocation86_spill] sm:$0xff]  ;;  %v17817_v21 = vld [vmem:[#allocation87_spill] sm:$0xff] }
 0x584   : > { %v9124_v40 = vrot.slane %v9123_v62, 2  ;;  %v9136_v37 = vrot.slane %v9135_v60, 4  ;;  %v9131_v9 = vrot.slane %v9130_v29, 2  ;;  %v15933_v16 = vmax.f32 %v9104_v5, %v9105_v10  ;;  %v17823_v5 = vld [vmem:[#allocation92_spill] sm:$0xff]  ;;  %v17898_v45 = vld [vmem:[#allocation83_spill] sm:$0xff] }
 0x585   : > { %17815 = vst [vmem:[#allocation85_spill] sm:$0xff] %v15929_v17  ;;  %v9112_v63 = vrot.slane %v9111_v20, 1  ;;  %v9119_v4 = vrot.slane %v9118_v49, 1  ;;  %v17899_v22 = vld [vmem:[#allocation84_spill] sm:$0xff] }
 0x586   : > { %v9125_v61 = vmax.f32 %v9123_v62, %v9124_v40  ;;  %v9137_v2 = vmax.f32 %v9135_v60, %v9136_v37  ;;  %v9132_v0 = vmax.f32 %v9130_v29, %v9131_v9  ;;  %v17818_v60 = vld [vmem:[#allocation88_spill] sm:$0xff]  ;;  %v17820_v29 = vld [vmem:[#allocation90_spill] sm:$0xff]  ;;  %v17897_v62 = vld [vmem:[#allocation147_spill] sm:$0xff] }
 0x587   : > { %v15939_v39 = vmax.f32 %v9111_v20, %v9112_v63  ;;  %v15941_v42 = vmax.f32 %v9118_v49, %v9119_v4  ;;  %v17819_v20 = vld [vmem:[#allocation89_spill] sm:$0xff]  ;;  %v17822_v49 = vld [vmem:[#allocation91_spill] sm:$0xff]  ;;  %v17903_v4 = vpack.c.bf16 %v17816_v48, %v17816_v48  ;;  %v17907_v48 = vpack.c.bf16 %v17820_v29, %v17820_v29 }
 0x588   : > { %v9126_v8 = vrot.slane %v9125_v61, 1  ;;  %v9138_v25 = vrot.slane %v9137_v2, 2  ;;  %v9133_v10 = vrot.slane %v9132_v0, 1  ;;  %v17824_v63 = vld [vmem:[#allocation93_spill] sm:$0xff]  ;;  %v17911_v29 = vpack.c.bf16 %v15379_v41, %v15379_v41 }
 0x589   : > { %v17916_v41 = vpack.c.bf16 %v17822_v49, %v17822_v49  ;;  %v17921_v49 = vpack.c.bf16 %v15415_v19, %v15415_v19 }
 0x58a   : > { %v15949_v37 = vmax.f32 %v9125_v61, %v9126_v8  ;;  %v9139_v38 = vmax.f32 %v9137_v2, %v9138_v25  ;;  %v15961_v40 = vmax.f32 %v9132_v0, %v9133_v10  ;;  %v17901_v8 = vpack.c.bf16 %v15329_v57, %v15329_v57  ;;  %v17928_v0 = vld [vmem:[#allocation95_spill] sm:$0xff] }
 0x58b   : > { %v17902_v25 = vpack.c.bf16 %v15331_v30, %v15331_v30  ;;  %v17905_v57 = vpack.c.bf16 %v17818_v60, %v17818_v60  ;;  %v17906_v30 = vpack.c.bf16 %v17819_v20, %v17819_v20  ;;  %v17909_v60 = vpack.c.bf16 %v15369_v56, %v15369_v56 }
 0x58c   : > { %17821 = vst [vmem:[#allocation86_spill] sm:$0xff] %v15961_v40  ;;  %v9140_v61 = vrot.slane %v9139_v38, 1  ;;  %v16207_v2 = vunpack.c.l.b16 %v17901_v8  ;;  %v16217_v40 = vunpack.c.l.b16 %v17903_v4  ;;  %v16237_v4 = vunpack.c.l.b16 %v17907_v48 }
 0x58d   : > { %v16212_v9 = vunpack.c.l.b16 %v17902_v25  ;;  %v16227_v8 = vunpack.c.l.b16 %v17905_v57  ;;  %v16232_v25 = vunpack.c.l.b16 %v17906_v30  ;;  %v16247_v57 = vunpack.c.l.b16 %v17909_v60 }
 0x58e   : > { %v15975_v10 = vmax.f32 %v9139_v38, %v9140_v61  ;;  %v17825_v38 = vld [vmem:[#allocation94_spill] sm:$0xff]  ;;  %v17900_v61 = vpack.c.bf16 %v15327_v12, %v15327_v12  ;;  %v17904_v12 = vpack.c.bf16 %v17817_v21, %v17817_v21  ;;  %v17908_v21 = vpack.c.bf16 %v15367_v51, %v15367_v51 }
 0x58f   : > { %v17910_v20 = vpack.c.bf16 %v15373_v59, %v15373_v59  ;;  %v16257_v48 = vunpack.c.l.b16 %v17911_v29  ;;  %v17912_v51 = vpack.c.bf16 %v15381_v35, %v15381_v35  ;;  %v17913_v56 = vpack.c.bf16 %v15383_v24, %v15383_v24 }
 0x590   : > { %v16202_v17 = vunpack.c.l.b16 %v17900_v61  ;;  %v16222_v61 = vunpack.c.l.b16 %v17904_v12  ;;  %v16242_v12 = vunpack.c.l.b16 %v17908_v21  ;;  %v17914_v59 = vpack.c.bf16 %v15393_v11, %v15393_v11 }
 0x591   : > { %v16252_v30 = vunpack.c.l.b16 %v17910_v20  ;;  %v16262_v21 = vunpack.c.l.b16 %v17912_v51  ;;  %v16267_v60 = vunpack.c.l.b16 %v17913_v56  ;;  %v16277_v29 = vunpack.c.l.b16 %v17916_v41 }
 0x592   : > { %v16272_v20 = vunpack.c.l.b16 %v17914_v59  ;;  %v17918_v35 = vpack.c.bf16 %v15407_v58, %v15407_v58  ;;  %v17919_v24 = vpack.c.bf16 %v15409_v6, %v15409_v6  ;;  %v17920_v11 = vpack.c.bf16 %v15413_v54, %v15413_v54 }
 0x593   : > { %17917 = vst [vmem:[#allocation88_spill] sm:$0xff] %v16277_v29  ;;  %v16297_v41 = vunpack.c.l.b16 %v17921_v49  ;;  %v17922_v58 = vpack.c.bf16 %v15421_v47, %v15421_v47  ;;  %v17923_v6 = vpack.c.bf16 %v17823_v5, %v17823_v5  ;;  %v17924_v54 = vpack.c.bf16 %v17824_v63, %v17824_v63  ;;  %v17935_v29 = vld [vmem:[#allocation97_spill] sm:$0xff] }
 0x594   : > { %17915 = vst [vmem:[#allocation87_spill] sm:$0xff] %v16272_v20  ;;  %v16282_v51 = vunpack.c.l.b16 %v17918_v35  ;;  %v16287_v56 = vunpack.c.l.b16 %v17919_v24  ;;  %v16292_v59 = vunpack.c.l.b16 %v17920_v11  ;;  %v17926_v19 = vpack.c.bf16 %v17825_v38, %v17825_v38  ;;  %v17941_v20 = vld [vmem:[#allocation99_spill] sm:$0xff] }
 0x595   : > { %v16302_v35 = vunpack.c.l.b16 %v17922_v58  ;;  %v16307_v24 = vunpack.c.l.b16 %v17923_v6  ;;  %v16312_v11 = vunpack.c.l.b16 %v17924_v54  ;;  %v17929_v47 = vpack.c.bf16 %v17928_v0, %v17928_v0 }
 0x596   : > { %v16317_v49 = vunpack.c.l.b16 %v17926_v19  ;;  %v17930_v5 = vpack.c.bf16 %v15449_v33, %v15449_v33  ;;  %v17931_v63 = vpack.c.bf16 %v15453_v1, %v15453_v1  ;;  %v17932_v38 = vpack.c.bf16 %v15459_v32, %v15459_v32 }
 0x597   : > { %17925 = vst [vmem:[#allocation89_spill] sm:$0xff] %v16312_v11  ;;  %v16322_v58 = vunpack.c.l.b16 %v17929_v47  ;;  %v17936_v33 = vpack.c.bf16 %v17935_v29, %v17935_v29  ;;  %v17937_v11 = vld [vmem:[#allocation98_spill] sm:$0xff]  ;;  %v17939_v32 = vpack.c.bf16 %v15479_v53, %v15479_v53  ;;  %v17944_v29 = vpack.c.bf16 %v15489_v28, %v15489_v28 }
 0x598   : > { %17927 = vst [vmem:[#allocation90_spill] sm:$0xff] %v16317_v49  ;;  %v16327_v6 = vunpack.c.l.b16 %v17930_v5  ;;  %v16332_v54 = vunpack.c.l.b16 %v17931_v63  ;;  %v16337_v19 = vunpack.c.l.b16 %v17932_v38  ;;  %v17933_v49 = vld [vmem:[#allocation96_spill] sm:$0xff]  ;;  %v17938_v1 = vpack.c.bf16 %v17937_v11, %v17937_v11 }
 0x599   : > { %v17934_v0 = vpack.c.bf16 %v17933_v49, %v17933_v49  ;;  %v16347_v5 = vunpack.c.l.b16 %v17936_v33  ;;  %v16357_v38 = vunpack.c.l.b16 %v17939_v32  ;;  %v17942_v49 = vpack.c.bf16 %v17941_v20, %v17941_v20 }
 0x59a   : > { %v16352_v63 = vunpack.c.l.b16 %v17938_v1  ;;  %v16367_v33 = vunpack.c.l.b16 %v17944_v29  ;;  %v17946_v11 = vpack.c.bf16 %v15493_v46, %v15493_v46  ;;  %v17947_v53 = vpack.c.bf16 %v15499_v55, %v15499_v55 }
 0x59b   : > { %v16342_v47 = vunpack.c.l.b16 %v17934_v0  ;;  %17940 = vst [vmem:[#allocation91_spill] sm:$0xff] %v16357_v38  ;;  %v16362_v0 = vunpack.c.l.b16 %v17942_v49  ;;  %v17949_v38 = vld [vmem:[#allocation100_spill] sm:$0xff]  ;;  %v17958_v55 = vpack.c.bf16 %v15519_v27, %v15519_v27  ;;  %v17964_v27 = vpack.c.bf16 %v15539_v50, %v15539_v50 }
 0x59c   : > { %17945 = vst [vmem:[#allocation93_spill] sm:$0xff] %v16367_v33  ;;  %v16372_v1 = vunpack.c.l.b16 %v17946_v11  ;;  %v16377_v32 = vunpack.c.l.b16 %v17947_v53  ;;  %v17950_v20 = vpack.c.bf16 %v17949_v38, %v17949_v38  ;;  %v17955_v33 = vld [vmem:[#allocation102_spill] sm:$0xff]  ;;  %v17975_v50 = vpack.c.bf16 %v15559_v44, %v15559_v44 }
 0x59d   : > { %17943 = vst [vmem:[#allocation92_spill] sm:$0xff] %v16362_v0  ;;  %v17952_v0 = vld [vmem:[#allocation101_spill] sm:$0xff]  ;;  %v17956_v46 = vpack.c.bf16 %v17955_v33, %v17955_v33  ;;  %v16397_v53 = vunpack.c.l.b16 %v17958_v55  ;;  %v17963_v33 = vpack.c.bf16 %v15533_v14, %v15533_v14  ;;  %v16417_v55 = vunpack.c.l.b16 %v17964_v27 }
 0x59e   : > { %17948 = vst [vmem:[#allocation94_spill] sm:$0xff] %v16377_v32  ;;  %v16382_v49 = vunpack.c.l.b16 %v17950_v20  ;;  %v17953_v28 = vpack.c.bf16 %v17952_v0, %v17952_v0  ;;  %v17960_v32 = vld [vmem:[#allocation103_spill] sm:$0xff]  ;;  %v17962_v0 = vpack.c.bf16 %v15529_v23, %v15529_v23  ;;  %v16437_v27 = vunpack.c.l.b16 %v17975_v50 }
 0x59f   : > { %v16392_v11 = vunpack.c.l.b16 %v17956_v46  ;;  %17959 = vst [vmem:[#allocation82_spill] sm:$0xff] %v16397_v53  ;;  %v17961_v38 = vpack.c.bf16 %v17960_v32, %v17960_v32  ;;  %v16412_v46 = vunpack.c.l.b16 %v17963_v33  ;;  %17965 = vst [vmem:[#allocation146_spill] sm:$0xff] %v16417_v55  ;;  %v17966_v53 = vld [vmem:[#allocation104_spill] sm:$0xff]  ;;  %v17977_v55 = vld [vmem:[#allocation107_spill] sm:$0xff]  ;;  %v17981_v44 = vpack.c.bf16 %v15579_v36, %v15579_v36 }
 0x5a0   : > { %17951 = vst [vmem:[#allocation144_spill] sm:$0xff] %v16382_v49  ;;  %v16387_v29 = vunpack.c.l.b16 %v17953_v28  ;;  %v16407_v28 = vunpack.c.l.b16 %v17962_v0  ;;  %v17967_v32 = vpack.c.bf16 %v17966_v53, %v17966_v53  ;;  %17976 = vst [vmem:[#allocation95_spill] sm:$0xff] %v16437_v27  ;;  %v17978_v53 = vpack.c.bf16 %v17977_v55, %v17977_v55  ;;  %v17983_v27 = vld [vmem:[#allocation108_spill] sm:$0xff]  ;;  %v18010_v49 = vld [vmem:[#allocation117_spill] sm:$0xff] }
 0x5a1   : > { %17957 = vst [vmem:[#allocation145_spill] sm:$0xff] %v16392_v11  ;;  %v16402_v20 = vunpack.c.l.b16 %v17961_v38  ;;  %v17969_v11 = vld [vmem:[#allocation105_spill] sm:$0xff]  ;;  %v16457_v50 = vunpack.c.l.b16 %v17981_v44  ;;  %v17984_v55 = vpack.c.bf16 %v17983_v27, %v17983_v27  ;;  %v17992_v36 = vpack.c.bf16 %v15599_v13, %v15599_v13 }
 0x5a2   : > { %17954 = vst [vmem:[#allocation81_spill] sm:$0xff] %v16387_v29  ;;  %v16422_v38 = vunpack.c.l.b16 %v17967_v32  ;;  %v17970_v23 = vpack.c.bf16 %v17969_v11, %v17969_v11  ;;  %v17972_v29 = vld [vmem:[#allocation106_spill] sm:$0xff]  ;;  %v16442_v32 = vunpack.c.l.b16 %v17978_v53  ;;  %v17979_v11 = vpack.c.bf16 %v15569_v26, %v15569_v26 }
 0x5a3   : > { %v17973_v14 = vpack.c.bf16 %v17972_v29, %v17972_v29  ;;  %v17980_v29 = vpack.c.bf16 %v15573_v52, %v15573_v52  ;;  %17982 = vst [vmem:[#allocation96_spill] sm:$0xff] %v16457_v50  ;;  %v16462_v53 = vunpack.c.l.b16 %v17984_v55  ;;  %v16477_v44 = vunpack.c.l.b16 %v17992_v36  ;;  %v18007_v50 = vld [vmem:[#allocation116_spill] sm:$0xff] }
 0x5a4   : > { %17968 = vst [vmem:[#allocation147_spill] sm:$0xff] %v16422_v38  ;;  %v16427_v0 = vunpack.c.l.b16 %v17970_v23  ;;  %v16447_v23 = vunpack.c.l.b16 %v17979_v11  ;;  %v17994_v38 = vld [vmem:[#allocation111_spill] sm:$0xff] }
 0x5a5   : > { %v16432_v33 = vunpack.c.l.b16 %v17973_v14  ;;  %v16452_v14 = vunpack.c.l.b16 %v17980_v29  ;;  %17985 = vst [vmem:[#allocation97_spill] sm:$0xff] %v16462_v53  ;;  %17993 = vst [vmem:[#allocation100_spill] sm:$0xff] %v16477_v44  ;;  %v17995_v27 = vpack.c.bf16 %v17994_v38, %v17994_v38  ;;  %v17996_v53 = vld [vmem:[#allocation112_spill] sm:$0xff]  ;;  %v18004_v44 = vld [vmem:[#allocation115_spill] sm:$0xff] }
 0x5a6   : > { %17971 = vst [vmem:[#allocation83_spill] sm:$0xff] %v16427_v0  ;;  %v17989_v0 = vld [vmem:[#allocation110_spill] sm:$0xff]  ;;  %v18005_v38 = vpack.c.bf16 %v18004_v44, %v18004_v44 }
 0x5a7   : > { %17974 = vst [vmem:[#allocation84_spill] sm:$0xff] %v16432_v33  ;;  %v17986_v33 = vld [vmem:[#allocation109_spill] sm:$0xff]  ;;  %v17990_v52 = vpack.c.bf16 %v17989_v0, %v17989_v0  ;;  %v16482_v55 = vunpack.c.l.b16 %v17995_v27 }
 0x5a8   : > { %v17987_v26 = vpack.c.bf16 %v17986_v33, %v17986_v33  ;;  %v17997_v33 = vpack.c.bf16 %v17996_v53, %v17996_v53  ;;  %v16502_v27 = vunpack.c.l.b16 %v18005_v38  ;;  %v18008_v53 = vpack.c.bf16 %v18007_v50, %v18007_v50 }
 0x5a9   : > { %v16472_v29 = vunpack.c.l.b16 %v17990_v52 }
 0x5aa   : > { %v16467_v11 = vunpack.c.l.b16 %v17987_v26  ;;  %v16487_v26 = vunpack.c.l.b16 %v17997_v33  ;;  %18006 = vst [vmem:[#allocation103_spill] sm:$0xff] %v16502_v27  ;;  %v16507_v33 = vunpack.c.l.b16 %v18008_v53  ;;  %v18019_v27 = vld [vmem:[#allocation120_spill] sm:$0xff] }
 0x5ab   : > { %17991 = vst [vmem:[#allocation99_spill] sm:$0xff] %v16472_v29  ;;  %v18001_v29 = vld [vmem:[#allocation114_spill] sm:$0xff]  ;;  %v18020_v50 = vpack.c.bf16 %v18019_v27, %v18019_v27 }
 0x5ac   : > { %17988 = vst [vmem:[#allocation98_spill] sm:$0xff] %v16467_v11  ;;  %v17998_v11 = vld [vmem:[#allocation113_spill] sm:$0xff]  ;;  %v18002_v13 = vpack.c.bf16 %v18001_v29, %v18001_v29  ;;  %18009 = vst [vmem:[#allocation104_spill] sm:$0xff] %v16507_v33 }
 0x5ad   : > { %v17999_v0 = vpack.c.bf16 %v17998_v11, %v17998_v11  ;;  %v18011_v11 = vpack.c.bf16 %v18010_v49, %v18010_v49  ;;  %v16527_v53 = vunpack.c.l.b16 %v18020_v50  ;;  %v18022_v33 = vld [vmem:[#allocation121_spill] sm:$0xff] }
 0x5ae   : > { %v16497_v36 = vunpack.c.l.b16 %v18002_v13  ;;  %v18023_v49 = vpack.c.bf16 %v18022_v33, %v18022_v33 }
 0x5af   : > { %v16492_v52 = vunpack.c.l.b16 %v17999_v0  ;;  %v16512_v0 = vunpack.c.l.b16 %v18011_v11  ;;  %18021 = vst [vmem:[#allocation108_spill] sm:$0xff] %v16527_v53  ;;  %v18034_v53 = vld [vmem:[#allocation62_spill] sm:$0xff] }
 0x5b0   : > { %18003 = vst [vmem:[#allocation102_spill] sm:$0xff] %v16497_v36  ;;  %v18016_v36 = vld [vmem:[#allocation119_spill] sm:$0xff]  ;;  %v16532_v11 = vunpack.c.l.b16 %v18023_v49  ;;  %v18035_v33 = vpack.c.bf16 %v18034_v53, %v18034_v53 }
 0x5b1   : > { %18000 = vst [vmem:[#allocation101_spill] sm:$0xff] %v16492_v52  ;;  %18012 = vst [vmem:[#allocation105_spill] sm:$0xff] %v16512_v0  ;;  %v18013_v52 = vld [vmem:[#allocation118_spill] sm:$0xff]  ;;  %v18017_v44 = vpack.c.bf16 %v18016_v36, %v18016_v36 }
 0x5b2   : > { %v18014_v29 = vpack.c.bf16 %v18013_v52, %v18013_v52  ;;  %18024 = vst [vmem:[#allocation109_spill] sm:$0xff] %v16532_v11  ;;  %v18025_v0 = vld [vmem:[#allocation122_spill] sm:$0xff]  ;;  %v16552_v49 = vunpack.c.l.b16 %v18035_v33  ;;  %v18037_v11 = vld [vmem:[#allocation124_spill] sm:$0xff] }
 0x5b3   : > { %v16522_v38 = vunpack.c.l.b16 %v18017_v44  ;;  %v18026_v52 = vpack.c.bf16 %v18025_v0, %v18025_v0  ;;  %v18038_v0 = vpack.c.bf16 %v18037_v11, %v18037_v11 }
 0x5b4   : > { %v16517_v13 = vunpack.c.l.b16 %v18014_v29  ;;  %18036 = vst [vmem:[#allocation113_spill] sm:$0xff] %v16552_v49  ;;  %v18049_v49 = vld [vmem:[#allocation126_spill] sm:$0xff] }
 0x5b5   : > { %18018 = vst [vmem:[#allocation107_spill] sm:$0xff] %v16522_v38  ;;  %v16537_v29 = vunpack.c.l.b16 %v18026_v52  ;;  %v18031_v38 = vld [vmem:[#allocation61_spill] sm:$0xff]  ;;  %v16557_v52 = vunpack.c.l.b16 %v18038_v0  ;;  %v18050_v11 = vpack.c.bf16 %v18049_v49, %v18049_v49 }
 0x5b6   : > { %18015 = vst [vmem:[#allocation106_spill] sm:$0xff] %v16517_v13  ;;  %v18028_v13 = vld [vmem:[#allocation123_spill] sm:$0xff]  ;;  %v18032_v27 = vpack.c.bf16 %v18031_v38, %v18031_v38 }
 0x5b7   : > { %18027 = vst [vmem:[#allocation110_spill] sm:$0xff] %v16537_v29  ;;  %v18029_v36 = vpack.c.bf16 %v18028_v13, %v18028_v13  ;;  %18039 = vst [vmem:[#allocation114_spill] sm:$0xff] %v16557_v52  ;;  %v18040_v29 = vld [vmem:[#allocation63_spill] sm:$0xff]  ;;  %v16577_v0 = vunpack.c.l.b16 %v18050_v11 }
 0x5b8   : > { %v16547_v50 = vunpack.c.l.b16 %v18032_v27  ;;  %v18041_v13 = vpack.c.bf16 %v18040_v29, %v18040_v29  ;;  %v18052_v52 = vld [vmem:[#allocation127_spill] sm:$0xff] }
 0x5b9   : > { %v16542_v44 = vunpack.c.l.b16 %v18029_v36  ;;  %18051 = vst [vmem:[#allocation118_spill] sm:$0xff] %v16577_v0  ;;  %v18053_v29 = vpack.c.bf16 %v18052_v52, %v18052_v52  ;;  %v18064_v0 = vld [vmem:[#allocation67_spill] sm:$0xff] }
 0x5ba   : > { %18033 = vst [vmem:[#allocation112_spill] sm:$0xff] %v16547_v50  ;;  %v16562_v36 = vunpack.c.l.b16 %v18041_v13  ;;  %v18046_v50 = vld [vmem:[#allocation64_spill] sm:$0xff]  ;;  %v18065_v52 = vpack.c.bf16 %v18064_v0, %v18064_v0 }
 0x5bb   : > { %18030 = vst [vmem:[#allocation111_spill] sm:$0xff] %v16542_v44  ;;  %v18043_v44 = vld [vmem:[#allocation125_spill] sm:$0xff]  ;;  %v18047_v53 = vpack.c.bf16 %v18046_v50, %v18046_v50  ;;  %v16582_v13 = vunpack.c.l.b16 %v18053_v29 }
 0x5bc   : > { %18042 = vst [vmem:[#allocation115_spill] sm:$0xff] %v16562_v36  ;;  %v18044_v38 = vpack.c.bf16 %v18043_v44, %v18043_v44  ;;  %v18055_v36 = vld [vmem:[#allocation65_spill] sm:$0xff]  ;;  %v16602_v29 = vunpack.c.l.b16 %v18065_v52 }
 0x5bd   : > { %v16572_v33 = vunpack.c.l.b16 %v18047_v53  ;;  %18054 = vst [vmem:[#allocation119_spill] sm:$0xff] %v16582_v13  ;;  %v18056_v44 = vpack.c.bf16 %v18055_v36, %v18055_v36  ;;  %v18067_v13 = vld [vmem:[#allocation129_spill] sm:$0xff] }
 0x5be   : > { %v16567_v27 = vunpack.c.l.b16 %v18044_v38  ;;  %18066 = vst [vmem:[#allocation123_spill] sm:$0xff] %v16602_v29  ;;  %v18068_v36 = vpack.c.bf16 %v18067_v13, %v18067_v13  ;;  %v18079_v29 = vld [vmem:[#allocation69_spill] sm:$0xff] }
 0x5bf   : > { %18048 = vst [vmem:[#allocation117_spill] sm:$0xff] %v16572_v33  ;;  %v16587_v38 = vunpack.c.l.b16 %v18056_v44  ;;  %v18061_v33 = vld [vmem:[#allocation128_spill] sm:$0xff]  ;;  %v18080_v13 = vpack.c.bf16 %v18079_v29, %v18079_v29 }
 0x5c0   : > { %18045 = vst [vmem:[#allocation116_spill] sm:$0xff] %v16567_v27  ;;  %v18058_v27 = vld [vmem:[#allocation66_spill] sm:$0xff]  ;;  %v18062_v49 = vpack.c.bf16 %v18061_v33, %v18061_v33  ;;  %v16607_v44 = vunpack.c.l.b16 %v18068_v36 }
 0x5c1   : > { %18057 = vst [vmem:[#allocation120_spill] sm:$0xff] %v16587_v38  ;;  %v18059_v50 = vpack.c.bf16 %v18058_v27, %v18058_v27  ;;  %v18070_v38 = vld [vmem:[#allocation68_spill] sm:$0xff]  ;;  %v16627_v36 = vunpack.c.l.b16 %v18080_v13 }
 0x5c2   : > { %v16597_v11 = vunpack.c.l.b16 %v18062_v49  ;;  %18069 = vst [vmem:[#allocation61_spill] sm:$0xff] %v16607_v44  ;;  %v18071_v27 = vpack.c.bf16 %v18070_v38, %v18070_v38  ;;  %v18082_v44 = vld [vmem:[#allocation72_spill] sm:$0xff] }
 0x5c3   : > { %v16592_v53 = vunpack.c.l.b16 %v18059_v50  ;;  %18081 = vst [vmem:[#allocation125_spill] sm:$0xff] %v16627_v36  ;;  %v18083_v38 = vpack.c.bf16 %v18082_v44, %v18082_v44  ;;  %v18094_v36 = vld [vmem:[#allocation74_spill] sm:$0xff] }
 0x5c4   : > { %18063 = vst [vmem:[#allocation122_spill] sm:$0xff] %v16597_v11  ;;  %v16612_v50 = vunpack.c.l.b16 %v18071_v27  ;;  %v18076_v11 = vld [vmem:[#allocation131_spill] sm:$0xff]  ;;  %v18095_v44 = vpack.c.bf16 %v18094_v36, %v18094_v36 }
 0x5c5   : > { %18060 = vst [vmem:[#allocation121_spill] sm:$0xff] %v16592_v53  ;;  %v18073_v53 = vld [vmem:[#allocation130_spill] sm:$0xff]  ;;  %v18077_v0 = vpack.c.bf16 %v18076_v11, %v18076_v11  ;;  %v16632_v27 = vunpack.c.l.b16 %v18083_v38 }
 0x5c6   : > { %18072 = vst [vmem:[#allocation62_spill] sm:$0xff] %v16612_v50  ;;  %v18074_v33 = vpack.c.bf16 %v18073_v53, %v18073_v53  ;;  %v18085_v50 = vld [vmem:[#allocation132_spill] sm:$0xff]  ;;  %v16652_v38 = vunpack.c.l.b16 %v18095_v44 }
 0x5c7   : > { %v16622_v52 = vunpack.c.l.b16 %v18077_v0  ;;  %18084 = vst [vmem:[#allocation64_spill] sm:$0xff] %v16632_v27  ;;  %v18086_v53 = vpack.c.bf16 %v18085_v50, %v18085_v50  ;;  %v18097_v27 = vld [vmem:[#allocation134_spill] sm:$0xff] }
 0x5c8   : > { %v16617_v49 = vunpack.c.l.b16 %v18074_v33  ;;  %18096 = vst [vmem:[#allocation66_spill] sm:$0xff] %v16652_v38  ;;  %v18098_v50 = vpack.c.bf16 %v18097_v27, %v18097_v27  ;;  %v18109_v38 = vld [vmem:[#allocation136_spill] sm:$0xff] }
 0x5c9   : > { %18078 = vst [vmem:[#allocation63_spill] sm:$0xff] %v16622_v52  ;;  %v16637_v33 = vunpack.c.l.b16 %v18086_v53  ;;  %v18091_v52 = vld [vmem:[#allocation133_spill] sm:$0xff]  ;;  %v18110_v27 = vpack.c.bf16 %v18109_v38, %v18109_v38 }
 0x5ca   : > { %18075 = vst [vmem:[#allocation124_spill] sm:$0xff] %v16617_v49  ;;  %v18088_v49 = vld [vmem:[#allocation73_spill] sm:$0xff]  ;;  %v18092_v29 = vpack.c.bf16 %v18091_v52, %v18091_v52  ;;  %v16657_v53 = vunpack.c.l.b16 %v18098_v50 }
 0x5cb   : > { %18087 = vst [vmem:[#allocation126_spill] sm:$0xff] %v16637_v33  ;;  %v18089_v11 = vpack.c.bf16 %v18088_v49, %v18088_v49  ;;  %v18100_v33 = vld [vmem:[#allocation135_spill] sm:$0xff]  ;;  %v16677_v50 = vunpack.c.l.b16 %v18110_v27 }
 0x5cc   : > { %v16647_v13 = vunpack.c.l.b16 %v18092_v29  ;;  %18099 = vst [vmem:[#allocation128_spill] sm:$0xff] %v16657_v53  ;;  %v18101_v49 = vpack.c.bf16 %v18100_v33, %v18100_v33  ;;  %v18112_v53 = vld [vmem:[#allocation71_spill] sm:$0xff] }
 0x5cd   : > { %v16642_v0 = vunpack.c.l.b16 %v18089_v11  ;;  %18111 = vst [vmem:[#allocation130_spill] sm:$0xff] %v16677_v50  ;;  %v18113_v33 = vpack.c.bf16 %v18112_v53, %v18112_v53  ;;  %v18124_v50 = vld [vmem:[#allocation139_spill] sm:$0xff] }
 0x5ce   : > { %18093 = vst [vmem:[#allocation65_spill] sm:$0xff] %v16647_v13  ;;  %v16662_v11 = vunpack.c.l.b16 %v18101_v49  ;;  %v18106_v13 = vld [vmem:[#allocation70_spill] sm:$0xff]  ;;  %v18125_v53 = vpack.c.bf16 %v18124_v50, %v18124_v50 }
 0x5cf   : > { %18090 = vst [vmem:[#allocation127_spill] sm:$0xff] %v16642_v0  ;;  %v18103_v0 = vld [vmem:[#allocation75_spill] sm:$0xff]  ;;  %v18107_v36 = vpack.c.bf16 %v18106_v13, %v18106_v13  ;;  %v16682_v49 = vunpack.c.l.b16 %v18113_v33 }
 0x5d0   : > { %18102 = vst [vmem:[#allocation67_spill] sm:$0xff] %v16662_v11  ;;  %v18104_v52 = vpack.c.bf16 %v18103_v0, %v18103_v0  ;;  %v18115_v11 = vld [vmem:[#allocation137_spill] sm:$0xff]  ;;  %v16702_v33 = vunpack.c.l.b16 %v18125_v53 }
 0x5d1   : > { %v16672_v44 = vunpack.c.l.b16 %v18107_v36  ;;  %18114 = vst [vmem:[#allocation131_spill] sm:$0xff] %v16682_v49  ;;  %v18116_v0 = vpack.c.bf16 %v18115_v11, %v18115_v11  ;;  %v18127_v49 = vld [vmem:[#allocation60_spill] sm:$0xff] }
 0x5d2   : > { %v16667_v29 = vunpack.c.l.b16 %v18104_v52  ;;  %18126 = vst [vmem:[#allocation73_spill] sm:$0xff] %v16702_v33  ;;  %v18128_v11 = vpack.c.bf16 %v18127_v49, %v18127_v49  ;;  %v18139_v33 = vld [vmem:[#allocation141_spill] sm:$0xff] }
 0x5d3   : > { %18108 = vst [vmem:[#allocation68_spill] sm:$0xff] %v16672_v44  ;;  %v16687_v52 = vunpack.c.l.b16 %v18116_v0  ;;  %v18121_v44 = vld [vmem:[#allocation138_spill] sm:$0xff]  ;;  %v18140_v49 = vpack.c.bf16 %v18139_v33, %v18139_v33 }
 0x5d4   : > { %18105 = vst [vmem:[#allocation129_spill] sm:$0xff] %v16667_v29  ;;  %v18118_v29 = vld [vmem:[#allocation59_spill] sm:$0xff]  ;;  %v18122_v38 = vpack.c.bf16 %v18121_v44, %v18121_v44  ;;  %v16707_v0 = vunpack.c.l.b16 %v18128_v11 }
 0x5d5   : > { %18117 = vst [vmem:[#allocation69_spill] sm:$0xff] %v16687_v52  ;;  %v18119_v13 = vpack.c.bf16 %v18118_v29, %v18118_v29  ;;  %v18130_v52 = vld [vmem:[#allocation76_spill] sm:$0xff]  ;;  %v16727_v11 = vunpack.c.l.b16 %v18140_v49 }
 0x5d6   : > { %v16697_v27 = vunpack.c.l.b16 %v18122_v38  ;;  %18129 = vst [vmem:[#allocation133_spill] sm:$0xff] %v16707_v0  ;;  %v18131_v29 = vpack.c.bf16 %v18130_v52, %v18130_v52  ;;  %v18142_v0 = vld [vmem:[#allocation78_spill] sm:$0xff] }
 0x5d7   : > { %v16692_v36 = vunpack.c.l.b16 %v18119_v13  ;;  %18141 = vst [vmem:[#allocation75_spill] sm:$0xff] %v16727_v11  ;;  %v18143_v52 = vpack.c.bf16 %v18142_v0, %v18142_v0  ;;  %v18150_v11 = vld [vmem:[#allocation80_spill] sm:$0xff] }
 0x5d8   : > { %18123 = vst [vmem:[#allocation132_spill] sm:$0xff] %v16697_v27  ;;  %v16712_v13 = vunpack.c.l.b16 %v18131_v29  ;;  %v18136_v27 = vld [vmem:[#allocation77_spill] sm:$0xff]  ;;  %v18151_v0 = vpack.c.bf16 %v18150_v11, %v18150_v11  ;;  %v18156_v11 = vpack.c.bf16 %v17895_v3, %v17895_v3  ;;  %v18160_v3 = vpack.c.bf16 %v17899_v22, %v17899_v22 }
 0x5d9   : > { %18120 = vst [vmem:[#allocation72_spill] sm:$0xff] %v16692_v36  ;;  %v18133_v36 = vld [vmem:[#allocation140_spill] sm:$0xff]  ;;  %v18137_v50 = vpack.c.bf16 %v18136_v27, %v18136_v27  ;;  %v16732_v29 = vunpack.c.l.b16 %v18143_v52  ;;  %v18166_v22 = vpack.c.bf16 %v15933_v16, %v15933_v16 }
 0x5da   : > { %18132 = vst [vmem:[#allocation74_spill] sm:$0xff] %v16712_v13  ;;  %v18134_v44 = vpack.c.bf16 %v18133_v36, %v18133_v36  ;;  %v18144_v13 = vld [vmem:[#allocation142_spill] sm:$0xff]  ;;  %v16752_v52 = vunpack.c.l.b16 %v18151_v0  ;;  %v16772_v0 = vunpack.c.l.b16 %v18156_v11  ;;  %v16792_v11 = vunpack.c.l.b16 %v18160_v3 }
 0x5db   : > { %v16722_v53 = vunpack.c.l.b16 %v18137_v50  ;;  %v18145_v36 = vpack.c.bf16 %v18144_v13, %v18144_v13  ;;  %v18152_v13 = vpack.c.bf16 %v17892_v15, %v17892_v15  ;;  %v18157_v15 = vpack.c.bf16 %v17896_v43, %v17896_v43 }
 0x5dc   : > { %v16717_v38 = vunpack.c.l.b16 %v18134_v44  ;;  %v18161_v43 = vpack.c.bf16 %v15919_v34, %v15919_v34  ;;  %v16812_v3 = vunpack.c.l.b16 %v18166_v22  ;;  %v18167_v34 = vpack.c.bf16 %v15939_v39, %v15939_v39 }
 0x5dd   : > { %18138 = vst [vmem:[#allocation135_spill] sm:$0xff] %v16722_v53  ;;  %v16737_v44 = vunpack.c.l.b16 %v18145_v36  ;;  %v18148_v53 = vld [vmem:[#allocation79_spill] sm:$0xff]  ;;  %v16757_v36 = vunpack.c.l.b16 %v18152_v13  ;;  %v16777_v13 = vunpack.c.l.b16 %v18157_v15  ;;  %v18172_v39 = vpack.c.bf16 %v15975_v10, %v15975_v10 }
 0x5de   : > { %18135 = vst [vmem:[#allocation134_spill] sm:$0xff] %v16717_v38  ;;  %v18146_v38 = vld [vmem:[#allocation143_spill] sm:$0xff]  ;;  %v18149_v33 = vpack.c.bf16 %v18148_v53, %v18148_v53  ;;  %v18155_v53 = vpack.c.bf16 %v17894_v31, %v17894_v31  ;;  %v18159_v31 = vpack.c.bf16 %v17898_v45, %v17898_v45  ;;  %v16797_v15 = vunpack.c.l.b16 %v18161_v43 }
 0x5df   : > { %v18147_v27 = vpack.c.bf16 %v18146_v38, %v18146_v38  ;;  %18153 = vst [vmem:[#allocation70_spill] sm:$0xff] %v16757_v36  ;;  %v18154_v38 = vpack.c.bf16 %v17893_v18, %v17893_v18  ;;  %v18158_v18 = vpack.c.bf16 %v17897_v62, %v17897_v62  ;;  %v18163_v62 = vpack.c.bf16 %v15923_v7, %v15923_v7  ;;  %v18164_v36 = vld [vmem:[#allocation85_spill] sm:$0xff] }
 0x5e0   : > { %v16747_v49 = vunpack.c.l.b16 %v18149_v33  ;;  %v16767_v33 = vunpack.c.l.b16 %v18155_v53  ;;  %v16787_v53 = vunpack.c.l.b16 %v18159_v31  ;;  %18162 = vst [vmem:[#allocation136_spill] sm:$0xff] %v16797_v15  ;;  %v18165_v45 = vpack.c.bf16 %v18164_v36, %v18164_v36  ;;  %v18170_v15 = vld [vmem:[#allocation86_spill] sm:$0xff] }
 0x5e1   : > { %v16742_v50 = vunpack.c.l.b16 %v18147_v27  ;;  %v16762_v27 = vunpack.c.l.b16 %v18154_v38  ;;  %v16782_v38 = vunpack.c.l.b16 %v18158_v18  ;;  %v16802_v18 = vunpack.c.l.b16 %v18163_v62 }
 0x5e2   : > { %v16807_v31 = vunpack.c.l.b16 %v18165_v45  ;;  %v16817_v43 = vunpack.c.l.b16 %v18167_v34  ;;  %v18168_v7 = vpack.c.bf16 %v15941_v42, %v15941_v42  ;;  %v18169_v36 = vpack.c.bf16 %v15949_v37, %v15949_v37 }
 0x5e3   : > { %v18171_v16 = vpack.c.bf16 %v18170_v15, %v18170_v15  ;;  %v16837_v34 = vunpack.c.l.b16 %v18172_v39  ;;  %v9783_v42 = vsel %vm9782_vm15, %v16207_v2, %v16202_v17  ;;  %v9796_v10 = vsel %vm9782_vm15, %v16247_v57, %v16242_v12  ;;  %v18178_v39 = vld [vmem:[#allocation92_spill] sm:$0xff] }
 0x5e4   : > { %v16822_v62 = vunpack.c.l.b16 %v18168_v7  ;;  %v16827_v45 = vunpack.c.l.b16 %v18169_v36  ;;  %v9785_v37 = vsel %vm9784_vm0, %v16212_v9, %v9783_v42  ;;  %v9803_v15 = vsel %vm9782_vm15, %v16287_v56, %v16282_v51  ;;  %v18179_v42 = vld [vmem:[#allocation93_spill] sm:$0xff] }
 0x5e5   : > { %v16832_v22 = vunpack.c.l.b16 %v18171_v16  ;;  %v9810_v7 = vsel %vm9782_vm15, %v16327_v6, %v16322_v58  ;;  %v9787_v17 = vsel %vm9786_vm1, %v16217_v40, %v9785_v37  ;;  %v9797_v2 = vsel %vm9784_vm0, %v16252_v30, %v9796_v10  ;;  %v18177_v16 = vld [vmem:[#allocation91_spill] sm:$0xff] }
 0x5e6   : > { %v9804_v9 = vsel %vm9784_vm0, %v16292_v59, %v9803_v15  ;;  %v9811_v12 = vsel %vm9784_vm0, %v16332_v54, %v9810_v7  ;;  %v9789_v57 = vsel %vm9788_vm2, %v16222_v61, %v9787_v17  ;;  %v9798_v51 = vsel %vm9786_vm1, %v16257_v48, %v9797_v2  ;;  %v18180_v17 = vld [vmem:[#allocation94_spill] sm:$0xff] }
 0x5e7   : > { %v9805_v56 = vsel %vm9786_vm1, %v16297_v41, %v9804_v9  ;;  %v9812_v40 = vsel %vm9786_vm1, %v16337_v19, %v9811_v12  ;;  %v9791_v30 = vsel %vm9790_vm3, %v16227_v8, %v9789_v57  ;;  %v9799_v59 = vsel %vm9788_vm2, %v16262_v21, %v9798_v51  ;;  %v18174_v19 = vld [vmem:[#allocation89_spill] sm:$0xff]  ;;  %v18184_v51 = vld [vmem:[#allocation96_spill] sm:$0xff] }
 0x5e8   : > { %v9806_v58 = vsel %vm9788_vm2, %v16302_v35, %v9805_v56  ;;  %v9813_v61 = vsel %vm9788_vm2, %v16342_v47, %v9812_v40  ;;  %v9793_v48 = vsel %vm9792_vm4, %v16232_v25, %v9791_v30  ;;  %v9800_v41 = vsel %vm9790_vm3, %v16267_v60, %v9799_v59  ;;  %v18173_v35 = vld [vmem:[#allocation87_spill] sm:$0xff]  ;;  %v18175_v60 = vld [vmem:[#allocation88_spill] sm:$0xff]  ;;  %v18181_v12 = vld [vmem:[#allocation101_spill] sm:$0xff] }
 0x5e9   : > { %v9807_v6 = vsel %vm9790_vm3, %v16307_v24, %v9806_v58  ;;  %v9814_v8 = vsel %vm9790_vm3, %v16347_v5, %v9813_v61  ;;  %v16887_v21 = vsel %vm9794_vm5, %v16237_v4, %v9793_v48  ;;  %v9801_v54 = vsel %vm9792_vm4, %v18173_v35, %v9800_v41  ;;  %v18176_v24 = vld [vmem:[#allocation90_spill] sm:$0xff]  ;;  %v18186_v40 = vld [vmem:[#allocation81_spill] sm:$0xff]  ;;  %v18187_v30 = vld [vmem:[#allocation147_spill] sm:$0xff] }
 0x5ea   : > { %v9808_v47 = vsel %vm9792_vm4, %v18174_v19, %v9807_v6  ;;  %v9815_v25 = vsel %vm9792_vm4, %v16352_v63, %v9814_v8  ;;  %v16897_v36 = vsel %vm9794_vm5, %v18175_v60, %v9801_v54  ;;  %v9817_v37 = vsel %vm9782_vm15, %v18179_v42, %v18178_v39  ;;  %v18188_v59 = vld [vmem:[#allocation97_spill] sm:$0xff]  ;;  %v18189_v61 = vld [vmem:[#allocation103_spill] sm:$0xff]  ;;  %v18192_v54 = vld [vmem:[#allocation98_spill] sm:$0xff] }
 0x5eb   : > { %v16901_v5 = vsel %vm9794_vm5, %v18176_v24, %v9808_v47  ;;  %v16905_v4 = vsel %vm9794_vm5, %v18177_v16, %v9815_v25  ;;  %v9818_v10 = vsel %vm9784_vm0, %v16372_v1, %v9817_v37  ;;  %v9824_v63 = vsel %vm9782_vm15, %v16407_v28, %v16402_v20  ;;  %v18182_v28 = vld [vmem:[#allocation144_spill] sm:$0xff]  ;;  %v18190_v41 = vld [vmem:[#allocation145_spill] sm:$0xff]  ;;  %v18191_v8 = vld [vmem:[#allocation83_spill] sm:$0xff] }
 0x5ec   : > { %v9831_v15 = vsel %vm9782_vm15, %v16447_v23, %v16442_v32  ;;  %v9838_v7 = vsel %vm9782_vm15, %v16487_v26, %v16482_v55  ;;  %v9819_v2 = vsel %vm9786_vm1, %v18180_v17, %v9818_v10  ;;  %v9825_v9 = vsel %vm9784_vm0, %v16412_v46, %v9824_v63  ;;  %v18183_v32 = vld [vmem:[#allocation146_spill] sm:$0xff]  ;;  %v18193_v47 = vld [vmem:[#allocation104_spill] sm:$0xff]  ;;  %v18196_v42 = vld [vmem:[#allocation99_spill] sm:$0xff] }
 0x5ed   : > { %v9832_v1 = vsel %vm9784_vm0, %v16452_v14, %v9831_v15  ;;  %v9839_v20 = vsel %vm9784_vm0, %v18181_v12, %v9838_v7  ;;  %v9820_v57 = vsel %vm9788_vm2, %v18182_v28, %v9819_v2  ;;  %v9826_v23 = vsel %vm9786_vm1, %v18183_v32, %v9825_v9  ;;  %v18185_v26 = vld [vmem:[#allocation102_spill] sm:$0xff]  ;;  %v18195_v16 = vld [vmem:[#allocation84_spill] sm:$0xff]  ;;  %v18197_v10 = vld [vmem:[#allocation105_spill] sm:$0xff] }
 0x5ee   : > { %v9833_v55 = vsel %vm9786_vm1, %v18184_v51, %v9832_v1  ;;  %v9840_v56 = vsel %vm9786_vm1, %v18185_v26, %v9839_v20  ;;  %v9821_v46 = vsel %vm9790_vm3, %v18186_v40, %v9820_v57  ;;  %v9827_v14 = vsel %vm9788_vm2, %v18187_v30, %v9826_v23  ;;  %v18194_v60 = vld [vmem:[#allocation82_spill] sm:$0xff]  ;;  %v18198_v15 = vld [vmem:[#allocation95_spill] sm:$0xff]  ;;  %v18199_v17 = vld [vmem:[#allocation100_spill] sm:$0xff] }
 0x5ef   : > { %v9834_v58 = vsel %vm9788_vm2, %v18188_v59, %v9833_v55  ;;  %v9841_v48 = vsel %vm9788_vm2, %v18189_v61, %v9840_v56  ;;  %v9822_v6 = vsel %vm9792_vm4, %v18190_v41, %v9821_v46  ;;  %v9828_v35 = vsel %vm9790_vm3, %v18191_v8, %v9827_v14  ;;  %v18200_v9 = vld [vmem:[#allocation106_spill] sm:$0xff]  ;;  %v18201_v12 = vld [vmem:[#allocation107_spill] sm:$0xff]  ;;  %v18202_v20 = vld [vmem:[#allocation108_spill] sm:$0xff] }
 0x5f0   : > { %v9835_v19 = vsel %vm9790_vm3, %v18192_v54, %v9834_v58  ;;  %v9842_v25 = vsel %vm9790_vm3, %v18193_v47, %v9841_v48  ;;  %v16955_v24 = vsel %vm9794_vm5, %v18194_v60, %v9822_v6  ;;  %v9829_v39 = vsel %vm9792_vm4, %v18195_v16, %v9828_v35  ;;  %v18203_v57 = vld [vmem:[#allocation109_spill] sm:$0xff]  ;;  %v18204_v23 = vld [vmem:[#allocation115_spill] sm:$0xff]  ;;  %v18205_v51 = vld [vmem:[#allocation116_spill] sm:$0xff] }
 0x5f1   : > { %v9836_v37 = vsel %vm9792_vm4, %v18196_v42, %v9835_v19  ;;  %v9843_v63 = vsel %vm9792_vm4, %v18197_v10, %v9842_v25  ;;  %v16965_v7 = vsel %vm9794_vm5, %v18198_v15, %v9829_v39  ;;  %v9845_v28 = vsel %vm9782_vm15, %v18202_v20, %v18201_v12  ;;  %v18206_v26 = vld [vmem:[#allocation123_spill] sm:$0xff]  ;;  %v18207_v56 = vld [vmem:[#allocation61_spill] sm:$0xff]  ;;  %v18210_v59 = vld [vmem:[#allocation110_spill] sm:$0xff] }
 0x5f2   : > { %v16969_v2 = vsel %vm9794_vm5, %v18199_v17, %v9836_v37  ;;  %v16973_v1 = vsel %vm9794_vm5, %v18200_v9, %v9843_v63  ;;  %v9846_v32 = vsel %vm9784_vm0, %v18203_v57, %v9845_v28  ;;  %v9852_v55 = vsel %vm9782_vm15, %v18205_v51, %v18204_v23  ;;  %v18208_v46 = vld [vmem:[#allocation127_spill] sm:$0xff]  ;;  %v18209_v30 = vld [vmem:[#allocation65_spill] sm:$0xff]  ;;  %v18212_v41 = vld [vmem:[#allocation62_spill] sm:$0xff] }
 0x5f3   : > { %v9859_v40 = vsel %vm9782_vm15, %v18207_v56, %v18206_v26  ;;  %v9866_v14 = vsel %vm9782_vm15, %v18209_v30, %v18208_v46  ;;  %v9847_v58 = vsel %vm9786_vm1, %v18210_v59, %v9846_v32  ;;  %v18211_v61 = vld [vmem:[#allocation117_spill] sm:$0xff]  ;;  %v18213_v8 = vld [vmem:[#allocation66_spill] sm:$0xff]  ;;  %v18214_v54 = vld [vmem:[#allocation111_spill] sm:$0xff] }
 0x5f4   : > { %v9853_v48 = vsel %vm9784_vm0, %v18211_v61, %v9852_v55  ;;  %v9860_v6 = vsel %vm9784_vm0, %v18212_v41, %v9859_v40  ;;  %v9867_v35 = vsel %vm9784_vm0, %v18213_v8, %v9866_v14  ;;  %v9848_v19 = vsel %vm9788_vm2, %v18214_v54, %v9847_v58  ;;  %v18215_v47 = vld [vmem:[#allocation118_spill] sm:$0xff]  ;;  %v18216_v60 = vld [vmem:[#allocation124_spill] sm:$0xff]  ;;  %v18219_v63 = vld [vmem:[#allocation119_spill] sm:$0xff] }
 0x5f5   : > { %v9854_v25 = vsel %vm9786_vm1, %v18215_v47, %v9853_v48  ;;  %v9861_v16 = vsel %vm9786_vm1, %v18216_v60, %v9860_v6  ;;  %v18217_v39 = vld [vmem:[#allocation128_spill] sm:$0xff]  ;;  %v18220_v17 = vld [vmem:[#allocation63_spill] sm:$0xff]  ;;  %v18222_v28 = vld [vmem:[#allocation113_spill] sm:$0xff] }
 0x5f6   : > { %v9868_v42 = vsel %vm9786_vm1, %v18217_v39, %v9867_v35  ;;  %v18218_v37 = vld [vmem:[#allocation112_spill] sm:$0xff]  ;;  %v9855_v15 = vsel %vm9788_vm2, %v18219_v63, %v9854_v25  ;;  %v9862_v9 = vsel %vm9788_vm2, %v18220_v17, %v9861_v16  ;;  %v18221_v12 = vld [vmem:[#allocation67_spill] sm:$0xff]  ;;  %v18224_v51 = vld [vmem:[#allocation125_spill] sm:$0xff]  ;;  %v9887_v63 = vsel %vm9782_vm15, %v16767_v33, %v16762_v27 }
 0x5f7   : > { %v9849_v10 = vsel %vm9790_vm3, %v18218_v37, %v9848_v19  ;;  %v9869_v20 = vsel %vm9788_vm2, %v18221_v12, %v9868_v42  ;;  %v18223_v32 = vld [vmem:[#allocation120_spill] sm:$0xff]  ;;  %v9863_v55 = vsel %vm9790_vm3, %v18224_v51, %v9862_v9  ;;  %v18225_v26 = vld [vmem:[#allocation129_spill] sm:$0xff]  ;;  %v18226_v40 = vld [vmem:[#allocation114_spill] sm:$0xff] }
 0x5f8   : > { %v9850_v57 = vsel %vm9792_vm4, %v18222_v28, %v9849_v10  ;;  %v9856_v23 = vsel %vm9790_vm3, %v18223_v32, %v9855_v15  ;;  %v9870_v56 = vsel %vm9790_vm3, %v18225_v26, %v9869_v20  ;;  %v18227_v30 = vld [vmem:[#allocation121_spill] sm:$0xff]  ;;  %v18228_v59 = vld [vmem:[#allocation64_spill] sm:$0xff]  ;;  %v18230_v41 = vld [vmem:[#allocation122_spill] sm:$0xff]  ;;  %v9894_v15 = vsel %vm9782_vm15, %v16807_v31, %v16802_v18 }
 0x5f9   : > { %v9851_v46 = vsel %vm9794_vm5, %v18226_v40, %v9850_v57  ;;  %v9857_v14 = vsel %vm9792_vm4, %v18227_v30, %v9856_v23  ;;  %v9864_v58 = vsel %vm9792_vm4, %v18228_v59, %v9863_v55  ;;  %v18229_v61 = vld [vmem:[#allocation68_spill] sm:$0xff]  ;;  %v18231_v8 = vld [vmem:[#allocation126_spill] sm:$0xff]  ;;  %v18233_v47 = vld [vmem:[#allocation131_spill] sm:$0xff]  ;;  %v9888_v20 = vsel %vm9784_vm0, %v16772_v0, %v9887_v63 }
 0x5fa   : > { %v9871_v48 = vsel %vm9792_vm4, %v18229_v61, %v9870_v56  ;;  %v9858_v6 = vsel %vm9794_vm5, %v18230_v41, %v9857_v14  ;;  %v9865_v35 = vsel %vm9794_vm5, %v18231_v8, %v9864_v58  ;;  %v18232_v54 = vld [vmem:[#allocation130_spill] sm:$0xff]  ;;  %v18234_v25 = vld [vmem:[#allocation69_spill] sm:$0xff]  ;;  %v18235_v16 = vld [vmem:[#allocation72_spill] sm:$0xff]  ;;  %v9895_v28 = vsel %vm9784_vm0, %v16812_v3, %v9894_v15 }
 0x5fb   : > { %v9872_v19 = vsel %vm9794_vm5, %v18232_v54, %v9871_v48  ;;  %v9873_v60 = vsel %vm9782_vm15, %v18234_v25, %v18233_v47  ;;  %v18236_v42 = vld [vmem:[#allocation135_spill] sm:$0xff]  ;;  %v18238_v17 = vld [vmem:[#allocation132_spill] sm:$0xff]  ;;  %v18239_v57 = vld [vmem:[#allocation73_spill] sm:$0xff]  ;;  %v9889_v33 = vsel %vm9786_vm1, %v16777_v13, %v9888_v20  ;;  %v9896_v18 = vsel %vm9786_vm1, %v16817_v43, %v9895_v28 }
 0x5fc   : > { %v9874_v39 = vsel %vm9784_vm0, %v18235_v16, %v9873_v60  ;;  %v18237_v37 = vld [vmem:[#allocation75_spill] sm:$0xff]  ;;  %v18240_v31 = vld [vmem:[#allocation133_spill] sm:$0xff]  ;;  %v9890_v3 = vsel %vm9788_vm2, %v16782_v38, %v9889_v33  ;;  %v9897_v23 = vsel %vm9788_vm2, %v16822_v62, %v9896_v18  ;;  %v18241_v51 = vld [vmem:[#allocation74_spill] sm:$0xff]  ;;  %v9901_v14 = vpack.c.b16 %v16887_v21, %v16887_v21 }
 0x5fd   : > { %v9880_v10 = vsel %vm9782_vm15, %v18237_v37, %v18236_v42  ;;  %v9875_v9 = vsel %vm9786_vm1, %v18238_v17, %v9874_v39  ;;  %v9891_v43 = vsel %vm9790_vm3, %v16787_v53, %v9890_v3  ;;  %v9898_v55 = vsel %vm9790_vm3, %v16827_v45, %v9897_v23  ;;  %v18242_v26 = vld [vmem:[#allocation134_spill] sm:$0xff]  ;;  %v18244_v30 = vld [vmem:[#allocation136_spill] sm:$0xff] }
 0x5fe   : > { %v9881_v12 = vsel %vm9784_vm0, %v16732_v29, %v9880_v10  ;;  %v9876_v32 = vsel %vm9788_vm2, %v18239_v57, %v9875_v9  ;;  %v9892_v62 = vsel %vm9792_vm4, %v16792_v11, %v9891_v43  ;;  %v9899_v56 = vsel %vm9792_vm4, %v16832_v22, %v9898_v55  ;;  %v18243_v40 = vld [vmem:[#allocation70_spill] sm:$0xff]  ;;  %9933 = vst [vmem:[#allocation11] sm:$0xf] %v9901_v14 }
 0x5ff   : > { %v9882_v27 = vsel %vm9786_vm1, %v16737_v44, %v9881_v12  ;;  %v9877_v29 = vsel %vm9790_vm3, %v18240_v31, %v9876_v32  ;;  %v9893_v53 = vsel %vm9794_vm5, %v18244_v30, %v9892_v62  ;;  %v9900_v45 = vsel %vm9794_vm5, %v16837_v34, %v9899_v56 }
 0x600   : > { %v9883_v0 = vsel %vm9788_vm2, %v16742_v50, %v9882_v27  ;;  %v9878_v44 = vsel %vm9792_vm4, %v18241_v51, %v9877_v29  ;;  %v9903_v11 = vpack.c.b16 %v16901_v5, %v16901_v5  ;;  %v9904_v22 = vpack.c.b16 %v16905_v4, %v16905_v4 }
 0x601   : > { %v9884_v13 = vsel %vm9790_vm3, %v16747_v49, %v9883_v0  ;;  %v9879_v50 = vsel %vm9794_vm5, %v18242_v26, %v9878_v44  ;;  %v9905_v59 = vpack.c.b16 %v16955_v24, %v16955_v24  ;;  %v9906_v58 = vpack.c.b16 %v16965_v7, %v16965_v7 }
 0x602   : > { %v9885_v38 = vsel %vm9792_vm4, %v16752_v52, %v9884_v13  ;;  %v9902_v52 = vpack.c.b16 %v16897_v36, %v16897_v36  ;;  %v9907_v34 = vpack.c.b16 %v16969_v2, %v16969_v2  ;;  %v9908_v21 = vpack.c.b16 %v16973_v1, %v16973_v1  ;;  %9935 = vst [vmem:[#allocation11 + $0x8] sm:$0xf] %v9903_v11 }
 0x603   : > { %v9886_v49 = vsel %vm9794_vm5, %v18243_v40, %v9885_v38  ;;  %v9909_v61 = vpack.c.b16 %v9851_v46, %v9851_v46  ;;  %v9910_v36 = vpack.c.b16 %v9858_v6, %v9858_v6  ;;  %v9911_v48 = vpack.c.b16 %v9865_v35, %v9865_v35  ;;  %9936 = vst [vmem:[#allocation11 + $0xc] sm:$0xf] %v9904_v22 }
 0x604   : > { %v9912_v5 = vpack.c.b16 %v9872_v19, %v9872_v19  ;;  %v9913_v41 = vpack.c.b16 %v9879_v50, %v9879_v50  ;;  %9934 = vst [vmem:[#allocation11 + $0x4] sm:$0xf] %v9902_v52  ;;  %9937 = vst [vmem:[#allocation11 + $0x10] sm:$0xf] %v9905_v59  ;;  %v9914_v4 = vpack.c.b16 %v9886_v49, %v9886_v49 }
 0x605   : > { %v9915_v24 = vpack.c.b16 %v9893_v53, %v9893_v53  ;;  %v9916_v8 = vpack.c.b16 %v9900_v45, %v9900_v45  ;;  %9938 = vst [vmem:[#allocation11 + $0x14] sm:$0xf] %v9906_v58  ;;  %9939 = vst [vmem:[#allocation11 + $0x18] sm:$0xf] %v9907_v34 }
 0x606   : > { %9940 = vst [vmem:[#allocation11 + $0x1c] sm:$0xf] %v9908_v21  ;;  %9941 = vst [vmem:[#allocation11 + $0x20] sm:$0xf] %v9909_v61 }
 0x607   : > { %9942 = vst [vmem:[#allocation11 + $0x24] sm:$0xf] %v9910_v36  ;;  %9943 = vst [vmem:[#allocation11 + $0x28] sm:$0xf] %v9911_v48 }
 0x608   : > { %9944 = vst [vmem:[#allocation11 + $0x2c] sm:$0xf] %v9912_v5  ;;  %9945 = vst [vmem:[#allocation11 + $0x30] sm:$0xf] %v9913_v41 }
 0x609   : > { %9946 = vst [vmem:[#allocation11 + $0x34] sm:$0xf] %v9914_v4  ;;  %9947 = vst [vmem:[#allocation11 + $0x38] sm:$0xf] %v9915_v24 }
 0x60a   : > { %9948 = vst [vmem:[#allocation11 + $0x3c] sm:$0xf] %v9916_v8 }
 0x60b PF: > { %p17113_p8 = scmp.eq.s32.totalorder %s10060_s18, 1  ;;  %s12567_s10 = smov [#allocation11]  }
 0x60c   : > { %s9965_s11 = sshll.u32 %s12567_s10, 4  ;;  %s9966_s11 = int_to_ptr.vmem [resolvable:$true] %s9965_s11 }
 0x60d   : > { %s12497_s12 = scalar_lea.vmem %s9966_s11, 1024  ;;  %s12503_s13 = scalar_lea.vmem %s9966_s11, 2048 }
 0x60e   : > { %p12498_p9 = scmp.ne.s32.totalorder %s9966_s11, %s12497_s12  ;;  %p12504_p1 = scmp.lt.s32.totalorder %s9966_s11, %s9966_s11 }
 0x60f   : > { %p12505_p2 = scmp.lt.s32.totalorder %s12503_s13, %s12497_s12 }
 0x610   : > { %p12499_p13 = pnand %p12498_p9, %p17113_p8 }
 0x611   : > { %p12506_p5 = por %p12505_p2, %p12504_p1 }
 0x612   : > { %p12500_p0 = pneg %p12499_p13 }
 0x614   : > { %p12507_p10 = pnand %p12506_p5, %p12500_p0 }
 0x616   : > { %12510 = shalt.err (!%p12507_p10)
}
 0x617   : > { %s12511_s23 = scalar_lea.hbm %s17152_s4, 1024 }
 0x618   : > { %p12512_p11 = scmp.ne.s32.totalorder %s17152_s4, %s12511_s23  ;;  %p12517_p4 = scmp.lt.u32.totalorder %s12511_s23, %s17152_s4 }
 0x61a   : > { %p12513_p3 = pnand %p12512_p11, %p17113_p8 }
 0x61c   : > { %p12514_p6 = pneg %p12513_p3 }
 0x61e   : > { %p12519_p12 = pnand %p12517_p4, %p12514_p6 }
 0x620   : > { %12522 = shalt.err (!%p12519_p12)
}
 0x621   : > { %s12568_s24 = smov 64   ;;  %s12569_s29 = smov 4  }
 0x622   : > { %12166 = dma.vmem_to_hbm [thread:$0]  (%p17113_p8), %s9966_s11, 1024, %s17152_s4, [#allocation8], %s12568_s24, %s12568_s24, %s12569_s29  }
 0x623 PF: > { %p12188_p7 = scmp.eq.s32.totalorder %s10061_s19, 1  ;;  %p18246_p9 = scmp.ge.s32.totalorder %s12557_s17, 2 }
 0x625   : > { %p12178_p13 = pnand %p12188_p7, %p18246_p9 }
 0x627   : > { %12544 = dma.done.wait (!%p12178_p13), [#allocation8], 1024  }
 0x628   : > { %12546 = vsyncadd (!%p12178_p13), [#allocation8], 4294966272  ;;  %s21_s17 = sadd.s32 1, %s12557_s17   ;;  %s18247_s15 = smov %s12553_s16 }
 0x629   : > { %p18_p0 = scmp.ge.s32.totalorder %s21_s17, 4   ;;  %s18248_s16 = smov %s18250_s20 }
 0x62b   :  { %20 = sbr.rel (!%p18_p0) target bundleno = 6 (0x6), region = 108 }
 0x632   :  { %9986 = vsyncpa [#allocation7], 1 }
 0x633   :  { %9988 = vsyncpa [#allocation7 + $0x1], 1 }
 0x634   :  { %9989 = vsyncpa [#allocation10], 1 }
 0x635   :  { %9990 = vsyncpa [#allocation8], 1 }
 0x636   :  { %9992 = vsyncpa [#allocation8 + $0x1], 1 }

</bundles_post_ra>
